<compile_context>
chip_gen: v5e
topology: v5e:2x2
jax: 0.10.0
libtpu: 0.0.40
codegen_flags: <defaults>
</compile_context>

<pallas_src>
import jax
import jax.numpy as jnp
from jax.experimental import pallas as pl
from jax.experimental.pallas import tpu as pltpu


# ----------------------------------------------------------------------------
# Kernel: grid=(N1//tn,) over layer-1 output-column tiles.
#   step j:  h1 = relu(x @ W1[:, j] + b1[:, j]);  acc2 += h1 @ W2[j, :]
#   last j:  h2 = relu(acc2 + b2); layers 3-5; write output.
# ----------------------------------------------------------------------------
def mlp_kernel(x_ref,
               w1_ref, b1_ref,
               w2_ref, b2_ref,
               w3_ref, b3_ref,
               w4_ref, b4_ref,
               w5_ref, b5_ref,
               o_ref,
               acc_ref):
    j = pl.program_id(0)

    @pl.when(j == 0)
    def _init():
        acc_ref[...] = jnp.zeros_like(acc_ref)

    # Layer-1 column tile (bf16 MXU, f32 accumulation) + bias + ReLU.
    x_bf16 = x_ref[...].astype(jnp.bfloat16)
    h1 = jnp.dot(x_bf16, w1_ref[...], preferred_element_type=jnp.float32)
    h1 = jnp.maximum(h1 + b1_ref[...], 0.0)

    # Layer-2 partial sum over this tile of h1 (== this row tile of W2).
    acc_ref[...] += jnp.dot(h1.astype(jnp.bfloat16), w2_ref[...],
                            preferred_element_type=jnp.float32)

    @pl.when(j == pl.num_programs(0) - 1)
    def _epilogue():
        h = jnp.maximum(acc_ref[...] + b2_ref[...], 0.0)
        h = jnp.maximum(
            jnp.dot(h, w3_ref[...], preferred_element_type=jnp.float32)
            + b3_ref[...], 0.0)
        h = jnp.maximum(
            jnp.dot(h, w4_ref[...], preferred_element_type=jnp.float32)
            + b4_ref[...], 0.0)
        o_ref[...] = (
            jnp.dot(h, w5_ref[...], preferred_element_type=jnp.float32)
            + b5_ref[...]
        ).astype(o_ref.dtype)


def _resident_spec(shape):
    # Same block for every grid step -> stays resident in VMEM, fetched once.
    return pl.BlockSpec(shape, lambda j: tuple(0 for _ in shape))


def mlp_forward(x, params, *, tn=640):
    """params = [(w1, b1), ..., (w5, b5)] with w: (in, out), b: (1, out)."""
    batch, d_in = x.shape
    (w1, b1), (w2, b2), (w3, b3), (w4, b4), (w5, b5) = params
    n1 = w1.shape[1]
    n2 = w2.shape[1]
    n_label = w5.shape[1]
    assert w1.shape[0] == d_in, (w1.shape, d_in)
    assert n1 % tn == 0 and tn % 128 == 0, (n1, tn)
    n_steps = n1 // tn

    # Cast the two big weights to bf16: halves the HBM bytes this kernel
    # streams (the dominant cost). Accumulation stays f32 in the kernel.
    w1 = w1.astype(jnp.bfloat16)
    w2 = w2.astype(jnp.bfloat16)

    in_specs = [
        _resident_spec(x.shape),                          # x (80 KB, resident)
        pl.BlockSpec((d_in, tn), lambda j: (0, j)),       # W1 column tile
        pl.BlockSpec((1, tn), lambda j: (0, j)),          # b1 column tile
        pl.BlockSpec((tn, n2), lambda j: (j, 0)),         # W2 row tile
        _resident_spec(b2.shape),                         # layers 2-5 residents
        _resident_spec(w3.shape), _resident_spec(b3.shape),
        _resident_spec(w4.shape), _resident_spec(b4.shape),
        _resident_spec(w5.shape), _resident_spec(b5.shape),
    ]
    flat_args = [x, w1, b1, w2, b2, w3, b3, w4, b4, w5, b5]

    out_shape = jax.ShapeDtypeStruct((batch, n_label), jnp.float32)

    # Advisory cost for XLA's scheduler (bf16 bytes for W1/W2, f32 elsewhere).
    dims = [d_in, n1, n2, w4.shape[0], w5.shape[0], n_label]
    flops = 2 * batch * sum(a * b for a, b in zip(dims[:-1], dims[1:]))
    bytes_accessed = (4 * x.size
                      + 2 * (w1.size + w2.size)
                      + 4 * (b1.size + b2.size + w3.size + b3.size
                             + w4.size + b4.size + w5.size + b5.size)
                      + 4 * batch * n_label)
    cost = pl.CostEstimate(flops=flops, transcendentals=0,
                           bytes_accessed=bytes_accessed)

    return pl.pallas_call(
        mlp_kernel,
        out_shape=out_shape,
        grid_spec=pltpu.PrefetchScalarGridSpec(
            num_scalar_prefetch=0,
            grid=(n_steps,),
            in_specs=in_specs,
            out_specs=_resident_spec((batch, n_label)),
            scratch_shapes=[pltpu.VMEM((batch, n2), jnp.float32)],
        ),
        compiler_params=pltpu.CompilerParams(
            # Carried accumulator across the grid -> sequential axis.
            dimension_semantics=("arbitrary",),
            # Real footprint ~10 MB with double buffering; 32 MiB is safe on
            # v5e/v6e/v7x alike.
            vmem_limit_bytes=32 * 1024 * 1024,
        ),
        cost_estimate=cost,
    )(*flat_args)


# ----------------------------------------------------------------------------
# Deterministic parameter construction (PyTorch nn.Linear default init style:
# U(-1/sqrt(fan_in), 1/sqrt(fan_in)) for both weight and bias).
# ----------------------------------------------------------------------------
def make_params(key, dims, dtype=jnp.float32):
    params = []
    for d_in, d_out in zip(dims[:-1], dims[1:]):
        key, kw, kb = jax.random.split(key, 3)
        bound = 1.0 / jnp.sqrt(d_in)
        w = jax.random.uniform(kw, (d_in, d_out), jnp.float32, -bound, bound)
        b = jax.random.uniform(kb, (1, d_out), jnp.float32, -bound, bound)
        params.append((w.astype(dtype), b.astype(dtype)))
    return params


def reference_forward(x, params):
    """Matches the kernel's numerics: layers 1-2 use bf16 inputs/weights with
    f32 accumulation; layers 3-5 are pure f32."""
    (w1, b1), (w2, b2), (w3, b3), (w4, b4), (w5, b5) = params
    h = jnp.dot(x.astype(jnp.bfloat16), w1.astype(jnp.bfloat16),
                preferred_element_type=jnp.float32) + b1
    h = jnp.maximum(h, 0.0)
    h = jnp.dot(h.astype(jnp.bfloat16), w2.astype(jnp.bfloat16),
                preferred_element_type=jnp.float32) + b2
    h = jnp.maximum(h, 0.0)
    h = jnp.maximum(h @ w3 + b3, 0.0)
    h = jnp.maximum(h @ w4 + b4, 0.0)
    return h @ w5 + b5


if __name__ == "__main__":
    n_label = 6
    batch = 8
    dims = (2560, 1280, 640, 160, 40, n_label)

    key = jax.random.PRNGKey(0)
    key, kx = jax.random.split(key)
    x = jax.random.normal(kx, (batch, 2560), jnp.float32)
    params = make_params(key, dims)

    out = mlp_forward(x, params)
    out = jax.block_until_ready(out)

    ref = reference_forward(x, params)
    assert out.shape == (batch, n_label), out.shape
    assert jnp.allclose(out, ref, atol=2e-2, rtol=2e-2), \
        float(jnp.max(jnp.abs(out - ref)))

    print("KERNEL_OK")
</pallas_src>

<mosaic_0001>
module attributes {stable_mosaic.version = 11 : i64} {
  func.func @mlp_kernel(%arg0: i32, %arg1: memref<8x2560xf32, #tpu.memory_space<vmem>>, %arg2: memref<2560x640xbf16, #tpu.memory_space<vmem>>, %arg3: memref<1x640xf32, #tpu.memory_space<vmem>>, %arg4: memref<640x640xbf16, #tpu.memory_space<vmem>>, %arg5: memref<1x640xf32, #tpu.memory_space<vmem>>, %arg6: memref<640x160xf32, #tpu.memory_space<vmem>>, %arg7: memref<1x160xf32, #tpu.memory_space<vmem>>, %arg8: memref<160x40xf32, #tpu.memory_space<vmem>>, %arg9: memref<1x40xf32, #tpu.memory_space<vmem>>, %arg10: memref<40x6xf32, #tpu.memory_space<vmem>>, %arg11: memref<1x6xf32, #tpu.memory_space<vmem>>, %arg12: memref<8x6xf32, #tpu.memory_space<vmem>>, %arg13: memref<8x640xf32, #tpu.memory_space<vmem>>) attributes {dimension_semantics = [#tpu.dimension_semantics<arbitrary>], iteration_bounds = array<i64: 2>, scalar_prefetch = 0 : i64, scratch_operands = 1 : i64, tpu.core_type = #tpu.core_type<tc>, window_params = [{pipeline_mode = #tpu.pipeline_mode<synchronous>, transform_indices = @transform_0, window_bounds = array<i64: 8, 2560>}, {transform_indices = @transform_1, window_bounds = array<i64: 2560, 640>}, {transform_indices = @transform_2, window_bounds = array<i64: 1, 640>}, {transform_indices = @transform_3, window_bounds = array<i64: 640, 640>}, {pipeline_mode = #tpu.pipeline_mode<synchronous>, transform_indices = @transform_4, window_bounds = array<i64: 1, 640>}, {pipeline_mode = #tpu.pipeline_mode<synchronous>, transform_indices = @transform_5, window_bounds = array<i64: 640, 160>}, {pipeline_mode = #tpu.pipeline_mode<synchronous>, transform_indices = @transform_6, window_bounds = array<i64: 1, 160>}, {pipeline_mode = #tpu.pipeline_mode<synchronous>, transform_indices = @transform_7, window_bounds = array<i64: 160, 40>}, {pipeline_mode = #tpu.pipeline_mode<synchronous>, transform_indices = @transform_8, window_bounds = array<i64: 1, 40>}, {pipeline_mode = #tpu.pipeline_mode<synchronous>, transform_indices = @transform_9, window_bounds = array<i64: 40, 6>}, {pipeline_mode = #tpu.pipeline_mode<synchronous>, transform_indices = @transform_10, window_bounds = array<i64: 1, 6>}, {pipeline_mode = #tpu.pipeline_mode<synchronous>, transform_indices = @transform_11, window_bounds = array<i64: 8, 6>}]} {
    %c0_i32 = arith.constant 0 : i32
    %0 = arith.cmpi eq, %arg0, %c0_i32 : i32
    %1 = arith.extui %0 : i1 to i32
    %c0_i32_0 = arith.constant 0 : i32
    %2 = arith.cmpi ne, %1, %c0_i32_0 : i32
    scf.if %2 {
      %cst_15 = arith.constant 0.000000e+00 : f32
      %21 = vector.broadcast %cst_15 : f32 to vector<8x640xf32>
      %c0_16 = arith.constant 0 : index
      %c0_17 = arith.constant 0 : index
      %22 = vector.load %arg13[%c0_16, %c0_17] : memref<8x640xf32, #tpu.memory_space<vmem>>, vector<8x640xf32>
      tpu.vector_store %arg13[%c0_16, %c0_17], %21 {strides = array<i32>} : memref<8x640xf32, #tpu.memory_space<vmem>>, vector<8x640xf32>,
    } else {
    }
    %c0 = arith.constant 0 : index
    %c0_1 = arith.constant 0 : index
    %3 = vector.load %arg1[%c0, %c0_1] : memref<8x2560xf32, #tpu.memory_space<vmem>>, vector<8x2560xf32>
    %4 = arith.truncf %3 : vector<8x2560xf32> to vector<8x2560xbf16>
    %c0_2 = arith.constant 0 : index
    %c0_3 = arith.constant 0 : index
    %5 = vector.load %arg2[%c0_2, %c0_3] : memref<2560x640xbf16, #tpu.memory_space<vmem>>, vector<2560x640xbf16>
    %cst = arith.constant dense<0.000000e+00> : vector<8x640xf32>
    %6 = tpu.matmul %4, %5, %cst {dimension_numbers = #tpu.dot_dimension_numbers<[1], [0], [0], [1], [0, 0, 1, 1], [], []>} : vector<8x2560xbf16>, vector<2560x640xbf16>, vector<8x640xf32> -> vector<8x640xf32>
    %c0_4 = arith.constant 0 : index
    %c0_5 = arith.constant 0 : index
    %7 = vector.load %arg3[%c0_4, %c0_5] : memref<1x640xf32, #tpu.memory_space<vmem>>, vector<1x640xf32>
    %8 = vector.broadcast %7 : vector<1x640xf32> to vector<8x640xf32>
    %9 = arith.addf %6, %8 : vector<8x640xf32>
    %cst_6 = arith.constant 0.000000e+00 : f32
    %10 = vector.broadcast %cst_6 : f32 to vector<8x640xf32>
    %11 = arith.maximumf %9, %10 : vector<8x640xf32>
    %c0_7 = arith.constant 0 : index
    %c0_8 = arith.constant 0 : index
    %12 = vector.load %arg13[%c0_7, %c0_8] : memref<8x640xf32, #tpu.memory_space<vmem>>, vector<8x640xf32>
    %13 = arith.truncf %11 : vector<8x640xf32> to vector<8x640xbf16>
    %c0_9 = arith.constant 0 : index
    %c0_10 = arith.constant 0 : index
    %14 = vector.load %arg4[%c0_9, %c0_10] : memref<640x640xbf16, #tpu.memory_space<vmem>>, vector<640x640xbf16>
    %cst_11 = arith.constant dense<0.000000e+00> : vector<8x640xf32>
    %15 = tpu.matmul %13, %14, %cst_11 {dimension_numbers = #tpu.dot_dimension_numbers<[1], [0], [0], [1], [0, 0, 1, 1], [], []>} : vector<8x640xbf16>, vector<640x640xbf16>, vector<8x640xf32> -> vector<8x640xf32>
    %16 = arith.addf %12, %15 : vector<8x640xf32>
    %c0_12 = arith.constant 0 : index
    %c0_13 = arith.constant 0 : index
    %17 = vector.load %arg13[%c0_12, %c0_13] : memref<8x640xf32, #tpu.memory_space<vmem>>, vector<8x640xf32>
    tpu.vector_store %arg13[%c0_12, %c0_13], %16 {strides = array<i32>} : memref<8x640xf32, #tpu.memory_space<vmem>>, vector<8x640xf32>,
    %c1_i32 = arith.constant 1 : i32
    %18 = arith.cmpi eq, %arg0, %c1_i32 : i32
    %19 = arith.extui %18 : i1 to i32
    %c0_i32_14 = arith.constant 0 : i32
    %20 = arith.cmpi ne, %19, %c0_i32_14 : i32
    scf.if %20 {
      %c0_15 = arith.constant 0 : index
      %c0_16 = arith.constant 0 : index
      %21 = vector.load %arg13[%c0_15, %c0_16] : memref<8x640xf32, #tpu.memory_space<vmem>>, vector<8x640xf32>
      %c0_17 = arith.constant 0 : index
      %c0_18 = arith.constant 0 : index
      %22 = vector.load %arg5[%c0_17, %c0_18] : memref<1x640xf32, #tpu.memory_space<vmem>>, vector<1x640xf32>
      %23 = vector.broadcast %22 : vector<1x640xf32> to vector<8x640xf32>
      %24 = arith.addf %21, %23 : vector<8x640xf32>
      %cst_19 = arith.constant 0.000000e+00 : f32
      %25 = vector.broadcast %cst_19 : f32 to vector<8x640xf32>
      %26 = arith.maximumf %24, %25 : vector<8x640xf32>
      %c0_20 = arith.constant 0 : index
      %c0_21 = arith.constant 0 : index
      %27 = vector.load %arg6[%c0_20, %c0_21] : memref<640x160xf32, #tpu.memory_space<vmem>>, vector<640x160xf32>
      %cst_22 = arith.constant dense<0.000000e+00> : vector<8x160xf32>
      %28 = tpu.matmul %26, %27, %cst_22 {dimension_numbers = #tpu.dot_dimension_numbers<[1], [0], [0], [1], [0, 0, 1, 1], [], []>} : vector<8x640xf32>, vector<640x160xf32>, vector<8x160xf32> -> vector<8x160xf32>
      %c0_23 = arith.constant 0 : index
      %c0_24 = arith.constant 0 : index
      %29 = vector.load %arg7[%c0_23, %c0_24] : memref<1x160xf32, #tpu.memory_space<vmem>>, vector<1x160xf32>
      %30 = vector.broadcast %29 : vector<1x160xf32> to vector<8x160xf32>
      %31 = arith.addf %28, %30 : vector<8x160xf32>
      %cst_25 = arith.constant 0.000000e+00 : f32
      %32 = vector.broadcast %cst_25 : f32 to vector<8x160xf32>
      %33 = arith.maximumf %31, %32 : vector<8x160xf32>
      %c0_26 = arith.constant 0 : index
      %c0_27 = arith.constant 0 : index
      %34 = vector.load %arg8[%c0_26, %c0_27] : memref<160x40xf32, #tpu.memory_space<vmem>>, vector<160x40xf32>
      %cst_28 = arith.constant dense<0.000000e+00> : vector<8x40xf32>
      %35 = tpu.matmul %33, %34, %cst_28 {dimension_numbers = #tpu.dot_dimension_numbers<[1], [0], [0], [1], [0, 0, 1, 1], [], []>} : vector<8x160xf32>, vector<160x40xf32>, vector<8x40xf32> -> vector<8x40xf32>
      %c0_29 = arith.constant 0 : index
      %c0_30 = arith.constant 0 : index
      %36 = vector.load %arg9[%c0_29, %c0_30] : memref<1x40xf32, #tpu.memory_space<vmem>>, vector<1x40xf32>
      %37 = vector.broadcast %36 : vector<1x40xf32> to vector<8x40xf32>
      %38 = arith.addf %35, %37 : vector<8x40xf32>
      %cst_31 = arith.constant 0.000000e+00 : f32
      %39 = vector.broadcast %cst_31 : f32 to vector<8x40xf32>
      %40 = arith.maximumf %38, %39 : vector<8x40xf32>
      %c0_32 = arith.constant 0 : index
      %c0_33 = arith.constant 0 : index
      %41 = vector.load %arg10[%c0_32, %c0_33] : memref<40x6xf32, #tpu.memory_space<vmem>>, vector<40x6xf32>
      %cst_34 = arith.constant dense<0.000000e+00> : vector<8x6xf32>
      %42 = tpu.matmul %40, %41, %cst_34 {dimension_numbers = #tpu.dot_dimension_numbers<[1], [0], [0], [1], [0, 0, 1, 1], [], []>} : vector<8x40xf32>, vector<40x6xf32>, vector<8x6xf32> -> vector<8x6xf32>
      %c0_35 = arith.constant 0 : index
      %c0_36 = arith.constant 0 : index
      %43 = vector.load %arg11[%c0_35, %c0_36] : memref<1x6xf32, #tpu.memory_space<vmem>>, vector<1x6xf32>
      %44 = vector.broadcast %43 : vector<1x6xf32> to vector<8x6xf32>
      %45 = arith.addf %42, %44 : vector<8x6xf32>
      %c0_37 = arith.constant 0 : index
      %c0_38 = arith.constant 0 : index
      %46 = vector.load %arg12[%c0_37, %c0_38] : memref<8x6xf32, #tpu.memory_space<vmem>>, vector<8x6xf32>
      tpu.vector_store %arg12[%c0_37, %c0_38], %45 {strides = array<i32>} : memref<8x6xf32, #tpu.memory_space<vmem>>, vector<8x6xf32>,
    } else {
    }
    return
  }
  func.func @transform_0(%arg0: i32) -> (i32, i32) {
    %c0_i32 = arith.constant 0 : i32
    %c0_i32_0 = arith.constant 0 : i32
    %c0_i32_1 = arith.constant 0 : i32
    return %c0_i32, %c0_i32_0 : i32, i32
  }
  func.func @transform_1(%arg0: i32) -> (i32, i32) {
    %c0_i32 = arith.constant 0 : i32
    %c0_i32_0 = arith.constant 0 : i32
    return %c0_i32, %arg0 : i32, i32
  }
  func.func @transform_2(%arg0: i32) -> (i32, i32) {
    %c0_i32 = arith.constant 0 : i32
    %c0_i32_0 = arith.constant 0 : i32
    return %c0_i32, %arg0 : i32, i32
  }
  func.func @transform_3(%arg0: i32) -> (i32, i32) {
    %c0_i32 = arith.constant 0 : i32
    %c0_i32_0 = arith.constant 0 : i32
    return %arg0, %c0_i32 : i32, i32
  }
  func.func @transform_4(%arg0: i32) -> (i32, i32) {
    %c0_i32 = arith.constant 0 : i32
    %c0_i32_0 = arith.constant 0 : i32
    %c0_i32_1 = arith.constant 0 : i32
    return %c0_i32, %c0_i32_0 : i32, i32
  }
  func.func @transform_5(%arg0: i32) -> (i32, i32) {
    %c0_i32 = arith.constant 0 : i32
    %c0_i32_0 = arith.constant 0 : i32
    %c0_i32_1 = arith.constant 0 : i32
    return %c0_i32, %c0_i32_0 : i32, i32
  }
  func.func @transform_6(%arg0: i32) -> (i32, i32) {
    %c0_i32 = arith.constant 0 : i32
    %c0_i32_0 = arith.constant 0 : i32
    %c0_i32_1 = arith.constant 0 : i32
    return %c0_i32, %c0_i32_0 : i32, i32
  }
  func.func @transform_7(%arg0: i32) -> (i32, i32) {
    %c0_i32 = arith.constant 0 : i32
    %c0_i32_0 = arith.constant 0 : i32
    %c0_i32_1 = arith.constant 0 : i32
    return %c0_i32, %c0_i32_0 : i32, i32
  }
  func.func @transform_8(%arg0: i32) -> (i32, i32) {
    %c0_i32 = arith.constant 0 : i32
    %c0_i32_0 = arith.constant 0 : i32
    %c0_i32_1 = arith.constant 0 : i32
    return %c0_i32, %c0_i32_0 : i32, i32
  }
  func.func @transform_9(%arg0: i32) -> (i32, i32) {
    %c0_i32 = arith.constant 0 : i32
    %c0_i32_0 = arith.constant 0 : i32
    %c0_i32_1 = arith.constant 0 : i32
    return %c0_i32, %c0_i32_0 : i32, i32
  }
  func.func @transform_10(%arg0: i32) -> (i32, i32) {
    %c0_i32 = arith.constant 0 : i32
    %c0_i32_0 = arith.constant 0 : i32
    %c0_i32_1 = arith.constant 0 : i32
    return %c0_i32, %c0_i32_0 : i32, i32
  }
  func.func @transform_11(%arg0: i32) -> (i32, i32) {
    %c0_i32 = arith.constant 0 : i32
    %c0_i32_0 = arith.constant 0 : i32
    %c0_i32_1 = arith.constant 0 : i32
    return %c0_i32, %c0_i32_0 : i32, i32
  }
}

</mosaic_0001>

<bundles_post_ra>
// kernel: tpu_custom_call.1
= control target key start
LH: loop header
LB: loop body
LE: loop exit
PB: predicated region body
PF: predicated region fallthrough
CT: control target
= control target key end

     0   :  { %s17962_s0 = inlined_call_operand.hbm [shape: f32[8,2560], index: 0, kind: input, shape index: {}]   ;;  %s17963_s1 = inlined_call_operand.hbm [shape: bf16[2560,1280], index: 1, kind: input, shape index: {}]   ;;  %s17964_s2 = inlined_call_operand.hbm [shape: f32[1,1280], index: 2, kind: input, shape index: {}]   ;;  %s17965_s3 = inlined_call_operand.hbm [shape: bf16[1280,640], index: 3, kind: input, shape index: {}]   ;;  %s17966_s4 = inlined_call_operand.hbm [shape: f32[1,640], index: 4, kind: input, shape index: {}]   ;;  %s17967_s5 = inlined_call_operand.vmem [shape: f32[640,160], index: 5, kind: input, shape index: {}]   ;;  %s17968_s6 = inlined_call_operand.hbm [shape: f32[1,160], index: 6, kind: input, shape index: {}]   ;;  %s17969_s7 = inlined_call_operand.vmem [shape: f32[160,40], index: 7, kind: input, shape index: {}]   ;;  %s17970_s8 = inlined_call_operand.hbm [shape: f32[1,40], index: 8, kind: input, shape index: {}]   ;;  %s17971_s9 = inlined_call_operand.vmem [shape: f32[40,6], index: 9, kind: input, shape index: {}]   ;;  %s17972_s10 = inlined_call_operand.hbm [shape: f32[1,6], index: 10, kind: input, shape index: {}]   ;;  %s17973_s11 = inlined_call_operand.hbm [shape: f32[8,6], index: 11, kind: output, shape index: {}]  }
   0x1   :  { %17979 = sst [smem:[#allocation28_spill]] %s17962_s0 }
   0x2   :  { %17980 = sst [smem:[#allocation29_spill]] %s17966_s4 }
   0x3   :  { %17981 = sst [smem:[#allocation30_spill]] %s17968_s6 }
   0x4   :  { %17982 = sst [smem:[#allocation31_spill]] %s17971_s9 }
   0x5   :  { %17983 = sst [smem:[#allocation32_spill]] %s17973_s11 }
   0x6   :  { %16 = vsyncpa [#allocation4], 0 }
   0x7   :  { %17 = vsyncpa [#allocation7], 0 }
   0x8   :  { %19 = vsyncpa [#allocation7 + $0x1], 0 }
   0x9   :  { %20 = vsyncpa [#allocation10], 0 }
   0xa   :  { %22 = vsyncpa [#allocation10 + $0x1], 0 }
   0xb   :  { %23 = vsyncpa [#allocation13], 0 }
   0xc   :  { %24 = vsyncpa [#allocation16], 0 }
   0xd   :  { %25 = vsyncpa [#allocation5], 0  ;;  %s14864_s17 = smov 0   ;;  %s14866_s18 = smov 0  }
   0xe   :  { %s14868_s19 = smov 0   ;;  %s14870_s20 = smov 0  }
   0xf LB: > { %17984 = sst [smem:[#allocation25_spill]] %s14788_s19  ;;  %s14883_s21 = sadd.s32 4294967295, %s14792_s20   ;;  %s14792_s20 = sphi %s14870_s20, %s18000_s20   ;;  %s14788_s19 = sphi %s14868_s19, %s18002_s19   ;;  %s14784_s18 = sphi %s14866_s18, %s18004_s18   ;;  %s14780_s17 = sphi %s14864_s17, %s18003_s17  }
  0x10   : > { %p72_p0 = scmp.ne.s32.totalorder %s14784_s18, %s14780_s17  ;;  %p73_p1 = scmp.eq.s32.totalorder %s14883_s21, 0 }
  0x11   : > { %p9317_p2 = scmp.ge.s32.totalorder %s14792_s20, 1  ;;  %p303_p3 = scmp.lt.s32.totalorder %s14792_s20, 3 }
  0x12   : > { %p9318_p4 = scmp.ne.s32.totalorder %s14883_s21, 0  ;;  %p14892_p5 = por %p73_p1, %p72_p0 }
  0x13   : > { %s17986_s4 = sld [smem:[#allocation29_spill]]  ;;  %p14899_p6 = pnand %p9317_p2, %p303_p3 }
  0x14   : > { %s14794_s27 = smov [#allocation11]   ;;  %s17989_s6 = sld [smem:[#allocation30_spill]] }
  0x15   : > { %p14378_p7 = pneg %p14899_p6  ;;  %s329_s28 = sshll.u32 %s14794_s27, 4  ;;  %s330_s28 = int_to_ptr.vmem [resolvable:$true] %s329_s28 }
  0x16   : > { %s14795_s14 = smov [#allocation12]   ;;  %s14919_s16 = sadd.s32 1, %s14792_s20  }
  0x17   : > { %p14907_p8 = pnand %p14378_p7, %p73_p1  ;;  %s344_s15 = sshll.u32 %s14795_s14, 4  ;;  %s345_s15 = int_to_ptr.vmem [resolvable:$true] %s344_s15 }
  0x18   : > { %17990 = sst [smem:[#allocation26_spill]] %s14919_s16  ;;  %s56_s17 = ssub.s32 %s14792_s20, %s14919_s16 }
  0x19   : > { %s327_s25 = sshll.u32 %s17986_s4, 4  ;;  %s59_s23 = sadd.s32 1, %s14788_s19  ;;  %s328_s25 = int_to_ptr.hbm [resolvable:$true] %s327_s25 }
  0x1a   : > { %s342_s13 = sshll.u32 %s17989_s6, 4  ;;  %p57_p9 = scmp.eq.s32.totalorder %s56_s17, 0  ;;  %s343_s13 = int_to_ptr.hbm [resolvable:$true] %s342_s13 }
  0x1b   : > { %14384 = dma.hbm_to_vmem [thread:$0]  (!%p14907_p8), %s328_s25, 80, %s330_s28, [#allocation10]  }
  0x1c   : > { %14387 = dma.hbm_to_vmem [thread:$0]  (!%p14907_p8), %s343_s13, 32, %s345_s15, [#allocation13]  }
  0x1d   : > { %p66_p10 = scmp.ne.s32.totalorder %s14788_s19, %s14784_s18  ;;  %p67_p11 = scmp.eq.s32.totalorder %s14792_s20, 0 }
  0x1e   : > { %p14409_p12 = scmp.lt.s32.totalorder %s14792_s20, 2  ;;  %s14933_s30 = sand.u32 1, %s14788_s19  }
  0x1f   : > { %s14929_s24 = scalar_select %p57_p9, %s14788_s19, %s59_s23  }
  0x20   : > { %p68_p13 = por %p67_p11, %p66_p10  ;;  %s14341_s25 = smul.u32 6400, %s14933_s30 }
  0x21   : > { %17991 = sst [smem:[#allocation27_spill]] %s14929_s24  ;;  %s13340_s12 = smul.u32 20, %s14792_s20 }
  0x22   : > { %p14936_p0 = pnand %p14409_p12, %p68_p13  ;;  %s389_s17 = scalar_lea.vmem [#allocation6], %s14341_s25 }
  0x23   : > { %s394_s15 = scalar_lea.hbm %s17963_s1, %s13340_s12  ;;  %s397_s23 = sshll.u32 %s389_s17, 4  ;;  %s398_s23 = int_to_ptr.vmem [resolvable:$true] %s397_s23 }
  0x24   : > { %s395_s4 = sshll.u32 %s394_s15, 4  ;;  %s17993_s0 = sld [smem:[#allocation28_spill]]  ;;  %s396_s4 = int_to_ptr.hbm [resolvable:$true] %s395_s4 }
  0x25   : > { %s17994_s19 = sand.u32 1, %s14792_s20   ;;  %s14526_s11 = sshra.s32 %s396_s4, 4  ;;  %s14527_s11 = int_to_ptr.hbm [resolvable:$true] %s14526_s11 }
  0x26   : > { %s14949_s16 = scalar_lea.sflag [#allocation7], %s17994_s19  ;;  %s14528_s9 = scalar_lea.hbm %s14527_s11, 6400 }
  0x27   : > { %p14529_p2 = scmp.ne.s32.totalorder %s14527_s11, %s14528_s9  ;;  %p14530_p3 = pneg %p14936_p0 }
  0x28   : > { %s14533_s13 = scalar_lea.hbm %s17963_s1, 12800  ;;  %p14534_p10 = scmp.lt.s32.totalorder %s14527_s11, %s17963_s1 }
  0x29   : > { %p14531_p7 = pnand %p14530_p3, %p14529_p2  ;;  %p14535_p11 = scmp.lt.s32.totalorder %s14533_s13, %s14528_s9 }
  0x2a   : > { %s315_s24 = sshll.u32 %s17993_s0, 4  ;;  %s316_s24 = int_to_ptr.hbm [resolvable:$true] %s315_s24 }
  0x2b   : > { %p14532_p9 = pneg %p14531_p7  ;;  %p14536_p12 = por %p14535_p11, %p14534_p10 }
  0x2d   : > { %p14537_p13 = pnand %p14536_p12, %p14532_p9 }
  0x2f   : > { %14540 = shalt.err (!%p14537_p13)
}
  0x30   : > { %s14796_s19 = smov 640   ;;  %s17978_s27 = smov 320  }
  0x31   : > { %s14798_s15 = smov 20   ;;  %s14799_s17 = smov [#allocation3]  }
  0x32   : > { %14397 = dma.hbm_to_vmem [thread:$0]  (!%p14936_p0), %s396_s4, 102400, %s398_s23, %s14949_s16, %s14796_s19, %s17978_s27, %s14798_s15  }
  0x33   : > { %s317_s11 = sshll.u32 %s14799_s17, 4  ;;  %s357_s12 = sshll.u32 %s17970_s8, 4  ;;  %s318_s11 = int_to_ptr.vmem [resolvable:$true] %s317_s11  ;;  %s358_s12 = int_to_ptr.hbm [resolvable:$true] %s357_s12 }
  0x34   : > { %14381 = dma.hbm_to_vmem [thread:$0]  (!%p14907_p8), %s316_s24, 2560, %s318_s11, [#allocation4]  }
  0x35   : > { %s372_s6 = sshll.u32 %s17972_s10, 4  ;;  %s14800_s0 = smov [#allocation14]   ;;  %s373_s6 = int_to_ptr.hbm [resolvable:$true] %s372_s6 }
  0x36   : > { %s359_s4 = sshll.u32 %s14800_s0, 4  ;;  %s14801_s23 = smov [#allocation15]   ;;  %s360_s4 = int_to_ptr.vmem [resolvable:$true] %s359_s4 }
  0x37   : > { %14390 = dma.hbm_to_vmem [thread:$0]  (!%p14907_p8), %s358_s12, 16, %s360_s4, [#allocation13]  }
  0x38   : > { %s374_s19 = sshll.u32 %s14801_s23, 4  ;;  %s14342_s17 = smul.u32 5, %s14933_s30  ;;  %s375_s19 = int_to_ptr.vmem [resolvable:$true] %s374_s19 }
  0x39   : > { %s412_s9 = smul.u32 5, %s14792_s20 }
  0x3a   : > { %14393 = dma.hbm_to_vmem [thread:$0]  (!%p14907_p8), %s373_s6, 16, %s375_s19, [#allocation16]  }
  0x3b   : > { %s415_s11 = scalar_lea.hbm %s17964_s2, %s412_s9  ;;  %s411_s14 = scalar_lea.vmem [#allocation8], %s14342_s17 }
  0x3c   : > { %s417_s13 = sshll.u32 %s415_s11, 4  ;;  %s419_s27 = sshll.u32 %s411_s14, 4  ;;  %s418_s13 = int_to_ptr.hbm [resolvable:$true] %s417_s13  ;;  %s420_s27 = int_to_ptr.vmem [resolvable:$true] %s419_s27 }
  0x3d   : > { %s14646_s0 = sshra.s32 %s418_s13, 4  ;;  %s14653_s6 = scalar_lea.hbm %s17964_s2, 10  ;;  %s14647_s0 = int_to_ptr.hbm [resolvable:$true] %s14646_s0 }
  0x3e   : > { %s14648_s12 = scalar_lea.hbm %s14647_s0, 5  ;;  %p14654_p8 = scmp.lt.s32.totalorder %s14647_s0, %s17964_s2 }
  0x3f   : > { %p14649_p2 = scmp.ne.s32.totalorder %s14647_s0, %s14648_s12  ;;  %p14655_p10 = scmp.lt.s32.totalorder %s14653_s6, %s14648_s12 }
  0x41   : > { %p14651_p7 = pnand %p14649_p2, %p14530_p3  ;;  %p14656_p11 = por %p14655_p10, %p14654_p8 }
  0x43   : > { %p14652_p9 = pneg %p14651_p7 }
  0x45   : > { %p14657_p12 = pnand %p14656_p11, %p14652_p9 }
  0x47   : > { %14660 = shalt.err (!%p14657_p12)
}
  0x48   : > { %14400 = dma.hbm_to_vmem [thread:$0]  (!%p14936_p0), %s418_s13, 80, %s420_s27, %s14949_s16  }
  0x49   : > { %s14343_s17 = smul.u32 1600, %s14933_s30  ;;  %s17995_s4 = sand.u32 1, %s14792_s20  }
  0x4a   : > { %s14410_s9 = smul.u32 1600, %s14792_s20  ;;  %s427_s29 = scalar_lea.sflag [#allocation10], %s17995_s4 }
  0x4b   : > { %s430_s14 = scalar_lea.vmem [#allocation9], %s14343_s17  ;;  %s14683_s27 = scalar_lea.hbm %s17965_s3, 3200 }
  0x4c   : > { %s436_s11 = scalar_lea.hbm %s17965_s3, %s14410_s9  ;;  %s439_s0 = sshll.u32 %s430_s14, 4  ;;  %s440_s0 = int_to_ptr.vmem [resolvable:$true] %s439_s0 }
  0x4d   : > { %s437_s12 = sshll.u32 %s436_s11, 4  ;;  %s438_s12 = int_to_ptr.hbm [resolvable:$true] %s437_s12 }
  0x4e   : > { %s14676_s6 = sshra.s32 %s438_s12, 4  ;;  %s14677_s6 = int_to_ptr.hbm [resolvable:$true] %s14676_s6 }
  0x4f   : > { %s14678_s23 = scalar_lea.hbm %s14677_s6, 1600  ;;  %p14684_p9 = scmp.lt.s32.totalorder %s14677_s6, %s17965_s3 }
  0x50   : > { %p14679_p13 = scmp.ne.s32.totalorder %s14677_s6, %s14678_s23  ;;  %p14685_p8 = scmp.lt.s32.totalorder %s14683_s27, %s14678_s23 }
  0x52   : > { %p14681_p2 = pnand %p14679_p13, %p14530_p3  ;;  %p14686_p10 = por %p14685_p8, %p14684_p9 }
  0x54   : > { %p14682_p7 = pneg %p14681_p2 }
  0x56   : > { %p14687_p11 = pnand %p14686_p10, %p14682_p7 }
  0x58   : > { %14690 = shalt.err (!%p14687_p11)
}
  0x59   : > { %s17996_s20 = smov 320   ;;  %451 = sbr.rel (%p14899_p6) target bundleno = 1844 (0x734), region = 64 }
  0x5a   : > { %14403 = dma.hbm_to_vmem [thread:$0]  (!%p14936_p0), %s438_s12, 25600, %s440_s0, %s427_s29, %s17996_s20, %s17996_s20, %s14798_s15  }
  0x5e   : > { %14751 = dma.done.wait (%p73_p1), [#allocation4], 2560  }
  0x5f   : > { %14753 = vsyncadd (%p73_p1), [#allocation4], 4294964736  ;;  %s458_s17 = sand.u32 1, %s14883_s21   ;;  %s460_s9 = sand.u32 1, %s14784_s18  }
  0x60   : > { %s14345_s25 = smul.u32 6400, %s460_s9  ;;  %s459_s28 = scalar_lea.sflag [#allocation7], %s458_s17 }
  0x62   : > { %s15025_s24 = scalar_lea.vmem [#allocation6], %s14345_s25 }
  0x63   : > { %14755 = dma.done.wait (%p14892_p5), %s459_s28, 102480  }
  0x64   : > { %14757 = vsyncadd (%p14892_p5), %s459_s28, 4294864816  ;;  %s14346_s26 = smul.u32 5, %s460_s9  ;;  %s479_s14 = scalar_lea.sflag [#allocation10], %s458_s17 }
  0x65   : > { %s14347_s15 = smul.u32 1600, %s460_s9 }
  0x66   : > { %s15031_s11 = scalar_lea.vmem [#allocation8], %s14346_s26 }
  0x67   : > { %s15033_s0 = scalar_lea.vmem [#allocation9], %s14347_s15 }
  0x68   : > { %14759 = dma.done.wait (%p14892_p5), %s479_s14, 25600  }
  0x69   : > { %14761 = vsyncadd (%p14892_p5), %s479_s14, 4294941696 }
  0x6a   : > { %14763 = dma.done.wait (%p73_p1), [#allocation10], 80  }
  0x6b   : > { %14765 = vsyncadd (%p73_p1), [#allocation10], 4294967216 }
  0x6c   : > { %14767 = dma.done.wait (%p73_p1), [#allocation13], 48  }
  0x6d   : > { %14769 = vsyncadd (%p73_p1), [#allocation13], 4294967248 }
  0x6e   : > { %14771 = dma.done.wait (%p73_p1), [#allocation16], 16  }
  0x6f   : > { %14773 = vsyncadd (%p73_p1), [#allocation16], 4294967280  ;;  %553 = sbr.rel (%p9318_p4) target bundleno = 122 (0x7a), region = 100 }
  0x74   : > { %v14802_v0 = vmov 0.0  }
  0x75   : > { %554 = vst [vmem:[#allocation2 + $0x8] sm:$0xff] %v14802_v0 }
  0x76   : > { %555 = vst [vmem:[#allocation2] sm:$0xff] %v14802_v0 }
  0x77   : > { %556 = vst [vmem:[#allocation2 + $0x20] sm:$0xff] %v14802_v0 }
  0x78   : > { %557 = vst [vmem:[#allocation2 + $0x10] sm:$0xff] %v14802_v0 }
  0x79   : > { %558 = vst [vmem:[#allocation2 + $0x18] sm:$0xff] %v14802_v0 }
  0x7a PF: > { %v9475_v1 = vld [vmem:[%s15025_s24 + $0x118] sm:$0xf]  ;;  %v13378_v2 = vld [vmem:[%s15025_s24 + $0x128] sm:$0xf0]  ;;  %v9455_v12 = vld [vmem:[%s15025_s24 + $0xf0] sm:$0xf] }
  0x7b   : > { %v9635_v3 = vld [vmem:[%s15025_s24 + $0x258] sm:$0xf]  ;;  %v9476_v4 = vor.u32 %v13378_v2, %v9475_v1  ;;  %v13418_v5 = vld [vmem:[%s15025_s24 + $0x268] sm:$0xf0]  ;;  %v13373_v14 = vld [vmem:[%s15025_s24 + $0x100] sm:$0xf0] }
  0x7c   : > { %v9795_v6 = vld [vmem:[%s15025_s24 + $0x398] sm:$0xf]  ;;  %v13458_v7 = vld [vmem:[%s15025_s24 + $0x3a8] sm:$0xf0]  ;;  %v9636_v8 = vor.u32 %v13418_v5, %v9635_v3  ;;  %v9615_v15 = vld [vmem:[%s15025_s24 + $0x230] sm:$0xf]  ;;  %v9456_v17 = vor.u32 %v13373_v14, %v9455_v12 }
  0x7d   : > { %v9796_v9 = vor.u32 %v13458_v7, %v9795_v6  ;;  %v9955_v10 = vld [vmem:[%s15025_s24 + $0x4d8] sm:$0xf]  ;;  %v13498_v11 = vld [vmem:[%s15025_s24 + $0x4e8] sm:$0xf0]  ;;  %5731 = vmatpush.bf16.msra.mxu0 %v9476_v4  ;;  %v13413_v16 = vld [vmem:[%s15025_s24 + $0x240] sm:$0xf0] }
  0x7e   : > { %v9956_v13 = vor.u32 %v13498_v11, %v9955_v10  ;;  %5744 = vmatpush.bf16.msra.mxu1 %v9636_v8  ;;  %v9616_v18 = vor.u32 %v13413_v16, %v9615_v15  ;;  %v9775_v19 = vld [vmem:[%s15025_s24 + $0x370] sm:$0xf]  ;;  %v13453_v20 = vld [vmem:[%s15025_s24 + $0x380] sm:$0xf0]  ;;  %v9435_v24 = vld [vmem:[%s15025_s24 + $0xc8] sm:$0xf] }
  0x7f   : > { %5757 = vmatpush.bf16.msra.mxu2 %v9796_v9  ;;  %v9935_v21 = vld [vmem:[%s15025_s24 + $0x4b0] sm:$0xf]  ;;  %v9776_v22 = vor.u32 %v13453_v20, %v9775_v19  ;;  %v13493_v23 = vld [vmem:[%s15025_s24 + $0x4c0] sm:$0xf0]  ;;  %v13368_v25 = vld [vmem:[%s15025_s24 + $0xd8] sm:$0xf0] }
  0x80   : > { %5770 = vmatpush.bf16.msra.mxu3 %v9956_v13  ;;  %v9936_v26 = vor.u32 %v13493_v23, %v9935_v21  ;;  %v9595_v27 = vld [vmem:[%s15025_s24 + $0x208] sm:$0xf]  ;;  %v13408_v28 = vld [vmem:[%s15025_s24 + $0x218] sm:$0xf0]  ;;  %v9436_v30 = vor.u32 %v13368_v25, %v9435_v24  ;;  %v9415_v36 = vld [vmem:[%s15025_s24 + $0xa0] sm:$0xf] }
  0x81   : > { %v9755_v29 = vld [vmem:[%s15025_s24 + $0x348] sm:$0xf]  ;;  %5732 = vmatpush.bf16.msra.mxu0 %v9456_v17  ;;  %v13448_v31 = vld [vmem:[%s15025_s24 + $0x358] sm:$0xf0]  ;;  %v9596_v34 = vor.u32 %v13408_v28, %v9595_v27  ;;  %v13363_v37 = vld [vmem:[%s15025_s24 + $0xb0] sm:$0xf0] }
  0x82   : > { %v9915_v32 = vld [vmem:[%s15025_s24 + $0x488] sm:$0xf]  ;;  %v13488_v33 = vld [vmem:[%s15025_s24 + $0x498] sm:$0xf0]  ;;  %5745 = vmatpush.bf16.msra.mxu1 %v9616_v18  ;;  %v9756_v35 = vor.u32 %v13448_v31, %v9755_v29  ;;  %v9575_v38 = vld [vmem:[%s15025_s24 + $0x1e0] sm:$0xf]  ;;  %v9416_v45 = vor.u32 %v13363_v37, %v9415_v36 }
  0x83   : > { %5758 = vmatpush.bf16.msra.mxu2 %v9776_v22  ;;  %v9916_v39 = vor.u32 %v13488_v33, %v9915_v32  ;;  %v13403_v40 = vld [vmem:[%s15025_s24 + $0x1f0] sm:$0xf0]  ;;  %v9735_v41 = vld [vmem:[%s15025_s24 + $0x320] sm:$0xf]  ;;  %v9395_v48 = vld [vmem:[%s15025_s24 + $0x78] sm:$0xf] }
  0x84   : > { %5771 = vmatpush.bf16.msra.mxu3 %v9936_v26  ;;  %v13443_v42 = vld [vmem:[%s15025_s24 + $0x330] sm:$0xf0]  ;;  %v9895_v43 = vld [vmem:[%s15025_s24 + $0x460] sm:$0xf]  ;;  %v9576_v46 = vor.u32 %v13403_v40, %v9575_v38  ;;  %v13358_v49 = vld [vmem:[%s15025_s24 + $0x88] sm:$0xf0] }
  0x85   : > { %v13483_v44 = vld [vmem:[%s15025_s24 + $0x470] sm:$0xf0]  ;;  %5733 = vmatpush.bf16.msra.mxu0 %v9436_v30  ;;  %v9736_v47 = vor.u32 %v13443_v42, %v9735_v41  ;;  %v9555_v50 = vld [vmem:[%s15025_s24 + $0x1b8] sm:$0xf]  ;;  %v13398_v52 = vld [vmem:[%s15025_s24 + $0x1c8] sm:$0xf0]  ;;  %v9396_v57 = vor.u32 %v13358_v49, %v9395_v48 }
  0x86   : > { %5746 = vmatpush.bf16.msra.mxu1 %v9596_v34  ;;  %v9896_v51 = vor.u32 %v13483_v44, %v9895_v43  ;;  %v9715_v53 = vld [vmem:[%s15025_s24 + $0x2f8] sm:$0xf]  ;;  %v13438_v54 = vld [vmem:[%s15025_s24 + $0x308] sm:$0xf0]  ;;  %v9556_v58 = vor.u32 %v13398_v52, %v9555_v50  ;;  %v9375_v60 = vld [vmem:[%s15025_s24 + $0x50] sm:$0xf] }
  0x87   : > { %5759 = vmatpush.bf16.msra.mxu2 %v9756_v35  ;;  %v9875_v55 = vld [vmem:[%s15025_s24 + $0x438] sm:$0xf]  ;;  %v13478_v56 = vld [vmem:[%s15025_s24 + $0x448] sm:$0xf0]  ;;  %v9716_v59 = vor.u32 %v13438_v54, %v9715_v53  ;;  %v13353_v61 = vld [vmem:[%s15025_s24 + $0x60] sm:$0xf0] }
  0x88   : > { %5772 = vmatpush.bf16.msra.mxu3 %v9916_v39  ;;  %v9535_v62 = vld [vmem:[%s15025_s24 + $0x190] sm:$0xf]  ;;  %v9876_v63 = vor.u32 %v13478_v56, %v9875_v55  ;;  %v13393_v0 = vld [vmem:[%s15025_s24 + $0x1a0] sm:$0xf0]  ;;  %v9376_v5 = vor.u32 %v13353_v61, %v9375_v60  ;;  %v9355_v8 = vld [vmem:[%s15025_s24 + $0x28] sm:$0xf] }
  0x89   : > { %5734 = vmatpush.bf16.msra.mxu0 %v9416_v45  ;;  %v9695_v1 = vld [vmem:[%s15025_s24 + $0x2d0] sm:$0xf]  ;;  %v13433_v2 = vld [vmem:[%s15025_s24 + $0x2e0] sm:$0xf0]  ;;  %v9536_v6 = vor.u32 %v13393_v0, %v9535_v62  ;;  %v13348_v9 = vld [vmem:[%s15025_s24 + $0x38] sm:$0xf0] }
  0x8a   : > { %5747 = vmatpush.bf16.msra.mxu1 %v9576_v46  ;;  %v9855_v3 = vld [vmem:[%s15025_s24 + $0x410] sm:$0xf]  ;;  %v13473_v4 = vld [vmem:[%s15025_s24 + $0x420] sm:$0xf0]  ;;  %v9696_v7 = vor.u32 %v13433_v2, %v9695_v1  ;;  %v9515_v10 = vld [vmem:[%s15025_s24 + $0x168] sm:$0xf]  ;;  %v9356_v17 = vor.u32 %v13348_v9, %v9355_v8 }
  0x8b   : > { %5760 = vmatpush.bf16.msra.mxu2 %v9736_v47  ;;  %v9856_v11 = vor.u32 %v13473_v4, %v9855_v3  ;;  %v13388_v12 = vld [vmem:[%s15025_s24 + $0x178] sm:$0xf0]  ;;  %v9675_v13 = vld [vmem:[%s15025_s24 + $0x2a8] sm:$0xf]  ;;  %v9335_v18 = vld [vmem:[%s15025_s24] sm:$0xf] }
  0x8c   : > { %5773 = vmatpush.bf16.msra.mxu3 %v9896_v51  ;;  %v13428_v14 = vld [vmem:[%s15025_s24 + $0x2b8] sm:$0xf0]  ;;  %v9835_v15 = vld [vmem:[%s15025_s24 + $0x3e8] sm:$0xf]  ;;  %v13343_v19 = vld [vmem:[%s15025_s24 + $0x10] sm:$0xf0]  ;;  %v9516_v20 = vor.u32 %v13388_v12, %v9515_v10 }
  0x8d   : > { %5735 = vmatpush.bf16.msra.mxu0 %v9396_v57  ;;  %v13468_v16 = vld [vmem:[%s15025_s24 + $0x3f8] sm:$0xf0]  ;;  %v9676_v21 = vor.u32 %v13428_v14, %v9675_v13  ;;  %v9495_v22 = vld [vmem:[%s15025_s24 + $0x140] sm:$0xf]  ;;  %v13383_v23 = vld [vmem:[%s15025_s24 + $0x150] sm:$0xf0]  ;;  %v9336_v32 = vor.u32 %v13343_v19, %v9335_v18 }
  0x8e   : > { %5748 = vmatpush.bf16.msra.mxu1 %v9556_v58  ;;  %v9655_v24 = vld [vmem:[%s15025_s24 + $0x280] sm:$0xf]  ;;  %v9836_v25 = vor.u32 %v13468_v16, %v9835_v15  ;;  %v13423_v26 = vld [vmem:[%s15025_s24 + $0x290] sm:$0xf0]  ;;  %v10115_v29 = vld [vmem:[%s15025_s24 + $0x618] sm:$0xf]  ;;  %v9496_v36 = vor.u32 %v13383_v23, %v9495_v22 }
  0x8f   : > { %5761 = vmatpush.bf16.msra.mxu2 %v9716_v59  ;;  %v9815_v27 = vld [vmem:[%s15025_s24 + $0x3c0] sm:$0xf]  ;;  %v13463_v28 = vld [vmem:[%s15025_s24 + $0x3d0] sm:$0xf0]  ;;  %v13538_v30 = vld [vmem:[%s15025_s24 + $0x628] sm:$0xf0]  ;;  %v9656_v37 = vor.u32 %v13423_v26, %v9655_v24 }
  0x90   : > { %5774 = vmatpush.bf16.msra.mxu3 %v9876_v63  ;;  %v10275_v31 = vld [vmem:[%s15025_s24 + $0x758] sm:$0xf]  ;;  %v13578_v33 = vld [vmem:[%s15025_s24 + $0x768] sm:$0xf0]  ;;  %v9816_v40 = vor.u32 %v13463_v28, %v9815_v27  ;;  %v10116_v41 = vor.u32 %v13538_v30, %v10115_v29  ;;  %v10095_v44 = vld [vmem:[%s15025_s24 + $0x5f0] sm:$0xf] }
  0x91   : > { %5736 = vmatpush.bf16.msra.mxu0 %v9376_v5  ;;  %v10435_v34 = vld [vmem:[%s15025_s24 + $0x898] sm:$0xf]  ;;  %v13618_v35 = vld [vmem:[%s15025_s24 + $0x8a8] sm:$0xf0]  ;;  %v10276_v42 = vor.u32 %v13578_v33, %v10275_v31  ;;  %v13533_v45 = vld [vmem:[%s15025_s24 + $0x600] sm:$0xf0] }
  0x92   : > { %5749 = vmatpush.bf16.msra.mxu1 %v9536_v6  ;;  %v10595_v38 = vld [vmem:[%s15025_s24 + $0x9d8] sm:$0xf]  ;;  %v13658_v39 = vld [vmem:[%s15025_s24 + $0x9e8] sm:$0xf0]  ;;  %v10436_v43 = vor.u32 %v13618_v35, %v10435_v34  ;;  %v10255_v46 = vld [vmem:[%s15025_s24 + $0x730] sm:$0xf]  ;;  %v10096_v53 = vor.u32 %v13533_v45, %v10095_v44 }
  0x93   : > { %5762 = vmatpush.bf16.msra.mxu2 %v9696_v7  ;;  %v10596_v47 = vor.u32 %v13658_v39, %v10595_v38  ;;  %v13573_v48 = vld [vmem:[%s15025_s24 + $0x740] sm:$0xf0]  ;;  %v10415_v49 = vld [vmem:[%s15025_s24 + $0x870] sm:$0xf]  ;;  %v10075_v54 = vld [vmem:[%s15025_s24 + $0x5c8] sm:$0xf] }
  0x94   : > { %5775 = vmatpush.bf16.msra.mxu3 %v9856_v11  ;;  %v13613_v50 = vld [vmem:[%s15025_s24 + $0x880] sm:$0xf0]  ;;  %v10575_v51 = vld [vmem:[%s15025_s24 + $0x9b0] sm:$0xf]  ;;  %v10256_v55 = vor.u32 %v13573_v48, %v10255_v46  ;;  %v13528_v57 = vld [vmem:[%s15025_s24 + $0x5d8] sm:$0xf0] }
  0x95   : > { %5737 = vmatpush.bf16.msra.mxu0 %v9356_v17  ;;  %v13653_v52 = vld [vmem:[%s15025_s24 + $0x9c0] sm:$0xf0]  ;;  %v10416_v56 = vor.u32 %v13613_v50, %v10415_v49  ;;  %v10235_v58 = vld [vmem:[%s15025_s24 + $0x708] sm:$0xf]  ;;  %v13568_v59 = vld [vmem:[%s15025_s24 + $0x718] sm:$0xf0]  ;;  %v10076_v1 = vor.u32 %v13528_v57, %v10075_v54 }
  0x96   : > { %5750 = vmatpush.bf16.msra.mxu1 %v9516_v20  ;;  %v10576_v60 = vor.u32 %v13653_v52, %v10575_v51  ;;  %v10395_v61 = vld [vmem:[%s15025_s24 + $0x848] sm:$0xf]  ;;  %v13608_v62 = vld [vmem:[%s15025_s24 + $0x858] sm:$0xf0]  ;;  %v10236_v2 = vor.u32 %v13568_v59, %v10235_v58  ;;  %v10055_v3 = vld [vmem:[%s15025_s24 + $0x5a0] sm:$0xf] }
  0x97   : > { %5763 = vmatpush.bf16.msra.mxu2 %v9676_v21  ;;  %v10555_v63 = vld [vmem:[%s15025_s24 + $0x988] sm:$0xf]  ;;  %v13648_v0 = vld [vmem:[%s15025_s24 + $0x998] sm:$0xf0]  ;;  %v561_v4 = vld [vmem:[#allocation3 + $0x10] sm:$0xff]  ;;  %v10396_v6 = vor.u32 %v13608_v62, %v10395_v61  ;;  %p13333_p1 = scmp.ne.s32.totalorder %s14883_s21, 1 }
  0x98   : > { %5776 = vmatpush.bf16.msra.mxu3 %v9836_v25  ;;  %v559_v5 = vld [vmem:[#allocation3] sm:$0xff]  ;;  %v13523_v7 = vld [vmem:[%s15025_s24 + $0x5b0] sm:$0xf0]  ;;  %v15144_v9 = vpack.c.bf16 %v561_v4, %v561_v4  ;;  %v562_v11 = vld [vmem:[#allocation3 + $0x18] sm:$0xff]  ;;  %v10556_v12 = vor.u32 %v13648_v0, %v10555_v63  ;;  %s17997_s19 = sld [smem:[#allocation31_spill]] (!%p13333_p1) }
  0x99   : > { %5738 = vmatpush.bf16.msra.mxu0 %v9336_v32  ;;  %v10215_v8 = vld [vmem:[%s15025_s24 + $0x6e0] sm:$0xf]  ;;  %v15146_v10 = vpack.c.bf16 %v559_v5, %v559_v5  ;;  %v13563_v13 = vld [vmem:[%s15025_s24 + $0x6f0] sm:$0xf0]  ;;  %v15151_v16 = vpack.c.bf16 %v562_v11, %v562_v11  ;;  %v10056_v19 = vor.u32 %v13523_v7, %v10055_v3  ;;  %v560_v20 = vld [vmem:[#allocation3 + $0x8] sm:$0xff] }
  0x9a   : > { %5751 = vmatpush.bf16.msra.mxu1 %v9496_v36  ;;  %v10375_v14 = vld [vmem:[%s15025_s24 + $0x820] sm:$0xf]  ;;  %v13603_v15 = vld [vmem:[%s15025_s24 + $0x830] sm:$0xf0]  ;;  %v10216_v21 = vor.u32 %v13563_v13, %v10215_v8  ;;  %v10035_v23 = vld [vmem:[%s15025_s24 + $0x578] sm:$0xf]  ;;  %v15161_v26 = vpack.c.bf16 %v560_v20, %v560_v20 }
  0x9b   : > { %5764 = vmatpush.bf16.msra.mxu2 %v9656_v37  ;;  %v10535_v17 = vld [vmem:[%s15025_s24 + $0x960] sm:$0xf]  ;;  %v13643_v18 = vld [vmem:[%s15025_s24 + $0x970] sm:$0xf0]  ;;  %v10376_v22 = vor.u32 %v13603_v15, %v10375_v14  ;;  %v13518_v24 = vld [vmem:[%s15025_s24 + $0x588] sm:$0xf0] }
  0x9c   : > { %5777 = vmatpush.bf16.msra.mxu3 %v9816_v40  ;;  %5739 = vmatmul.bf16.vlgmr.msra.gmra.mxu0 %v15146_v10  ;;  %v10195_v25 = vld [vmem:[%s15025_s24 + $0x6b8] sm:$0xf]  ;;  %v10536_v27 = vor.u32 %v13643_v18, %v10535_v17  ;;  %v13558_v28 = vld [vmem:[%s15025_s24 + $0x6c8] sm:$0xf0]  ;;  %v10036_v33 = vor.u32 %v13518_v24, %v10035_v23  ;;  %v10015_v36 = vld [vmem:[%s15025_s24 + $0x550] sm:$0xf] }
  0x9d   : > { %5783 = vmatpush.bf16.msrb.mxu0 %v10116_v41  ;;  %v10355_v29 = vld [vmem:[%s15025_s24 + $0x7f8] sm:$0xf]  ;;  %v13598_v30 = vld [vmem:[%s15025_s24 + $0x808] sm:$0xf0]  ;;  %5752 = vmatmul.bf16.vlgmr.msra.gmra.mxu1 %v15161_v26  ;;  %v10196_v34 = vor.u32 %v13558_v28, %v10195_v25  ;;  %v13513_v37 = vld [vmem:[%s15025_s24 + $0x560] sm:$0xf0] }
  0x9e   : > { %5796 = vmatpush.bf16.msrb.mxu1 %v10276_v42  ;;  %5765 = vmatmul.bf16.vlgmr.msra.gmra.mxu2 %v15144_v9  ;;  %v10515_v31 = vld [vmem:[%s15025_s24 + $0x938] sm:$0xf]  ;;  %v13638_v32 = vld [vmem:[%s15025_s24 + $0x948] sm:$0xf0]  ;;  %v10356_v35 = vor.u32 %v13598_v30, %v10355_v29  ;;  %v10175_v38 = vld [vmem:[%s15025_s24 + $0x690] sm:$0xf]  ;;  %v10016_v45 = vor.u32 %v13513_v37, %v10015_v36  ;;  %s17998_s9 = smov (!%p13333_p1), %s17997_s19 }
  0x9f   : > { %5809 = vmatpush.bf16.msrb.mxu2 %v10436_v43  ;;  %5778 = vmatmul.bf16.vlgmr.msra.gmra.mxu3 %v15151_v16  ;;  %v10516_v39 = vor.u32 %v13638_v32, %v10515_v31  ;;  %v13553_v40 = vld [vmem:[%s15025_s24 + $0x6a0] sm:$0xf0]  ;;  %v10335_v41 = vld [vmem:[%s15025_s24 + $0x7d0] sm:$0xf]  ;;  %v9995_v48 = vld [vmem:[%s15025_s24 + $0x528] sm:$0xf] }
  0xa0   : > { %5822 = vmatpush.bf16.msrb.mxu3 %v10596_v47  ;;  %v13593_v42 = vld [vmem:[%s15025_s24 + $0x7e0] sm:$0xf0]  ;;  %v10495_v43 = vld [vmem:[%s15025_s24 + $0x910] sm:$0xf]  ;;  %v10176_v46 = vor.u32 %v13553_v40, %v10175_v38  ;;  %v13508_v49 = vld [vmem:[%s15025_s24 + $0x538] sm:$0xf0] }
  0xa1   : > { %5784 = vmatpush.bf16.msrb.mxu0 %v10096_v53  ;;  %v13633_v44 = vld [vmem:[%s15025_s24 + $0x920] sm:$0xf0]  ;;  %v10336_v47 = vor.u32 %v13593_v42, %v10335_v41  ;;  %v10155_v50 = vld [vmem:[%s15025_s24 + $0x668] sm:$0xf]  ;;  %v13548_v52 = vld [vmem:[%s15025_s24 + $0x678] sm:$0xf0]  ;;  %v9996_v57 = vor.u32 %v13508_v49, %v9995_v48 }
  0xa2   : > { %5797 = vmatpush.bf16.msrb.mxu1 %v10256_v55  ;;  %v10496_v51 = vor.u32 %v13633_v44, %v10495_v43  ;;  %v10315_v53 = vld [vmem:[%s15025_s24 + $0x7a8] sm:$0xf]  ;;  %v13588_v54 = vld [vmem:[%s15025_s24 + $0x7b8] sm:$0xf0]  ;;  %v9975_v58 = vld [vmem:[%s15025_s24 + $0x500] sm:$0xf] }
  0xa3   : > { %5810 = vmatpush.bf16.msrb.mxu2 %v10416_v56  ;;  %v10475_v55 = vld [vmem:[%s15025_s24 + $0x8e8] sm:$0xf]  ;;  %v13628_v56 = vld [vmem:[%s15025_s24 + $0x8f8] sm:$0xf0]  ;;  %v13503_v59 = vld [vmem:[%s15025_s24 + $0x510] sm:$0xf0]  ;;  %v10316_v61 = vor.u32 %v13588_v54, %v10315_v53 }
  0xa4   : > { %5823 = vmatpush.bf16.msrb.mxu3 %v10576_v60  ;;  %v10156_v60 = vor.u32 %v13548_v52, %v10155_v50  ;;  %v10135_v62 = vld [vmem:[%s15025_s24 + $0x640] sm:$0xf]  ;;  %v13543_v63 = vld [vmem:[%s15025_s24 + $0x650] sm:$0xf0]  ;;  %v10755_v5 = vld [vmem:[%s15025_s24 + $0xb18] sm:$0xf]  ;;  %v9976_v8 = vor.u32 %v13503_v59, %v9975_v58 }
  0xa5   : > { %5785 = vmatpush.bf16.msrb.mxu0 %v10076_v1  ;;  %v10295_v0 = vld [vmem:[%s15025_s24 + $0x780] sm:$0xf]  ;;  %v10476_v1 = vor.u32 %v13628_v56, %v10475_v55  ;;  %v13623_v4 = vld [vmem:[%s15025_s24 + $0x8d0] sm:$0xf0]  ;;  %v10915_v7 = vld [vmem:[%s15025_s24 + $0xc58] sm:$0xf]  ;;  %v10136_v14 = vor.u32 %v13543_v63, %v10135_v62 }
  0xa6   : > { %5798 = vmatpush.bf16.msrb.mxu1 %v10236_v2  ;;  %v13583_v2 = vld [vmem:[%s15025_s24 + $0x790] sm:$0xf0]  ;;  %v10455_v3 = vld [vmem:[%s15025_s24 + $0x8c0] sm:$0xf]  ;;  %v13738_v11 = vld [vmem:[%s15025_s24 + $0xc68] sm:$0xf0] }
  0xa7   : > { %5811 = vmatpush.bf16.msrb.mxu2 %v10396_v6  ;;  %v13698_v6 = vld [vmem:[%s15025_s24 + $0xb28] sm:$0xf0]  ;;  %v10296_v15 = vor.u32 %v13583_v2, %v10295_v0  ;;  %v11235_v17 = vld [vmem:[%s15025_s24 + $0xed8] sm:$0xf]  ;;  %v10456_v20 = vor.u32 %v13623_v4, %v10455_v3  ;;  %v563_v23 = vld [vmem:[#allocation3 + $0x20] sm:$0xff]  ;;  %v10916_v25 = vor.u32 %v13738_v11, %v10915_v7 }
  0xa8   : > { %5824 = vmatpush.bf16.msrb.mxu3 %v10556_v12  ;;  %v11075_v12 = vld [vmem:[%s15025_s24 + $0xd98] sm:$0xf]  ;;  %v13778_v13 = vld [vmem:[%s15025_s24 + $0xda8] sm:$0xf0]  ;;  %v13693_v28 = vld [vmem:[%s15025_s24 + $0xb00] sm:$0xf0]  ;;  %v15211_v38 = vpack.c.bf16 %v563_v23, %v563_v23 }
  0xa9   : > { %5786 = vmatpush.bf16.msrb.mxu0 %v10056_v19  ;;  %v13818_v18 = vld [vmem:[%s15025_s24 + $0xee8] sm:$0xf0]  ;;  %v565_v19 = vld [vmem:[#allocation3 + $0x30] sm:$0xff]  ;;  %v566_v24 = vld [vmem:[#allocation3 + $0x38] sm:$0xff] }
  0xaa   : > { %5799 = vmatpush.bf16.msrb.mxu1 %v10216_v21  ;;  %v10756_v21 = vor.u32 %v13698_v6, %v10755_v5  ;;  %v10895_v29 = vld [vmem:[%s15025_s24 + $0xc30] sm:$0xf]  ;;  %v564_v30 = vld [vmem:[#allocation3 + $0x28] sm:$0xff]  ;;  %v11236_v31 = vor.u32 %v13818_v18, %v11235_v17  ;;  %v13733_v32 = vld [vmem:[%s15025_s24 + $0xc40] sm:$0xf0] }
  0xab   : > { %5812 = vmatpush.bf16.msrb.mxu2 %v10376_v22  ;;  %v10735_v22 = vld [vmem:[%s15025_s24 + $0xaf0] sm:$0xf]  ;;  %v13813_v37 = vld [vmem:[%s15025_s24 + $0xec0] sm:$0xf0]  ;;  %v15215_v41 = vpack.c.bf16 %v564_v30, %v564_v30  ;;  %v10896_v42 = vor.u32 %v13733_v32, %v10895_v29  ;;  %v10715_v44 = vld [vmem:[%s15025_s24 + $0xac8] sm:$0xf] }
  0xac   : > { %5825 = vmatpush.bf16.msrb.mxu3 %v10536_v27  ;;  %v11076_v27 = vor.u32 %v13778_v13, %v11075_v12  ;;  %v11215_v36 = vld [vmem:[%s15025_s24 + $0xeb0] sm:$0xf]  ;;  %v10736_v40 = vor.u32 %v13693_v28, %v10735_v22  ;;  %v13728_v48 = vld [vmem:[%s15025_s24 + $0xc18] sm:$0xf0]  ;;  %v11035_v49 = vld [vmem:[%s15025_s24 + $0xd48] sm:$0xf] }
  0xad   : > { %5787 = vmatpush.bf16.msrb.mxu0 %v10036_v33  ;;  %v11055_v33 = vld [vmem:[%s15025_s24 + $0xd70] sm:$0xf]  ;;  %v13768_v50 = vld [vmem:[%s15025_s24 + $0xd58] sm:$0xf0]  ;;  %v10695_v56 = vld [vmem:[%s15025_s24 + $0xaa0] sm:$0xf] }
  0xae   : > { %5800 = vmatpush.bf16.msrb.mxu1 %v10196_v34  ;;  %v13773_v34 = vld [vmem:[%s15025_s24 + $0xd80] sm:$0xf0]  ;;  %v13808_v52 = vld [vmem:[%s15025_s24 + $0xe98] sm:$0xf0]  ;;  %v11036_v55 = vor.u32 %v13768_v50, %v11035_v49  ;;  %v10855_v58 = vld [vmem:[%s15025_s24 + $0xbe0] sm:$0xf] }
  0xaf   : > { %5813 = vmatpush.bf16.msrb.mxu2 %v10356_v35  ;;  %v15207_v35 = vpack.c.bf16 %v565_v19, %v565_v19  ;;  %v11056_v43 = vor.u32 %v13773_v34, %v11055_v33  ;;  %v13763_v62 = vld [vmem:[%s15025_s24 + $0xd30] sm:$0xf0]  ;;  %v11175_v63 = vld [vmem:[%s15025_s24 + $0xe60] sm:$0xf]  ;;  %v10675_v4 = vld [vmem:[%s15025_s24 + $0xa78] sm:$0xf] }
  0xb0   : > { %5826 = vmatpush.bf16.msrb.mxu3 %v10516_v39  ;;  %v15213_v39 = vpack.c.bf16 %v566_v24, %v566_v24  ;;  %v13803_v0 = vld [vmem:[%s15025_s24 + $0xe70] sm:$0xf0]  ;;  %v13678_v5 = vld [vmem:[%s15025_s24 + $0xa88] sm:$0xf0]  ;;  %v10835_v6 = vld [vmem:[%s15025_s24 + $0xbb8] sm:$0xf] }
  0xb1   : > { %5788 = vmatpush.bf16.msrb.mxu0 %v10016_v45  ;;  %v13688_v45 = vld [vmem:[%s15025_s24 + $0xad8] sm:$0xf0]  ;;  %v11176_v7 = vor.u32 %v13803_v0, %v11175_v63  ;;  %v10995_v11 = vld [vmem:[%s15025_s24 + $0xcf8] sm:$0xf]  ;;  %v13758_v12 = vld [vmem:[%s15025_s24 + $0xd08] sm:$0xf0] }
  0xb2   : > { %5801 = vmatpush.bf16.msrb.mxu1 %v10176_v46  ;;  %v10875_v46 = vld [vmem:[%s15025_s24 + $0xc08] sm:$0xf]  ;;  %v10716_v53 = vor.u32 %v13688_v45, %v10715_v44  ;;  %v11155_v13 = vld [vmem:[%s15025_s24 + $0xe38] sm:$0xf]  ;;  %v10996_v18 = vor.u32 %v13758_v12, %v10995_v11  ;;  %v10655_v19 = vld [vmem:[%s15025_s24 + $0xa50] sm:$0xf] }
  0xb3   : > { %5814 = vmatpush.bf16.msrb.mxu2 %v10336_v47  ;;  %v11216_v47 = vor.u32 %v13813_v37, %v11215_v36  ;;  %v10876_v54 = vor.u32 %v13728_v48, %v10875_v46  ;;  %v13713_v23 = vld [vmem:[%s15025_s24 + $0xba0] sm:$0xf0]  ;;  %v10975_v24 = vld [vmem:[%s15025_s24 + $0xcd0] sm:$0xf]  ;;  %v10635_v32 = vld [vmem:[%s15025_s24 + $0xa28] sm:$0xf] }
  0xb4   : > { %5827 = vmatpush.bf16.msrb.mxu3 %v10496_v51  ;;  %v11195_v51 = vld [vmem:[%s15025_s24 + $0xe88] sm:$0xf]  ;;  %v13793_v28 = vld [vmem:[%s15025_s24 + $0xe20] sm:$0xf0]  ;;  %v13668_v33 = vld [vmem:[%s15025_s24 + $0xa38] sm:$0xf0] }
  0xb5   : > { %5789 = vmatpush.bf16.msrb.mxu0 %v9996_v57  ;;  %v13683_v57 = vld [vmem:[%s15025_s24 + $0xab0] sm:$0xf0]  ;;  %v11196_v59 = vor.u32 %v13808_v52, %v11195_v51  ;;  %v10795_v34 = vld [vmem:[%s15025_s24 + $0xb68] sm:$0xf]  ;;  %v13708_v37 = vld [vmem:[%s15025_s24 + $0xb78] sm:$0xf0]  ;;  %v10636_v45 = vor.u32 %v13668_v33, %v10635_v32 }
  0xb6   : > { %5802 = vmatpush.bf16.msrb.mxu1 %v10156_v60  ;;  %v13723_v60 = vld [vmem:[%s15025_s24 + $0xbf0] sm:$0xf0]  ;;  %v13788_v44 = vld [vmem:[%s15025_s24 + $0xdf8] sm:$0xf0]  ;;  %v10615_v46 = vld [vmem:[%s15025_s24 + $0xa00] sm:$0xf]  ;;  %v10796_v48 = vor.u32 %v13708_v37, %v10795_v34 }
  0xb7   : > { %5815 = vmatpush.bf16.msrb.mxu2 %v10316_v61  ;;  %v11015_v61 = vld [vmem:[%s15025_s24 + $0xd20] sm:$0xf]  ;;  %v10856_v2 = vor.u32 %v13723_v60, %v10855_v58  ;;  %v13703_v51 = vld [vmem:[%s15025_s24 + $0xb50] sm:$0xf0]  ;;  %v13858_v58 = vld [vmem:[%s15025_s24 + $0x1028] sm:$0xf0] }
  0xb8   : > { %5828 = vmatpush.bf16.msrb.mxu3 %v10476_v1  ;;  %v10696_v1 = vor.u32 %v13683_v57, %v10695_v56  ;;  %v11016_v3 = vor.u32 %v13763_v62, %v11015_v61  ;;  %v10775_v50 = vld [vmem:[%s15025_s24 + $0xb40] sm:$0xf]  ;;  %v13783_v56 = vld [vmem:[%s15025_s24 + $0xdd0] sm:$0xf0]  ;;  %v11395_v57 = vld [vmem:[%s15025_s24 + $0x1018] sm:$0xf] }
  0xb9   : > { %5790 = vmatpush.bf16.msrb.mxu0 %v9976_v8  ;;  %v13718_v8 = vld [vmem:[%s15025_s24 + $0xbc8] sm:$0xf0]  ;;  %v10935_v52 = vld [vmem:[%s15025_s24 + $0xc80] sm:$0xf]  ;;  %v11715_v62 = vld [vmem:[%s15025_s24 + $0x1298] sm:$0xf]  ;;  %v10776_v0 = vor.u32 %v13703_v51, %v10775_v50 }
  0xba   : > { %5803 = vmatpush.bf16.msrb.mxu1 %v10136_v14  ;;  %v13798_v14 = vld [vmem:[%s15025_s24 + $0xe48] sm:$0xf0]  ;;  %v10836_v17 = vor.u32 %v13718_v8, %v10835_v6  ;;  %v11396_v6 = vor.u32 %v13858_v58, %v11395_v57  ;;  %v570_v11 = vld [vmem:[#allocation3 + $0x58] sm:$0xff]  ;;  %v11355_v32 = vld [vmem:[%s15025_s24 + $0xfc8] sm:$0xf] }
  0xbb   : > { %5816 = vmatpush.bf16.msrb.mxu2 %v10296_v15  ;;  %v10676_v15 = vor.u32 %v13678_v5, %v10675_v4  ;;  %v11156_v22 = vor.u32 %v13798_v14, %v11155_v13  ;;  %v13898_v61 = vld [vmem:[%s15025_s24 + $0x1168] sm:$0xf0]  ;;  %v567_v4 = vld [vmem:[#allocation3 + $0x40] sm:$0xff]  ;;  %v11375_v14 = vld [vmem:[%s15025_s24 + $0xff0] sm:$0xf] }
  0xbc   : > { %5829 = vmatpush.bf16.msrb.mxu3 %v10456_v20  ;;  %5791 = vmatmul.bf16.vlgmr.msrb.gmra.mxu0 %v15211_v38  ;;  %v13673_v20 = vld [vmem:[%s15025_s24 + $0xa60] sm:$0xf0]  ;;  %v13938_v63 = vld [vmem:[%s15025_s24 + $0x12a8] sm:$0xf0]  ;;  %v13848_v33 = vld [vmem:[%s15025_s24 + $0xfd8] sm:$0xf0] }
  0xbd   : > { %5835 = vmatpush.bf16.msra.mxu0 %v10756_v21  ;;  %5804 = vmatmul.bf16.vlgmr.msrb.gmra.mxu1 %v15215_v41  ;;  %v10815_v21 = vld [vmem:[%s15025_s24 + $0xb90] sm:$0xf]  ;;  %v10656_v29 = vor.u32 %v13673_v20, %v10655_v19  ;;  %v568_v8 = vld [vmem:[#allocation3 + $0x48] sm:$0xff]  ;;  %v11716_v13 = vor.u32 %v13938_v63, %v11715_v62  ;;  %v15280_v19 = vpack.c.bf16 %v567_v4, %v567_v4  ;;  %v13893_v20 = vld [vmem:[%s15025_s24 + $0x1140] sm:$0xf0] }
  0xbe   : > { %5848 = vmatpush.bf16.msra.mxu1 %v10916_v25  ;;  %5817 = vmatmul.bf16.vlgmr.msrb.gmra.mxu2 %v15207_v35  ;;  %v13753_v25 = vld [vmem:[%s15025_s24 + $0xce0] sm:$0xf0]  ;;  %v10816_v30 = vor.u32 %v13713_v23, %v10815_v21  ;;  %v11695_v21 = vld [vmem:[%s15025_s24 + $0x1270] sm:$0xf]  ;;  %v11515_v34 = vld [vmem:[%s15025_s24 + $0x1108] sm:$0xf] }
  0xbf   : > { %5861 = vmatpush.bf16.msra.mxu2 %v11076_v27  ;;  %5830 = vmatmul.bf16.vlgmr.msrb.gmra.mxu3 %v15213_v39  ;;  %v11135_v27 = vld [vmem:[%s15025_s24 + $0xe10] sm:$0xf]  ;;  %v13888_v37 = vld [vmem:[%s15025_s24 + $0x1118] sm:$0xf0]  ;;  %v11495_v50 = vld [vmem:[%s15025_s24 + $0x10e0] sm:$0xf] }
  0xc0   : > { %5874 = vmatpush.bf16.msra.mxu3 %v11236_v31  ;;  %v10976_v31 = vor.u32 %v13753_v25, %v10975_v24  ;;  %v11136_v36 = vor.u32 %v13793_v28, %v11135_v27  ;;  %v15287_v24 = vpack.c.bf16 %v568_v8, %v568_v8  ;;  %v11855_v25 = vld [vmem:[%s15025_s24 + $0x13b0] sm:$0xf]  ;;  %v13973_v27 = vld [vmem:[%s15025_s24 + $0x13c0] sm:$0xf0]  ;;  %v15291_v28 = vpack.c.bf16 %v570_v11, %v570_v11  ;;  %v11475_v62 = vld [vmem:[%s15025_s24 + $0x10b8] sm:$0xf] }
  0xc1   : > { %5836 = vmatpush.bf16.msra.mxu0 %v10736_v40  ;;  %v10955_v40 = vld [vmem:[%s15025_s24 + $0xca8] sm:$0xf]  ;;  %v13958_v4 = vld [vmem:[%s15025_s24 + $0x1348] sm:$0xf0]  ;;  %v11295_v8 = vld [vmem:[%s15025_s24 + $0xf50] sm:$0xf] }
  0xc2   : > { %5849 = vmatpush.bf16.msra.mxu1 %v10896_v42  ;;  %v13748_v42 = vld [vmem:[%s15025_s24 + $0xcb8] sm:$0xf0]  ;;  %v13833_v11 = vld [vmem:[%s15025_s24 + $0xf60] sm:$0xf0] }
  0xc3   : > { %5862 = vmatpush.bf16.msra.mxu2 %v11056_v43  ;;  %v11115_v43 = vld [vmem:[%s15025_s24 + $0xde8] sm:$0xf]  ;;  %v10956_v49 = vor.u32 %v13748_v42, %v10955_v40  ;;  %v13928_v42 = vld [vmem:[%s15025_s24 + $0x1258] sm:$0xf0] }
  0xc4   : > { %5875 = vmatpush.bf16.msra.mxu3 %v11216_v47  ;;  %v13663_v47 = vld [vmem:[%s15025_s24 + $0xa10] sm:$0xf0]  ;;  %v11675_v40 = vld [vmem:[%s15025_s24 + $0x1248] sm:$0xf] }
  0xc5   : > { %5837 = vmatpush.bf16.msra.mxu0 %v10716_v53  ;;  %v11116_v53 = vor.u32 %v13788_v44, %v11115_v43  ;;  %v10616_v60 = vor.u32 %v13663_v47, %v10615_v46  ;;  %v11835_v43 = vld [vmem:[%s15025_s24 + $0x1388] sm:$0xf]  ;;  %v13968_v44 = vld [vmem:[%s15025_s24 + $0x1398] sm:$0xf0]  ;;  %v11516_v46 = vor.u32 %v13888_v37, %v11515_v34  ;;  %v11676_v47 = vor.u32 %v13928_v42, %v11675_v40  ;;  %v11255_v42 = vld [vmem:[%s15025_s24 + $0xf00] sm:$0xf] }
  0xc6   : > { %5850 = vmatpush.bf16.msra.mxu1 %v10876_v54  ;;  %v13743_v54 = vld [vmem:[%s15025_s24 + $0xc90] sm:$0xf0]  ;;  %v11836_v51 = vor.u32 %v13968_v44, %v11835_v43  ;;  %v13908_v34 = vld [vmem:[%s15025_s24 + $0x11b8] sm:$0xf0] }
  0xc7   : > { %5863 = vmatpush.bf16.msra.mxu2 %v11036_v55  ;;  %v11095_v55 = vld [vmem:[%s15025_s24 + $0xdc0] sm:$0xf]  ;;  %v13948_v37 = vld [vmem:[%s15025_s24 + $0x12f8] sm:$0xf0]  ;;  %v13823_v43 = vld [vmem:[%s15025_s24 + $0xf10] sm:$0xf0] }
  0xc8   : > { %5876 = vmatpush.bf16.msra.mxu3 %v11196_v59  ;;  %v11555_v59 = vld [vmem:[%s15025_s24 + $0x1158] sm:$0xf]  ;;  %v11096_v5 = vor.u32 %v13783_v56, %v11095_v55  ;;  %v11815_v55 = vld [vmem:[%s15025_s24 + $0x1360] sm:$0xf]  ;;  %v13963_v56 = vld [vmem:[%s15025_s24 + $0x1370] sm:$0xf0] }
  0xc9   : > { %5838 = vmatpush.bf16.msra.mxu0 %v10696_v1  ;;  %v10936_v1 = vor.u32 %v13743_v54, %v10935_v52  ;;  %v11556_v12 = vor.u32 %v13898_v61, %v11555_v59  ;;  %v13883_v52 = vld [vmem:[%s15025_s24 + $0x10f0] sm:$0xf0]  ;;  %v13838_v61 = vld [vmem:[%s15025_s24 + $0xf88] sm:$0xf0]  ;;  %v11816_v63 = vor.u32 %v13963_v56, %v11815_v55  ;;  %v12195_v55 = vld [vmem:[%s15025_s24 + $0x1658] sm:$0xf]  ;;  %v11256_v56 = vor.u32 %v13823_v43, %v11255_v42 }
  0xca   : > { %5851 = vmatpush.bf16.msra.mxu1 %v10856_v2  ;;  %v11875_v2 = vld [vmem:[%s15025_s24 + $0x13d8] sm:$0xf]  ;;  %v13923_v54 = vld [vmem:[%s15025_s24 + $0x1230] sm:$0xf0]  ;;  %v11496_v58 = vor.u32 %v13883_v52, %v11495_v50  ;;  %v14088_v42 = vld [vmem:[%s15025_s24 + $0x1758] sm:$0xf0] }
  0xcb   : > { %5864 = vmatpush.bf16.msra.mxu2 %v11016_v3  ;;  %v13978_v3 = vld [vmem:[%s15025_s24 + $0x13e8] sm:$0xf0]  ;;  %v13903_v50 = vld [vmem:[%s15025_s24 + $0x1190] sm:$0xf0]  ;;  %v12475_v43 = vld [vmem:[%s15025_s24 + $0x1888] sm:$0xf] }
  0xcc   : > { %5877 = vmatpush.bf16.msra.mxu3 %v11176_v7  ;;  %v569_v7 = vld [vmem:[#allocation3 + $0x50] sm:$0xff] }
  0xcd   : > { %5839 = vmatpush.bf16.msra.mxu0 %v10676_v15  ;;  %v13853_v15 = vld [vmem:[%s15025_s24 + $0x1000] sm:$0xf0]  ;;  %v15285_v23 = vpack.c.bf16 %v569_v7, %v569_v7  ;;  %v13943_v52 = vld [vmem:[%s15025_s24 + $0x12d0] sm:$0xf0] }
  0xce   : > { %5852 = vmatpush.bf16.msra.mxu1 %v10836_v17  ;;  %v11535_v17 = vld [vmem:[%s15025_s24 + $0x1130] sm:$0xf] }
  0xcf   : > { %5865 = vmatpush.bf16.msra.mxu2 %v10996_v18  ;;  %v11876_v18 = vor.u32 %v13978_v3, %v11875_v2  ;;  %v13918_v2 = vld [vmem:[%s15025_s24 + $0x1208] sm:$0xf0]  ;;  %v11795_v3 = vld [vmem:[%s15025_s24 + $0x1338] sm:$0xf] }
  0xd0   : > { %5878 = vmatpush.bf16.msra.mxu3 %v11156_v22  ;;  %v13933_v22 = vld [vmem:[%s15025_s24 + $0x1280] sm:$0xf0] }
  0xd1   : > { %5840 = vmatpush.bf16.msra.mxu0 %v10656_v29  ;;  %v11376_v29 = vor.u32 %v13853_v15, %v11375_v14  ;;  %v13873_v14 = vld [vmem:[%s15025_s24 + $0x10a0] sm:$0xf0]  ;;  %v11615_v15 = vld [vmem:[%s15025_s24 + $0x11d0] sm:$0xf] }
  0xd2   : > { %5853 = vmatpush.bf16.msra.mxu1 %v10816_v30  ;;  %v11536_v30 = vor.u32 %v13893_v20, %v11535_v17  ;;  %v13913_v17 = vld [vmem:[%s15025_s24 + $0x11e0] sm:$0xf0] }
  0xd3   : > { %5866 = vmatpush.bf16.msra.mxu2 %v10976_v31  ;;  %v11696_v31 = vor.u32 %v13933_v22, %v11695_v21  ;;  %v13953_v20 = vld [vmem:[%s15025_s24 + $0x1320] sm:$0xf0]  ;;  %v11296_v21 = vor.u32 %v13833_v11, %v11295_v8  ;;  %v12015_v8 = vld [vmem:[%s15025_s24 + $0x14f0] sm:$0xf] }
  0xd4   : > { %5879 = vmatpush.bf16.msra.mxu3 %v11136_v36  ;;  %v11856_v36 = vor.u32 %v13973_v27, %v11855_v25  ;;  %v11616_v25 = vor.u32 %v13913_v17, %v11615_v15  ;;  %v11275_v27 = vld [vmem:[%s15025_s24 + $0xf28] sm:$0xf]  ;;  %v14013_v11 = vld [vmem:[%s15025_s24 + $0x1500] sm:$0xf0]  ;;  %v12335_v17 = vld [vmem:[%s15025_s24 + $0x1770] sm:$0xf] }
  0xd5   : > { %5841 = vmatpush.bf16.msra.mxu0 %v10636_v45  ;;  %v11356_v45 = vor.u32 %v13848_v33, %v11355_v32  ;;  %v13868_v32 = vld [vmem:[%s15025_s24 + $0x1078] sm:$0xf0]  ;;  %v11595_v33 = vld [vmem:[%s15025_s24 + $0x11a8] sm:$0xf]  ;;  %v14053_v15 = vld [vmem:[%s15025_s24 + $0x1640] sm:$0xf0] }
  0xd6   : > { %5854 = vmatpush.bf16.msra.mxu1 %v10796_v48  ;;  %v11335_v48 = vld [vmem:[%s15025_s24 + $0xfa0] sm:$0xf] }
  0xd7   : > { %5867 = vmatpush.bf16.msra.mxu2 %v10956_v49  ;;  %v13843_v49 = vld [vmem:[%s15025_s24 + $0xfb0] sm:$0xf0] }
  0xd8   : > { %5880 = vmatpush.bf16.msra.mxu3 %v11116_v53  ;;  %v11655_v53 = vld [vmem:[%s15025_s24 + $0x1220] sm:$0xf]  ;;  %v11336_v57 = vor.u32 %v13843_v49, %v11335_v48 }
  0xd9   : > { %5842 = vmatpush.bf16.msra.mxu0 %v10616_v60  ;;  %v11656_v59 = vor.u32 %v13923_v54, %v11655_v53  ;;  %v11315_v60 = vld [vmem:[%s15025_s24 + $0xf78] sm:$0xf]  ;;  %v11575_v48 = vld [vmem:[%s15025_s24 + $0x1180] sm:$0xf]  ;;  %v14018_v54 = vld [vmem:[%s15025_s24 + $0x1528] sm:$0xf0] }
  0xda   : > { %5855 = vmatpush.bf16.msra.mxu1 %v10776_v0  ;;  %v13878_v0 = vld [vmem:[%s15025_s24 + $0x10c8] sm:$0xf0]  ;;  %v12035_v53 = vld [vmem:[%s15025_s24 + $0x1518] sm:$0xf] }
  0xdb   : > { %5868 = vmatpush.bf16.msra.mxu2 %v10936_v1  ;;  %v11635_v1 = vld [vmem:[%s15025_s24 + $0x11f8] sm:$0xf] }
  0xdc   : > { %5881 = vmatpush.bf16.msra.mxu3 %v11096_v5  ;;  %5843 = vmatmul.bf16.vlgmr.msra.gmra.mxu0 %v15280_v19  ;;  %v11316_v5 = vor.u32 %v13838_v61, %v11315_v60  ;;  %v11636_v7 = vor.u32 %v13918_v2, %v11635_v1  ;;  %v11576_v61 = vor.u32 %v13903_v50, %v11575_v48  ;;  %v11975_v48 = vld [vmem:[%s15025_s24 + $0x14a0] sm:$0xf] }
  0xdd   : > { %5887 = vmatpush.bf16.msrb.mxu0 %v11396_v6  ;;  %5856 = vmatmul.bf16.vlgmr.msra.gmra.mxu1 %v15287_v24  ;;  %v11476_v6 = vor.u32 %v13878_v0, %v11475_v62  ;;  %v12515_v62 = vld [vmem:[%s15025_s24 + $0x18d8] sm:$0xf]  ;;  %v571_v0 = vld [vmem:[#allocation3 + $0x60] sm:$0xff]  ;;  %v12036_v2 = vor.u32 %v14018_v54, %v12035_v53  ;;  %v14083_v54 = vld [vmem:[%s15025_s24 + $0x1730] sm:$0xf0] }
  0xde   : > { %5900 = vmatpush.bf16.msrb.mxu1 %v11556_v12  ;;  %5869 = vmatmul.bf16.vlgmr.msra.gmra.mxu2 %v15285_v23  ;;  %v11455_v12 = vld [vmem:[%s15025_s24 + $0x1090] sm:$0xf]  ;;  %v12135_v50 = vld [vmem:[%s15025_s24 + $0x15e0] sm:$0xf] }
  0xdf   : > { %5913 = vmatpush.bf16.msrb.mxu2 %v11716_v13  ;;  %5882 = vmatmul.bf16.vlgmr.msra.gmra.mxu3 %v15291_v28  ;;  %v11796_v13 = vor.u32 %v13958_v4, %v11795_v3  ;;  %v11456_v22 = vor.u32 %v13873_v14, %v11455_v12  ;;  %v573_v3 = vld [vmem:[#allocation3 + $0x70] sm:$0xff]  ;;  %v572_v4 = vld [vmem:[#allocation3 + $0x68] sm:$0xff]  ;;  %v15356_v14 = vpack.c.bf16 %v571_v0, %v571_v0  ;;  %v12295_v53 = vld [vmem:[%s15025_s24 + $0x1720] sm:$0xf] }
  0xe0   : > { %5926 = vmatpush.bf16.msrb.mxu3 %v11876_v18  ;;  %v11775_v18 = vld [vmem:[%s15025_s24 + $0x1310] sm:$0xf]  ;;  %v14038_v0 = vld [vmem:[%s15025_s24 + $0x15c8] sm:$0xf0] }
  0xe1   : > { %5888 = vmatpush.bf16.msrb.mxu0 %v11376_v29  ;;  %v13828_v29 = vld [vmem:[%s15025_s24 + $0xf38] sm:$0xf0]  ;;  %v12175_v12 = vld [vmem:[%s15025_s24 + $0x1630] sm:$0xf] }
  0xe2   : > { %5901 = vmatpush.bf16.msrb.mxu1 %v11536_v30  ;;  %v11435_v30 = vld [vmem:[%s15025_s24 + $0x1068] sm:$0xf]  ;;  %v11276_v40 = vor.u32 %v13828_v29, %v11275_v27  ;;  %v12016_v29 = vor.u32 %v14013_v11, %v12015_v8  ;;  %v11935_v8 = vld [vmem:[%s15025_s24 + $0x1450] sm:$0xf]  ;;  %v13993_v11 = vld [vmem:[%s15025_s24 + $0x1460] sm:$0xf0] }
  0xe3   : > { %5914 = vmatpush.bf16.msrb.mxu2 %v11696_v31  ;;  %v11776_v31 = vor.u32 %v13953_v20, %v11775_v18  ;;  %v11436_v44 = vor.u32 %v13868_v32, %v11435_v30  ;;  %v14093_v18 = vld [vmem:[%s15025_s24 + $0x1780] sm:$0xf0]  ;;  %v15361_v20 = vpack.c.bf16 %v573_v3, %v573_v3  ;;  %v12176_v30 = vor.u32 %v14053_v15, %v12175_v12  ;;  %v11995_v32 = vld [vmem:[%s15025_s24 + $0x14c8] sm:$0xf]  ;;  %v12435_v3 = vld [vmem:[%s15025_s24 + $0x1838] sm:$0xf] }
  0xe4   : > { %5927 = vmatpush.bf16.msrb.mxu3 %v11856_v36  ;;  %v11755_v36 = vld [vmem:[%s15025_s24 + $0x12e8] sm:$0xf]  ;;  %v12095_v12 = vld [vmem:[%s15025_s24 + $0x1590] sm:$0xf]  ;;  %v14033_v15 = vld [vmem:[%s15025_s24 + $0x15a0] sm:$0xf0] }
  0xe5   : > { %5889 = vmatpush.bf16.msrb.mxu0 %v11356_v45  ;;  %v11596_v45 = vor.u32 %v13908_v34, %v11595_v33  ;;  %v11756_v49 = vor.u32 %v13948_v37, %v11755_v36  ;;  %v14008_v33 = vld [vmem:[%s15025_s24 + $0x14d8] sm:$0xf0]  ;;  %v12155_v34 = vld [vmem:[%s15025_s24 + $0x1608] sm:$0xf] }
  0xe6   : > { %5902 = vmatpush.bf16.msrb.mxu1 %v11516_v46  ;;  %v11415_v46 = vld [vmem:[%s15025_s24 + $0x1040] sm:$0xf]  ;;  %v14048_v37 = vld [vmem:[%s15025_s24 + $0x1618] sm:$0xf0] }
  0xe7   : > { %5915 = vmatpush.bf16.msrb.mxu2 %v11676_v47  ;;  %v13863_v47 = vld [vmem:[%s15025_s24 + $0x1050] sm:$0xf0] }
  0xe8   : > { %5928 = vmatpush.bf16.msrb.mxu3 %v11836_v51  ;;  %v11735_v51 = vld [vmem:[%s15025_s24 + $0x12c0] sm:$0xf]  ;;  %v11416_v60 = vor.u32 %v13863_v47, %v11415_v46  ;;  %v12156_v46 = vor.u32 %v14048_v37, %v12155_v34  ;;  %v12075_v34 = vld [vmem:[%s15025_s24 + $0x1568] sm:$0xf]  ;;  %v14028_v37 = vld [vmem:[%s15025_s24 + $0x1578] sm:$0xf0] }
  0xe9   : > { %5890 = vmatpush.bf16.msrb.mxu0 %v11336_v57  ;;  %v14058_v57 = vld [vmem:[%s15025_s24 + $0x1668] sm:$0xf0]  ;;  %v11736_v1 = vor.u32 %v13943_v52, %v11735_v51  ;;  %v14043_v52 = vld [vmem:[%s15025_s24 + $0x15f0] sm:$0xf0] }
  0xea   : > { %5903 = vmatpush.bf16.msrb.mxu1 %v11496_v58  ;;  %v12355_v58 = vld [vmem:[%s15025_s24 + $0x1798] sm:$0xf] }
  0xeb   : > { %5916 = vmatpush.bf16.msrb.mxu2 %v11656_v59  ;;  %v14098_v59 = vld [vmem:[%s15025_s24 + $0x17a8] sm:$0xf0] }
  0xec   : > { %5929 = vmatpush.bf16.msrb.mxu3 %v11816_v63  ;;  %v14138_v63 = vld [vmem:[%s15025_s24 + $0x18e8] sm:$0xf0] }
  0xed   : > { %5891 = vmatpush.bf16.msrb.mxu0 %v11316_v5  ;;  %v574_v5 = vld [vmem:[#allocation3 + $0x78] sm:$0xff] }
  0xee   : > { %5904 = vmatpush.bf16.msrb.mxu1 %v11476_v6  ;;  %v12196_v6 = vor.u32 %v14058_v57, %v12195_v55  ;;  %v15367_v27 = vpack.c.bf16 %v574_v5, %v574_v5  ;;  %v12455_v55 = vld [vmem:[%s15025_s24 + $0x1860] sm:$0xf] }
  0xef   : > { %5917 = vmatpush.bf16.msrb.mxu2 %v11636_v7  ;;  %v12356_v7 = vor.u32 %v14098_v59, %v12355_v58  ;;  %v12136_v58 = vor.u32 %v14043_v52, %v12135_v50  ;;  %v12296_v59 = vor.u32 %v14083_v54, %v12295_v53  ;;  %v12055_v50 = vld [vmem:[%s15025_s24 + $0x1540] sm:$0xf]  ;;  %v14063_v54 = vld [vmem:[%s15025_s24 + $0x1690] sm:$0xf0] }
  0xf0   : > { %5930 = vmatpush.bf16.msrb.mxu3 %v11796_v13  ;;  %v12516_v13 = vor.u32 %v14138_v63, %v12515_v62  ;;  %v12115_v62 = vld [vmem:[%s15025_s24 + $0x15b8] sm:$0xf]  ;;  %v12215_v52 = vld [vmem:[%s15025_s24 + $0x1680] sm:$0xf] }
  0xf1   : > { %5892 = vmatpush.bf16.msrb.mxu0 %v11296_v21  ;;  %v15363_v21 = vpack.c.bf16 %v572_v4, %v572_v4  ;;  %v14118_v4 = vld [vmem:[%s15025_s24 + $0x1848] sm:$0xf0] }
  0xf2   : > { %5905 = vmatpush.bf16.msrb.mxu1 %v11456_v22  ;;  %v12495_v22 = vld [vmem:[%s15025_s24 + $0x18b0] sm:$0xf] }
  0xf3   : > { %5918 = vmatpush.bf16.msrb.mxu2 %v11616_v25  ;;  %v14133_v25 = vld [vmem:[%s15025_s24 + $0x18c0] sm:$0xf0] }
  0xf4   : > { %5931 = vmatpush.bf16.msrb.mxu3 %v11776_v31  ;;  %v12336_v31 = vor.u32 %v14093_v18, %v12335_v17  ;;  %v12496_v36 = vor.u32 %v14133_v25, %v12495_v22  ;;  %v12255_v17 = vld [vmem:[%s15025_s24 + $0x16d0] sm:$0xf]  ;;  %v14073_v18 = vld [vmem:[%s15025_s24 + $0x16e0] sm:$0xf0] }
  0xf5   : > { %5893 = vmatpush.bf16.msrb.mxu0 %v11276_v40  ;;  %v12315_v40 = vld [vmem:[%s15025_s24 + $0x1748] sm:$0xf]  ;;  %v12415_v22 = vld [vmem:[%s15025_s24 + $0x1810] sm:$0xf]  ;;  %v14113_v25 = vld [vmem:[%s15025_s24 + $0x1820] sm:$0xf0] }
  0xf6   : > { %5906 = vmatpush.bf16.msrb.mxu1 %v11436_v44  ;;  %v14128_v44 = vld [vmem:[%s15025_s24 + $0x1898] sm:$0xf0]  ;;  %v12316_v47 = vor.u32 %v14088_v42, %v12315_v40  ;;  %v12235_v40 = vld [vmem:[%s15025_s24 + $0x16a8] sm:$0xf] }
  0xf7   : > { %5919 = vmatpush.bf16.msrb.mxu2 %v11596_v45  ;;  %v11996_v45 = vor.u32 %v14008_v33, %v11995_v32  ;;  %v12476_v51 = vor.u32 %v14128_v44, %v12475_v43  ;;  %v11915_v32 = vld [vmem:[%s15025_s24 + $0x1428] sm:$0xf]  ;;  %v13988_v33 = vld [vmem:[%s15025_s24 + $0x1438] sm:$0xf0] }
  0xf8   : > { %5932 = vmatpush.bf16.msrb.mxu3 %v11756_v49  ;;  %v14003_v49 = vld [vmem:[%s15025_s24 + $0x14b0] sm:$0xf0]  ;;  %v14068_v42 = vld [vmem:[%s15025_s24 + $0x16b8] sm:$0xf0]  ;;  %v12395_v43 = vld [vmem:[%s15025_s24 + $0x17e8] sm:$0xf] }
  0xf9   : > { %5894 = vmatpush.bf16.msrb.mxu0 %v11256_v56  ;;  %v14123_v56 = vld [vmem:[%s15025_s24 + $0x1870] sm:$0xf0]  ;;  %v11976_v57 = vor.u32 %v14003_v49, %v11975_v48  ;;  %v14108_v44 = vld [vmem:[%s15025_s24 + $0x17f8] sm:$0xf0]  ;;  %v12076_v48 = vor.u32 %v14028_v37, %v12075_v34  ;;  %v12236_v49 = vor.u32 %v14068_v42, %v12235_v40 }
  0xfa   : > { %5907 = vmatpush.bf16.msrb.mxu1 %v11416_v60  ;;  %v11955_v60 = vld [vmem:[%s15025_s24 + $0x1478] sm:$0xf]  ;;  %v12456_v63 = vor.u32 %v14123_v56, %v12455_v55  ;;  %v12396_v53 = vor.u32 %v14108_v44, %v12395_v43  ;;  %v12375_v55 = vld [vmem:[%s15025_s24 + $0x17c0] sm:$0xf]  ;;  %v14103_v56 = vld [vmem:[%s15025_s24 + $0x17d0] sm:$0xf0] }
  0xfb   : > { %5920 = vmatpush.bf16.msrb.mxu2 %v11576_v61  ;;  %v13998_v61 = vld [vmem:[%s15025_s24 + $0x1488] sm:$0xf0]  ;;  %v13491_v34 = vld [vmem:[%s15025_s24 + $0x4b4] sm:$0xf] }
  0xfc   : > { %5933 = vmatpush.bf16.msrb.mxu3 %v11736_v1  ;;  %5895 = vmatmul.bf16.vlgmr.msrb.gmra.mxu0 %v15356_v14  ;;  %v12275_v1 = vld [vmem:[%s15025_s24 + $0x16f8] sm:$0xf]  ;;  %v11956_v5 = vor.u32 %v13998_v61, %v11955_v60  ;;  %v9637_v61 = vld [vmem:[%s15025_s24 + $0x26c] sm:$0xf0]  ;;  %v13366_v44 = vld [vmem:[%s15025_s24 + $0xcc] sm:$0xf] }
  0xfd   : > { %5939 = vmatpush.bf16.msra.mxu0 %v12036_v2  ;;  %5908 = vmatmul.bf16.vlgmr.msrb.gmra.mxu1 %v15363_v21  ;;  %v14078_v2 = vld [vmem:[%s15025_s24 + $0x1708] sm:$0xf0] }
  0xfe   : > { %5952 = vmatpush.bf16.msra.mxu1 %v12196_v6  ;;  %5921 = vmatmul.bf16.vlgmr.msrb.gmra.mxu2 %v15361_v20  ;;  %v12116_v6 = vor.u32 %v14038_v0, %v12115_v62  ;;  %v13456_v62 = vld [vmem:[%s15025_s24 + $0x39c] sm:$0xf] }
  0xff   : > { %5965 = vmatpush.bf16.msra.mxu2 %v12356_v7  ;;  %5934 = vmatmul.bf16.vlgmr.msrb.gmra.mxu3 %v15367_v27  ;;  %v12276_v7 = vor.u32 %v14078_v2, %v12275_v1  ;;  %v12216_v1 = vor.u32 %v14063_v54, %v12215_v52  ;;  %v13496_v2 = vld [vmem:[%s15025_s24 + $0x4dc] sm:$0xf]  ;;  %v9917_v52 = vld [vmem:[%s15025_s24 + $0x49c] sm:$0xf0]  ;;  %v13361_v54 = vld [vmem:[%s15025_s24 + $0xa4] sm:$0xf] }
 0x100   : > { %5978 = vmatpush.bf16.msra.mxu3 %v12516_v13  ;;  %v12436_v13 = vor.u32 %v14118_v4, %v12435_v3  ;;  %v9957_v3 = vld [vmem:[%s15025_s24 + $0x4ec] sm:$0xf0]  ;;  %v575_v4 = vld [vmem:[#allocation3 + $0x80] sm:$0xff] }
 0x101   : > { %5940 = vmatpush.bf16.msra.mxu0 %v12016_v29  ;;  %v11936_v29 = vor.u32 %v13993_v11, %v11935_v8  ;;  %v576_v8 = vld [vmem:[#allocation3 + $0x88] sm:$0xff]  ;;  %v578_v11 = vld [vmem:[#allocation3 + $0x98] sm:$0xff] }
 0x102   : > { %5953 = vmatpush.bf16.msra.mxu1 %v12176_v30  ;;  %v12096_v30 = vor.u32 %v14033_v15, %v12095_v12  ;;  %v13371_v15 = vld [vmem:[%s15025_s24 + $0xf4] sm:$0xf]  ;;  %v15443_v37 = vpack.c.bf16 %v578_v11, %v578_v11 }
 0x103   : > { %5966 = vmatpush.bf16.msra.mxu2 %v12336_v31  ;;  %v12256_v31 = vor.u32 %v14073_v18, %v12255_v17  ;;  %v9457_v17 = vld [vmem:[%s15025_s24 + $0x104] sm:$0xf0]  ;;  %v13411_v18 = vld [vmem:[%s15025_s24 + $0x234] sm:$0xf] }
 0x104   : > { %5979 = vmatpush.bf16.msra.mxu3 %v12496_v36  ;;  %v12416_v36 = vor.u32 %v14113_v25, %v12415_v22  ;;  %v9960_v22 = vor.u32 %v13496_v2, %v9957_v3  ;;  %v15432_v25 = vpack.c.bf16 %v575_v4, %v575_v4  ;;  %v9460_v40 = vor.u32 %v13371_v15, %v9457_v17  ;;  %v13356_v3 = vld [vmem:[%s15025_s24 + $0x7c] sm:$0xf]  ;;  %v9717_v15 = vld [vmem:[%s15025_s24 + $0x30c] sm:$0xf0] }
 0x105   : > { %5941 = vmatpush.bf16.msra.mxu0 %v11996_v45  ;;  %v11916_v45 = vor.u32 %v13988_v33, %v11915_v32  ;;  %v15439_v33 = vpack.c.bf16 %v576_v8, %v576_v8  ;;  %v13476_v17 = vld [vmem:[%s15025_s24 + $0x43c] sm:$0xf] }
 0x106   : > { %5954 = vmatpush.bf16.msra.mxu1 %v12156_v46  ;;  %v11895_v46 = vld [vmem:[%s15025_s24 + $0x1400] sm:$0xf] }
 0x107   : > { %5967 = vmatpush.bf16.msra.mxu2 %v12316_v47  ;;  %v13983_v47 = vld [vmem:[%s15025_s24 + $0x1410] sm:$0xf0] }
 0x108   : > { %5980 = vmatpush.bf16.msra.mxu3 %v12476_v51  ;;  %v14023_v51 = vld [vmem:[%s15025_s24 + $0x1550] sm:$0xf0]  ;;  %v11896_v60 = vor.u32 %v13983_v47, %v11895_v46  ;;  %v13406_v46 = vld [vmem:[%s15025_s24 + $0x20c] sm:$0xf] }
 0x109   : > { %5942 = vmatpush.bf16.msra.mxu0 %v11976_v57  ;;  %v13376_v57 = vld [vmem:[%s15025_s24 + $0x11c] sm:$0xf]  ;;  %v12056_v0 = vor.u32 %v14023_v51, %v12055_v50  ;;  %v9757_v50 = vld [vmem:[%s15025_s24 + $0x35c] sm:$0xf0]  ;;  %v13486_v51 = vld [vmem:[%s15025_s24 + $0x48c] sm:$0xf] }
 0x10a   : > { %5955 = vmatpush.bf16.msra.mxu1 %v12136_v58  ;;  %v9477_v58 = vld [vmem:[%s15025_s24 + $0x12c] sm:$0xf0] }
 0x10b   : > { %5968 = vmatpush.bf16.msra.mxu2 %v12296_v59  ;;  %v13416_v59 = vld [vmem:[%s15025_s24 + $0x25c] sm:$0xf] }
 0x10c   : > { %5981 = vmatpush.bf16.msra.mxu3 %v12456_v63  ;;  %v9797_v63 = vld [vmem:[%s15025_s24 + $0x3ac] sm:$0xf0]  ;;  %v9640_v12 = vor.u32 %v13416_v59, %v9637_v61  ;;  %v9577_v59 = vld [vmem:[%s15025_s24 + $0x1f4] sm:$0xf0]  ;;  %v13441_v61 = vld [vmem:[%s15025_s24 + $0x324] sm:$0xf] }
 0x10d   : > { %5943 = vmatpush.bf16.msra.mxu0 %v11956_v5  ;;  %v12376_v5 = vor.u32 %v14103_v56, %v12375_v55 }
 0x10e   : > { %5956 = vmatpush.bf16.msra.mxu1 %v12116_v6  ;;  %v9480_v6 = vor.u32 %v13376_v57, %v9477_v58  ;;  %v9417_v57 = vld [vmem:[%s15025_s24 + $0xb4] sm:$0xf0]  ;;  %v13401_v58 = vld [vmem:[%s15025_s24 + $0x1e4] sm:$0xf] }
 0x10f   : > { %5969 = vmatpush.bf16.msra.mxu2 %v12276_v7  ;;  %v577_v7 = vld [vmem:[#allocation3 + $0x90] sm:$0xff]  ;;  %v9420_v2 = vor.u32 %v13361_v54, %v9417_v57  ;;  %v9580_v4 = vor.u32 %v13401_v58, %v9577_v59  ;;  %v9357_v54 = vld [vmem:[%s15025_s24 + $0x3c] sm:$0xf0]  ;;  %v13426_v59 = vld [vmem:[%s15025_s24 + $0x2ac] sm:$0xf] }
 0x110   : > { %5982 = vmatpush.bf16.msra.mxu3 %v12436_v13  ;;  %v9800_v13 = vor.u32 %v13456_v62, %v9797_v63  ;;  %v15437_v32 = vpack.c.bf16 %v577_v7, %v577_v7  ;;  %v9737_v62 = vld [vmem:[%s15025_s24 + $0x334] sm:$0xf0]  ;;  %v1559_v63 = vld [vmem:[%s15031_s11] sm:$0x1f]  ;;  %v13396_v7 = vld [vmem:[%s15025_s24 + $0x1bc] sm:$0xf] }
 0x111   : > { %5944 = vmatpush.bf16.msra.mxu0 %v11936_v29  ;;  %v9617_v29 = vld [vmem:[%s15025_s24 + $0x244] sm:$0xf0]  ;;  %v1561_v8 = vperm.slane %v1559_v63, 0  ;;  %v9517_v58 = vld [vmem:[%s15025_s24 + $0x17c] sm:$0xf0] }
 0x112   : > { %5957 = vmatpush.bf16.msra.mxu1 %v12096_v30  ;;  %v13451_v30 = vld [vmem:[%s15025_s24 + $0x374] sm:$0xf]  ;;  %v9620_v42 = vor.u32 %v13411_v18, %v9617_v29  ;;  %v9877_v18 = vld [vmem:[%s15025_s24 + $0x44c] sm:$0xf0]  ;;  %v9837_v63 = vld [vmem:[%s15025_s24 + $0x3fc] sm:$0xf0] }
 0x113   : > { %5970 = vmatpush.bf16.msra.mxu2 %v12256_v31  ;;  %v9777_v31 = vld [vmem:[%s15025_s24 + $0x384] sm:$0xf0] }
 0x114   : > { %5983 = vmatpush.bf16.msra.mxu3 %v12416_v36  ;;  %v9937_v36 = vld [vmem:[%s15025_s24 + $0x4c4] sm:$0xf0]  ;;  %v9780_v43 = vor.u32 %v13451_v30, %v9777_v31 }
 0x115   : > { %5945 = vmatpush.bf16.msra.mxu0 %v11916_v45  ;;  %v9437_v45 = vld [vmem:[%s15025_s24 + $0xdc] sm:$0xf0]  ;;  %v9940_v47 = vor.u32 %v13491_v34, %v9937_v36  ;;  %v13351_v34 = vld [vmem:[%s15025_s24 + $0x54] sm:$0xf]  ;;  %v9377_v36 = vld [vmem:[%s15025_s24 + $0x64] sm:$0xf0] }
 0x116   : > { %5958 = vmatpush.bf16.msra.mxu1 %v12076_v48  ;;  %v9597_v48 = vld [vmem:[%s15025_s24 + $0x21c] sm:$0xf0] }
 0x117   : > { %5971 = vmatpush.bf16.msra.mxu2 %v12236_v49  ;;  %v13446_v49 = vld [vmem:[%s15025_s24 + $0x34c] sm:$0xf]  ;;  %v9600_v55 = vor.u32 %v13406_v46, %v9597_v48  ;;  %v9697_v46 = vld [vmem:[%s15025_s24 + $0x2e4] sm:$0xf0] }
 0x118   : > { %5984 = vmatpush.bf16.msra.mxu3 %v12396_v53  ;;  %v9440_v53 = vor.u32 %v13366_v44, %v9437_v45  ;;  %v9760_v56 = vor.u32 %v13446_v49, %v9757_v50  ;;  %v9537_v44 = vld [vmem:[%s15025_s24 + $0x1a4] sm:$0xf0]  ;;  %v13431_v45 = vld [vmem:[%s15025_s24 + $0x2d4] sm:$0xf]  ;;  %v9380_v49 = vor.u32 %v13351_v34, %v9377_v36  ;;  %v10277_v36 = vld [vmem:[%s15025_s24 + $0x76c] sm:$0xf0] }
 0x119   : > { %5946 = vmatpush.bf16.msra.mxu0 %v11896_v60  ;;  %v9920_v60 = vor.u32 %v13486_v51, %v9917_v52  ;;  %v5740_v29 = vpop.f32.mrf.mxu0  ;;  %v9857_v48 = vld [vmem:[%s15025_s24 + $0x424] sm:$0xf0]  ;;  %v9700_v52 = vor.u32 %v13431_v45, %v9697_v46  ;;  %v13656_v46 = vld [vmem:[%s15025_s24 + $0x9dc] sm:$0xf] }
 0x11a   : > { %5959 = vmatpush.bf16.msra.mxu1 %v12056_v0  ;;  %v13481_v0 = vld [vmem:[%s15025_s24 + $0x464] sm:$0xf]  ;;  %v5753_v50 = vpop.f32.mrf.mxu1 }
 0x11b   : > { %5972 = vmatpush.bf16.msra.mxu2 %v12216_v1  ;;  %v9897_v1 = vld [vmem:[%s15025_s24 + $0x474] sm:$0xf0] }
 0x11c   : > { %5985 = vmatpush.bf16.msra.mxu3 %v12376_v5  ;;  %5947 = vmatmul.bf16.vlgmr.msra.gmra.mxu0 %v15432_v25  ;;  %v9740_v5 = vor.u32 %v13441_v61, %v9737_v62  ;;  %v9900_v11 = vor.u32 %v13481_v0, %v9897_v1  ;;  %v13466_v62 = vld [vmem:[%s15025_s24 + $0x3ec] sm:$0xf] }
 0x11d   : > { %5991 = vmatpush.bf16.msrb.mxu0 %v9480_v6  ;;  %5960 = vmatmul.bf16.vlgmr.msra.gmra.mxu1 %v15439_v33  ;;  %v9397_v6 = vld [vmem:[%s15025_s24 + $0x8c] sm:$0xf0] }
 0x11e   : > { %6004 = vmatpush.bf16.msrb.mxu1 %v9640_v12  ;;  %5973 = vmatmul.bf16.vlgmr.msra.gmra.mxu2 %v15437_v32  ;;  %v9557_v12 = vld [vmem:[%s15025_s24 + $0x1cc] sm:$0xf0] }
 0x11f   : > { %6017 = vmatpush.bf16.msrb.mxu2 %v9800_v13  ;;  %5986 = vmatmul.bf16.vlgmr.msra.gmra.mxu3 %v15443_v37  ;;  %v13436_v13 = vld [vmem:[%s15025_s24 + $0x2fc] sm:$0xf]  ;;  %v9560_v30 = vor.u32 %v13396_v7, %v9557_v12  ;;  %v13421_v12 = vld [vmem:[%s15025_s24 + $0x284] sm:$0xf] }
 0x120   : > { %6030 = vmatpush.bf16.msrb.mxu3 %v9960_v22  ;;  %v9400_v22 = vor.u32 %v13356_v3, %v9397_v6  ;;  %v9720_v31 = vor.u32 %v13436_v13, %v9717_v15  ;;  %v13341_v3 = vld [vmem:[%s15025_s24 + $0x4] sm:$0xf]  ;;  %v9840_v15 = vor.u32 %v13466_v62, %v9837_v63  ;;  %v10577_v62 = vld [vmem:[%s15025_s24 + $0x9c4] sm:$0xf0] }
 0x121   : > { %5992 = vmatpush.bf16.msrb.mxu0 %v9460_v40  ;;  %v13391_v40 = vld [vmem:[%s15025_s24 + $0x194] sm:$0xf]  ;;  %v5766_v61 = vpop.f32.mrf.mxu2 }
 0x122   : > { %6005 = vmatpush.bf16.msrb.mxu1 %v9620_v42  ;;  %v5741_v42 = vadd.f32 %v5740_v29, %v1561_v8  ;;  %v9540_v51 = vor.u32 %v13391_v40, %v9537_v44  ;;  %v5779_v1 = vpop.f32.mrf.mxu3  ;;  %v13381_v8 = vld [vmem:[%s15025_s24 + $0x144] sm:$0xf]  ;;  %v13536_v29 = vld [vmem:[%s15025_s24 + $0x61c] sm:$0xf] }
 0x123   : > { %6018 = vmatpush.bf16.msrb.mxu2 %v9780_v43  ;;  %v9880_v43 = vor.u32 %v13476_v17, %v9877_v18  ;;  %v9657_v17 = vld [vmem:[%s15025_s24 + $0x294] sm:$0xf0]  ;;  %v13461_v18 = vld [vmem:[%s15025_s24 + $0x3c4] sm:$0xf]  ;;  %v13616_v40 = vld [vmem:[%s15025_s24 + $0x89c] sm:$0xf] }
 0x124   : > { %6031 = vmatpush.bf16.msrb.mxu3 %v9940_v47  ;;  %v13471_v47 = vld [vmem:[%s15025_s24 + $0x414] sm:$0xf]  ;;  %v9660_v45 = vor.u32 %v13421_v12, %v9657_v17  ;;  %v10557_v12 = vld [vmem:[%s15025_s24 + $0x99c] sm:$0xf0] }
 0x125   : > { %5993 = vmatpush.bf16.msrb.mxu0 %v9440_v53  ;;  %v13346_v53 = vld [vmem:[%s15025_s24 + $0x2c] sm:$0xf]  ;;  %v9860_v57 = vor.u32 %v13471_v47, %v9857_v48  ;;  %v10597_v47 = vld [vmem:[%s15025_s24 + $0x9ec] sm:$0xf0] }
 0x126   : > { %6006 = vmatpush.bf16.msrb.mxu1 %v9600_v55  ;;  %v13386_v55 = vld [vmem:[%s15025_s24 + $0x16c] sm:$0xf] }
 0x127   : > { %6019 = vmatpush.bf16.msrb.mxu2 %v9760_v56  ;;  %v5754_v56 = vadd.f32 %v5753_v50, %v5741_v42  ;;  %v9520_v6 = vor.u32 %v13386_v55, %v9517_v58  ;;  %v10437_v42 = vld [vmem:[%s15025_s24 + $0x8ac] sm:$0xf0]  ;;  %v13571_v55 = vld [vmem:[%s15025_s24 + $0x734] sm:$0xf]  ;;  %v10257_v58 = vld [vmem:[%s15025_s24 + $0x744] sm:$0xf0] }
 0x128   : > { %6032 = vmatpush.bf16.msrb.mxu3 %v9920_v60  ;;  %v9677_v60 = vld [vmem:[%s15025_s24 + $0x2bc] sm:$0xf0] }
 0x129   : > { %5994 = vmatpush.bf16.msrb.mxu0 %v9420_v2  ;;  %v5767_v0 = vadd.f32 %v5766_v61, %v5754_v56  ;;  %v9360_v2 = vor.u32 %v13346_v53, %v9357_v54  ;;  %v9680_v7 = vor.u32 %v13426_v59, %v9677_v60  ;;  %v5768_v50 = vpop.f32.mrf.mxu2  ;;  %v13531_v53 = vld [vmem:[%s15025_s24 + $0x5f4] sm:$0xf]  ;;  %v10097_v54 = vld [vmem:[%s15025_s24 + $0x604] sm:$0xf0] }
 0x12a   : > { %6007 = vmatpush.bf16.msrb.mxu1 %v9580_v4  ;;  %v9337_v4 = vld [vmem:[%s15025_s24 + $0x14] sm:$0xf0]  ;;  %v5781_v56 = vpop.f32.mrf.mxu3  ;;  %v13611_v59 = vld [vmem:[%s15025_s24 + $0x874] sm:$0xf]  ;;  %v10417_v60 = vld [vmem:[%s15025_s24 + $0x884] sm:$0xf0]  ;;  %v10100_v63 = vor.u32 %v13531_v53, %v10097_v54 }
 0x12b   : > { %6020 = vmatpush.bf16.msrb.mxu2 %v9740_v5  ;;  %v5742_v5 = vpop.f32.mrf.mxu0  ;;  %v15495_v13 = vadd.f32 %v5779_v1, %v5767_v0  ;;  %v9340_v34 = vor.u32 %v13341_v3, %v9337_v4  ;;  %v13651_v61 = vld [vmem:[%s15025_s24 + $0x9b4] sm:$0xf]  ;;  %v10260_v0 = vor.u32 %v13571_v55, %v10257_v58  ;;  %v10420_v1 = vor.u32 %v13611_v59, %v10417_v60  ;;  %v10077_v3 = vld [vmem:[%s15025_s24 + $0x5dc] sm:$0xf0]  ;;  %v13566_v4 = vld [vmem:[%s15025_s24 + $0x70c] sm:$0xf] }
 0x12c   : > { %6033 = vmatpush.bf16.msrb.mxu3 %v9900_v11  ;;  %v9497_v11 = vld [vmem:[%s15025_s24 + $0x154] sm:$0xf0]  ;;  %v10580_v5 = vor.u32 %v13651_v61, %v10577_v62  ;;  %v13556_v50 = vld [vmem:[%s15025_s24 + $0x6bc] sm:$0xf]  ;;  %v10197_v54 = vld [vmem:[%s15025_s24 + $0x6cc] sm:$0xf0] }
 0x12d   : > { %5995 = vmatpush.bf16.msrb.mxu0 %v9400_v22  ;;  %v9817_v22 = vld [vmem:[%s15025_s24 + $0x3d4] sm:$0xf0]  ;;  %v9500_v44 = vor.u32 %v13381_v8, %v9497_v11  ;;  %v10397_v8 = vld [vmem:[%s15025_s24 + $0x85c] sm:$0xf0]  ;;  %v13646_v11 = vld [vmem:[%s15025_s24 + $0x98c] sm:$0xf] }
 0x12e   : > { %6008 = vmatpush.bf16.msrb.mxu1 %v9560_v30  ;;  %v10117_v30 = vld [vmem:[%s15025_s24 + $0x62c] sm:$0xf0]  ;;  %v9820_v48 = vor.u32 %v13461_v18, %v9817_v22  ;;  %v13521_v22 = vld [vmem:[%s15025_s24 + $0x5a4] sm:$0xf]  ;;  %v13596_v55 = vld [vmem:[%s15025_s24 + $0x7fc] sm:$0xf] }
 0x12f   : > { %6021 = vmatpush.bf16.msrb.mxu2 %v9720_v31  ;;  %v13576_v31 = vld [vmem:[%s15025_s24 + $0x75c] sm:$0xf]  ;;  %v10357_v56 = vld [vmem:[%s15025_s24 + $0x80c] sm:$0xf0]  ;;  %v13511_v62 = vld [vmem:[%s15025_s24 + $0x554] sm:$0xf] }
 0x130   : > { %6034 = vmatpush.bf16.msrb.mxu3 %v9880_v43  ;;  %v5755_v43 = vpop.f32.mrf.mxu1  ;;  %v10517_v58 = vld [vmem:[%s15025_s24 + $0x94c] sm:$0xf0]  ;;  %v10360_v61 = vor.u32 %v13596_v55, %v10357_v56  ;;  %v10297_v56 = vld [vmem:[%s15025_s24 + $0x794] sm:$0xf0] }
 0x131   : > { %5996 = vmatpush.bf16.msrb.mxu0 %v9380_v49  ;;  %v10120_v49 = vor.u32 %v13536_v29, %v10117_v30  ;;  %v10057_v29 = vld [vmem:[%s15025_s24 + $0x5b4] sm:$0xf0]  ;;  %v13561_v30 = vld [vmem:[%s15025_s24 + $0x6e4] sm:$0xf] }
 0x132   : > { %6009 = vmatpush.bf16.msrb.mxu1 %v9540_v51  ;;  %v10280_v51 = vor.u32 %v13576_v31, %v10277_v36  ;;  %v10560_v31 = vor.u32 %v13646_v11, %v10557_v12  ;;  %v13601_v36 = vld [vmem:[%s15025_s24 + $0x824] sm:$0xf]  ;;  %v10537_v43 = vld [vmem:[%s15025_s24 + $0x974] sm:$0xf0]  ;;  %v10497_v11 = vld [vmem:[%s15025_s24 + $0x924] sm:$0xf0] }
 0x133   : > { %6022 = vmatpush.bf16.msrb.mxu2 %v9700_v52  ;;  %v10440_v52 = vor.u32 %v13616_v40, %v10437_v42  ;;  %v10377_v40 = vld [vmem:[%s15025_s24 + $0x834] sm:$0xf0]  ;;  %v13641_v42 = vld [vmem:[%s15025_s24 + $0x964] sm:$0xf] }
 0x134   : > { %6035 = vmatpush.bf16.msrb.mxu3 %v9860_v57  ;;  %v10600_v57 = vor.u32 %v13656_v46, %v10597_v47  ;;  %v10380_v47 = vor.u32 %v13601_v36, %v10377_v40  ;;  %v10540_v53 = vor.u32 %v13641_v42, %v10537_v43  ;;  %v10157_v40 = vld [vmem:[%s15025_s24 + $0x67c] sm:$0xf0]  ;;  %v13586_v42 = vld [vmem:[%s15025_s24 + $0x7ac] sm:$0xf] }
 0x135   : > { %5997 = vmatpush.bf16.msrb.mxu0 %v9360_v2  ;;  %v13526_v2 = vld [vmem:[%s15025_s24 + $0x5cc] sm:$0xf]  ;;  %v10317_v43 = vld [vmem:[%s15025_s24 + $0x7bc] sm:$0xf0] }
 0x136   : > { %6010 = vmatpush.bf16.msrb.mxu1 %v9520_v6  ;;  %v10237_v6 = vld [vmem:[%s15025_s24 + $0x71c] sm:$0xf0] }
 0x137   : > { %6023 = vmatpush.bf16.msrb.mxu2 %v9680_v7  ;;  %v13606_v7 = vld [vmem:[%s15025_s24 + $0x84c] sm:$0xf]  ;;  %v10240_v17 = vor.u32 %v13566_v4, %v10237_v6  ;;  %v13591_v4 = vld [vmem:[%s15025_s24 + $0x7d4] sm:$0xf] }
 0x138   : > { %6036 = vmatpush.bf16.msrb.mxu3 %v9840_v15  ;;  %v10080_v15 = vor.u32 %v13526_v2, %v10077_v3  ;;  %v10400_v18 = vor.u32 %v13606_v7, %v10397_v8  ;;  %v10177_v3 = vld [vmem:[%s15025_s24 + $0x6a4] sm:$0xf0]  ;;  %v13631_v8 = vld [vmem:[%s15025_s24 + $0x914] sm:$0xf] }
 0x139   : > { %5998 = vmatpush.bf16.msrb.mxu0 %v9340_v34  ;;  %v10217_v34 = vld [vmem:[%s15025_s24 + $0x6f4] sm:$0xf0]  ;;  %v10500_v36 = vor.u32 %v13631_v8, %v10497_v11 }
 0x13a   : > { %6011 = vmatpush.bf16.msrb.mxu1 %v9500_v44  ;;  %v10060_v44 = vor.u32 %v13521_v22, %v10057_v29  ;;  %v10220_v46 = vor.u32 %v13561_v30, %v10217_v34  ;;  %v13506_v29 = vld [vmem:[%s15025_s24 + $0x52c] sm:$0xf]  ;;  %v9997_v30 = vld [vmem:[%s15025_s24 + $0x53c] sm:$0xf0] }
 0x13b   : > { %6024 = vmatpush.bf16.msrb.mxu2 %v9660_v45  ;;  %v5792_v45 = vpop.f32.mrf.mxu0 }
 0x13c   : > { %6037 = vmatpush.bf16.msrb.mxu3 %v9820_v48  ;;  %5999 = vmatmul.bf16.vlgmr.msrb.gmra.mxu0 %v15146_v10  ;;  %v13516_v48 = vld [vmem:[%s15025_s24 + $0x57c] sm:$0xf] }
 0x13d   : > { %6043 = vmatpush.bf16.msra.mxu0 %v10120_v49  ;;  %6012 = vmatmul.bf16.vlgmr.msrb.gmra.mxu1 %v15161_v26  ;;  %v10037_v49 = vld [vmem:[%s15025_s24 + $0x58c] sm:$0xf0] }
 0x13e   : > { %6056 = vmatpush.bf16.msra.mxu1 %v10280_v51  ;;  %6025 = vmatmul.bf16.vlgmr.msrb.gmra.mxu2 %v15144_v9  ;;  %v5793_v51 = vadd.f32 %v5792_v45, %v15495_v13  ;;  %v10040_v60 = vor.u32 %v13516_v48, %v10037_v49  ;;  %v10200_v13 = vor.u32 %v13556_v50, %v10197_v54  ;;  %v10477_v45 = vld [vmem:[%s15025_s24 + $0x8fc] sm:$0xf0]  ;;  %v9977_v48 = vld [vmem:[%s15025_s24 + $0x514] sm:$0xf0] }
 0x13f   : > { %6069 = vmatpush.bf16.msra.mxu2 %v10440_v52  ;;  %6038 = vmatmul.bf16.vlgmr.msrb.gmra.mxu3 %v15151_v16  ;;  %v5805_v52 = vpop.f32.mrf.mxu1  ;;  %v10320_v50 = vor.u32 %v13586_v42, %v10317_v43 }
 0x140   : > { %6082 = vmatpush.bf16.msra.mxu3 %v10600_v57  ;;  %v13636_v57 = vld [vmem:[%s15025_s24 + $0x93c] sm:$0xf]  ;;  %v5806_v59 = vadd.f32 %v5805_v52, %v5793_v51  ;;  %v13541_v51 = vld [vmem:[%s15025_s24 + $0x644] sm:$0xf]  ;;  %v10137_v52 = vld [vmem:[%s15025_s24 + $0x654] sm:$0xf0] }
 0x141   : > { %6044 = vmatpush.bf16.msra.mxu0 %v10100_v63  ;;  %v10017_v63 = vld [vmem:[%s15025_s24 + $0x564] sm:$0xf0]  ;;  %v10520_v2 = vor.u32 %v13636_v57, %v10517_v58  ;;  %v13621_v57 = vld [vmem:[%s15025_s24 + $0x8c4] sm:$0xf]  ;;  %v10457_v58 = vld [vmem:[%s15025_s24 + $0x8d4] sm:$0xf0] }
 0x142   : > { %6057 = vmatpush.bf16.msra.mxu1 %v10260_v0  ;;  %v13551_v0 = vld [vmem:[%s15025_s24 + $0x694] sm:$0xf]  ;;  %v5831_v7 = vpop.f32.mrf.mxu3  ;;  %v10020_v12 = vor.u32 %v13511_v62, %v10017_v63  ;;  %v10917_v63 = vld [vmem:[%s15025_s24 + $0xc6c] sm:$0xf0] }
 0x143   : > { %6070 = vmatpush.bf16.msra.mxu2 %v10420_v1  ;;  %v5818_v1 = vpop.f32.mrf.mxu2 }
 0x144   : > { %6083 = vmatpush.bf16.msra.mxu3 %v10580_v5  ;;  %v10337_v5 = vld [vmem:[%s15025_s24 + $0x7e4] sm:$0xf0]  ;;  %v5819_v6 = vadd.f32 %v5818_v1, %v5806_v59  ;;  %v11077_v1 = vld [vmem:[%s15025_s24 + $0xdac] sm:$0xf0] }
 0x145   : > { %6045 = vmatpush.bf16.msra.mxu0 %v10080_v15  ;;  %v10340_v22 = vor.u32 %v13591_v4, %v10337_v5  ;;  %v13816_v4 = vld [vmem:[%s15025_s24 + $0xedc] sm:$0xf]  ;;  %v11237_v5 = vld [vmem:[%s15025_s24 + $0xeec] sm:$0xf0] }
 0x146   : > { %6058 = vmatpush.bf16.msra.mxu1 %v10240_v17  ;;  %v15553_v15 = vadd.f32 %v5831_v7, %v5819_v6  ;;  %v5794_v17 = vpop.f32.mrf.mxu0  ;;  %v10460_v6 = vor.u32 %v13621_v57, %v10457_v58  ;;  %v10697_v57 = vld [vmem:[%s15025_s24 + $0xab4] sm:$0xf0]  ;;  %v13721_v58 = vld [vmem:[%s15025_s24 + $0xbe4] sm:$0xf] }
 0x147   : > { %6071 = vmatpush.bf16.msra.mxu2 %v10400_v18  ;;  %v10180_v18 = vor.u32 %v13551_v0, %v10177_v3  ;;  %v5807_v34 = vpop.f32.mrf.mxu1  ;;  %v13776_v0 = vld [vmem:[%s15025_s24 + $0xd9c] sm:$0xf]  ;;  %v10737_v17 = vld [vmem:[%s15025_s24 + $0xb04] sm:$0xf0] }
 0x148   : > { %6084 = vmatpush.bf16.msra.mxu3 %v10560_v31  ;;  %v13546_v31 = vld [vmem:[%s15025_s24 + $0x66c] sm:$0xf]  ;;  %v11080_v11 = vor.u32 %v13776_v0, %v11077_v1  ;;  %v13811_v34 = vld [vmem:[%s15025_s24 + $0xeb4] sm:$0xf]  ;;  %v11177_v0 = vld [vmem:[%s15025_s24 + $0xe74] sm:$0xf0] }
 0x149   : > { %6046 = vmatpush.bf16.msra.mxu0 %v10060_v44  ;;  %v13626_v44 = vld [vmem:[%s15025_s24 + $0x8ec] sm:$0xf]  ;;  %v10160_v49 = vor.u32 %v13546_v31, %v10157_v40  ;;  %v11057_v31 = vld [vmem:[%s15025_s24 + $0xd84] sm:$0xf0] }
 0x14a   : > { %6059 = vmatpush.bf16.msra.mxu1 %v10220_v46  ;;  %v10000_v46 = vor.u32 %v13506_v29, %v9997_v30  ;;  %v10480_v55 = vor.u32 %v13626_v44, %v10477_v45  ;;  %v5833_v59 = vpop.f32.mrf.mxu3  ;;  %v10897_v29 = vld [vmem:[%s15025_s24 + $0xc44] sm:$0xf0]  ;;  %v13771_v30 = vld [vmem:[%s15025_s24 + $0xd74] sm:$0xf]  ;;  %v13686_v44 = vld [vmem:[%s15025_s24 + $0xacc] sm:$0xf] }
 0x14b   : > { %6072 = vmatpush.bf16.msra.mxu2 %v10380_v47  ;;  %v13501_v47 = vld [vmem:[%s15025_s24 + $0x504] sm:$0xf]  ;;  %v5820_v54 = vpop.f32.mrf.mxu2  ;;  %v11060_v43 = vor.u32 %v13771_v30, %v11057_v31  ;;  %v10717_v45 = vld [vmem:[%s15025_s24 + $0xadc] sm:$0xf0] }
 0x14c   : > { %6085 = vmatpush.bf16.msra.mxu3 %v10540_v53  ;;  %v13581_v53 = vld [vmem:[%s15025_s24 + $0x784] sm:$0xf]  ;;  %v9980_v62 = vor.u32 %v13501_v47, %v9977_v48  ;;  %v10877_v48 = vld [vmem:[%s15025_s24 + $0xc1c] sm:$0xf0] }
 0x14d   : > { %6047 = vmatpush.bf16.msra.mxu0 %v10040_v60  ;;  %v13696_v60 = vld [vmem:[%s15025_s24 + $0xb1c] sm:$0xf]  ;;  %v10300_v3 = vor.u32 %v13581_v53, %v10297_v56  ;;  %v10720_v53 = vor.u32 %v13686_v44, %v10717_v45  ;;  %v13681_v56 = vld [vmem:[%s15025_s24 + $0xaa4] sm:$0xf]  ;;  %v10817_v45 = vld [vmem:[%s15025_s24 + $0xba4] sm:$0xf0] }
 0x14e   : > { %6060 = vmatpush.bf16.msra.mxu1 %v10200_v13  ;;  %v10757_v13 = vld [vmem:[%s15025_s24 + $0xb2c] sm:$0xf0] }
 0x14f   : > { %6073 = vmatpush.bf16.msra.mxu2 %v10360_v61  ;;  %v13736_v61 = vld [vmem:[%s15025_s24 + $0xc5c] sm:$0xf]  ;;  %v10760_v7 = vor.u32 %v13696_v60, %v10757_v13  ;;  %v10857_v60 = vld [vmem:[%s15025_s24 + $0xbf4] sm:$0xf0]  ;;  %v13761_v13 = vld [vmem:[%s15025_s24 + $0xd24] sm:$0xf] }
 0x150   : > { %6086 = vmatpush.bf16.msra.mxu3 %v10520_v2  ;;  %v10140_v2 = vor.u32 %v13541_v51, %v10137_v52  ;;  %v10920_v8 = vor.u32 %v13736_v61, %v10917_v63  ;;  %v13806_v51 = vld [vmem:[%s15025_s24 + $0xe8c] sm:$0xf]  ;;  %v11197_v52 = vld [vmem:[%s15025_s24 + $0xe9c] sm:$0xf0]  ;;  %v11017_v61 = vld [vmem:[%s15025_s24 + $0xd34] sm:$0xf0] }
 0x151   : > { %6048 = vmatpush.bf16.msra.mxu0 %v10020_v12  ;;  %v13691_v12 = vld [vmem:[%s15025_s24 + $0xaf4] sm:$0xf]  ;;  %v11200_v59 = vor.u32 %v13806_v51, %v11197_v52  ;;  %v13801_v63 = vld [vmem:[%s15025_s24 + $0xe64] sm:$0xf]  ;;  %v11137_v51 = vld [vmem:[%s15025_s24 + $0xe24] sm:$0xf0] }
 0x152   : > { %6061 = vmatpush.bf16.msra.mxu1 %v10180_v18  ;;  %v13731_v18 = vld [vmem:[%s15025_s24 + $0xc34] sm:$0xf]  ;;  %v10740_v40 = vor.u32 %v13691_v12, %v10737_v17  ;;  %v10837_v17 = vld [vmem:[%s15025_s24 + $0xbcc] sm:$0xf0] }
 0x153   : > { %6074 = vmatpush.bf16.msra.mxu2 %v10340_v22  ;;  %v11240_v22 = vor.u32 %v13816_v4, %v11237_v5  ;;  %v10900_v42 = vor.u32 %v13731_v18, %v10897_v29  ;;  %v10860_v4 = vor.u32 %v13721_v58, %v10857_v60  ;;  %v11020_v5 = vor.u32 %v13761_v13, %v11017_v61  ;;  %v13756_v18 = vld [vmem:[%s15025_s24 + $0xcfc] sm:$0xf]  ;;  %v11157_v29 = vld [vmem:[%s15025_s24 + $0xe4c] sm:$0xf0]  ;;  %v13666_v58 = vld [vmem:[%s15025_s24 + $0xa2c] sm:$0xf] }
 0x154   : > { %6087 = vmatpush.bf16.msra.mxu3 %v10500_v36  ;;  %v11217_v36 = vld [vmem:[%s15025_s24 + $0xec4] sm:$0xf0]  ;;  %v13706_v60 = vld [vmem:[%s15025_s24 + $0xb6c] sm:$0xf]  ;;  %v10797_v61 = vld [vmem:[%s15025_s24 + $0xb7c] sm:$0xf0] }
 0x155   : > { %6049 = vmatpush.bf16.msra.mxu0 %v10000_v46  ;;  %v13726_v46 = vld [vmem:[%s15025_s24 + $0xc0c] sm:$0xf]  ;;  %v11220_v47 = vor.u32 %v13811_v34, %v11217_v36  ;;  %v13671_v36 = vld [vmem:[%s15025_s24 + $0xa54] sm:$0xf] }
 0x156   : > { %6062 = vmatpush.bf16.msra.mxu1 %v10160_v49  ;;  %v13766_v49 = vld [vmem:[%s15025_s24 + $0xd4c] sm:$0xf]  ;;  %v10880_v54 = vor.u32 %v13726_v46, %v10877_v48  ;;  %v13751_v46 = vld [vmem:[%s15025_s24 + $0xcd4] sm:$0xf] }
 0x157   : > { %6075 = vmatpush.bf16.msra.mxu2 %v10320_v50  ;;  %v11037_v50 = vld [vmem:[%s15025_s24 + $0xd5c] sm:$0xf0] }
 0x158   : > { %6088 = vmatpush.bf16.msra.mxu3 %v10480_v55  ;;  %v11040_v55 = vor.u32 %v13766_v49, %v11037_v50  ;;  %v13791_v50 = vld [vmem:[%s15025_s24 + $0xe14] sm:$0xf] }
 0x159   : > { %6050 = vmatpush.bf16.msra.mxu0 %v9980_v62  ;;  %v5844_v62 = vpop.f32.mrf.mxu0  ;;  %v11140_v13 = vor.u32 %v13791_v50, %v11137_v51 }
 0x15a   : > { %6063 = vmatpush.bf16.msra.mxu1 %v10140_v2  ;;  %v5845_v1 = vadd.f32 %v5844_v62, %v15553_v15  ;;  %v10700_v2 = vor.u32 %v13681_v56, %v10697_v57  ;;  %v10997_v15 = vld [vmem:[%s15025_s24 + $0xd0c] sm:$0xf0]  ;;  %v13746_v62 = vld [vmem:[%s15025_s24 + $0xcac] sm:$0xf] }
 0x15b   : > { %6076 = vmatpush.bf16.msra.mxu2 %v10300_v3  ;;  %v5857_v3 = vpop.f32.mrf.mxu1  ;;  %v11000_v34 = vor.u32 %v13756_v18, %v10997_v15  ;;  %v13781_v18 = vld [vmem:[%s15025_s24 + $0xdc4] sm:$0xf]  ;;  %v11097_v15 = vld [vmem:[%s15025_s24 + $0xdd4] sm:$0xf0] }
 0x15c   : > { %6089 = vmatpush.bf16.msra.mxu3 %v10460_v6  ;;  %6051 = vmatmul.bf16.vlgmr.msra.gmra.mxu0 %v15211_v38  ;;  %v13676_v6 = vld [vmem:[%s15025_s24 + $0xa7c] sm:$0xf]  ;;  %v5858_v12 = vadd.f32 %v5857_v3, %v5845_v1  ;;  %v11117_v1 = vld [vmem:[%s15025_s24 + $0xdfc] sm:$0xf0]  ;;  %v13661_v3 = vld [vmem:[%s15025_s24 + $0xa04] sm:$0xf] }
 0x15d   : > { %6095 = vmatpush.bf16.msrb.mxu0 %v10760_v7  ;;  %6064 = vmatmul.bf16.vlgmr.msra.gmra.mxu1 %v15215_v41  ;;  %v10677_v7 = vld [vmem:[%s15025_s24 + $0xa8c] sm:$0xf0] }
 0x15e   : > { %6108 = vmatpush.bf16.msrb.mxu1 %v10920_v8  ;;  %6077 = vmatmul.bf16.vlgmr.msra.gmra.mxu2 %v15207_v35  ;;  %v13716_v8 = vld [vmem:[%s15025_s24 + $0xbbc] sm:$0xf]  ;;  %v10680_v30 = vor.u32 %v13676_v6, %v10677_v7  ;;  %v13701_v7 = vld [vmem:[%s15025_s24 + $0xb44] sm:$0xf] }
 0x15f   : > { %6121 = vmatpush.bf16.msrb.mxu2 %v11080_v11  ;;  %6090 = vmatmul.bf16.vlgmr.msra.gmra.mxu3 %v15213_v39  ;;  %v11180_v11 = vor.u32 %v13801_v63, %v11177_v0  ;;  %v10840_v31 = vor.u32 %v13716_v8, %v10837_v17  ;;  %v10957_v63 = vld [vmem:[%s15025_s24 + $0xcbc] sm:$0xf0]  ;;  %v13786_v0 = vld [vmem:[%s15025_s24 + $0xdec] sm:$0xf]  ;;  %v10777_v8 = vld [vmem:[%s15025_s24 + $0xb54] sm:$0xf0] }
 0x160   : > { %6134 = vmatpush.bf16.msrb.mxu3 %v11240_v22  ;;  %v13796_v22 = vld [vmem:[%s15025_s24 + $0xe3c] sm:$0xf]  ;;  %v10960_v6 = vor.u32 %v13746_v62, %v10957_v63  ;;  %v10937_v17 = vld [vmem:[%s15025_s24 + $0xc94] sm:$0xf0] }
 0x161   : > { %6096 = vmatpush.bf16.msrb.mxu0 %v10740_v40  ;;  %v10657_v40 = vld [vmem:[%s15025_s24 + $0xa64] sm:$0xf0]  ;;  %v5870_v44 = vpop.f32.mrf.mxu2  ;;  %v5846_v52 = vpop.f32.mrf.mxu0 }
 0x162   : > { %6109 = vmatpush.bf16.msrb.mxu1 %v10900_v42  ;;  %v13711_v42 = vld [vmem:[%s15025_s24 + $0xb94] sm:$0xf]  ;;  %v5871_v48 = vadd.f32 %v5870_v44, %v5858_v12  ;;  %v5883_v49 = vpop.f32.mrf.mxu3  ;;  %v11120_v12 = vor.u32 %v13786_v0, %v11117_v1  ;;  %v10780_v44 = vor.u32 %v13701_v7, %v10777_v8  ;;  %v13846_v0 = vld [vmem:[%s15025_s24 + $0xfcc] sm:$0xf]  ;;  %v11357_v1 = vld [vmem:[%s15025_s24 + $0xfdc] sm:$0xf0] }
 0x163   : > { %6122 = vmatpush.bf16.msrb.mxu2 %v11060_v43  ;;  %v11160_v43 = vor.u32 %v13796_v22, %v11157_v29  ;;  %v10820_v56 = vor.u32 %v13711_v42, %v10817_v45  ;;  %v13856_v29 = vld [vmem:[%s15025_s24 + $0x101c] sm:$0xf]  ;;  %v13851_v52 = vld [vmem:[%s15025_s24 + $0xff4] sm:$0xf]  ;;  %v13966_v7 = vld [vmem:[%s15025_s24 + $0x138c] sm:$0xf] }
 0x164   : > { %6135 = vmatpush.bf16.msrb.mxu3 %v11220_v47  ;;  %v10977_v47 = vld [vmem:[%s15025_s24 + $0xce4] sm:$0xf0]  ;;  %v13936_v42 = vld [vmem:[%s15025_s24 + $0x129c] sm:$0xf]  ;;  %v11837_v8 = vld [vmem:[%s15025_s24 + $0x139c] sm:$0xf0] }
 0x165   : > { %6097 = vmatpush.bf16.msrb.mxu0 %v10720_v53  ;;  %v10660_v53 = vor.u32 %v13671_v36, %v10657_v40  ;;  %v10980_v57 = vor.u32 %v13751_v46, %v10977_v47  ;;  %v11557_v40 = vld [vmem:[%s15025_s24 + $0x116c] sm:$0xf0]  ;;  %v13976_v46 = vld [vmem:[%s15025_s24 + $0x13dc] sm:$0xf] }
 0x166   : > { %6110 = vmatpush.bf16.msrb.mxu1 %v10880_v54  ;;  %v5859_v54 = vpop.f32.mrf.mxu1  ;;  %v11877_v47 = vld [vmem:[%s15025_s24 + $0x13ec] sm:$0xf0] }
 0x167   : > { %6123 = vmatpush.bf16.msrb.mxu2 %v11040_v55  ;;  %v15624_v55 = vadd.f32 %v5883_v49, %v5871_v48  ;;  %v11100_v48 = vor.u32 %v13781_v18, %v11097_v15  ;;  %v13891_v54 = vld [vmem:[%s15025_s24 + $0x1134] sm:$0xf]  ;;  %v13841_v18 = vld [vmem:[%s15025_s24 + $0xfa4] sm:$0xf]  ;;  %v11337_v15 = vld [vmem:[%s15025_s24 + $0xfb4] sm:$0xf0] }
 0x168   : > { %6136 = vmatpush.bf16.msrb.mxu3 %v11200_v59  ;;  %v10637_v59 = vld [vmem:[%s15025_s24 + $0xa3c] sm:$0xf0] }
 0x169   : > { %6098 = vmatpush.bf16.msrb.mxu0 %v10700_v2  ;;  %v10640_v2 = vor.u32 %v13666_v58, %v10637_v59  ;;  %v5872_v22 = vpop.f32.mrf.mxu2  ;;  %v13931_v58 = vld [vmem:[%s15025_s24 + $0x1274] sm:$0xf]  ;;  %v11697_v59 = vld [vmem:[%s15025_s24 + $0x1284] sm:$0xf0] }
 0x16a   : > { %6111 = vmatpush.bf16.msrb.mxu1 %v10860_v4  ;;  %v10617_v4 = vld [vmem:[%s15025_s24 + $0xa14] sm:$0xf0]  ;;  %v11700_v63 = vor.u32 %v13931_v58, %v11697_v59  ;;  %v13881_v22 = vld [vmem:[%s15025_s24 + $0x10e4] sm:$0xf] }
 0x16b   : > { %6124 = vmatpush.bf16.msrb.mxu2 %v11020_v5  ;;  %v10800_v5 = vor.u32 %v13706_v60, %v10797_v61  ;;  %v10620_v36 = vor.u32 %v13661_v3, %v10617_v4  ;;  %v13971_v60 = vld [vmem:[%s15025_s24 + $0x13b4] sm:$0xf]  ;;  %v11517_v4 = vld [vmem:[%s15025_s24 + $0x111c] sm:$0xf0] }
 0x16c   : > { %6137 = vmatpush.bf16.msrb.mxu3 %v11180_v11  ;;  %v13741_v11 = vld [vmem:[%s15025_s24 + $0xc84] sm:$0xf] }
 0x16d   : > { %6099 = vmatpush.bf16.msrb.mxu0 %v10680_v30  ;;  %v11397_v30 = vld [vmem:[%s15025_s24 + $0x102c] sm:$0xf0]  ;;  %v10940_v45 = vor.u32 %v13741_v11, %v10937_v17  ;;  %v11360_v11 = vor.u32 %v13846_v0, %v11357_v1  ;;  %v11457_v1 = vld [vmem:[%s15025_s24 + $0x10a4] sm:$0xf0] }
 0x16e   : > { %6112 = vmatpush.bf16.msrb.mxu1 %v10840_v31  ;;  %v13896_v31 = vld [vmem:[%s15025_s24 + $0x115c] sm:$0xf]  ;;  %v11400_v49 = vor.u32 %v13856_v29, %v11397_v30  ;;  %v11840_v29 = vor.u32 %v13966_v7, %v11837_v8  ;;  %v11497_v30 = vld [vmem:[%s15025_s24 + $0x10f4] sm:$0xf0]  ;;  %v11777_v7 = vld [vmem:[%s15025_s24 + $0x1324] sm:$0xf0] }
 0x16f   : > { %6125 = vmatpush.bf16.msrb.mxu2 %v11000_v34  ;;  %v5885_v34 = vpop.f32.mrf.mxu3  ;;  %v11560_v50 = vor.u32 %v13896_v31, %v11557_v40  ;;  %v13921_v31 = vld [vmem:[%s15025_s24 + $0x1224] sm:$0xf] }
 0x170   : > { %6138 = vmatpush.bf16.msrb.mxu3 %v11160_v43  ;;  %v11717_v43 = vld [vmem:[%s15025_s24 + $0x12ac] sm:$0xf0]  ;;  %v11657_v34 = vld [vmem:[%s15025_s24 + $0x1234] sm:$0xf0]  ;;  %v13961_v40 = vld [vmem:[%s15025_s24 + $0x1364] sm:$0xf] }
 0x171   : > { %6100 = vmatpush.bf16.msrb.mxu0 %v10660_v53  ;;  %v11720_v51 = vor.u32 %v13936_v42, %v11717_v43  ;;  %v11377_v53 = vld [vmem:[%s15025_s24 + $0x1004] sm:$0xf0]  ;;  %v11817_v42 = vld [vmem:[%s15025_s24 + $0x1374] sm:$0xf0] }
 0x172   : > { %6113 = vmatpush.bf16.msrb.mxu1 %v10820_v56  ;;  %v11880_v56 = vor.u32 %v13976_v46, %v11877_v47  ;;  %v11380_v61 = vor.u32 %v13851_v52, %v11377_v53  ;;  %v11500_v46 = vor.u32 %v13881_v22, %v11497_v30  ;;  %v11660_v47 = vor.u32 %v13921_v31, %v11657_v34  ;;  %v11477_v53 = vld [vmem:[%s15025_s24 + $0x10cc] sm:$0xf0]  ;;  %v13826_v22 = vld [vmem:[%s15025_s24 + $0xf2c] sm:$0xf]  ;;  %v11437_v34 = vld [vmem:[%s15025_s24 + $0x107c] sm:$0xf0] }
 0x173   : > { %6126 = vmatpush.bf16.msrb.mxu2 %v10980_v57  ;;  %v11537_v57 = vld [vmem:[%s15025_s24 + $0x1144] sm:$0xf0]  ;;  %v13866_v30 = vld [vmem:[%s15025_s24 + $0x106c] sm:$0xf] }
 0x174   : > { %6139 = vmatpush.bf16.msrb.mxu3 %v11140_v13  ;;  %v11857_v13 = vld [vmem:[%s15025_s24 + $0x13c4] sm:$0xf0]  ;;  %v11540_v62 = vor.u32 %v13891_v54, %v11537_v57  ;;  %v13916_v54 = vld [vmem:[%s15025_s24 + $0x11fc] sm:$0xf]  ;;  %v11797_v57 = vld [vmem:[%s15025_s24 + $0x134c] sm:$0xf0] }
 0x175   : > { %6101 = vmatpush.bf16.msrb.mxu0 %v10640_v2  ;;  %v13886_v2 = vld [vmem:[%s15025_s24 + $0x110c] sm:$0xf]  ;;  %v11860_v3 = vor.u32 %v13971_v60, %v11857_v13  ;;  %v13831_v13 = vld [vmem:[%s15025_s24 + $0xf54] sm:$0xf] }
 0x176   : > { %6114 = vmatpush.bf16.msrb.mxu1 %v10800_v5  ;;  %v13926_v5 = vld [vmem:[%s15025_s24 + $0x124c] sm:$0xf] }
 0x177   : > { %6127 = vmatpush.bf16.msrb.mxu2 %v10960_v6  ;;  %v11677_v6 = vld [vmem:[%s15025_s24 + $0x125c] sm:$0xf0] }
 0x178   : > { %6140 = vmatpush.bf16.msrb.mxu3 %v11120_v12  ;;  %v11520_v12 = vor.u32 %v13886_v2, %v11517_v4  ;;  %v11680_v17 = vor.u32 %v13926_v5, %v11677_v6  ;;  %v13911_v2 = vld [vmem:[%s15025_s24 + $0x11d4] sm:$0xf] }
 0x179   : > { %6102 = vmatpush.bf16.msrb.mxu0 %v10620_v36  ;;  %v5896_v36 = vpop.f32.mrf.mxu0  ;;  %v13951_v6 = vld [vmem:[%s15025_s24 + $0x1314] sm:$0xf] }
 0x17a   : > { %6115 = vmatpush.bf16.msrb.mxu1 %v10780_v44  ;;  %v5897_v43 = vadd.f32 %v5896_v36, %v15624_v55  ;;  %v11340_v44 = vor.u32 %v13841_v18, %v11337_v15  ;;  %v11637_v55 = vld [vmem:[%s15025_s24 + $0x120c] sm:$0xf0]  ;;  %v11780_v31 = vor.u32 %v13951_v6, %v11777_v7  ;;  %v13906_v36 = vld [vmem:[%s15025_s24 + $0x11ac] sm:$0xf] }
 0x17b   : > { %6128 = vmatpush.bf16.msrb.mxu2 %v10940_v45  ;;  %v5909_v45 = vpop.f32.mrf.mxu1  ;;  %v11640_v60 = vor.u32 %v13916_v54, %v11637_v55  ;;  %v13941_v54 = vld [vmem:[%s15025_s24 + $0x12c4] sm:$0xf]  ;;  %v11737_v55 = vld [vmem:[%s15025_s24 + $0x12d4] sm:$0xf0] }
 0x17c   : > { %6141 = vmatpush.bf16.msrb.mxu3 %v11100_v48  ;;  %6103 = vmatmul.bf16.vlgmr.msrb.gmra.mxu0 %v15280_v19  ;;  %v13836_v48 = vld [vmem:[%s15025_s24 + $0xf7c] sm:$0xf]  ;;  %v5910_v52 = vadd.f32 %v5909_v45, %v5897_v43  ;;  %v11757_v43 = vld [vmem:[%s15025_s24 + $0x12fc] sm:$0xf0]  ;;  %v13821_v45 = vld [vmem:[%s15025_s24 + $0xf04] sm:$0xf] }
 0x17d   : > { %6147 = vmatpush.bf16.msra.mxu0 %v11400_v49  ;;  %6116 = vmatmul.bf16.vlgmr.msrb.gmra.mxu1 %v15287_v24  ;;  %v11317_v49 = vld [vmem:[%s15025_s24 + $0xf8c] sm:$0xf0] }
 0x17e   : > { %6160 = vmatpush.bf16.msra.mxu1 %v11560_v50  ;;  %6129 = vmatmul.bf16.vlgmr.msrb.gmra.mxu2 %v15285_v23  ;;  %v13876_v50 = vld [vmem:[%s15025_s24 + $0x10bc] sm:$0xf]  ;;  %v11320_v58 = vor.u32 %v13836_v48, %v11317_v49  ;;  %v13861_v49 = vld [vmem:[%s15025_s24 + $0x1044] sm:$0xf] }
 0x17f   : > { %6173 = vmatpush.bf16.msra.mxu2 %v11720_v51  ;;  %6142 = vmatmul.bf16.vlgmr.msrb.gmra.mxu3 %v15291_v28  ;;  %v11820_v51 = vor.u32 %v13961_v40, %v11817_v42  ;;  %v11480_v59 = vor.u32 %v13876_v50, %v11477_v53  ;;  %v11597_v40 = vld [vmem:[%s15025_s24 + $0x11bc] sm:$0xf0]  ;;  %v13946_v42 = vld [vmem:[%s15025_s24 + $0x12ec] sm:$0xf]  ;;  %v11417_v50 = vld [vmem:[%s15025_s24 + $0x1054] sm:$0xf0] }
 0x180   : > { %6186 = vmatpush.bf16.msra.mxu3 %v11880_v56  ;;  %v13956_v56 = vld [vmem:[%s15025_s24 + $0x133c] sm:$0xf]  ;;  %v11600_v48 = vor.u32 %v13906_v36, %v11597_v40  ;;  %v11577_v53 = vld [vmem:[%s15025_s24 + $0x1194] sm:$0xf0] }
 0x181   : > { %6148 = vmatpush.bf16.msra.mxu0 %v11380_v61  ;;  %v11297_v61 = vld [vmem:[%s15025_s24 + $0xf64] sm:$0xf0]  ;;  %v5922_v0 = vpop.f32.mrf.mxu2  ;;  %v5898_v8 = vpop.f32.mrf.mxu0 }
 0x182   : > { %6161 = vmatpush.bf16.msra.mxu1 %v11540_v62  ;;  %v13871_v62 = vld [vmem:[%s15025_s24 + $0x1094] sm:$0xf]  ;;  %v5923_v4 = vadd.f32 %v5922_v0, %v5910_v52  ;;  %v5935_v5 = vpop.f32.mrf.mxu3  ;;  %v11760_v52 = vor.u32 %v13946_v42, %v11757_v43  ;;  %v11420_v0 = vor.u32 %v13861_v49, %v11417_v50  ;;  %v14006_v42 = vld [vmem:[%s15025_s24 + $0x14cc] sm:$0xf]  ;;  %v11997_v43 = vld [vmem:[%s15025_s24 + $0x14dc] sm:$0xf0] }
 0x183   : > { %6174 = vmatpush.bf16.msra.mxu2 %v11700_v63  ;;  %v11800_v63 = vor.u32 %v13956_v56, %v11797_v57  ;;  %v11460_v18 = vor.u32 %v13871_v62, %v11457_v1  ;;  %v14016_v57 = vld [vmem:[%s15025_s24 + $0x151c] sm:$0xf]  ;;  %v14011_v8 = vld [vmem:[%s15025_s24 + $0x14f4] sm:$0xf]  ;;  %v14126_v49 = vld [vmem:[%s15025_s24 + $0x188c] sm:$0xf] }
 0x184   : > { %6187 = vmatpush.bf16.msra.mxu3 %v11860_v3  ;;  %v11617_v3 = vld [vmem:[%s15025_s24 + $0x11e4] sm:$0xf0]  ;;  %v14096_v62 = vld [vmem:[%s15025_s24 + $0x179c] sm:$0xf]  ;;  %v12477_v50 = vld [vmem:[%s15025_s24 + $0x189c] sm:$0xf0] }
 0x185   : > { %6149 = vmatpush.bf16.msra.mxu0 %v11360_v11  ;;  %v11300_v11 = vor.u32 %v13831_v13, %v11297_v61  ;;  %v11620_v15 = vor.u32 %v13911_v2, %v11617_v3  ;;  %v12197_v61 = vld [vmem:[%s15025_s24 + $0x166c] sm:$0xf0]  ;;  %v14136_v2 = vld [vmem:[%s15025_s24 + $0x18dc] sm:$0xf] }
 0x186   : > { %6162 = vmatpush.bf16.msra.mxu1 %v11520_v12  ;;  %v5911_v12 = vpop.f32.mrf.mxu1  ;;  %v12517_v3 = vld [vmem:[%s15025_s24 + $0x18ec] sm:$0xf0] }
 0x187   : > { %6175 = vmatpush.bf16.msra.mxu2 %v11680_v17  ;;  %v15695_v17 = vadd.f32 %v5935_v5, %v5923_v4  ;;  %v11740_v4 = vor.u32 %v13941_v54, %v11737_v55  ;;  %v14051_v12 = vld [vmem:[%s15025_s24 + $0x1634] sm:$0xf]  ;;  %v14001_v54 = vld [vmem:[%s15025_s24 + $0x14a4] sm:$0xf]  ;;  %v11977_v55 = vld [vmem:[%s15025_s24 + $0x14b4] sm:$0xf0] }
 0x188   : > { %6188 = vmatpush.bf16.msra.mxu3 %v11840_v29  ;;  %v11277_v29 = vld [vmem:[%s15025_s24 + $0xf3c] sm:$0xf0] }
 0x189   : > { %6150 = vmatpush.bf16.msra.mxu0 %v11340_v44  ;;  %v11280_v44 = vor.u32 %v13826_v22, %v11277_v29  ;;  %v5924_v56 = vpop.f32.mrf.mxu2  ;;  %v14091_v22 = vld [vmem:[%s15025_s24 + $0x1774] sm:$0xf]  ;;  %v12337_v29 = vld [vmem:[%s15025_s24 + $0x1784] sm:$0xf0] }
 0x18a   : > { %6163 = vmatpush.bf16.msra.mxu1 %v11500_v46  ;;  %v11257_v46 = vld [vmem:[%s15025_s24 + $0xf14] sm:$0xf0]  ;;  %v12340_v40 = vor.u32 %v14091_v22, %v12337_v29  ;;  %v14041_v56 = vld [vmem:[%s15025_s24 + $0x15e4] sm:$0xf] }
 0x18b   : > { %6176 = vmatpush.bf16.msra.mxu2 %v11660_v47  ;;  %v11440_v47 = vor.u32 %v13866_v30, %v11437_v34  ;;  %v11260_v13 = vor.u32 %v13821_v45, %v11257_v46  ;;  %v14131_v30 = vld [vmem:[%s15025_s24 + $0x18b4] sm:$0xf]  ;;  %v12157_v46 = vld [vmem:[%s15025_s24 + $0x161c] sm:$0xf0] }
 0x18c   : > { %6189 = vmatpush.bf16.msra.mxu3 %v11820_v51  ;;  %v13901_v51 = vld [vmem:[%s15025_s24 + $0x1184] sm:$0xf] }
 0x18d   : > { %6151 = vmatpush.bf16.msra.mxu0 %v11320_v58  ;;  %v12037_v58 = vld [vmem:[%s15025_s24 + $0x152c] sm:$0xf0]  ;;  %v11580_v1 = vor.u32 %v13901_v51, %v11577_v53  ;;  %v12000_v51 = vor.u32 %v14006_v42, %v11997_v43  ;;  %v12097_v43 = vld [vmem:[%s15025_s24 + $0x15a4] sm:$0xf0] }
 0x18e   : > { %6164 = vmatpush.bf16.msra.mxu1 %v11480_v59  ;;  %v14056_v59 = vld [vmem:[%s15025_s24 + $0x165c] sm:$0xf]  ;;  %v12040_v5 = vor.u32 %v14016_v57, %v12037_v58  ;;  %v12480_v57 = vor.u32 %v14126_v49, %v12477_v50  ;;  %v12137_v58 = vld [vmem:[%s15025_s24 + $0x15f4] sm:$0xf0]  ;;  %v12417_v49 = vld [vmem:[%s15025_s24 + $0x1824] sm:$0xf0] }
 0x18f   : > { %6177 = vmatpush.bf16.msra.mxu2 %v11640_v60  ;;  %v5937_v60 = vpop.f32.mrf.mxu3  ;;  %v12200_v6 = vor.u32 %v14056_v59, %v12197_v61  ;;  %v14081_v59 = vld [vmem:[%s15025_s24 + $0x1724] sm:$0xf] }
 0x190   : > { %6190 = vmatpush.bf16.msra.mxu3 %v11800_v63  ;;  %v12357_v63 = vld [vmem:[%s15025_s24 + $0x17ac] sm:$0xf0]  ;;  %v12297_v60 = vld [vmem:[%s15025_s24 + $0x1734] sm:$0xf0]  ;;  %v14121_v61 = vld [vmem:[%s15025_s24 + $0x1864] sm:$0xf] }
 0x191   : > { %6152 = vmatpush.bf16.msra.mxu0 %v11300_v11  ;;  %v12360_v7 = vor.u32 %v14096_v62, %v12357_v63  ;;  %v12017_v11 = vld [vmem:[%s15025_s24 + $0x1504] sm:$0xf0]  ;;  %v12457_v62 = vld [vmem:[%s15025_s24 + $0x1874] sm:$0xf0] }
 0x192   : > { %6165 = vmatpush.bf16.msra.mxu1 %v11460_v18  ;;  %v12520_v18 = vor.u32 %v14136_v2, %v12517_v3  ;;  %v12020_v34 = vor.u32 %v14011_v8, %v12017_v11  ;;  %v12140_v2 = vor.u32 %v14041_v56, %v12137_v58  ;;  %v12300_v3 = vor.u32 %v14081_v59, %v12297_v60  ;;  %v12117_v11 = vld [vmem:[%s15025_s24 + $0x15cc] sm:$0xf0]  ;;  %v13986_v56 = vld [vmem:[%s15025_s24 + $0x142c] sm:$0xf]  ;;  %v12077_v60 = vld [vmem:[%s15025_s24 + $0x157c] sm:$0xf0] }
 0x193   : > { %6178 = vmatpush.bf16.msra.mxu2 %v11620_v15  ;;  %v12177_v15 = vld [vmem:[%s15025_s24 + $0x1644] sm:$0xf0]  ;;  %v14026_v58 = vld [vmem:[%s15025_s24 + $0x156c] sm:$0xf] }
 0x194   : > { %6191 = vmatpush.bf16.msra.mxu3 %v11780_v31  ;;  %v12497_v31 = vld [vmem:[%s15025_s24 + $0x18c4] sm:$0xf0]  ;;  %v12180_v36 = vor.u32 %v14051_v12, %v12177_v15  ;;  %v14076_v12 = vld [vmem:[%s15025_s24 + $0x16fc] sm:$0xf]  ;;  %v12437_v15 = vld [vmem:[%s15025_s24 + $0x184c] sm:$0xf0] }
 0x195   : > { %6153 = vmatpush.bf16.msra.mxu0 %v11280_v44  ;;  %v14046_v44 = vld [vmem:[%s15025_s24 + $0x160c] sm:$0xf]  ;;  %v12500_v45 = vor.u32 %v14131_v30, %v12497_v31  ;;  %v13991_v31 = vld [vmem:[%s15025_s24 + $0x1454] sm:$0xf] }
 0x196   : > { %6166 = vmatpush.bf16.msra.mxu1 %v11440_v47  ;;  %v14086_v47 = vld [vmem:[%s15025_s24 + $0x174c] sm:$0xf] }
 0x197   : > { %6179 = vmatpush.bf16.msra.mxu2 %v11600_v48  ;;  %v12317_v48 = vld [vmem:[%s15025_s24 + $0x175c] sm:$0xf0] }
 0x198   : > { %6192 = vmatpush.bf16.msra.mxu3 %v11760_v52  ;;  %v12160_v52 = vor.u32 %v14046_v44, %v12157_v46  ;;  %v12320_v53 = vor.u32 %v14086_v47, %v12317_v48  ;;  %v14071_v44 = vld [vmem:[%s15025_s24 + $0x16d4] sm:$0xf] }
 0x199   : > { %6154 = vmatpush.bf16.msra.mxu0 %v11260_v13  ;;  %v5948_v13 = vpop.f32.mrf.mxu0  ;;  %v14111_v48 = vld [vmem:[%s15025_s24 + $0x1814] sm:$0xf] }
 0x19a   : > { %6167 = vmatpush.bf16.msra.mxu1 %v11420_v0  ;;  %v5949_v63 = vadd.f32 %v5948_v13, %v15695_v17  ;;  %v11980_v0 = vor.u32 %v14001_v54, %v11977_v55  ;;  %v12277_v17 = vld [vmem:[%s15025_s24 + $0x170c] sm:$0xf0]  ;;  %v12420_v59 = vor.u32 %v14111_v48, %v12417_v49  ;;  %v14066_v13 = vld [vmem:[%s15025_s24 + $0x16ac] sm:$0xf] }
 0x19b   : > { %6180 = vmatpush.bf16.msra.mxu2 %v11580_v1  ;;  %v5961_v1 = vpop.f32.mrf.mxu1  ;;  %v12280_v30 = vor.u32 %v14076_v12, %v12277_v17  ;;  %v14101_v12 = vld [vmem:[%s15025_s24 + $0x17c4] sm:$0xf]  ;;  %v12377_v17 = vld [vmem:[%s15025_s24 + $0x17d4] sm:$0xf0] }
 0x19c   : > { %6193 = vmatpush.bf16.msra.mxu3 %v11740_v4  ;;  %6155 = vmatmul.bf16.vlgmr.msra.gmra.mxu0 %v15356_v14  ;;  %v13996_v4 = vld [vmem:[%s15025_s24 + $0x147c] sm:$0xf]  ;;  %v5962_v8 = vadd.f32 %v5961_v1, %v5949_v63  ;;  %v12397_v63 = vld [vmem:[%s15025_s24 + $0x17fc] sm:$0xf0]  ;;  %v13981_v1 = vld [vmem:[%s15025_s24 + $0x1404] sm:$0xf] }
 0x19d   : > { %6199 = vmatpush.bf16.msrb.mxu0 %v12040_v5  ;;  %6168 = vmatmul.bf16.vlgmr.msra.gmra.mxu1 %v15363_v21  ;;  %v11957_v5 = vld [vmem:[%s15025_s24 + $0x148c] sm:$0xf0] }
 0x19e   : > { %6212 = vmatpush.bf16.msrb.mxu1 %v12200_v6  ;;  %6181 = vmatmul.bf16.vlgmr.msra.gmra.mxu2 %v15361_v20  ;;  %v14036_v6 = vld [vmem:[%s15025_s24 + $0x15bc] sm:$0xf]  ;;  %v11960_v22 = vor.u32 %v13996_v4, %v11957_v5  ;;  %v14021_v5 = vld [vmem:[%s15025_s24 + $0x1544] sm:$0xf] }
 0x19f   : > { %6225 = vmatpush.bf16.msrb.mxu2 %v12360_v7  ;;  %6194 = vmatmul.bf16.vlgmr.msra.gmra.mxu3 %v15367_v27  ;;  %v12460_v7 = vor.u32 %v14121_v61, %v12457_v62  ;;  %v12120_v29 = vor.u32 %v14036_v6, %v12117_v11  ;;  %v12237_v61 = vld [vmem:[%s15025_s24 + $0x16bc] sm:$0xf0]  ;;  %v14106_v62 = vld [vmem:[%s15025_s24 + $0x17ec] sm:$0xf]  ;;  %v12057_v6 = vld [vmem:[%s15025_s24 + $0x1554] sm:$0xf0] }
 0x1a0   : > { %6238 = vmatpush.bf16.msrb.mxu3 %v12520_v18  ;;  %v14116_v18 = vld [vmem:[%s15025_s24 + $0x183c] sm:$0xf]  ;;  %v12240_v4 = vor.u32 %v14066_v13, %v12237_v61  ;;  %v12217_v11 = vld [vmem:[%s15025_s24 + $0x1694] sm:$0xf0] }
 0x1a1   : > { %6200 = vmatpush.bf16.msrb.mxu0 %v12020_v34  ;;  %v11937_v34 = vld [vmem:[%s15025_s24 + $0x1464] sm:$0xf0]  ;;  %v5974_v42 = vpop.f32.mrf.mxu2  ;;  %v5950_v50 = vpop.f32.mrf.mxu0 }
 0x1a2   : > { %6213 = vmatpush.bf16.msrb.mxu1 %v12180_v36  ;;  %v14031_v36 = vld [vmem:[%s15025_s24 + $0x1594] sm:$0xf]  ;;  %v5975_v46 = vadd.f32 %v5974_v42, %v5962_v8  ;;  %v5987_v47 = vpop.f32.mrf.mxu3  ;;  %v12400_v8 = vor.u32 %v14106_v62, %v12397_v63  ;;  %v12060_v42 = vor.u32 %v14021_v5, %v12057_v6  ;;  %v9463_v50 = vld [vmem:[%s15025_s24 + $0xf8] sm:$0xf]  ;;  %v9443_v62 = vld [vmem:[%s15025_s24 + $0xd0] sm:$0xf] }
 0x1a3   : > { %6226 = vmatpush.bf16.msrb.mxu2 %v12340_v40  ;;  %v12440_v40 = vor.u32 %v14116_v18, %v12437_v15  ;;  %v12100_v54 = vor.u32 %v14031_v36, %v12097_v43  ;;  %v9483_v15 = vld [vmem:[%s15025_s24 + $0x120] sm:$0xf]  ;;  %v13369_v63 = vld [vmem:[%s15025_s24 + $0xe0] sm:$0xf0]  ;;  %v9923_v5 = vld [vmem:[%s15025_s24 + $0x490] sm:$0xf] }
 0x1a4   : > { %6239 = vmatpush.bf16.msrb.mxu3 %v12500_v45  ;;  %v12257_v45 = vld [vmem:[%s15025_s24 + $0x16e4] sm:$0xf0]  ;;  %v9803_v36 = vld [vmem:[%s15025_s24 + $0x3a0] sm:$0xf]  ;;  %v13489_v6 = vld [vmem:[%s15025_s24 + $0x4a0] sm:$0xf0] }
 0x1a5   : > { %6201 = vmatpush.bf16.msrb.mxu0 %v12000_v51  ;;  %v11940_v51 = vor.u32 %v13991_v31, %v11937_v34  ;;  %v12260_v55 = vor.u32 %v14071_v44, %v12257_v45  ;;  %v13419_v34 = vld [vmem:[%s15025_s24 + $0x270] sm:$0xf0]  ;;  %v9963_v44 = vld [vmem:[%s15025_s24 + $0x4e0] sm:$0xf] }
 0x1a6   : > { %6214 = vmatpush.bf16.msrb.mxu1 %v12160_v52  ;;  %v5963_v52 = vpop.f32.mrf.mxu1  ;;  %v13499_v45 = vld [vmem:[%s15025_s24 + $0x4f0] sm:$0xf0] }
 0x1a7   : > { %6227 = vmatpush.bf16.msrb.mxu2 %v12320_v53  ;;  %v15766_v53 = vadd.f32 %v5987_v47, %v5975_v46  ;;  %v12380_v46 = vor.u32 %v14101_v12, %v12377_v17  ;;  %v9623_v52 = vld [vmem:[%s15025_s24 + $0x238] sm:$0xf]  ;;  %v13364_v17 = vld [vmem:[%s15025_s24 + $0xb8] sm:$0xf0] }
 0x1a8   : > { %6240 = vmatpush.bf16.msrb.mxu3 %v12480_v57  ;;  %v11917_v57 = vld [vmem:[%s15025_s24 + $0x143c] sm:$0xf0] }
 0x1a9   : > { %6202 = vmatpush.bf16.msrb.mxu0 %v11980_v0  ;;  %v11920_v0 = vor.u32 %v13986_v56, %v11917_v57  ;;  %v5976_v18 = vpop.f32.mrf.mxu2  ;;  %v9783_v56 = vld [vmem:[%s15025_s24 + $0x378] sm:$0xf]  ;;  %v13454_v57 = vld [vmem:[%s15025_s24 + $0x388] sm:$0xf0] }
 0x1aa   : > { %6215 = vmatpush.bf16.msrb.mxu1 %v12140_v2  ;;  %v11897_v2 = vld [vmem:[%s15025_s24 + $0x1414] sm:$0xf0]  ;;  %v9784_v61 = vor.u32 %v13454_v57, %v9783_v56  ;;  %v9583_v18 = vld [vmem:[%s15025_s24 + $0x1e8] sm:$0xf]  ;;  %v9883_v56 = vld [vmem:[%s15025_s24 + $0x440] sm:$0xf] }
 0x1ab   : > { %6228 = vmatpush.bf16.msrb.mxu2 %v12300_v3  ;;  %v12080_v3 = vor.u32 %v14026_v58, %v12077_v60  ;;  %v11900_v31 = vor.u32 %v13981_v1, %v11897_v2  ;;  %v9943_v58 = vld [vmem:[%s15025_s24 + $0x4b8] sm:$0xf]  ;;  %v13409_v2 = vld [vmem:[%s15025_s24 + $0x220] sm:$0xf0]  ;;  %v13479_v57 = vld [vmem:[%s15025_s24 + $0x450] sm:$0xf0] }
 0x1ac   : > { %6241 = vmatpush.bf16.msrb.mxu3 %v12460_v7  ;;  %v14061_v7 = vld [vmem:[%s15025_s24 + $0x1684] sm:$0xf] }
 0x1ad   : > { %6203 = vmatpush.bf16.msrb.mxu0 %v11960_v22  ;;  %v13379_v22 = vld [vmem:[%s15025_s24 + $0x130] sm:$0xf0]  ;;  %v12220_v43 = vor.u32 %v14061_v7, %v12217_v11  ;;  %v9444_v7 = vor.u32 %v13369_v63, %v9443_v62  ;;  %v13354_v62 = vld [vmem:[%s15025_s24 + $0x68] sm:$0xf0]  ;;  %v9543_v63 = vld [vmem:[%s15025_s24 + $0x198] sm:$0xf] }
 0x1ae   : > { %6216 = vmatpush.bf16.msrb.mxu1 %v12120_v29  ;;  %v9643_v29 = vld [vmem:[%s15025_s24 + $0x260] sm:$0xf]  ;;  %v9484_v47 = vor.u32 %v13379_v22, %v9483_v15 }
 0x1af   : > { %6229 = vmatpush.bf16.msrb.mxu2 %v12280_v30  ;;  %v5989_v30 = vpop.f32.mrf.mxu3  ;;  %v9644_v48 = vor.u32 %v13419_v34, %v9643_v29  ;;  %v14460_v15 = vld [vmem:[%s15031_s11] sm:$0x1f]  ;;  %v9924_v29 = vor.u32 %v13489_v6, %v9923_v5  ;;  %v13444_v34 = vld [vmem:[%s15025_s24 + $0x338] sm:$0xf0] }
 0x1b0   : > { %6242 = vmatpush.bf16.msrb.mxu3 %v12440_v40  ;;  %v13459_v40 = vld [vmem:[%s15025_s24 + $0x3b0] sm:$0xf0]  ;;  %v1562_v22 = vperm.slane %v14460_v15, 1  ;;  %v13404_v30 = vld [vmem:[%s15025_s24 + $0x1f8] sm:$0xf0] }
 0x1b1   : > { %6204 = vmatpush.bf16.msrb.mxu0 %v11940_v51  ;;  %v9804_v49 = vor.u32 %v13459_v40, %v9803_v36  ;;  %v13374_v51 = vld [vmem:[%s15025_s24 + $0x108] sm:$0xf0]  ;;  %v9903_v36 = vld [vmem:[%s15025_s24 + $0x468] sm:$0xf]  ;;  %v13484_v40 = vld [vmem:[%s15025_s24 + $0x478] sm:$0xf0] }
 0x1b2   : > { %6217 = vmatpush.bf16.msrb.mxu1 %v12100_v54  ;;  %v9964_v54 = vor.u32 %v13499_v45, %v9963_v44  ;;  %v9464_v60 = vor.u32 %v13374_v51, %v9463_v50  ;;  %v9584_v44 = vor.u32 %v13404_v30, %v9583_v18  ;;  %v9904_v51 = vor.u32 %v13484_v40, %v9903_v36  ;;  %v9523_v30 = vld [vmem:[%s15025_s24 + $0x170] sm:$0xf]  ;;  %v13389_v36 = vld [vmem:[%s15025_s24 + $0x180] sm:$0xf0] }
 0x1b3   : > { %6230 = vmatpush.bf16.msrb.mxu2 %v12260_v55  ;;  %v13414_v55 = vld [vmem:[%s15025_s24 + $0x248] sm:$0xf0]  ;;  %v9683_v40 = vld [vmem:[%s15025_s24 + $0x2b0] sm:$0xf] }
 0x1b4   : > { %6243 = vmatpush.bf16.msrb.mxu3 %v12420_v59  ;;  %v13494_v59 = vld [vmem:[%s15025_s24 + $0x4c8] sm:$0xf0]  ;;  %v9624_v13 = vor.u32 %v13414_v55, %v9623_v52  ;;  %v13399_v52 = vld [vmem:[%s15025_s24 + $0x1d0] sm:$0xf0] }
 0x1b5   : > { %6205 = vmatpush.bf16.msrb.mxu0 %v11920_v0  ;;  %v9603_v0 = vld [vmem:[%s15025_s24 + $0x210] sm:$0xf]  ;;  %v9944_v1 = vor.u32 %v13494_v59, %v9943_v58  ;;  %v13439_v55 = vld [vmem:[%s15025_s24 + $0x310] sm:$0xf0] }
 0x1b6   : > { %6218 = vmatpush.bf16.msrb.mxu1 %v12080_v3  ;;  %v9763_v3 = vld [vmem:[%s15025_s24 + $0x350] sm:$0xf]  ;;  %v9604_v11 = vor.u32 %v13409_v2, %v9603_v0  ;;  %v13394_v2 = vld [vmem:[%s15025_s24 + $0x1a8] sm:$0xf0] }
 0x1b7   : > { %6231 = vmatpush.bf16.msrb.mxu2 %v12240_v4  ;;  %v13449_v4 = vld [vmem:[%s15025_s24 + $0x360] sm:$0xf0]  ;;  %v9544_v18 = vor.u32 %v13394_v2, %v9543_v63  ;;  %v13579_v63 = vld [vmem:[%s15025_s24 + $0x770] sm:$0xf0] }
 0x1b8   : > { %6244 = vmatpush.bf16.msrb.mxu3 %v12400_v8  ;;  %v9423_v8 = vld [vmem:[%s15025_s24 + $0xa8] sm:$0xf]  ;;  %v9764_v12 = vor.u32 %v13449_v4, %v9763_v3  ;;  %v9703_v3 = vld [vmem:[%s15025_s24 + $0x2d8] sm:$0xf]  ;;  %v13434_v4 = vld [vmem:[%s15025_s24 + $0x2e8] sm:$0xf0] }
 0x1b9   : > { %6206 = vmatpush.bf16.msrb.mxu0 %v11900_v31  ;;  %v9743_v31 = vld [vmem:[%s15025_s24 + $0x328] sm:$0xf]  ;;  %v9704_v15 = vor.u32 %v13434_v4, %v9703_v3  ;;  %v10603_v4 = vld [vmem:[%s15025_s24 + $0x9e0] sm:$0xf] }
 0x1ba   : > { %6219 = vmatpush.bf16.msrb.mxu1 %v12060_v42  ;;  %v9424_v42 = vor.u32 %v13364_v17, %v9423_v8  ;;  %v9744_v45 = vor.u32 %v13444_v34, %v9743_v31  ;;  %v6013_v50 = vpop.f32.mrf.mxu1  ;;  %v13474_v8 = vld [vmem:[%s15025_s24 + $0x428] sm:$0xf0] }
 0x1bb   : > { %6232 = vmatpush.bf16.msrb.mxu2 %v12220_v43  ;;  %v6000_v43 = vpop.f32.mrf.mxu0 }
 0x1bc   : > { %6245 = vmatpush.bf16.msrb.mxu3 %v12380_v46  ;;  %6207 = vmatmul.bf16.vlgmr.msrb.gmra.mxu0 %v15432_v25  ;;  %v9403_v46 = vld [vmem:[%s15025_s24 + $0x80] sm:$0xf] }
 0x1bd   : > { %6251 = vmatpush.bf16.msra.mxu0 %v9484_v47  ;;  %6220 = vmatmul.bf16.vlgmr.msrb.gmra.mxu1 %v15439_v33  ;;  %v13359_v47 = vld [vmem:[%s15025_s24 + $0x90] sm:$0xf0] }
 0x1be   : > { %6264 = vmatpush.bf16.msra.mxu1 %v9644_v48  ;;  %6233 = vmatmul.bf16.vlgmr.msrb.gmra.mxu2 %v15437_v32  ;;  %v9563_v48 = vld [vmem:[%s15025_s24 + $0x1c0] sm:$0xf]  ;;  %v9404_v59 = vor.u32 %v13359_v47, %v9403_v46  ;;  %v9343_v46 = vld [vmem:[%s15025_s24 + $0x8] sm:$0xf]  ;;  %v13344_v47 = vld [vmem:[%s15025_s24 + $0x18] sm:$0xf0] }
 0x1bf   : > { %6277 = vmatpush.bf16.msra.mxu2 %v9804_v49  ;;  %6246 = vmatmul.bf16.vlgmr.msrb.gmra.mxu3 %v15443_v37  ;;  %v6001_v49 = vadd.f32 %v6000_v43, %v1562_v22  ;;  %v9363_v22 = vld [vmem:[%s15025_s24 + $0x30] sm:$0xf] }
 0x1c0   : > { %6290 = vmatpush.bf16.msra.mxu3 %v9964_v54  ;;  %v9723_v54 = vld [vmem:[%s15025_s24 + $0x300] sm:$0xf]  ;;  %v9843_v43 = vld [vmem:[%s15025_s24 + $0x3f0] sm:$0xf] }
 0x1c1   : > { %6252 = vmatpush.bf16.msra.mxu0 %v9464_v60  ;;  %v6014_v58 = vadd.f32 %v6013_v50, %v6001_v49  ;;  %v9564_v60 = vor.u32 %v13399_v52, %v9563_v48  ;;  %v6026_v0 = vpop.f32.mrf.mxu2  ;;  %v9524_v48 = vor.u32 %v13389_v36, %v9523_v30  ;;  %v9503_v50 = vld [vmem:[%s15025_s24 + $0x148] sm:$0xf]  ;;  %v10423_v30 = vld [vmem:[%s15025_s24 + $0x878] sm:$0xf]  ;;  %v13654_v36 = vld [vmem:[%s15025_s24 + $0x9c8] sm:$0xf0] }
 0x1c2   : > { %6265 = vmatpush.bf16.msra.mxu1 %v9624_v13  ;;  %v9724_v13 = vor.u32 %v13439_v55, %v9723_v54  ;;  %v6039_v6 = vpop.f32.mrf.mxu3  ;;  %v6015_v31 = vpop.f32.mrf.mxu1  ;;  %v9663_v52 = vld [vmem:[%s15025_s24 + $0x288] sm:$0xf] }
 0x1c3   : > { %6278 = vmatpush.bf16.msra.mxu2 %v9784_v61  ;;  %v9383_v61 = vld [vmem:[%s15025_s24 + $0x58] sm:$0xf]  ;;  %v6027_v5 = vadd.f32 %v6026_v0, %v6014_v58  ;;  %v6002_v17 = vpop.f32.mrf.mxu0  ;;  %v13464_v58 = vld [vmem:[%s15025_s24 + $0x3d8] sm:$0xf0]  ;;  %v10443_v0 = vld [vmem:[%s15025_s24 + $0x8a0] sm:$0xf] }
 0x1c4   : > { %6291 = vmatpush.bf16.msra.mxu3 %v9944_v1  ;;  %v9884_v1 = vor.u32 %v13479_v57, %v9883_v56  ;;  %v13424_v56 = vld [vmem:[%s15025_s24 + $0x298] sm:$0xf0]  ;;  %v9823_v57 = vld [vmem:[%s15025_s24 + $0x3c8] sm:$0xf]  ;;  %v10103_v17 = vld [vmem:[%s15025_s24 + $0x5f8] sm:$0xf] }
 0x1c5   : > { %6253 = vmatpush.bf16.msra.mxu0 %v9444_v7  ;;  %v9863_v7 = vld [vmem:[%s15025_s24 + $0x418] sm:$0xf]  ;;  %v9664_v3 = vor.u32 %v13424_v56, %v9663_v52  ;;  %v13614_v31 = vld [vmem:[%s15025_s24 + $0x888] sm:$0xf0]  ;;  %v13649_v52 = vld [vmem:[%s15025_s24 + $0x9a0] sm:$0xf0] }
 0x1c6   : > { %6266 = vmatpush.bf16.msra.mxu1 %v9604_v11  ;;  %v9384_v11 = vor.u32 %v13354_v62, %v9383_v61  ;;  %v9864_v34 = vor.u32 %v13474_v8, %v9863_v7  ;;  %v10283_v61 = vld [vmem:[%s15025_s24 + $0x760] sm:$0xf]  ;;  %v9344_v62 = vor.u32 %v13344_v47, %v9343_v46  ;;  %v10243_v46 = vld [vmem:[%s15025_s24 + $0x710] sm:$0xf] }
 0x1c7   : > { %6279 = vmatpush.bf16.msra.mxu2 %v9764_v12  ;;  %v15837_v12 = vadd.f32 %v6039_v6, %v6027_v5  ;;  %v13659_v5 = vld [vmem:[%s15025_s24 + $0x9f0] sm:$0xf0]  ;;  %v9824_v6 = vor.u32 %v13464_v58, %v9823_v57  ;;  %v10284_v8 = vor.u32 %v13579_v63, %v10283_v61  ;;  %v10063_v57 = vld [vmem:[%s15025_s24 + $0x5a8] sm:$0xf]  ;;  %v13524_v58 = vld [vmem:[%s15025_s24 + $0x5b8] sm:$0xf0] }
 0x1c8   : > { %6292 = vmatpush.bf16.msra.mxu3 %v9924_v29  ;;  %v13349_v29 = vld [vmem:[%s15025_s24 + $0x40] sm:$0xf0]  ;;  %v10383_v61 = vld [vmem:[%s15025_s24 + $0x828] sm:$0xf] }
 0x1c9   : > { %6254 = vmatpush.bf16.msra.mxu0 %v9424_v42  ;;  %v13429_v42 = vld [vmem:[%s15025_s24 + $0x2c0] sm:$0xf0]  ;;  %v6028_v54 = vpop.f32.mrf.mxu2  ;;  %v10543_v63 = vld [vmem:[%s15025_s24 + $0x968] sm:$0xf] }
 0x1ca   : > { %6267 = vmatpush.bf16.msra.mxu1 %v9584_v44  ;;  %v13469_v44 = vld [vmem:[%s15025_s24 + $0x400] sm:$0xf0]  ;;  %v9684_v49 = vor.u32 %v13429_v42, %v9683_v40 }
 0x1cb   : > { %6280 = vmatpush.bf16.msra.mxu2 %v9744_v45  ;;  %v9364_v45 = vor.u32 %v13349_v29, %v9363_v22  ;;  %v9844_v55 = vor.u32 %v13469_v44, %v9843_v43  ;;  %v10604_v22 = vor.u32 %v13659_v5, %v10603_v4  ;;  %v13574_v29 = vld [vmem:[%s15025_s24 + $0x748] sm:$0xf0]  ;;  %v10424_v43 = vor.u32 %v13614_v31, %v10423_v30  ;;  %v10083_v44 = vld [vmem:[%s15025_s24 + $0x5d0] sm:$0xf]  ;;  %v10043_v5 = vld [vmem:[%s15025_s24 + $0x580] sm:$0xf] }
 0x1cc   : > { %6293 = vmatpush.bf16.msra.mxu3 %v9904_v51  ;;  %v13384_v51 = vld [vmem:[%s15025_s24 + $0x158] sm:$0xf0]  ;;  %v13639_v30 = vld [vmem:[%s15025_s24 + $0x950] sm:$0xf0] }
 0x1cd   : > { %6255 = vmatpush.bf16.msra.mxu0 %v9404_v59  ;;  %v6041_v59 = vpop.f32.mrf.mxu3  ;;  %v9504_v2 = vor.u32 %v13384_v51, %v9503_v50  ;;  %v13609_v50 = vld [vmem:[%s15025_s24 + $0x860] sm:$0xf0]  ;;  %v10563_v51 = vld [vmem:[%s15025_s24 + $0x990] sm:$0xf] }
 0x1ce   : > { %6268 = vmatpush.bf16.msra.mxu1 %v9564_v60  ;;  %v10123_v60 = vld [vmem:[%s15025_s24 + $0x620] sm:$0xf]  ;;  %v10223_v59 = vld [vmem:[%s15025_s24 + $0x6e8] sm:$0xf] }
 0x1cf   : > { %6281 = vmatpush.bf16.msra.mxu2 %v9724_v13  ;;  %v13539_v13 = vld [vmem:[%s15025_s24 + $0x630] sm:$0xf0] }
 0x1d0   : > { %6294 = vmatpush.bf16.msra.mxu3 %v9884_v1  ;;  %v13619_v1 = vld [vmem:[%s15025_s24 + $0x8b0] sm:$0xf0]  ;;  %v10124_v7 = vor.u32 %v13539_v13, %v10123_v60  ;;  %v10564_v60 = vor.u32 %v13649_v52, %v10563_v51  ;;  %v13564_v13 = vld [vmem:[%s15025_s24 + $0x6f8] sm:$0xf0]  ;;  %v10503_v51 = vld [vmem:[%s15025_s24 + $0x918] sm:$0xf] }
 0x1d1   : > { %6256 = vmatpush.bf16.msra.mxu0 %v9384_v11  ;;  %v10444_v11 = vor.u32 %v13619_v1, %v10443_v0  ;;  %v13644_v0 = vld [vmem:[%s15025_s24 + $0x978] sm:$0xf0]  ;;  %v10064_v1 = vor.u32 %v13524_v58, %v10063_v57  ;;  %v13634_v52 = vld [vmem:[%s15025_s24 + $0x928] sm:$0xf0] }
 0x1d2   : > { %6269 = vmatpush.bf16.msra.mxu1 %v9544_v18  ;;  %v13534_v18 = vld [vmem:[%s15025_s24 + $0x608] sm:$0xf0] }
 0x1d3   : > { %6282 = vmatpush.bf16.msra.mxu2 %v9704_v15  ;;  %v10263_v15 = vld [vmem:[%s15025_s24 + $0x738] sm:$0xf]  ;;  %v10104_v40 = vor.u32 %v13534_v18, %v10103_v17  ;;  %v10544_v17 = vor.u32 %v13644_v0, %v10543_v63  ;;  %v13559_v18 = vld [vmem:[%s15025_s24 + $0x6d0] sm:$0xf0]  ;;  %v13549_v63 = vld [vmem:[%s15025_s24 + $0x680] sm:$0xf0] }
 0x1d4   : > { %6295 = vmatpush.bf16.msra.mxu3 %v9864_v34  ;;  %v10583_v34 = vld [vmem:[%s15025_s24 + $0x9b8] sm:$0xf]  ;;  %v10264_v42 = vor.u32 %v13574_v29, %v10263_v15  ;;  %v10363_v15 = vld [vmem:[%s15025_s24 + $0x800] sm:$0xf]  ;;  %v10323_v0 = vld [vmem:[%s15025_s24 + $0x7b0] sm:$0xf] }
 0x1d5   : > { %6257 = vmatpush.bf16.msra.mxu0 %v9364_v45  ;;  %v13529_v45 = vld [vmem:[%s15025_s24 + $0x5e0] sm:$0xf0]  ;;  %v10584_v47 = vor.u32 %v13654_v36, %v10583_v34  ;;  %v10523_v29 = vld [vmem:[%s15025_s24 + $0x940] sm:$0xf] }
 0x1d6   : > { %6270 = vmatpush.bf16.msra.mxu1 %v9524_v48  ;;  %v13569_v48 = vld [vmem:[%s15025_s24 + $0x720] sm:$0xf0]  ;;  %v10084_v54 = vor.u32 %v13529_v45, %v10083_v44  ;;  %v10524_v45 = vor.u32 %v13639_v30, %v10523_v29  ;;  %v13584_v29 = vld [vmem:[%s15025_s24 + $0x798] sm:$0xf0]  ;;  %v10463_v30 = vld [vmem:[%s15025_s24 + $0x8c8] sm:$0xf] }
 0x1d7   : > { %6283 = vmatpush.bf16.msra.mxu2 %v9684_v49  ;;  %v10403_v49 = vld [vmem:[%s15025_s24 + $0x850] sm:$0xf] }
 0x1d8   : > { %6296 = vmatpush.bf16.msra.mxu3 %v9844_v55  ;;  %v10244_v55 = vor.u32 %v13569_v48, %v10243_v46  ;;  %v10404_v56 = vor.u32 %v13609_v50, %v10403_v49  ;;  %v13554_v46 = vld [vmem:[%s15025_s24 + $0x6a8] sm:$0xf0] }
 0x1d9   : > { %6258 = vmatpush.bf16.msra.mxu0 %v9344_v62  ;;  %v13604_v62 = vld [vmem:[%s15025_s24 + $0x838] sm:$0xf0]  ;;  %v13594_v48 = vld [vmem:[%s15025_s24 + $0x7e8] sm:$0xf0] }
 0x1da   : > { %6271 = vmatpush.bf16.msra.mxu1 %v9504_v2  ;;  %v6052_v2 = vpop.f32.mrf.mxu0  ;;  %v10384_v4 = vor.u32 %v13604_v62, %v10383_v61  ;;  %v10504_v62 = vor.u32 %v13634_v52, %v10503_v51 }
 0x1db   : > { %6284 = vmatpush.bf16.msra.mxu2 %v9664_v3  ;;  %v10224_v3 = vor.u32 %v13564_v13, %v10223_v59  ;;  %v10003_v59 = vld [vmem:[%s15025_s24 + $0x530] sm:$0xf] }
 0x1dc   : > { %6297 = vmatpush.bf16.msra.mxu3 %v9824_v6  ;;  %6259 = vmatmul.bf16.vlgmr.msra.gmra.mxu0 %v15146_v10  ;;  %v13519_v6 = vld [vmem:[%s15025_s24 + $0x590] sm:$0xf0]  ;;  %v10163_v13 = vld [vmem:[%s15025_s24 + $0x670] sm:$0xf] }
 0x1dd   : > { %6303 = vmatpush.bf16.msrb.mxu0 %v10124_v7  ;;  %6272 = vmatmul.bf16.vlgmr.msra.gmra.mxu1 %v15161_v26  ;;  %v10203_v7 = vld [vmem:[%s15025_s24 + $0x6c0] sm:$0xf]  ;;  %v10044_v34 = vor.u32 %v13519_v6, %v10043_v5  ;;  %v9983_v5 = vld [vmem:[%s15025_s24 + $0x508] sm:$0xf]  ;;  %v13504_v6 = vld [vmem:[%s15025_s24 + $0x518] sm:$0xf0] }
 0x1de   : > { %6316 = vmatpush.bf16.msrb.mxu1 %v10284_v8  ;;  %6285 = vmatmul.bf16.vlgmr.msra.gmra.mxu2 %v15144_v9  ;;  %v6053_v8 = vadd.f32 %v6052_v2, %v15837_v12  ;;  %v10204_v12 = vor.u32 %v13559_v18, %v10203_v7  ;;  %v10483_v2 = vld [vmem:[%s15025_s24 + $0x8f0] sm:$0xf]  ;;  %v10164_v7 = vor.u32 %v13549_v63, %v10163_v13  ;;  %v10303_v18 = vld [vmem:[%s15025_s24 + $0x788] sm:$0xf]  ;;  %v11063_v13 = vld [vmem:[%s15025_s24 + $0xd78] sm:$0xf] }
 0x1df   : > { %6329 = vmatpush.bf16.msrb.mxu2 %v10444_v11  ;;  %6298 = vmatmul.bf16.vlgmr.msra.gmra.mxu3 %v15151_v16  ;;  %v6065_v11 = vpop.f32.mrf.mxu1  ;;  %v13814_v63 = vld [vmem:[%s15025_s24 + $0xec8] sm:$0xf0] }
 0x1e0   : > { %6342 = vmatpush.bf16.msrb.mxu3 %v10604_v22  ;;  %v13599_v22 = vld [vmem:[%s15025_s24 + $0x810] sm:$0xf0]  ;;  %v6066_v31 = vadd.f32 %v6065_v11, %v6053_v8  ;;  %v10143_v11 = vld [vmem:[%s15025_s24 + $0x648] sm:$0xf] }
 0x1e1   : > { %6304 = vmatpush.bf16.msrb.mxu0 %v10104_v40  ;;  %v10364_v36 = vor.u32 %v13599_v22, %v10363_v15  ;;  %v10023_v40 = vld [vmem:[%s15025_s24 + $0x558] sm:$0xf]  ;;  %v6078_v44 = vpop.f32.mrf.mxu2 }
 0x1e2   : > { %6317 = vmatpush.bf16.msrb.mxu1 %v10264_v42  ;;  %v13514_v42 = vld [vmem:[%s15025_s24 + $0x568] sm:$0xf0]  ;;  %v6079_v49 = vadd.f32 %v6078_v44, %v6066_v31  ;;  %v6091_v50 = vpop.f32.mrf.mxu3  ;;  %v13624_v31 = vld [vmem:[%s15025_s24 + $0x8d8] sm:$0xf0]  ;;  %v11083_v44 = vld [vmem:[%s15025_s24 + $0xda0] sm:$0xf] }
 0x1e3   : > { %6330 = vmatpush.bf16.msrb.mxu2 %v10424_v43  ;;  %v10183_v43 = vld [vmem:[%s15025_s24 + $0x698] sm:$0xf] }
 0x1e4   : > { %6343 = vmatpush.bf16.msrb.mxu3 %v10584_v47  ;;  %v10343_v47 = vld [vmem:[%s15025_s24 + $0x7d8] sm:$0xf]  ;;  %v10184_v57 = vor.u32 %v13554_v46, %v10183_v43  ;;  %v13739_v43 = vld [vmem:[%s15025_s24 + $0xc70] sm:$0xf0] }
 0x1e5   : > { %6305 = vmatpush.bf16.msrb.mxu0 %v10084_v54  ;;  %v10024_v54 = vor.u32 %v13514_v42, %v10023_v40  ;;  %v10344_v58 = vor.u32 %v13594_v48, %v10343_v47  ;;  %v10923_v40 = vld [vmem:[%s15025_s24 + $0xc60] sm:$0xf]  ;;  %v9984_v42 = vor.u32 %v13504_v6, %v9983_v5  ;;  %v10304_v47 = vor.u32 %v13584_v29, %v10303_v18  ;;  %v10883_v5 = vld [vmem:[%s15025_s24 + $0xc10] sm:$0xf]  ;;  %v13809_v18 = vld [vmem:[%s15025_s24 + $0xea0] sm:$0xf0] }
 0x1e6   : > { %6318 = vmatpush.bf16.msrb.mxu1 %v10244_v55  ;;  %v15908_v55 = vadd.f32 %v6091_v50, %v6079_v49  ;;  %v11243_v48 = vld [vmem:[%s15025_s24 + $0xee0] sm:$0xf]  ;;  %v13819_v49 = vld [vmem:[%s15025_s24 + $0xef0] sm:$0xf0]  ;;  %v10464_v50 = vor.u32 %v13624_v31, %v10463_v30  ;;  %v10924_v52 = vor.u32 %v13739_v43, %v10923_v40  ;;  %v10703_v30 = vld [vmem:[%s15025_s24 + $0xaa8] sm:$0xf] }
 0x1e7   : > { %6331 = vmatpush.bf16.msrb.mxu2 %v10404_v56  ;;  %v6054_v56 = vpop.f32.mrf.mxu0  ;;  %v6067_v61 = vpop.f32.mrf.mxu1  ;;  %v13684_v31 = vld [vmem:[%s15025_s24 + $0xab8] sm:$0xf0]  ;;  %v11023_v40 = vld [vmem:[%s15025_s24 + $0xd28] sm:$0xf] }
 0x1e8   : > { %6344 = vmatpush.bf16.msrb.mxu3 %v10564_v60  ;;  %v13509_v60 = vld [vmem:[%s15025_s24 + $0x540] sm:$0xf0]  ;;  %v10743_v56 = vld [vmem:[%s15025_s24 + $0xaf8] sm:$0xf]  ;;  %v13774_v61 = vld [vmem:[%s15025_s24 + $0xd88] sm:$0xf0] }
 0x1e9   : > { %6306 = vmatpush.bf16.msrb.mxu0 %v10064_v1  ;;  %v13589_v1 = vld [vmem:[%s15025_s24 + $0x7c0] sm:$0xf0]  ;;  %v6080_v15 = vpop.f32.mrf.mxu2 }
 0x1ea   : > { %6319 = vmatpush.bf16.msrb.mxu1 %v10224_v3  ;;  %v13629_v3 = vld [vmem:[%s15025_s24 + $0x900] sm:$0xf0]  ;;  %v10324_v8 = vor.u32 %v13589_v1, %v10323_v0 }
 0x1eb   : > { %6332 = vmatpush.bf16.msrb.mxu2 %v10384_v4  ;;  %v10004_v4 = vor.u32 %v13509_v60, %v10003_v59  ;;  %v10484_v22 = vor.u32 %v13629_v3, %v10483_v2  ;;  %v11244_v59 = vor.u32 %v13819_v49, %v11243_v48  ;;  %v13734_v60 = vld [vmem:[%s15025_s24 + $0xc48] sm:$0xf0]  ;;  %v11064_v2 = vor.u32 %v13774_v61, %v11063_v13  ;;  %v10723_v3 = vld [vmem:[%s15025_s24 + $0xad0] sm:$0xf]  ;;  %v13799_v13 = vld [vmem:[%s15025_s24 + $0xe50] sm:$0xf0] }
 0x1ec   : > { %6345 = vmatpush.bf16.msrb.mxu3 %v10544_v17  ;;  %v13544_v17 = vld [vmem:[%s15025_s24 + $0x658] sm:$0xf0] }
 0x1ed   : > { %6307 = vmatpush.bf16.msrb.mxu0 %v10044_v34  ;;  %v6093_v34 = vpop.f32.mrf.mxu3  ;;  %v10144_v46 = vor.u32 %v13544_v17, %v10143_v11  ;;  %v13769_v11 = vld [vmem:[%s15025_s24 + $0xd60] sm:$0xf0]  ;;  %v11203_v17 = vld [vmem:[%s15025_s24 + $0xe90] sm:$0xf] }
 0x1ee   : > { %6320 = vmatpush.bf16.msrb.mxu1 %v10204_v12  ;;  %v10763_v12 = vld [vmem:[%s15025_s24 + $0xb20] sm:$0xf]  ;;  %v10863_v34 = vld [vmem:[%s15025_s24 + $0xbe8] sm:$0xf] }
 0x1ef   : > { %6333 = vmatpush.bf16.msrb.mxu2 %v10364_v36  ;;  %v13699_v36 = vld [vmem:[%s15025_s24 + $0xb30] sm:$0xf0] }
 0x1f0   : > { %6346 = vmatpush.bf16.msrb.mxu3 %v10524_v45  ;;  %v13779_v45 = vld [vmem:[%s15025_s24 + $0xdb0] sm:$0xf0]  ;;  %v10764_v51 = vor.u32 %v13699_v36, %v10763_v12  ;;  %v11204_v12 = vor.u32 %v13809_v18, %v11203_v17  ;;  %v13724_v36 = vld [vmem:[%s15025_s24 + $0xbf8] sm:$0xf0]  ;;  %v11143_v17 = vld [vmem:[%s15025_s24 + $0xe18] sm:$0xf] }
 0x1f1   : > { %6308 = vmatpush.bf16.msrb.mxu0 %v10024_v54  ;;  %v11084_v54 = vor.u32 %v13779_v45, %v11083_v44  ;;  %v11183_v44 = vld [vmem:[%s15025_s24 + $0xe68] sm:$0xf]  ;;  %v13804_v45 = vld [vmem:[%s15025_s24 + $0xe78] sm:$0xf0]  ;;  %v10864_v49 = vor.u32 %v13724_v36, %v10863_v34  ;;  %v13794_v18 = vld [vmem:[%s15025_s24 + $0xe28] sm:$0xf0] }
 0x1f2   : > { %6321 = vmatpush.bf16.msrb.mxu1 %v10184_v57  ;;  %v13694_v57 = vld [vmem:[%s15025_s24 + $0xb08] sm:$0xf0]  ;;  %v13669_v36 = vld [vmem:[%s15025_s24 + $0xa40] sm:$0xf0] }
 0x1f3   : > { %6334 = vmatpush.bf16.msrb.mxu2 %v10344_v58  ;;  %v10903_v58 = vld [vmem:[%s15025_s24 + $0xc38] sm:$0xf]  ;;  %v10744_v0 = vor.u32 %v13694_v57, %v10743_v56  ;;  %v11184_v56 = vor.u32 %v13804_v45, %v11183_v44  ;;  %v10963_v44 = vld [vmem:[%s15025_s24 + $0xcb0] sm:$0xf]  ;;  %v13749_v45 = vld [vmem:[%s15025_s24 + $0xcc0] sm:$0xf0] }
 0x1f4   : > { %6347 = vmatpush.bf16.msrb.mxu3 %v10504_v62  ;;  %v11223_v62 = vld [vmem:[%s15025_s24 + $0xeb8] sm:$0xf]  ;;  %v10904_v1 = vor.u32 %v13734_v60, %v10903_v58  ;;  %v13719_v58 = vld [vmem:[%s15025_s24 + $0xbd0] sm:$0xf0]  ;;  %v11163_v60 = vld [vmem:[%s15025_s24 + $0xe40] sm:$0xf] }
 0x1f5   : > { %6309 = vmatpush.bf16.msrb.mxu0 %v10004_v4  ;;  %v13689_v4 = vld [vmem:[%s15025_s24 + $0xae0] sm:$0xf0]  ;;  %v11224_v6 = vor.u32 %v13814_v63, %v11223_v62 }
 0x1f6   : > { %6322 = vmatpush.bf16.msrb.mxu1 %v10164_v7  ;;  %v13729_v7 = vld [vmem:[%s15025_s24 + $0xc20] sm:$0xf0]  ;;  %v10724_v15 = vor.u32 %v13689_v4, %v10723_v3  ;;  %v11164_v3 = vor.u32 %v13799_v13, %v11163_v60  ;;  %v13784_v60 = vld [vmem:[%s15025_s24 + $0xdd8] sm:$0xf0] }
 0x1f7   : > { %6335 = vmatpush.bf16.msrb.mxu2 %v10324_v8  ;;  %v11043_v8 = vld [vmem:[%s15025_s24 + $0xd50] sm:$0xf] }
 0x1f8   : > { %6348 = vmatpush.bf16.msrb.mxu3 %v10484_v22  ;;  %v10884_v22 = vor.u32 %v13729_v7, %v10883_v5  ;;  %v11044_v29 = vor.u32 %v13769_v11, %v11043_v8  ;;  %v13714_v5 = vld [vmem:[%s15025_s24 + $0xba8] sm:$0xf0] }
 0x1f9   : > { %6310 = vmatpush.bf16.msrb.mxu0 %v9984_v42  ;;  %v13764_v42 = vld [vmem:[%s15025_s24 + $0xd38] sm:$0xf0]  ;;  %v6104_v43 = vpop.f32.mrf.mxu0  ;;  %v13754_v7 = vld [vmem:[%s15025_s24 + $0xce8] sm:$0xf0] }
 0x1fa   : > { %6323 = vmatpush.bf16.msrb.mxu1 %v10144_v46  ;;  %v6105_v46 = vadd.f32 %v6104_v43, %v15908_v55  ;;  %v6117_v48 = vpop.f32.mrf.mxu1  ;;  %v13759_v55 = vld [vmem:[%s15025_s24 + $0xd10] sm:$0xf0]  ;;  %v13709_v43 = vld [vmem:[%s15025_s24 + $0xb80] sm:$0xf0] }
 0x1fb   : > { %6336 = vmatpush.bf16.msrb.mxu2 %v10304_v47  ;;  %v10704_v47 = vor.u32 %v13684_v31, %v10703_v30 }
 0x1fc   : > { %6349 = vmatpush.bf16.msrb.mxu3 %v10464_v50  ;;  %6311 = vmatmul.bf16.vlgmr.msrb.gmra.mxu0 %v15211_v38  ;;  %v11024_v50 = vor.u32 %v13764_v42, %v11023_v40  ;;  %v6118_v57 = vadd.f32 %v6117_v48, %v6105_v46  ;;  %v10803_v40 = vld [vmem:[%s15025_s24 + $0xb70] sm:$0xf]  ;;  %v11144_v42 = vor.u32 %v13794_v18, %v11143_v17 }
 0x1fd   : > { %6355 = vmatpush.bf16.msra.mxu0 %v10764_v51  ;;  %6324 = vmatmul.bf16.vlgmr.msrb.gmra.mxu1 %v15215_v41  ;;  %v10683_v51 = vld [vmem:[%s15025_s24 + $0xa80] sm:$0xf]  ;;  %v11123_v46 = vld [vmem:[%s15025_s24 + $0xdf0] sm:$0xf] }
 0x1fe   : > { %6368 = vmatpush.bf16.msra.mxu1 %v10924_v52  ;;  %6337 = vmatmul.bf16.vlgmr.msrb.gmra.mxu2 %v15207_v35  ;;  %v13679_v52 = vld [vmem:[%s15025_s24 + $0xa90] sm:$0xf0] }
 0x1ff   : > { %6381 = vmatpush.bf16.msra.mxu2 %v11084_v54  ;;  %6350 = vmatmul.bf16.vlgmr.msrb.gmra.mxu3 %v15213_v39  ;;  %v10843_v54 = vld [vmem:[%s15025_s24 + $0xbc0] sm:$0xf]  ;;  %v10684_v61 = vor.u32 %v13679_v52, %v10683_v51  ;;  %v10804_v51 = vor.u32 %v13709_v43, %v10803_v40  ;;  %v10964_v52 = vor.u32 %v13749_v45, %v10963_v44  ;;  %v13934_v40 = vld [vmem:[%s15025_s24 + $0x1288] sm:$0xf0] }
 0x200   : > { %6394 = vmatpush.bf16.msra.mxu3 %v11244_v59  ;;  %v11003_v59 = vld [vmem:[%s15025_s24 + $0xd00] sm:$0xf]  ;;  %v10844_v62 = vor.u32 %v13719_v58, %v10843_v54  ;;  %v10783_v54 = vld [vmem:[%s15025_s24 + $0xb48] sm:$0xf]  ;;  %v13974_v43 = vld [vmem:[%s15025_s24 + $0x13c8] sm:$0xf0] }
 0x201   : > { %6356 = vmatpush.bf16.msra.mxu0 %v10744_v0  ;;  %v11004_v63 = vor.u32 %v13759_v55, %v11003_v59  ;;  %v10663_v0 = vld [vmem:[%s15025_s24 + $0xa58] sm:$0xf]  ;;  %v6130_v4 = vpop.f32.mrf.mxu2  ;;  %v13744_v59 = vld [vmem:[%s15025_s24 + $0xc98] sm:$0xf0]  ;;  %v11103_v55 = vld [vmem:[%s15025_s24 + $0xdc8] sm:$0xf] }
 0x202   : > { %6369 = vmatpush.bf16.msra.mxu1 %v10904_v1  ;;  %v13674_v1 = vld [vmem:[%s15025_s24 + $0xa68] sm:$0xf0]  ;;  %v6131_v8 = vadd.f32 %v6130_v4, %v6118_v57  ;;  %v6143_v11 = vpop.f32.mrf.mxu3  ;;  %v10943_v57 = vld [vmem:[%s15025_s24 + $0xc88] sm:$0xf]  ;;  %v13939_v4 = vld [vmem:[%s15025_s24 + $0x12b0] sm:$0xf0] }
 0x203   : > { %6382 = vmatpush.bf16.msra.mxu2 %v11064_v2  ;;  %v10823_v2 = vld [vmem:[%s15025_s24 + $0xb98] sm:$0xf] }
 0x204   : > { %6395 = vmatpush.bf16.msra.mxu3 %v11224_v6  ;;  %v10983_v6 = vld [vmem:[%s15025_s24 + $0xcd8] sm:$0xf]  ;;  %v15979_v30 = vadd.f32 %v6143_v11, %v6131_v8  ;;  %v10824_v31 = vor.u32 %v13714_v5, %v10823_v2  ;;  %v13899_v2 = vld [vmem:[%s15025_s24 + $0x1170] sm:$0xf0]  ;;  %v11104_v11 = vor.u32 %v13784_v60, %v11103_v55  ;;  %v11343_v60 = vld [vmem:[%s15025_s24 + $0xfa8] sm:$0xf] }
 0x205   : > { %6357 = vmatpush.bf16.msra.mxu0 %v10724_v15  ;;  %v6106_v15 = vpop.f32.mrf.mxu0  ;;  %v10984_v34 = vor.u32 %v13754_v7, %v10983_v6  ;;  %v10944_v6 = vor.u32 %v13744_v59, %v10943_v57  ;;  %v11883_v7 = vld [vmem:[%s15025_s24 + $0x13e0] sm:$0xf]  ;;  %v13979_v8 = vld [vmem:[%s15025_s24 + $0x13f0] sm:$0xf0]  ;;  %v13969_v57 = vld [vmem:[%s15025_s24 + $0x13a0] sm:$0xf0] }
 0x206   : > { %6370 = vmatpush.bf16.msra.mxu1 %v10884_v22  ;;  %v10664_v22 = vor.u32 %v13674_v1, %v10663_v0 }
 0x207   : > { %6383 = vmatpush.bf16.msra.mxu2 %v11044_v29  ;;  %v6119_v29 = vpop.f32.mrf.mxu1 }
 0x208   : > { %6396 = vmatpush.bf16.msra.mxu3 %v11204_v12  ;;  %v10643_v12 = vld [vmem:[%s15025_s24 + $0xa30] sm:$0xf]  ;;  %v13854_v29 = vld [vmem:[%s15025_s24 + $0x1008] sm:$0xf0] }
 0x209   : > { %6358 = vmatpush.bf16.msra.mxu0 %v10704_v47  ;;  %v13789_v47 = vld [vmem:[%s15025_s24 + $0xe00] sm:$0xf0]  ;;  %v10644_v48 = vor.u32 %v13669_v36, %v10643_v12  ;;  %v6132_v13 = vpop.f32.mrf.mxu2  ;;  %v13894_v12 = vld [vmem:[%s15025_s24 + $0x1148] sm:$0xf0]  ;;  %v11703_v36 = vld [vmem:[%s15025_s24 + $0x1278] sm:$0xf] }
 0x20a   : > { %6371 = vmatpush.bf16.msra.mxu1 %v10864_v49  ;;  %v10623_v49 = vld [vmem:[%s15025_s24 + $0xa08] sm:$0xf]  ;;  %v11124_v58 = vor.u32 %v13789_v47, %v11123_v46  ;;  %v6145_v0 = vpop.f32.mrf.mxu3  ;;  %v11704_v46 = vor.u32 %v13934_v40, %v11703_v36  ;;  %v11363_v47 = vld [vmem:[%s15025_s24 + $0xfd0] sm:$0xf]  ;;  %v13844_v13 = vld [vmem:[%s15025_s24 + $0xfb8] sm:$0xf0] }
 0x20b   : > { %6384 = vmatpush.bf16.msra.mxu2 %v11024_v50  ;;  %v13664_v50 = vld [vmem:[%s15025_s24 + $0xa18] sm:$0xf0]  ;;  %v11663_v0 = vld [vmem:[%s15025_s24 + $0x1228] sm:$0xf]  ;;  %v13959_v36 = vld [vmem:[%s15025_s24 + $0x1350] sm:$0xf0] }
 0x20c   : > { %6397 = vmatpush.bf16.msra.mxu3 %v11184_v56  ;;  %v13704_v56 = vld [vmem:[%s15025_s24 + $0xb58] sm:$0xf0]  ;;  %v10624_v1 = vor.u32 %v13664_v50, %v10623_v49  ;;  %v11523_v49 = vld [vmem:[%s15025_s24 + $0x1110] sm:$0xf] }
 0x20d   : > { %6359 = vmatpush.bf16.msra.mxu0 %v10684_v61  ;;  %v11403_v61 = vld [vmem:[%s15025_s24 + $0x1020] sm:$0xf]  ;;  %v10784_v5 = vor.u32 %v13704_v56, %v10783_v54  ;;  %v13929_v54 = vld [vmem:[%s15025_s24 + $0x1260] sm:$0xf0]  ;;  %v11843_v56 = vld [vmem:[%s15025_s24 + $0x1390] sm:$0xf] }
 0x20e   : > { %6372 = vmatpush.bf16.msra.mxu1 %v10844_v62  ;;  %v13859_v62 = vld [vmem:[%s15025_s24 + $0x1030] sm:$0xf0] }
 0x20f   : > { %6385 = vmatpush.bf16.msra.mxu2 %v11004_v63  ;;  %v11563_v63 = vld [vmem:[%s15025_s24 + $0x1160] sm:$0xf]  ;;  %v11404_v17 = vor.u32 %v13859_v62, %v11403_v61  ;;  %v11503_v61 = vld [vmem:[%s15025_s24 + $0x10e8] sm:$0xf]  ;;  %v11844_v62 = vor.u32 %v13969_v57, %v11843_v56  ;;  %v11783_v56 = vld [vmem:[%s15025_s24 + $0x1318] sm:$0xf] }
 0x210   : > { %6398 = vmatpush.bf16.msra.mxu3 %v11164_v3  ;;  %v11723_v3 = vld [vmem:[%s15025_s24 + $0x12a0] sm:$0xf]  ;;  %v11564_v18 = vor.u32 %v13899_v2, %v11563_v63  ;;  %v13884_v63 = vld [vmem:[%s15025_s24 + $0x10f8] sm:$0xf0]  ;;  %v13954_v57 = vld [vmem:[%s15025_s24 + $0x1328] sm:$0xf0] }
 0x211   : > { %6360 = vmatpush.bf16.msra.mxu0 %v10664_v22  ;;  %v11724_v15 = vor.u32 %v13939_v4, %v11723_v3  ;;  %v11383_v22 = vld [vmem:[%s15025_s24 + $0xff8] sm:$0xf]  ;;  %v11823_v3 = vld [vmem:[%s15025_s24 + $0x1368] sm:$0xf]  ;;  %v13964_v4 = vld [vmem:[%s15025_s24 + $0x1378] sm:$0xf0] }
 0x212   : > { %6373 = vmatpush.bf16.msra.mxu1 %v10824_v31  ;;  %v11543_v31 = vld [vmem:[%s15025_s24 + $0x1138] sm:$0xf]  ;;  %v11384_v44 = vor.u32 %v13854_v29, %v11383_v22  ;;  %v11824_v22 = vor.u32 %v13964_v4, %v11823_v3  ;;  %v11603_v3 = vld [vmem:[%s15025_s24 + $0x11b0] sm:$0xf]  ;;  %v13909_v4 = vld [vmem:[%s15025_s24 + $0x11c0] sm:$0xf0] }
 0x213   : > { %6386 = vmatpush.bf16.msra.mxu2 %v10984_v34  ;;  %v11884_v34 = vor.u32 %v13979_v8, %v11883_v7  ;;  %v11544_v45 = vor.u32 %v13894_v12, %v11543_v31  ;;  %v11504_v8 = vor.u32 %v13884_v63, %v11503_v61  ;;  %v13879_v31 = vld [vmem:[%s15025_s24 + $0x10d0] sm:$0xf0]  ;;  %v11803_v12 = vld [vmem:[%s15025_s24 + $0x1340] sm:$0xf]  ;;  %v13829_v63 = vld [vmem:[%s15025_s24 + $0xf40] sm:$0xf0] }
 0x214   : > { %6399 = vmatpush.bf16.msra.mxu3 %v11144_v42  ;;  %v11863_v42 = vld [vmem:[%s15025_s24 + $0x13b8] sm:$0xf] }
 0x215   : > { %6361 = vmatpush.bf16.msra.mxu0 %v10644_v48  ;;  %v13849_v48 = vld [vmem:[%s15025_s24 + $0xfe0] sm:$0xf0]  ;;  %v11864_v50 = vor.u32 %v13974_v43, %v11863_v42 }
 0x216   : > { %6374 = vmatpush.bf16.msra.mxu1 %v10804_v51  ;;  %v13889_v51 = vld [vmem:[%s15025_s24 + $0x1120] sm:$0xf0] }
 0x217   : > { %6387 = vmatpush.bf16.msra.mxu2 %v10964_v52  ;;  %v11683_v52 = vld [vmem:[%s15025_s24 + $0x1250] sm:$0xf]  ;;  %v11524_v59 = vor.u32 %v13889_v51, %v11523_v49  ;;  %v13874_v49 = vld [vmem:[%s15025_s24 + $0x10a8] sm:$0xf0] }
 0x218   : > { %6400 = vmatpush.bf16.msra.mxu3 %v11124_v58  ;;  %v11364_v58 = vor.u32 %v13849_v48, %v11363_v47  ;;  %v11684_v55 = vor.u32 %v13929_v54, %v11683_v52  ;;  %v11804_v47 = vor.u32 %v13959_v36, %v11803_v12  ;;  %v13914_v51 = vld [vmem:[%s15025_s24 + $0x11e8] sm:$0xf0]  ;;  %v13944_v12 = vld [vmem:[%s15025_s24 + $0x12d8] sm:$0xf0] }
 0x219   : > { %6362 = vmatpush.bf16.msra.mxu0 %v10624_v1  ;;  %v13924_v1 = vld [vmem:[%s15025_s24 + $0x1238] sm:$0xf0]  ;;  %v6156_v2 = vpop.f32.mrf.mxu0 }
 0x21a   : > { %6375 = vmatpush.bf16.msra.mxu1 %v10784_v5  ;;  %v6157_v5 = vadd.f32 %v6156_v2, %v15979_v30  ;;  %v6169_v7 = vpop.f32.mrf.mxu1  ;;  %v13919_v30 = vld [vmem:[%s15025_s24 + $0x1210] sm:$0xf0]  ;;  %v13869_v2 = vld [vmem:[%s15025_s24 + $0x1080] sm:$0xf0] }
 0x21b   : > { %6388 = vmatpush.bf16.msra.mxu2 %v10944_v6  ;;  %v11344_v6 = vor.u32 %v13844_v13, %v11343_v60 }
 0x21c   : > { %6401 = vmatpush.bf16.msra.mxu3 %v11104_v11  ;;  %6363 = vmatmul.bf16.vlgmr.msra.gmra.mxu0 %v15280_v19  ;;  %v11664_v11 = vor.u32 %v13924_v1, %v11663_v0  ;;  %v6170_v29 = vadd.f32 %v6169_v7, %v6157_v5  ;;  %v11443_v0 = vld [vmem:[%s15025_s24 + $0x1070] sm:$0xf]  ;;  %v11784_v1 = vor.u32 %v13954_v57, %v11783_v56 }
 0x21d   : > { %6407 = vmatpush.bf16.msrb.mxu0 %v11404_v17  ;;  %6376 = vmatmul.bf16.vlgmr.msra.gmra.mxu1 %v15287_v24  ;;  %v11323_v17 = vld [vmem:[%s15025_s24 + $0xf80] sm:$0xf]  ;;  %v11763_v5 = vld [vmem:[%s15025_s24 + $0x12f0] sm:$0xf] }
 0x21e   : > { %6420 = vmatpush.bf16.msrb.mxu1 %v11564_v18  ;;  %6389 = vmatmul.bf16.vlgmr.msra.gmra.mxu2 %v15285_v23  ;;  %v13839_v18 = vld [vmem:[%s15025_s24 + $0xf90] sm:$0xf0] }
 0x21f   : > { %6433 = vmatpush.bf16.msrb.mxu2 %v11724_v15  ;;  %6402 = vmatmul.bf16.vlgmr.msra.gmra.mxu3 %v15291_v28  ;;  %v11483_v15 = vld [vmem:[%s15025_s24 + $0x10c0] sm:$0xf]  ;;  %v11324_v40 = vor.u32 %v13839_v18, %v11323_v17  ;;  %v11444_v17 = vor.u32 %v13869_v2, %v11443_v0  ;;  %v11604_v18 = vor.u32 %v13909_v4, %v11603_v3  ;;  %v14094_v0 = vld [vmem:[%s15025_s24 + $0x1788] sm:$0xf0] }
 0x220   : > { %6446 = vmatpush.bf16.msrb.mxu3 %v11884_v34  ;;  %v11643_v34 = vld [vmem:[%s15025_s24 + $0x1200] sm:$0xf]  ;;  %v11484_v42 = vor.u32 %v13879_v31, %v11483_v15  ;;  %v11423_v15 = vld [vmem:[%s15025_s24 + $0x1048] sm:$0xf]  ;;  %v14134_v2 = vld [vmem:[%s15025_s24 + $0x18c8] sm:$0xf0] }
 0x221   : > { %6408 = vmatpush.bf16.msrb.mxu0 %v11384_v44  ;;  %v11644_v43 = vor.u32 %v13919_v30, %v11643_v34  ;;  %v11303_v44 = vld [vmem:[%s15025_s24 + $0xf58] sm:$0xf]  ;;  %v6182_v48 = vpop.f32.mrf.mxu2  ;;  %v13904_v34 = vld [vmem:[%s15025_s24 + $0x1198] sm:$0xf0]  ;;  %v11743_v30 = vld [vmem:[%s15025_s24 + $0x12c8] sm:$0xf] }
 0x222   : > { %6421 = vmatpush.bf16.msrb.mxu1 %v11544_v45  ;;  %v13834_v45 = vld [vmem:[%s15025_s24 + $0xf68] sm:$0xf0]  ;;  %v6183_v52 = vadd.f32 %v6182_v48, %v6170_v29  ;;  %v6195_v54 = vpop.f32.mrf.mxu3  ;;  %v11583_v29 = vld [vmem:[%s15025_s24 + $0x1188] sm:$0xf]  ;;  %v14099_v48 = vld [vmem:[%s15025_s24 + $0x17b0] sm:$0xf0] }
 0x223   : > { %6434 = vmatpush.bf16.msrb.mxu2 %v11704_v46  ;;  %v11463_v46 = vld [vmem:[%s15025_s24 + $0x1098] sm:$0xf] }
 0x224   : > { %6447 = vmatpush.bf16.msrb.mxu3 %v11864_v50  ;;  %v11623_v50 = vld [vmem:[%s15025_s24 + $0x11d8] sm:$0xf]  ;;  %v16050_v60 = vadd.f32 %v6195_v54, %v6183_v52  ;;  %v11464_v13 = vor.u32 %v13874_v49, %v11463_v46  ;;  %v14059_v46 = vld [vmem:[%s15025_s24 + $0x1670] sm:$0xf0]  ;;  %v11744_v54 = vor.u32 %v13944_v12, %v11743_v30  ;;  %v11983_v12 = vld [vmem:[%s15025_s24 + $0x14a8] sm:$0xf] }
 0x225   : > { %6409 = vmatpush.bf16.msrb.mxu0 %v11364_v58  ;;  %v6158_v58 = vpop.f32.mrf.mxu0  ;;  %v11624_v61 = vor.u32 %v13914_v51, %v11623_v50  ;;  %v11584_v50 = vor.u32 %v13904_v34, %v11583_v29  ;;  %v12523_v51 = vld [vmem:[%s15025_s24 + $0x18e0] sm:$0xf]  ;;  %v14139_v52 = vld [vmem:[%s15025_s24 + $0x18f0] sm:$0xf0]  ;;  %v14129_v29 = vld [vmem:[%s15025_s24 + $0x18a0] sm:$0xf0] }
 0x226   : > { %6422 = vmatpush.bf16.msrb.mxu1 %v11524_v59  ;;  %v11304_v59 = vor.u32 %v13834_v45, %v11303_v44 }
 0x227   : > { %6435 = vmatpush.bf16.msrb.mxu2 %v11684_v55  ;;  %v6171_v55 = vpop.f32.mrf.mxu1 }
 0x228   : > { %6448 = vmatpush.bf16.msrb.mxu3 %v11844_v62  ;;  %v11283_v62 = vld [vmem:[%s15025_s24 + $0xf30] sm:$0xf]  ;;  %v14014_v55 = vld [vmem:[%s15025_s24 + $0x1508] sm:$0xf0] }
 0x229   : > { %6410 = vmatpush.bf16.msrb.mxu0 %v11344_v6  ;;  %v13949_v6 = vld [vmem:[%s15025_s24 + $0x1300] sm:$0xf0]  ;;  %v11284_v7 = vor.u32 %v13829_v63, %v11283_v62  ;;  %v6184_v36 = vpop.f32.mrf.mxu2  ;;  %v14054_v62 = vld [vmem:[%s15025_s24 + $0x1648] sm:$0xf0]  ;;  %v12343_v63 = vld [vmem:[%s15025_s24 + $0x1778] sm:$0xf] }
 0x22a   : > { %6423 = vmatpush.bf16.msrb.mxu1 %v11504_v8  ;;  %v11263_v8 = vld [vmem:[%s15025_s24 + $0xf08] sm:$0xf]  ;;  %v11764_v31 = vor.u32 %v13949_v6, %v11763_v5  ;;  %v6197_v44 = vpop.f32.mrf.mxu3  ;;  %v12344_v5 = vor.u32 %v14094_v0, %v12343_v63  ;;  %v12003_v6 = vld [vmem:[%s15025_s24 + $0x14d0] sm:$0xf]  ;;  %v14004_v36 = vld [vmem:[%s15025_s24 + $0x14b8] sm:$0xf0] }
 0x22b   : > { %6436 = vmatpush.bf16.msrb.mxu2 %v11664_v11  ;;  %v13824_v11 = vld [vmem:[%s15025_s24 + $0xf18] sm:$0xf0]  ;;  %v12303_v44 = vld [vmem:[%s15025_s24 + $0x1728] sm:$0xf]  ;;  %v14119_v63 = vld [vmem:[%s15025_s24 + $0x1850] sm:$0xf0] }
 0x22c   : > { %6449 = vmatpush.bf16.msrb.mxu3 %v11824_v22  ;;  %v13864_v22 = vld [vmem:[%s15025_s24 + $0x1058] sm:$0xf0]  ;;  %v11264_v45 = vor.u32 %v13824_v11, %v11263_v8  ;;  %v12163_v8 = vld [vmem:[%s15025_s24 + $0x1610] sm:$0xf] }
 0x22d   : > { %6411 = vmatpush.bf16.msrb.mxu0 %v11324_v40  ;;  %v12043_v40 = vld [vmem:[%s15025_s24 + $0x1520] sm:$0xf]  ;;  %v11424_v49 = vor.u32 %v13864_v22, %v11423_v15  ;;  %v14089_v15 = vld [vmem:[%s15025_s24 + $0x1760] sm:$0xf0]  ;;  %v12483_v22 = vld [vmem:[%s15025_s24 + $0x1890] sm:$0xf] }
 0x22e   : > { %6424 = vmatpush.bf16.msrb.mxu1 %v11484_v42  ;;  %v14019_v42 = vld [vmem:[%s15025_s24 + $0x1530] sm:$0xf0] }
 0x22f   : > { %6437 = vmatpush.bf16.msrb.mxu2 %v11644_v43  ;;  %v12203_v43 = vld [vmem:[%s15025_s24 + $0x1660] sm:$0xf]  ;;  %v12044_v56 = vor.u32 %v14019_v42, %v12043_v40  ;;  %v12143_v40 = vld [vmem:[%s15025_s24 + $0x15e8] sm:$0xf]  ;;  %v12484_v42 = vor.u32 %v14129_v29, %v12483_v22  ;;  %v12423_v22 = vld [vmem:[%s15025_s24 + $0x1818] sm:$0xf] }
 0x230   : > { %6450 = vmatpush.bf16.msrb.mxu3 %v11804_v47  ;;  %v12363_v47 = vld [vmem:[%s15025_s24 + $0x17a0] sm:$0xf]  ;;  %v12204_v57 = vor.u32 %v14059_v46, %v12203_v43  ;;  %v14044_v43 = vld [vmem:[%s15025_s24 + $0x15f8] sm:$0xf0]  ;;  %v14114_v29 = vld [vmem:[%s15025_s24 + $0x1828] sm:$0xf0] }
 0x231   : > { %6412 = vmatpush.bf16.msrb.mxu0 %v11304_v59  ;;  %v12364_v58 = vor.u32 %v14099_v48, %v12363_v47  ;;  %v12023_v59 = vld [vmem:[%s15025_s24 + $0x14f8] sm:$0xf]  ;;  %v12463_v47 = vld [vmem:[%s15025_s24 + $0x1868] sm:$0xf]  ;;  %v14124_v48 = vld [vmem:[%s15025_s24 + $0x1878] sm:$0xf0] }
 0x232   : > { %6425 = vmatpush.bf16.msrb.mxu1 %v11464_v13  ;;  %v12183_v13 = vld [vmem:[%s15025_s24 + $0x1638] sm:$0xf]  ;;  %v12024_v3 = vor.u32 %v14014_v55, %v12023_v59  ;;  %v12464_v59 = vor.u32 %v14124_v48, %v12463_v47  ;;  %v12243_v47 = vld [vmem:[%s15025_s24 + $0x16b0] sm:$0xf]  ;;  %v14069_v48 = vld [vmem:[%s15025_s24 + $0x16c0] sm:$0xf0] }
 0x233   : > { %6438 = vmatpush.bf16.msrb.mxu2 %v11624_v61  ;;  %v12524_v61 = vor.u32 %v14139_v52, %v12523_v51  ;;  %v12184_v4 = vor.u32 %v14054_v62, %v12183_v13  ;;  %v12144_v52 = vor.u32 %v14044_v43, %v12143_v40  ;;  %v14039_v13 = vld [vmem:[%s15025_s24 + $0x15d0] sm:$0xf0]  ;;  %v12443_v62 = vld [vmem:[%s15025_s24 + $0x1840] sm:$0xf]  ;;  %v13989_v43 = vld [vmem:[%s15025_s24 + $0x1440] sm:$0xf0] }
 0x234   : > { %6451 = vmatpush.bf16.msrb.mxu3 %v11784_v1  ;;  %v12503_v1 = vld [vmem:[%s15025_s24 + $0x18b8] sm:$0xf] }
 0x235   : > { %6413 = vmatpush.bf16.msrb.mxu0 %v11284_v7  ;;  %v14009_v7 = vld [vmem:[%s15025_s24 + $0x14e0] sm:$0xf0]  ;;  %v12504_v11 = vor.u32 %v14134_v2, %v12503_v1 }
 0x236   : > { %6426 = vmatpush.bf16.msrb.mxu1 %v11444_v17  ;;  %v14049_v17 = vld [vmem:[%s15025_s24 + $0x1620] sm:$0xf0] }
 0x237   : > { %6439 = vmatpush.bf16.msrb.mxu2 %v11604_v18  ;;  %v12323_v18 = vld [vmem:[%s15025_s24 + $0x1750] sm:$0xf]  ;;  %v12164_v34 = vor.u32 %v14049_v17, %v12163_v8  ;;  %v14034_v8 = vld [vmem:[%s15025_s24 + $0x15a8] sm:$0xf0] }
 0x238   : > { %6452 = vmatpush.bf16.msrb.mxu3 %v11764_v31  ;;  %v12004_v31 = vor.u32 %v14009_v7, %v12003_v6  ;;  %v12324_v30 = vor.u32 %v14089_v15, %v12323_v18  ;;  %v12444_v6 = vor.u32 %v14119_v63, %v12443_v62  ;;  %v14074_v17 = vld [vmem:[%s15025_s24 + $0x16e8] sm:$0xf0]  ;;  %v14104_v62 = vld [vmem:[%s15025_s24 + $0x17d8] sm:$0xf0] }
 0x239   : > { %6414 = vmatpush.bf16.msrb.mxu0 %v11264_v45  ;;  %v14084_v45 = vld [vmem:[%s15025_s24 + $0x1738] sm:$0xf0]  ;;  %v6208_v46 = vpop.f32.mrf.mxu0 }
 0x23a   : > { %6427 = vmatpush.bf16.msrb.mxu1 %v11424_v49  ;;  %v6209_v49 = vadd.f32 %v6208_v46, %v16050_v60  ;;  %v6221_v51 = vpop.f32.mrf.mxu1  ;;  %v14079_v60 = vld [vmem:[%s15025_s24 + $0x1710] sm:$0xf0]  ;;  %v14029_v46 = vld [vmem:[%s15025_s24 + $0x1580] sm:$0xf0] }
 0x23b   : > { %6440 = vmatpush.bf16.msrb.mxu2 %v11584_v50  ;;  %v11984_v50 = vor.u32 %v14004_v36, %v11983_v12 }
 0x23c   : > { %6453 = vmatpush.bf16.msrb.mxu3 %v11744_v54  ;;  %6415 = vmatmul.bf16.vlgmr.msrb.gmra.mxu0 %v15356_v14  ;;  %v12304_v54 = vor.u32 %v14084_v45, %v12303_v44  ;;  %v6222_v55 = vadd.f32 %v6221_v51, %v6209_v49  ;;  %v12083_v44 = vld [vmem:[%s15025_s24 + $0x1570] sm:$0xf]  ;;  %v12424_v45 = vor.u32 %v14114_v29, %v12423_v22 }
 0x23d   : > { %6459 = vmatpush.bf16.msra.mxu0 %v12044_v56  ;;  %6428 = vmatmul.bf16.vlgmr.msrb.gmra.mxu1 %v15363_v21  ;;  %v11963_v56 = vld [vmem:[%s15025_s24 + $0x1480] sm:$0xf]  ;;  %v12403_v49 = vld [vmem:[%s15025_s24 + $0x17f0] sm:$0xf] }
 0x23e   : > { %6472 = vmatpush.bf16.msra.mxu1 %v12204_v57  ;;  %6441 = vmatmul.bf16.vlgmr.msrb.gmra.mxu2 %v15361_v20  ;;  %v13999_v57 = vld [vmem:[%s15025_s24 + $0x1490] sm:$0xf0] }
 0x23f   : > { %6485 = vmatpush.bf16.msra.mxu2 %v12364_v58  ;;  %6454 = vmatmul.bf16.vlgmr.msrb.gmra.mxu3 %v15367_v27  ;;  %v12123_v58 = vld [vmem:[%s15025_s24 + $0x15c0] sm:$0xf]  ;;  %v11964_v0 = vor.u32 %v13999_v57, %v11963_v56  ;;  %v12084_v56 = vor.u32 %v14029_v46, %v12083_v44  ;;  %v12244_v57 = vor.u32 %v14069_v48, %v12243_v47  ;;  %v9785_v44 = vld [vmem:[%s15025_s24 + $0x38c] sm:$0xf0] }
 0x240   : > { %6498 = vmatpush.bf16.msra.mxu3 %v12524_v61  ;;  %v12283_v61 = vld [vmem:[%s15025_s24 + $0x1700] sm:$0xf]  ;;  %v12124_v1 = vor.u32 %v14039_v13, %v12123_v58  ;;  %v12063_v58 = vld [vmem:[%s15025_s24 + $0x1548] sm:$0xf]  ;;  %v9945_v46 = vld [vmem:[%s15025_s24 + $0x4cc] sm:$0xf0] }
 0x241   : > { %6460 = vmatpush.bf16.msra.mxu0 %v12024_v3  ;;  %v12284_v2 = vor.u32 %v14079_v60, %v12283_v61  ;;  %v11943_v3 = vld [vmem:[%s15025_s24 + $0x1458] sm:$0xf]  ;;  %v6234_v7 = vpop.f32.mrf.mxu2  ;;  %v14064_v61 = vld [vmem:[%s15025_s24 + $0x1698] sm:$0xf0]  ;;  %v12383_v60 = vld [vmem:[%s15025_s24 + $0x17c8] sm:$0xf] }
 0x242   : > { %6473 = vmatpush.bf16.msra.mxu1 %v12184_v4  ;;  %v13994_v4 = vld [vmem:[%s15025_s24 + $0x1468] sm:$0xf0]  ;;  %v6235_v18 = vadd.f32 %v6234_v7, %v6222_v55  ;;  %v6247_v15 = vpop.f32.mrf.mxu3  ;;  %v12223_v55 = vld [vmem:[%s15025_s24 + $0x1688] sm:$0xf]  ;;  %v9805_v7 = vld [vmem:[%s15025_s24 + $0x3b4] sm:$0xf0] }
 0x243   : > { %6486 = vmatpush.bf16.msra.mxu2 %v12344_v5  ;;  %v12103_v5 = vld [vmem:[%s15025_s24 + $0x1598] sm:$0xf] }
 0x244   : > { %6499 = vmatpush.bf16.msra.mxu3 %v12504_v11  ;;  %v12263_v11 = vld [vmem:[%s15025_s24 + $0x16d8] sm:$0xf]  ;;  %v16121_v12 = vadd.f32 %v6247_v15, %v6235_v18  ;;  %v12104_v36 = vor.u32 %v14034_v8, %v12103_v5  ;;  %v12384_v15 = vor.u32 %v14104_v62, %v12383_v60 }
 0x245   : > { %6461 = vmatpush.bf16.msra.mxu0 %v12004_v31  ;;  %v6210_v31 = vpop.f32.mrf.mxu0  ;;  %v12264_v40 = vor.u32 %v14074_v17, %v12263_v11  ;;  %v9645_v5 = vld [vmem:[%s15025_s24 + $0x274] sm:$0xf0]  ;;  %v12224_v11 = vor.u32 %v14064_v61, %v12223_v55  ;;  %v13497_v17 = vld [vmem:[%s15025_s24 + $0x4e4] sm:$0xf]  ;;  %v9925_v55 = vld [vmem:[%s15025_s24 + $0x4a4] sm:$0xf0] }
 0x246   : > { %6474 = vmatpush.bf16.msra.mxu1 %v12164_v34  ;;  %v11944_v34 = vor.u32 %v13994_v4, %v11943_v3  ;;  %v9965_v18 = vld [vmem:[%s15025_s24 + $0x4f4] sm:$0xf0]  ;;  %v13362_v61 = vld [vmem:[%s15025_s24 + $0xac] sm:$0xf] }
 0x247   : > { %6487 = vmatpush.bf16.msra.mxu2 %v12324_v30  ;;  %v6223_v30 = vpop.f32.mrf.mxu1 }
 0x248   : > { %6500 = vmatpush.bf16.msra.mxu3 %v12484_v42  ;;  %v11923_v42 = vld [vmem:[%s15025_s24 + $0x1430] sm:$0xf] }
 0x249   : > { %6462 = vmatpush.bf16.msra.mxu0 %v11984_v50  ;;  %v14109_v50 = vld [vmem:[%s15025_s24 + $0x1800] sm:$0xf0]  ;;  %v11924_v51 = vor.u32 %v13989_v43, %v11923_v42  ;;  %v6236_v63 = vpop.f32.mrf.mxu2  ;;  %v9465_v30 = vld [vmem:[%s15025_s24 + $0x10c] sm:$0xf0]  ;;  %v13452_v43 = vld [vmem:[%s15025_s24 + $0x37c] sm:$0xf] }
 0x24a   : > { %6475 = vmatpush.bf16.msra.mxu1 %v12144_v52  ;;  %v11903_v52 = vld [vmem:[%s15025_s24 + $0x1408] sm:$0xf]  ;;  %v12404_v13 = vor.u32 %v14109_v50, %v12403_v49  ;;  %v6249_v3 = vpop.f32.mrf.mxu3  ;;  %v9625_v42 = vld [vmem:[%s15025_s24 + $0x24c] sm:$0xf0]  ;;  %v9788_v49 = vor.u32 %v13452_v43, %v9785_v44  ;;  %v13367_v50 = vld [vmem:[%s15025_s24 + $0xd4] sm:$0xf] }
 0x24b   : > { %6488 = vmatpush.bf16.msra.mxu2 %v12304_v54  ;;  %v13984_v54 = vld [vmem:[%s15025_s24 + $0x1418] sm:$0xf0]  ;;  %v9425_v63 = vld [vmem:[%s15025_s24 + $0xbc] sm:$0xf0]  ;;  %v9725_v43 = vld [vmem:[%s15025_s24 + $0x314] sm:$0xf0] }
 0x24c   : > { %6501 = vmatpush.bf16.msra.mxu3 %v12464_v59  ;;  %v14024_v59 = vld [vmem:[%s15025_s24 + $0x1558] sm:$0xf0]  ;;  %v11904_v4 = vor.u32 %v13984_v54, %v11903_v52  ;;  %v13407_v52 = vld [vmem:[%s15025_s24 + $0x214] sm:$0xf]  ;;  %v13477_v44 = vld [vmem:[%s15025_s24 + $0x444] sm:$0xf] }
 0x24d   : > { %6463 = vmatpush.bf16.msra.mxu0 %v11964_v0  ;;  %v13377_v0 = vld [vmem:[%s15025_s24 + $0x124] sm:$0xf]  ;;  %v12064_v8 = vor.u32 %v14024_v59, %v12063_v58  ;;  %v9765_v58 = vld [vmem:[%s15025_s24 + $0x364] sm:$0xf0]  ;;  %v13487_v59 = vld [vmem:[%s15025_s24 + $0x494] sm:$0xf] }
 0x24e   : > { %6476 = vmatpush.bf16.msra.mxu1 %v12124_v1  ;;  %v9485_v1 = vld [vmem:[%s15025_s24 + $0x134] sm:$0xf0]  ;;  %v9928_v3 = vor.u32 %v13487_v59, %v9925_v55  ;;  %v9705_v59 = vld [vmem:[%s15025_s24 + $0x2ec] sm:$0xf0] }
 0x24f   : > { %6489 = vmatpush.bf16.msra.mxu2 %v12284_v2  ;;  %v13417_v2 = vld [vmem:[%s15025_s24 + $0x264] sm:$0xf]  ;;  %v9488_v22 = vor.u32 %v13377_v0, %v9485_v1  ;;  %v13402_v0 = vld [vmem:[%s15025_s24 + $0x1ec] sm:$0xf] }
 0x250   : > { %6502 = vmatpush.bf16.msra.mxu3 %v12444_v6  ;;  %v13457_v6 = vld [vmem:[%s15025_s24 + $0x3a4] sm:$0xf]  ;;  %v9648_v29 = vor.u32 %v13417_v2, %v9645_v5  ;;  %v13442_v5 = vld [vmem:[%s15025_s24 + $0x32c] sm:$0xf] }
 0x251   : > { %6464 = vmatpush.bf16.msra.mxu0 %v11944_v34  ;;  %v9808_v31 = vor.u32 %v13457_v6, %v9805_v7  ;;  %v13372_v34 = vld [vmem:[%s15025_s24 + $0xfc] sm:$0xf]  ;;  %v14461_v1 = vld [vmem:[%s15031_s11] sm:$0x1f]  ;;  %v13482_v7 = vld [vmem:[%s15025_s24 + $0x46c] sm:$0xf] }
 0x252   : > { %6477 = vmatpush.bf16.msra.mxu1 %v12104_v36  ;;  %v13412_v36 = vld [vmem:[%s15025_s24 + $0x23c] sm:$0xf]  ;;  %v9468_v47 = vor.u32 %v13372_v34, %v9465_v30  ;;  %v1563_v2 = vperm.slane %v14461_v1, 2  ;;  %v9745_v6 = vld [vmem:[%s15025_s24 + $0x33c] sm:$0xf0] }
 0x253   : > { %6490 = vmatpush.bf16.msra.mxu2 %v12264_v40  ;;  %v9968_v40 = vor.u32 %v13497_v17, %v9965_v18  ;;  %v9628_v48 = vor.u32 %v13412_v36, %v9625_v42  ;;  %v13437_v42 = vld [vmem:[%s15025_s24 + $0x304] sm:$0xf] }
 0x254   : > { %6503 = vmatpush.bf16.msra.mxu3 %v12424_v45  ;;  %v13492_v45 = vld [vmem:[%s15025_s24 + $0x4bc] sm:$0xf] }
 0x255   : > { %6465 = vmatpush.bf16.msra.mxu0 %v11924_v51  ;;  %v9445_v51 = vld [vmem:[%s15025_s24 + $0xe4] sm:$0xf0]  ;;  %v9948_v54 = vor.u32 %v13492_v45, %v9945_v46  ;;  %v9885_v45 = vld [vmem:[%s15025_s24 + $0x454] sm:$0xf0] }
 0x256   : > { %6478 = vmatpush.bf16.msra.mxu1 %v12084_v56  ;;  %v9605_v56 = vld [vmem:[%s15025_s24 + $0x224] sm:$0xf0] }
 0x257   : > { %6491 = vmatpush.bf16.msra.mxu2 %v12244_v57  ;;  %v13447_v57 = vld [vmem:[%s15025_s24 + $0x354] sm:$0xf]  ;;  %v9608_v60 = vor.u32 %v13407_v52, %v9605_v56  ;;  %v13392_v52 = vld [vmem:[%s15025_s24 + $0x19c] sm:$0xf]  ;;  %v9888_v56 = vor.u32 %v13477_v44, %v9885_v45  ;;  %v9665_v45 = vld [vmem:[%s15025_s24 + $0x29c] sm:$0xf0] }
 0x258   : > { %6504 = vmatpush.bf16.msra.mxu3 %v12404_v13  ;;  %v9448_v13 = vor.u32 %v13367_v50, %v9445_v51  ;;  %v9768_v62 = vor.u32 %v13447_v57, %v9765_v58  ;;  %v13352_v50 = vld [vmem:[%s15025_s24 + $0x5c] sm:$0xf]  ;;  %v9385_v51 = vld [vmem:[%s15025_s24 + $0x6c] sm:$0xf0] }
 0x259   : > { %6466 = vmatpush.bf16.msra.mxu0 %v11904_v4  ;;  %v9585_v4 = vld [vmem:[%s15025_s24 + $0x1fc] sm:$0xf0]  ;;  %v6260_v17 = vpop.f32.mrf.mxu0  ;;  %v9545_v57 = vld [vmem:[%s15025_s24 + $0x1ac] sm:$0xf0]  ;;  %v13432_v58 = vld [vmem:[%s15025_s24 + $0x2dc] sm:$0xf] }
 0x25a   : > { %6479 = vmatpush.bf16.msra.mxu1 %v12064_v8  ;;  %v9905_v8 = vld [vmem:[%s15025_s24 + $0x47c] sm:$0xf0]  ;;  %v9588_v18 = vor.u32 %v13402_v0, %v9585_v4  ;;  %v6261_v34 = vadd.f32 %v6260_v17, %v1563_v2  ;;  %v6273_v30 = vpop.f32.mrf.mxu1  ;;  %v9548_v1 = vor.u32 %v13392_v52, %v9545_v57  ;;  %v9708_v2 = vor.u32 %v13432_v58, %v9705_v59  ;;  %v9365_v4 = vld [vmem:[%s15025_s24 + $0x44] sm:$0xf0]  ;;  %v10445_v57 = vld [vmem:[%s15025_s24 + $0x8b4] sm:$0xf0] }
 0x25b   : > { %6492 = vmatpush.bf16.msra.mxu2 %v12224_v11  ;;  %v9428_v11 = vor.u32 %v13362_v61, %v9425_v63  ;;  %v9908_v36 = vor.u32 %v13482_v7, %v9905_v8  ;;  %v13472_v61 = vld [vmem:[%s15025_s24 + $0x41c] sm:$0xf]  ;;  %v9525_v8 = vld [vmem:[%s15025_s24 + $0x184] sm:$0xf0] }
 0x25c   : > { %6505 = vmatpush.bf16.msra.mxu3 %v12384_v15  ;;  %6467 = vmatmul.bf16.vlgmr.msra.gmra.mxu0 %v15432_v25  ;;  %v9748_v15 = vor.u32 %v13442_v5, %v9745_v6  ;;  %v6274_v46 = vadd.f32 %v6273_v30, %v6261_v34  ;;  %v13387_v5 = vld [vmem:[%s15025_s24 + $0x174] sm:$0xf]  ;;  %v9685_v17 = vld [vmem:[%s15025_s24 + $0x2c4] sm:$0xf0] }
 0x25d   : > { %6511 = vmatpush.bf16.msrb.mxu0 %v9488_v22  ;;  %6480 = vmatmul.bf16.vlgmr.msra.gmra.mxu1 %v15439_v33  ;;  %v13357_v22 = vld [vmem:[%s15025_s24 + $0x84] sm:$0xf]  ;;  %v9528_v34 = vor.u32 %v13387_v5, %v9525_v8  ;;  %v10265_v5 = vld [vmem:[%s15025_s24 + $0x74c] sm:$0xf0]  ;;  %v13652_v8 = vld [vmem:[%s15025_s24 + $0x9bc] sm:$0xf] }
 0x25e   : > { %6524 = vmatpush.bf16.msrb.mxu1 %v9648_v29  ;;  %6493 = vmatmul.bf16.vlgmr.msra.gmra.mxu2 %v15437_v32  ;;  %v9405_v29 = vld [vmem:[%s15025_s24 + $0x94] sm:$0xf0] }
 0x25f   : > { %6537 = vmatpush.bf16.msrb.mxu2 %v9808_v31  ;;  %6506 = vmatmul.bf16.vlgmr.msra.gmra.mxu3 %v15443_v37  ;;  %v13397_v31 = vld [vmem:[%s15025_s24 + $0x1c4] sm:$0xf] }
 0x260   : > { %6550 = vmatpush.bf16.msrb.mxu3 %v9968_v40  ;;  %v9565_v40 = vld [vmem:[%s15025_s24 + $0x1d4] sm:$0xf0] }
 0x261   : > { %6512 = vmatpush.bf16.msrb.mxu0 %v9468_v47  ;;  %v9408_v47 = vor.u32 %v13357_v22, %v9405_v29  ;;  %v6262_v0 = vpop.f32.mrf.mxu0  ;;  %v13342_v29 = vld [vmem:[%s15025_s24 + $0xc] sm:$0xf] }
 0x262   : > { %6525 = vmatpush.bf16.msrb.mxu1 %v9628_v48  ;;  %v9568_v48 = vor.u32 %v13397_v31, %v9565_v40  ;;  %v6275_v6 = vpop.f32.mrf.mxu1  ;;  %v9345_v31 = vld [vmem:[%s15025_s24 + $0x1c] sm:$0xf0] }
 0x263   : > { %6538 = vmatpush.bf16.msrb.mxu2 %v9788_v49  ;;  %v9728_v49 = vor.u32 %v13437_v42, %v9725_v43  ;;  %v9505_v40 = vld [vmem:[%s15025_s24 + $0x15c] sm:$0xf0]  ;;  %v13422_v42 = vld [vmem:[%s15025_s24 + $0x28c] sm:$0xf]  ;;  %v9348_v52 = vor.u32 %v13342_v29, %v9345_v31  ;;  %v13612_v6 = vld [vmem:[%s15025_s24 + $0x87c] sm:$0xf] }
 0x264   : > { %6551 = vmatpush.bf16.msrb.mxu3 %v9948_v54  ;;  %v6286_v54 = vpop.f32.mrf.mxu2  ;;  %v9668_v59 = vor.u32 %v13422_v42, %v9665_v45  ;;  %v10085_v29 = vld [vmem:[%s15025_s24 + $0x5e4] sm:$0xf0]  ;;  %v13567_v31 = vld [vmem:[%s15025_s24 + $0x714] sm:$0xf] }
 0x265   : > { %6513 = vmatpush.bf16.msrb.mxu0 %v9448_v13  ;;  %v6287_v55 = vadd.f32 %v6286_v54, %v6274_v46  ;;  %v6299_v13 = vpop.f32.mrf.mxu3  ;;  %v13462_v46 = vld [vmem:[%s15025_s24 + $0x3cc] sm:$0xf]  ;;  %v10285_v54 = vld [vmem:[%s15025_s24 + $0x774] sm:$0xf0]  ;;  %v13647_v42 = vld [vmem:[%s15025_s24 + $0x994] sm:$0xf] }
 0x266   : > { %6526 = vmatpush.bf16.msrb.mxu1 %v9608_v60  ;;  %v9865_v60 = vld [vmem:[%s15025_s24 + $0x42c] sm:$0xf0] }
 0x267   : > { %6539 = vmatpush.bf16.msrb.mxu2 %v9768_v62  ;;  %v9388_v62 = vor.u32 %v13352_v50, %v9385_v51  ;;  %v16192_v63 = vadd.f32 %v6299_v13, %v6287_v55  ;;  %v9868_v7 = vor.u32 %v13472_v61, %v9865_v60  ;;  %v10125_v50 = vld [vmem:[%s15025_s24 + $0x634] sm:$0xf0]  ;;  %v13577_v51 = vld [vmem:[%s15025_s24 + $0x764] sm:$0xf] }
 0x268   : > { %6552 = vmatpush.bf16.msrb.mxu3 %v9928_v3  ;;  %v13347_v3 = vld [vmem:[%s15025_s24 + $0x34] sm:$0xf]  ;;  %v13657_v55 = vld [vmem:[%s15025_s24 + $0x9e4] sm:$0xf]  ;;  %v10605_v13 = vld [vmem:[%s15025_s24 + $0x9f4] sm:$0xf0] }
 0x269   : > { %6514 = vmatpush.bf16.msrb.mxu0 %v9428_v11  ;;  %v13427_v11 = vld [vmem:[%s15025_s24 + $0x2b4] sm:$0xf]  ;;  %v9368_v22 = vor.u32 %v13347_v3, %v9365_v4  ;;  %v13572_v3 = vld [vmem:[%s15025_s24 + $0x73c] sm:$0xf]  ;;  %v10608_v4 = vor.u32 %v13657_v55, %v10605_v13 }
 0x26a   : > { %6527 = vmatpush.bf16.msrb.mxu1 %v9588_v18  ;;  %v13467_v18 = vld [vmem:[%s15025_s24 + $0x3f4] sm:$0xf]  ;;  %v9688_v30 = vor.u32 %v13427_v11, %v9685_v17  ;;  %v10585_v11 = vld [vmem:[%s15025_s24 + $0x9cc] sm:$0xf0] }
 0x26b   : > { %6540 = vmatpush.bf16.msrb.mxu2 %v9748_v15  ;;  %v9845_v15 = vld [vmem:[%s15025_s24 + $0x404] sm:$0xf0] }
 0x26c   : > { %6553 = vmatpush.bf16.msrb.mxu3 %v9908_v36  ;;  %v13382_v36 = vld [vmem:[%s15025_s24 + $0x14c] sm:$0xf]  ;;  %v6288_v43 = vpop.f32.mrf.mxu2  ;;  %v9848_v44 = vor.u32 %v13467_v18, %v9845_v15  ;;  %v10268_v18 = vor.u32 %v13572_v3, %v10265_v5  ;;  %v10205_v3 = vld [vmem:[%s15025_s24 + $0x6d4] sm:$0xf0] }
 0x26d   : > { %6515 = vmatpush.bf16.msrb.mxu0 %v9408_v47  ;;  %v9825_v47 = vld [vmem:[%s15025_s24 + $0x3dc] sm:$0xf0]  ;;  %v9508_v58 = vor.u32 %v13382_v36, %v9505_v40  ;;  %v13607_v36 = vld [vmem:[%s15025_s24 + $0x854] sm:$0xf]  ;;  %v10405_v40 = vld [vmem:[%s15025_s24 + $0x864] sm:$0xf0] }
 0x26e   : > { %6528 = vmatpush.bf16.msrb.mxu1 %v9568_v48  ;;  %v6301_v48 = vpop.f32.mrf.mxu3  ;;  %v9828_v61 = vor.u32 %v13462_v46, %v9825_v47  ;;  %v10565_v43 = vld [vmem:[%s15025_s24 + $0x9a4] sm:$0xf0]  ;;  %v10408_v46 = vor.u32 %v13607_v36, %v10405_v40  ;;  %v13522_v47 = vld [vmem:[%s15025_s24 + $0x5ac] sm:$0xf]  ;;  %v10365_v5 = vld [vmem:[%s15025_s24 + $0x814] sm:$0xf0] }
 0x26f   : > { %6541 = vmatpush.bf16.msrb.mxu2 %v9728_v49  ;;  %v13537_v49 = vld [vmem:[%s15025_s24 + $0x624] sm:$0xf]  ;;  %v10065_v48 = vld [vmem:[%s15025_s24 + $0x5bc] sm:$0xf0]  ;;  %v10345_v36 = vld [vmem:[%s15025_s24 + $0x7ec] sm:$0xf0] }
 0x270   : > { %6554 = vmatpush.bf16.msrb.mxu3 %v9888_v56  ;;  %v13617_v56 = vld [vmem:[%s15025_s24 + $0x8a4] sm:$0xf]  ;;  %v10128_v60 = vor.u32 %v13537_v49, %v10125_v50  ;;  %v13562_v49 = vld [vmem:[%s15025_s24 + $0x6ec] sm:$0xf]  ;;  %v10568_v50 = vor.u32 %v13647_v42, %v10565_v43  ;;  %v13632_v43 = vld [vmem:[%s15025_s24 + $0x91c] sm:$0xf] }
 0x271   : > { %6516 = vmatpush.bf16.msrb.mxu0 %v9388_v62  ;;  %v10288_v62 = vor.u32 %v13577_v51, %v10285_v54  ;;  %v10448_v0 = vor.u32 %v13617_v56, %v10445_v57  ;;  %v10225_v51 = vld [vmem:[%s15025_s24 + $0x6fc] sm:$0xf0]  ;;  %v13642_v56 = vld [vmem:[%s15025_s24 + $0x96c] sm:$0xf] }
 0x272   : > { %6529 = vmatpush.bf16.msrb.mxu1 %v9548_v1  ;;  %v13532_v1 = vld [vmem:[%s15025_s24 + $0x5fc] sm:$0xf]  ;;  %v10385_v54 = vld [vmem:[%s15025_s24 + $0x83c] sm:$0xf0]  ;;  %v10228_v55 = vor.u32 %v13562_v49, %v10225_v51  ;;  %v10005_v51 = vld [vmem:[%s15025_s24 + $0x544] sm:$0xf0] }
 0x273   : > { %6542 = vmatpush.bf16.msrb.mxu2 %v9708_v2  ;;  %v10105_v2 = vld [vmem:[%s15025_s24 + $0x60c] sm:$0xf0]  ;;  %v10545_v57 = vld [vmem:[%s15025_s24 + $0x97c] sm:$0xf0] }
 0x274   : > { %6555 = vmatpush.bf16.msrb.mxu3 %v9868_v7  ;;  %v10425_v7 = vld [vmem:[%s15025_s24 + $0x88c] sm:$0xf0]  ;;  %v10108_v17 = vor.u32 %v13532_v1, %v10105_v2  ;;  %v10548_v2 = vor.u32 %v13642_v56, %v10545_v57  ;;  %v10165_v57 = vld [vmem:[%s15025_s24 + $0x684] sm:$0xf0] }
 0x275   : > { %6517 = vmatpush.bf16.msrb.mxu0 %v9368_v22  ;;  %v10428_v15 = vor.u32 %v13612_v6, %v10425_v7  ;;  %v13527_v22 = vld [vmem:[%s15025_s24 + $0x5d4] sm:$0xf]  ;;  %v13637_v6 = vld [vmem:[%s15025_s24 + $0x944] sm:$0xf]  ;;  %v10525_v7 = vld [vmem:[%s15025_s24 + $0x954] sm:$0xf0] }
 0x276   : > { %6530 = vmatpush.bf16.msrb.mxu1 %v9528_v34  ;;  %v10588_v34 = vor.u32 %v13652_v8, %v10585_v11 }
 0x277   : > { %6543 = vmatpush.bf16.msrb.mxu2 %v9688_v30  ;;  %v10245_v30 = vld [vmem:[%s15025_s24 + $0x724] sm:$0xf0] }
 0x278   : > { %6556 = vmatpush.bf16.msrb.mxu3 %v9848_v44  ;;  %v10088_v44 = vor.u32 %v13527_v22, %v10085_v29  ;;  %v10248_v45 = vor.u32 %v13567_v31, %v10245_v30  ;;  %v13552_v22 = vld [vmem:[%s15025_s24 + $0x69c] sm:$0xf]  ;;  %v10528_v31 = vor.u32 %v13637_v6, %v10525_v7  ;;  %v10305_v7 = vld [vmem:[%s15025_s24 + $0x79c] sm:$0xf0] }
 0x279   : > { %6518 = vmatpush.bf16.msrb.mxu0 %v9348_v52  ;;  %v13602_v52 = vld [vmem:[%s15025_s24 + $0x82c] sm:$0xf]  ;;  %v13592_v30 = vld [vmem:[%s15025_s24 + $0x7dc] sm:$0xf] }
 0x27a   : > { %6531 = vmatpush.bf16.msrb.mxu1 %v9508_v58  ;;  %v10068_v58 = vor.u32 %v13522_v47, %v10065_v48  ;;  %v10388_v13 = vor.u32 %v13602_v52, %v10385_v54  ;;  %v6325_v1 = vpop.f32.mrf.mxu1  ;;  %v10348_v49 = vor.u32 %v13592_v30, %v10345_v36  ;;  %v13547_v52 = vld [vmem:[%s15025_s24 + $0x674] sm:$0xf] }
 0x27b   : > { %6544 = vmatpush.bf16.msrb.mxu2 %v9668_v59  ;;  %v6312_v59 = vpop.f32.mrf.mxu0 }
 0x27c   : > { %6557 = vmatpush.bf16.msrb.mxu3 %v9828_v61  ;;  %6519 = vmatmul.bf16.vlgmr.msrb.gmra.mxu0 %v15146_v10  ;;  %v13517_v61 = vld [vmem:[%s15025_s24 + $0x584] sm:$0xf] }
 0x27d   : > { %6563 = vmatpush.bf16.msra.mxu0 %v10128_v60  ;;  %6532 = vmatmul.bf16.vlgmr.msrb.gmra.mxu1 %v15161_v26  ;;  %v10045_v60 = vld [vmem:[%s15025_s24 + $0x594] sm:$0xf0] }
 0x27e   : > { %6576 = vmatpush.bf16.msra.mxu1 %v10288_v62  ;;  %6545 = vmatmul.bf16.vlgmr.msrb.gmra.mxu2 %v15144_v9  ;;  %v13557_v62 = vld [vmem:[%s15025_s24 + $0x6c4] sm:$0xf]  ;;  %v10048_v11 = vor.u32 %v13517_v61, %v10045_v60  ;;  %v13502_v60 = vld [vmem:[%s15025_s24 + $0x50c] sm:$0xf] }
 0x27f   : > { %6589 = vmatpush.bf16.msra.mxu2 %v10448_v0  ;;  %6558 = vmatmul.bf16.vlgmr.msrb.gmra.mxu3 %v15151_v16  ;;  %v6313_v0 = vadd.f32 %v6312_v59, %v16192_v63  ;;  %v10208_v63 = vor.u32 %v13557_v62, %v10205_v3  ;;  %v10325_v59 = vld [vmem:[%s15025_s24 + $0x7c4] sm:$0xf0]  ;;  %v9985_v62 = vld [vmem:[%s15025_s24 + $0x51c] sm:$0xf0] }
 0x280   : > { %6602 = vmatpush.bf16.msra.mxu3 %v10608_v4  ;;  %v13597_v4 = vld [vmem:[%s15025_s24 + $0x804] sm:$0xf]  ;;  %v10145_v3 = vld [vmem:[%s15025_s24 + $0x65c] sm:$0xf0] }
 0x281   : > { %6564 = vmatpush.bf16.msra.mxu0 %v10108_v17  ;;  %v6326_v8 = vadd.f32 %v6325_v1, %v6313_v0  ;;  %v10368_v17 = vor.u32 %v13597_v4, %v10365_v5  ;;  %v6338_v29 = vpop.f32.mrf.mxu2  ;;  %v10168_v0 = vor.u32 %v13547_v52, %v10165_v57  ;;  %v13582_v4 = vld [vmem:[%s15025_s24 + $0x78c] sm:$0xf]  ;;  %v10905_v52 = vld [vmem:[%s15025_s24 + $0xc4c] sm:$0xf0]  ;;  %v13812_v57 = vld [vmem:[%s15025_s24 + $0xebc] sm:$0xf] }
 0x282   : > { %6577 = vmatpush.bf16.msra.mxu1 %v10268_v18  ;;  %v13512_v18 = vld [vmem:[%s15025_s24 + $0x55c] sm:$0xf]  ;;  %v6351_v42 = vpop.f32.mrf.mxu3  ;;  %v6327_v54 = vpop.f32.mrf.mxu1  ;;  %v10308_v36 = vor.u32 %v13582_v4, %v10305_v7  ;;  %v13807_v4 = vld [vmem:[%s15025_s24 + $0xe94] sm:$0xf] }
 0x283   : > { %6590 = vmatpush.bf16.msra.mxu2 %v10428_v15  ;;  %v10025_v15 = vld [vmem:[%s15025_s24 + $0x56c] sm:$0xf0]  ;;  %v6339_v40 = vadd.f32 %v6338_v29, %v6326_v8  ;;  %v6314_v47 = vpop.f32.mrf.mxu0  ;;  %v13622_v8 = vld [vmem:[%s15025_s24 + $0x8cc] sm:$0xf]  ;;  %v10925_v29 = vld [vmem:[%s15025_s24 + $0xc74] sm:$0xf0] }
 0x284   : > { %6603 = vmatpush.bf16.msra.mxu3 %v10588_v34  ;;  %v10185_v34 = vld [vmem:[%s15025_s24 + $0x6ac] sm:$0xf0]  ;;  %v13772_v54 = vld [vmem:[%s15025_s24 + $0xd7c] sm:$0xf] }
 0x285   : > { %6565 = vmatpush.bf16.msra.mxu0 %v10088_v44  ;;  %v10505_v44 = vld [vmem:[%s15025_s24 + $0x92c] sm:$0xf0]  ;;  %v10188_v48 = vor.u32 %v13552_v22, %v10185_v34  ;;  %v9988_v22 = vor.u32 %v13502_v60, %v9985_v62  ;;  %v11085_v34 = vld [vmem:[%s15025_s24 + $0xdb4] sm:$0xf0]  ;;  %v10725_v60 = vld [vmem:[%s15025_s24 + $0xae4] sm:$0xf0] }
 0x286   : > { %6578 = vmatpush.bf16.msra.mxu1 %v10248_v45  ;;  %v10028_v45 = vor.u32 %v13512_v18, %v10025_v15  ;;  %v10508_v56 = vor.u32 %v13632_v43, %v10505_v44  ;;  %v10765_v18 = vld [vmem:[%s15025_s24 + $0xb34] sm:$0xf0]  ;;  %v13737_v15 = vld [vmem:[%s15025_s24 + $0xc64] sm:$0xf]  ;;  %v13727_v62 = vld [vmem:[%s15025_s24 + $0xc14] sm:$0xf] }
 0x287   : > { %6591 = vmatpush.bf16.msra.mxu2 %v10408_v46  ;;  %v16263_v46 = vadd.f32 %v6351_v42, %v6339_v40  ;;  %v13817_v40 = vld [vmem:[%s15025_s24 + $0xee4] sm:$0xf]  ;;  %v11245_v42 = vld [vmem:[%s15025_s24 + $0xef4] sm:$0xf0] }
 0x288   : > { %6604 = vmatpush.bf16.msra.mxu3 %v10568_v50  ;;  %v13507_v50 = vld [vmem:[%s15025_s24 + $0x534] sm:$0xf] }
 0x289   : > { %6566 = vmatpush.bf16.msra.mxu0 %v10068_v58  ;;  %v13587_v58 = vld [vmem:[%s15025_s24 + $0x7b4] sm:$0xf]  ;;  %v10008_v61 = vor.u32 %v13507_v50, %v10005_v51  ;;  %v6340_v5 = vpop.f32.mrf.mxu2  ;;  %v13732_v50 = vld [vmem:[%s15025_s24 + $0xc3c] sm:$0xf]  ;;  %v11248_v51 = vor.u32 %v13817_v40, %v11245_v42 }
 0x28a   : > { %6579 = vmatpush.bf16.msra.mxu1 %v10228_v55  ;;  %v13627_v55 = vld [vmem:[%s15025_s24 + $0x8f4] sm:$0xf]  ;;  %v10328_v1 = vor.u32 %v13587_v58, %v10325_v59  ;;  %v11225_v58 = vld [vmem:[%s15025_s24 + $0xecc] sm:$0xf0]  ;;  %v11205_v5 = vld [vmem:[%s15025_s24 + $0xea4] sm:$0xf0] }
 0x28b   : > { %6592 = vmatpush.bf16.msra.mxu2 %v10388_v13  ;;  %v10485_v13 = vld [vmem:[%s15025_s24 + $0x904] sm:$0xf0] }
 0x28c   : > { %6605 = vmatpush.bf16.msra.mxu3 %v10548_v2  ;;  %v13542_v2 = vld [vmem:[%s15025_s24 + $0x64c] sm:$0xf]  ;;  %v10488_v6 = vor.u32 %v13627_v55, %v10485_v13  ;;  %v10908_v55 = vor.u32 %v13732_v50, %v10905_v52  ;;  %v13757_v52 = vld [vmem:[%s15025_s24 + $0xd04] sm:$0xf] }
 0x28d   : > { %6567 = vmatpush.bf16.msra.mxu0 %v10048_v11  ;;  %v10465_v11 = vld [vmem:[%s15025_s24 + $0x8dc] sm:$0xf0]  ;;  %v10148_v30 = vor.u32 %v13542_v2, %v10145_v3  ;;  %v13767_v2 = vld [vmem:[%s15025_s24 + $0xd54] sm:$0xf]  ;;  %v11045_v3 = vld [vmem:[%s15025_s24 + $0xd64] sm:$0xf0] }
 0x28e   : > { %6580 = vmatpush.bf16.msra.mxu1 %v10208_v63  ;;  %v6353_v63 = vpop.f32.mrf.mxu3  ;;  %v10468_v43 = vor.u32 %v13622_v8, %v10465_v11  ;;  %v11048_v8 = vor.u32 %v13767_v2, %v11045_v3  ;;  %v13682_v11 = vld [vmem:[%s15025_s24 + $0xaac] sm:$0xf]  ;;  %v10985_v2 = vld [vmem:[%s15025_s24 + $0xcec] sm:$0xf0] }
 0x28f   : > { %6593 = vmatpush.bf16.msra.mxu2 %v10368_v17  ;;  %v13697_v17 = vld [vmem:[%s15025_s24 + $0xb24] sm:$0xf]  ;;  %v10705_v63 = vld [vmem:[%s15025_s24 + $0xabc] sm:$0xf0] }
 0x290   : > { %6606 = vmatpush.bf16.msra.mxu3 %v10528_v31  ;;  %v13777_v31 = vld [vmem:[%s15025_s24 + $0xda4] sm:$0xf]  ;;  %v10768_v44 = vor.u32 %v13697_v17, %v10765_v18  ;;  %v13722_v17 = vld [vmem:[%s15025_s24 + $0xbec] sm:$0xf]  ;;  %v11208_v18 = vor.u32 %v13807_v4, %v11205_v5  ;;  %v10708_v40 = vor.u32 %v13682_v11, %v10705_v63  ;;  %v13792_v5 = vld [vmem:[%s15025_s24 + $0xe1c] sm:$0xf] }
 0x291   : > { %6568 = vmatpush.bf16.msra.mxu0 %v10028_v45  ;;  %v10928_v45 = vor.u32 %v13737_v15, %v10925_v29  ;;  %v11088_v47 = vor.u32 %v13777_v31, %v11085_v34  ;;  %v10865_v15 = vld [vmem:[%s15025_s24 + $0xbfc] sm:$0xf0]  ;;  %v13802_v34 = vld [vmem:[%s15025_s24 + $0xe6c] sm:$0xf] }
 0x292   : > { %6581 = vmatpush.bf16.msra.mxu1 %v10188_v48  ;;  %v13692_v48 = vld [vmem:[%s15025_s24 + $0xafc] sm:$0xf]  ;;  %v11025_v29 = vld [vmem:[%s15025_s24 + $0xd3c] sm:$0xf0] }
 0x293   : > { %6594 = vmatpush.bf16.msra.mxu2 %v10348_v49  ;;  %v10745_v49 = vld [vmem:[%s15025_s24 + $0xb0c] sm:$0xf0] }
 0x294   : > { %6607 = vmatpush.bf16.msra.mxu3 %v10508_v56  ;;  %v11065_v56 = vld [vmem:[%s15025_s24 + $0xd8c] sm:$0xf0]  ;;  %v10748_v59 = vor.u32 %v13692_v48, %v10745_v49  ;;  %v13717_v48 = vld [vmem:[%s15025_s24 + $0xbc4] sm:$0xf] }
 0x295   : > { %6569 = vmatpush.bf16.msra.mxu0 %v10008_v61  ;;  %v11068_v13 = vor.u32 %v13772_v54, %v11065_v56  ;;  %v13687_v61 = vld [vmem:[%s15025_s24 + $0xad4] sm:$0xf]  ;;  %v13797_v54 = vld [vmem:[%s15025_s24 + $0xe44] sm:$0xf]  ;;  %v11165_v56 = vld [vmem:[%s15025_s24 + $0xe54] sm:$0xf0] }
 0x296   : > { %6582 = vmatpush.bf16.msra.mxu1 %v10168_v0  ;;  %v11228_v0 = vor.u32 %v13812_v57, %v11225_v58 }
 0x297   : > { %6595 = vmatpush.bf16.msra.mxu2 %v10328_v1  ;;  %v10885_v1 = vld [vmem:[%s15025_s24 + $0xc24] sm:$0xf0] }
 0x298   : > { %6608 = vmatpush.bf16.msra.mxu3 %v10488_v6  ;;  %v10728_v6 = vor.u32 %v13687_v61, %v10725_v60  ;;  %v10888_v7 = vor.u32 %v13727_v62, %v10885_v1  ;;  %v13712_v61 = vld [vmem:[%s15025_s24 + $0xb9c] sm:$0xf]  ;;  %v11168_v60 = vor.u32 %v13797_v54, %v11165_v56  ;;  %v13782_v54 = vld [vmem:[%s15025_s24 + $0xdcc] sm:$0xf]  ;;  %v11105_v56 = vld [vmem:[%s15025_s24 + $0xddc] sm:$0xf0] }
 0x299   : > { %6570 = vmatpush.bf16.msra.mxu0 %v9988_v22  ;;  %v13762_v22 = vld [vmem:[%s15025_s24 + $0xd2c] sm:$0xf]  ;;  %v6364_v31 = vpop.f32.mrf.mxu0  ;;  %v13752_v1 = vld [vmem:[%s15025_s24 + $0xcdc] sm:$0xf] }
 0x29a   : > { %6583 = vmatpush.bf16.msra.mxu1 %v10148_v30  ;;  %v11185_v30 = vld [vmem:[%s15025_s24 + $0xe7c] sm:$0xf0]  ;;  %v6377_v42 = vpop.f32.mrf.mxu1 }
 0x29b   : > { %6596 = vmatpush.bf16.msra.mxu2 %v10308_v36  ;;  %v6365_v36 = vadd.f32 %v6364_v31, %v16263_v46  ;;  %v11188_v49 = vor.u32 %v13802_v34, %v11185_v30  ;;  %v11005_v46 = vld [vmem:[%s15025_s24 + $0xd14] sm:$0xf0]  ;;  %v10805_v34 = vld [vmem:[%s15025_s24 + $0xb84] sm:$0xf0]  ;;  %v13747_v30 = vld [vmem:[%s15025_s24 + $0xcb4] sm:$0xf] }
 0x29c   : > { %6609 = vmatpush.bf16.msra.mxu3 %v10468_v43  ;;  %6571 = vmatmul.bf16.vlgmr.msra.gmra.mxu0 %v15211_v38  ;;  %v10868_v43 = vor.u32 %v13722_v17, %v10865_v15  ;;  %v13667_v15 = vld [vmem:[%s15025_s24 + $0xa34] sm:$0xf] }
 0x29d   : > { %6615 = vmatpush.bf16.msrb.mxu0 %v10768_v44  ;;  %6584 = vmatmul.bf16.vlgmr.msra.gmra.mxu1 %v15215_v41  ;;  %v11028_v44 = vor.u32 %v13762_v22, %v11025_v29  ;;  %v6378_v50 = vadd.f32 %v6377_v42, %v6365_v36  ;;  %v10645_v22 = vld [vmem:[%s15025_s24 + $0xa44] sm:$0xf0]  ;;  %v13707_v29 = vld [vmem:[%s15025_s24 + $0xb74] sm:$0xf] }
 0x29e   : > { %6628 = vmatpush.bf16.msrb.mxu1 %v10928_v45  ;;  %6597 = vmatmul.bf16.vlgmr.msra.gmra.mxu2 %v15207_v35  ;;  %v13677_v45 = vld [vmem:[%s15025_s24 + $0xa84] sm:$0xf]  ;;  %v10965_v36 = vld [vmem:[%s15025_s24 + $0xcc4] sm:$0xf0] }
 0x29f   : > { %6641 = vmatpush.bf16.msrb.mxu2 %v11088_v47  ;;  %6610 = vmatmul.bf16.vlgmr.msra.gmra.mxu3 %v15213_v39  ;;  %v10685_v47 = vld [vmem:[%s15025_s24 + $0xa94] sm:$0xf0]  ;;  %v11125_v42 = vld [vmem:[%s15025_s24 + $0xe04] sm:$0xf0] }
 0x2a0   : > { %6654 = vmatpush.bf16.msrb.mxu3 %v11248_v51  ;;  %v10845_v51 = vld [vmem:[%s15025_s24 + $0xbd4] sm:$0xf0]  ;;  %v10688_v57 = vor.u32 %v13677_v45, %v10685_v47  ;;  %v10625_v45 = vld [vmem:[%s15025_s24 + $0xa1c] sm:$0xf0]  ;;  %v10808_v47 = vor.u32 %v13707_v29, %v10805_v34  ;;  %v13932_v29 = vld [vmem:[%s15025_s24 + $0x127c] sm:$0xf] }
 0x2a1   : > { %6616 = vmatpush.bf16.msrb.mxu0 %v10748_v59  ;;  %v10848_v58 = vor.u32 %v13717_v48, %v10845_v51  ;;  %v11008_v59 = vor.u32 %v13757_v52, %v11005_v46  ;;  %v6390_v62 = vpop.f32.mrf.mxu2  ;;  %v10968_v48 = vor.u32 %v13747_v30, %v10965_v36  ;;  %v13742_v51 = vld [vmem:[%s15025_s24 + $0xc8c] sm:$0xf]  ;;  %v10945_v46 = vld [vmem:[%s15025_s24 + $0xc9c] sm:$0xf0]  ;;  %v13972_v34 = vld [vmem:[%s15025_s24 + $0x13bc] sm:$0xf] }
 0x2a2   : > { %6629 = vmatpush.bf16.msrb.mxu1 %v10908_v55  ;;  %v13672_v55 = vld [vmem:[%s15025_s24 + $0xa5c] sm:$0xf]  ;;  %v6391_v3 = vadd.f32 %v6390_v62, %v6378_v50  ;;  %v6403_v4 = vpop.f32.mrf.mxu3  ;;  %v6379_v11 = vpop.f32.mrf.mxu1  ;;  %v10785_v50 = vld [vmem:[%s15025_s24 + $0xb5c] sm:$0xf0]  ;;  %v13937_v62 = vld [vmem:[%s15025_s24 + $0x12a4] sm:$0xf] }
 0x2a3   : > { %6642 = vmatpush.bf16.msrb.mxu2 %v11068_v13  ;;  %v10665_v13 = vld [vmem:[%s15025_s24 + $0xa6c] sm:$0xf0]  ;;  %v13852_v11 = vld [vmem:[%s15025_s24 + $0xffc] sm:$0xf] }
 0x2a4   : > { %6655 = vmatpush.bf16.msrb.mxu3 %v11228_v0  ;;  %v10825_v0 = vld [vmem:[%s15025_s24 + $0xbac] sm:$0xf0]  ;;  %v16334_v63 = vadd.f32 %v6403_v4, %v6391_v3  ;;  %v13977_v3 = vld [vmem:[%s15025_s24 + $0x13e4] sm:$0xf]  ;;  %v11885_v4 = vld [vmem:[%s15025_s24 + $0x13f4] sm:$0xf0] }
 0x2a5   : > { %6617 = vmatpush.bf16.msrb.mxu0 %v10728_v6  ;;  %v11145_v6 = vld [vmem:[%s15025_s24 + $0xe2c] sm:$0xf0]  ;;  %v10828_v17 = vor.u32 %v13712_v61, %v10825_v0  ;;  %v11725_v0 = vld [vmem:[%s15025_s24 + $0x12b4] sm:$0xf0] }
 0x2a6   : > { %6630 = vmatpush.bf16.msrb.mxu1 %v10888_v7  ;;  %v6366_v7 = vpop.f32.mrf.mxu0  ;;  %v11148_v31 = vor.u32 %v13792_v5, %v11145_v6  ;;  %v11108_v5 = vor.u32 %v13782_v54, %v11105_v56  ;;  %v11865_v30 = vld [vmem:[%s15025_s24 + $0x13cc] sm:$0xf0] }
 0x2a7   : > { %6643 = vmatpush.bf16.msrb.mxu2 %v11048_v8  ;;  %v10668_v8 = vor.u32 %v13672_v55, %v10665_v13  ;;  %v13897_v55 = vld [vmem:[%s15025_s24 + $0x1164] sm:$0xf] }
 0x2a8   : > { %6656 = vmatpush.bf16.msrb.mxu3 %v11208_v18  ;;  %v10988_v18 = vor.u32 %v13752_v1, %v10985_v2  ;;  %v10948_v2 = vor.u32 %v13742_v51, %v10945_v46  ;;  %v13967_v51 = vld [vmem:[%s15025_s24 + $0x1394] sm:$0xf] }
 0x2a9   : > { %6618 = vmatpush.bf16.msrb.mxu0 %v10708_v40  ;;  %v13787_v40 = vld [vmem:[%s15025_s24 + $0xdf4] sm:$0xf] }
 0x2aa   : > { %6631 = vmatpush.bf16.msrb.mxu1 %v10868_v43  ;;  %v10648_v43 = vor.u32 %v13667_v15, %v10645_v22  ;;  %v11128_v52 = vor.u32 %v13787_v40, %v11125_v42  ;;  %v6405_v13 = vpop.f32.mrf.mxu3  ;;  %v11888_v15 = vor.u32 %v13977_v3, %v11885_v4  ;;  %v11545_v22 = vld [vmem:[%s15025_s24 + $0x114c] sm:$0xf0] }
 0x2ab   : > { %6644 = vmatpush.bf16.msrb.mxu2 %v11028_v44  ;;  %v13662_v44 = vld [vmem:[%s15025_s24 + $0xa0c] sm:$0xf]  ;;  %v11505_v13 = vld [vmem:[%s15025_s24 + $0x10fc] sm:$0xf0] }
 0x2ac   : > { %6657 = vmatpush.bf16.msrb.mxu3 %v11188_v49  ;;  %v13702_v49 = vld [vmem:[%s15025_s24 + $0xb4c] sm:$0xf]  ;;  %v10628_v61 = vor.u32 %v13662_v44, %v10625_v45  ;;  %v11365_v44 = vld [vmem:[%s15025_s24 + $0xfe4] sm:$0xf0]  ;;  %v13887_v45 = vld [vmem:[%s15025_s24 + $0x1114] sm:$0xf] }
 0x2ad   : > { %6619 = vmatpush.bf16.msrb.mxu0 %v10688_v57  ;;  %v6392_v57 = vpop.f32.mrf.mxu2  ;;  %v10788_v1 = vor.u32 %v13702_v49, %v10785_v50  ;;  %v13927_v49 = vld [vmem:[%s15025_s24 + $0x1254] sm:$0xf]  ;;  %v11685_v50 = vld [vmem:[%s15025_s24 + $0x1264] sm:$0xf0] }
 0x2ae   : > { %6632 = vmatpush.bf16.msrb.mxu1 %v10848_v58  ;;  %v13857_v58 = vld [vmem:[%s15025_s24 + $0x1024] sm:$0xf]  ;;  %v11688_v56 = vor.u32 %v13927_v49, %v11685_v50  ;;  %v13842_v57 = vld [vmem:[%s15025_s24 + $0xfac] sm:$0xf]  ;;  %v11625_v49 = vld [vmem:[%s15025_s24 + $0x11ec] sm:$0xf0] }
 0x2af   : > { %6645 = vmatpush.bf16.msrb.mxu2 %v11008_v59  ;;  %v11405_v59 = vld [vmem:[%s15025_s24 + $0x1034] sm:$0xf0] }
 0x2b0   : > { %6658 = vmatpush.bf16.msrb.mxu3 %v11168_v60  ;;  %v11565_v60 = vld [vmem:[%s15025_s24 + $0x1174] sm:$0xf0]  ;;  %v11408_v6 = vor.u32 %v13857_v58, %v11405_v59  ;;  %v11345_v58 = vld [vmem:[%s15025_s24 + $0xfbc] sm:$0xf0]  ;;  %v13882_v59 = vld [vmem:[%s15025_s24 + $0x10ec] sm:$0xf] }
 0x2b1   : > { %6620 = vmatpush.bf16.msrb.mxu0 %v10668_v8  ;;  %v11568_v7 = vor.u32 %v13897_v55, %v11565_v60  ;;  %v11728_v8 = vor.u32 %v13937_v62, %v11725_v0  ;;  %v11665_v60 = vld [vmem:[%s15025_s24 + $0x123c] sm:$0xf0]  ;;  %v13962_v0 = vld [vmem:[%s15025_s24 + $0x136c] sm:$0xf]  ;;  %v11348_v3 = vor.u32 %v13842_v57, %v11345_v58 }
 0x2b2   : > { %6633 = vmatpush.bf16.msrb.mxu1 %v10828_v17  ;;  %v11385_v17 = vld [vmem:[%s15025_s24 + $0x100c] sm:$0xf0] }
 0x2b3   : > { %6646 = vmatpush.bf16.msrb.mxu2 %v10988_v18  ;;  %v13892_v18 = vld [vmem:[%s15025_s24 + $0x113c] sm:$0xf]  ;;  %v11388_v36 = vor.u32 %v13852_v11, %v11385_v17  ;;  %v13877_v11 = vld [vmem:[%s15025_s24 + $0x10c4] sm:$0xf] }
 0x2b4   : > { %6659 = vmatpush.bf16.msrb.mxu3 %v11148_v31  ;;  %v11705_v31 = vld [vmem:[%s15025_s24 + $0x128c] sm:$0xf0]  ;;  %v11548_v40 = vor.u32 %v13892_v18, %v11545_v22  ;;  %v13917_v22 = vld [vmem:[%s15025_s24 + $0x1204] sm:$0xf] }
 0x2b5   : > { %6621 = vmatpush.bf16.msrb.mxu0 %v10648_v43  ;;  %v11708_v42 = vor.u32 %v13932_v29, %v11705_v31  ;;  %v13847_v43 = vld [vmem:[%s15025_s24 + $0xfd4] sm:$0xf]  ;;  %v13957_v29 = vld [vmem:[%s15025_s24 + $0x1344] sm:$0xf]  ;;  %v11805_v31 = vld [vmem:[%s15025_s24 + $0x1354] sm:$0xf0] }
 0x2b6   : > { %6634 = vmatpush.bf16.msrb.mxu1 %v10808_v47  ;;  %v11868_v47 = vor.u32 %v13972_v34, %v11865_v30  ;;  %v11368_v46 = vor.u32 %v13847_v43, %v11365_v44  ;;  %v13872_v43 = vld [vmem:[%s15025_s24 + $0x109c] sm:$0xf]  ;;  %v11808_v44 = vor.u32 %v13957_v29, %v11805_v31  ;;  %v13942_v29 = vld [vmem:[%s15025_s24 + $0x12cc] sm:$0xf]  ;;  %v11745_v31 = vld [vmem:[%s15025_s24 + $0x12dc] sm:$0xf0] }
 0x2b7   : > { %6647 = vmatpush.bf16.msrb.mxu2 %v10968_v48  ;;  %v11525_v48 = vld [vmem:[%s15025_s24 + $0x1124] sm:$0xf0] }
 0x2b8   : > { %6660 = vmatpush.bf16.msrb.mxu3 %v11128_v52  ;;  %v11845_v52 = vld [vmem:[%s15025_s24 + $0x13a4] sm:$0xf0]  ;;  %v11528_v54 = vor.u32 %v13887_v45, %v11525_v48  ;;  %v13912_v48 = vld [vmem:[%s15025_s24 + $0x11dc] sm:$0xf] }
 0x2b9   : > { %6622 = vmatpush.bf16.msrb.mxu0 %v10628_v61  ;;  %v11848_v55 = vor.u32 %v13967_v51, %v11845_v52  ;;  %v13922_v61 = vld [vmem:[%s15025_s24 + $0x122c] sm:$0xf]  ;;  %v6416_v62 = vpop.f32.mrf.mxu0  ;;  %v13952_v52 = vld [vmem:[%s15025_s24 + $0x131c] sm:$0xf] }
 0x2ba   : > { %6635 = vmatpush.bf16.msrb.mxu1 %v10788_v1  ;;  %v11825_v1 = vld [vmem:[%s15025_s24 + $0x137c] sm:$0xf0]  ;;  %v6429_v4 = vpop.f32.mrf.mxu1 }
 0x2bb   : > { %6648 = vmatpush.bf16.msrb.mxu2 %v10948_v2  ;;  %v6417_v2 = vadd.f32 %v6416_v62, %v16334_v63  ;;  %v11828_v17 = vor.u32 %v13962_v0, %v11825_v1  ;;  %v11645_v63 = vld [vmem:[%s15025_s24 + $0x1214] sm:$0xf0]  ;;  %v11445_v0 = vld [vmem:[%s15025_s24 + $0x1084] sm:$0xf0]  ;;  %v13907_v1 = vld [vmem:[%s15025_s24 + $0x11b4] sm:$0xf] }
 0x2bc   : > { %6661 = vmatpush.bf16.msrb.mxu3 %v11108_v5  ;;  %6623 = vmatmul.bf16.vlgmr.msrb.gmra.mxu0 %v15280_v19  ;;  %v11508_v5 = vor.u32 %v13882_v59, %v11505_v13  ;;  %v13827_v13 = vld [vmem:[%s15025_s24 + $0xf34] sm:$0xf] }
 0x2bd   : > { %6667 = vmatpush.bf16.msra.mxu0 %v11408_v6  ;;  %6636 = vmatmul.bf16.vlgmr.msrb.gmra.mxu1 %v15287_v24  ;;  %v11668_v6 = vor.u32 %v13922_v61, %v11665_v60  ;;  %v6430_v18 = vadd.f32 %v6429_v4, %v6417_v2  ;;  %v11285_v61 = vld [vmem:[%s15025_s24 + $0xf44] sm:$0xf0]  ;;  %v13867_v60 = vld [vmem:[%s15025_s24 + $0x1074] sm:$0xf] }
 0x2be   : > { %6680 = vmatpush.bf16.msra.mxu1 %v11568_v7  ;;  %6649 = vmatmul.bf16.vlgmr.msrb.gmra.mxu2 %v15285_v23  ;;  %v13837_v7 = vld [vmem:[%s15025_s24 + $0xf84] sm:$0xf]  ;;  %v11605_v2 = vld [vmem:[%s15025_s24 + $0x11c4] sm:$0xf0] }
 0x2bf   : > { %6693 = vmatpush.bf16.msra.mxu2 %v11728_v8  ;;  %6662 = vmatmul.bf16.vlgmr.msrb.gmra.mxu3 %v15291_v28  ;;  %v11325_v8 = vld [vmem:[%s15025_s24 + $0xf94] sm:$0xf0]  ;;  %v11765_v4 = vld [vmem:[%s15025_s24 + $0x1304] sm:$0xf0] }
 0x2c0   : > { %6706 = vmatpush.bf16.msra.mxu3 %v11888_v15  ;;  %v11485_v15 = vld [vmem:[%s15025_s24 + $0x10d4] sm:$0xf0]  ;;  %v11328_v34 = vor.u32 %v13837_v7, %v11325_v8  ;;  %v11265_v7 = vld [vmem:[%s15025_s24 + $0xf1c] sm:$0xf0]  ;;  %v11448_v8 = vor.u32 %v13867_v60, %v11445_v0  ;;  %v14092_v60 = vld [vmem:[%s15025_s24 + $0x177c] sm:$0xf] }
 0x2c1   : > { %6668 = vmatpush.bf16.msra.mxu0 %v11388_v36  ;;  %v11488_v30 = vor.u32 %v13877_v11, %v11485_v15  ;;  %v11648_v36 = vor.u32 %v13917_v22, %v11645_v63  ;;  %v6442_v45 = vpop.f32.mrf.mxu2  ;;  %v11608_v11 = vor.u32 %v13907_v1, %v11605_v2  ;;  %v13902_v15 = vld [vmem:[%s15025_s24 + $0x118c] sm:$0xf]  ;;  %v11585_v63 = vld [vmem:[%s15025_s24 + $0x119c] sm:$0xf0]  ;;  %v14132_v0 = vld [vmem:[%s15025_s24 + $0x18bc] sm:$0xf] }
 0x2c2   : > { %6681 = vmatpush.bf16.msra.mxu1 %v11548_v40  ;;  %v13832_v40 = vld [vmem:[%s15025_s24 + $0xf5c] sm:$0xf]  ;;  %v6443_v50 = vadd.f32 %v6442_v45, %v6430_v18  ;;  %v6455_v51 = vpop.f32.mrf.mxu3  ;;  %v6431_v57 = vpop.f32.mrf.mxu1  ;;  %v11425_v18 = vld [vmem:[%s15025_s24 + $0x105c] sm:$0xf0]  ;;  %v14097_v45 = vld [vmem:[%s15025_s24 + $0x17a4] sm:$0xf] }
 0x2c3   : > { %6694 = vmatpush.bf16.msra.mxu2 %v11708_v42  ;;  %v11305_v42 = vld [vmem:[%s15025_s24 + $0xf6c] sm:$0xf0]  ;;  %v14012_v57 = vld [vmem:[%s15025_s24 + $0x14fc] sm:$0xf] }
 0x2c4   : > { %6707 = vmatpush.bf16.msra.mxu3 %v11868_v47  ;;  %v11465_v47 = vld [vmem:[%s15025_s24 + $0x10ac] sm:$0xf0]  ;;  %v16405_v58 = vadd.f32 %v6455_v51, %v6443_v50  ;;  %v14137_v50 = vld [vmem:[%s15025_s24 + $0x18e4] sm:$0xf]  ;;  %v12525_v51 = vld [vmem:[%s15025_s24 + $0x18f4] sm:$0xf0] }
 0x2c5   : > { %6669 = vmatpush.bf16.msra.mxu0 %v11368_v46  ;;  %v11785_v46 = vld [vmem:[%s15025_s24 + $0x132c] sm:$0xf0]  ;;  %v11468_v59 = vor.u32 %v13872_v43, %v11465_v47  ;;  %v12365_v47 = vld [vmem:[%s15025_s24 + $0x17b4] sm:$0xf0] }
 0x2c6   : > { %6682 = vmatpush.bf16.msra.mxu1 %v11528_v54  ;;  %v6418_v54 = vpop.f32.mrf.mxu0  ;;  %v11788_v62 = vor.u32 %v13952_v52, %v11785_v46  ;;  %v11748_v52 = vor.u32 %v13942_v29, %v11745_v31  ;;  %v12505_v1 = vld [vmem:[%s15025_s24 + $0x18cc] sm:$0xf0] }
 0x2c7   : > { %6695 = vmatpush.bf16.msra.mxu2 %v11688_v56  ;;  %v11308_v56 = vor.u32 %v13832_v40, %v11305_v42  ;;  %v14057_v40 = vld [vmem:[%s15025_s24 + $0x1664] sm:$0xf] }
 0x2c8   : > { %6708 = vmatpush.bf16.msra.mxu3 %v11848_v55  ;;  %v11628_v55 = vor.u32 %v13912_v48, %v11625_v49  ;;  %v11588_v49 = vor.u32 %v13902_v15, %v11585_v63  ;;  %v14127_v15 = vld [vmem:[%s15025_s24 + $0x1894] sm:$0xf] }
 0x2c9   : > { %6670 = vmatpush.bf16.msra.mxu0 %v11348_v3  ;;  %v13947_v3 = vld [vmem:[%s15025_s24 + $0x12f4] sm:$0xf] }
 0x2ca   : > { %6683 = vmatpush.bf16.msra.mxu1 %v11508_v5  ;;  %v11288_v5 = vor.u32 %v13827_v13, %v11285_v61  ;;  %v11768_v22 = vor.u32 %v13947_v3, %v11765_v4  ;;  %v6457_v42 = vpop.f32.mrf.mxu3  ;;  %v12528_v13 = vor.u32 %v14137_v50, %v12525_v51  ;;  %v12185_v61 = vld [vmem:[%s15025_s24 + $0x164c] sm:$0xf0] }
 0x2cb   : > { %6696 = vmatpush.bf16.msra.mxu2 %v11668_v6  ;;  %v13822_v6 = vld [vmem:[%s15025_s24 + $0xf0c] sm:$0xf]  ;;  %v12145_v42 = vld [vmem:[%s15025_s24 + $0x15fc] sm:$0xf0] }
 0x2cc   : > { %6709 = vmatpush.bf16.msra.mxu3 %v11828_v17  ;;  %v13862_v17 = vld [vmem:[%s15025_s24 + $0x104c] sm:$0xf]  ;;  %v11268_v43 = vor.u32 %v13822_v6, %v11265_v7  ;;  %v12005_v6 = vld [vmem:[%s15025_s24 + $0x14e4] sm:$0xf0]  ;;  %v14047_v7 = vld [vmem:[%s15025_s24 + $0x1614] sm:$0xf] }
 0x2cd   : > { %6671 = vmatpush.bf16.msra.mxu0 %v11328_v34  ;;  %v6444_v34 = vpop.f32.mrf.mxu2  ;;  %v11428_v48 = vor.u32 %v13862_v17, %v11425_v18  ;;  %v14087_v17 = vld [vmem:[%s15025_s24 + $0x1754] sm:$0xf]  ;;  %v12325_v18 = vld [vmem:[%s15025_s24 + $0x1764] sm:$0xf0] }
 0x2ce   : > { %6684 = vmatpush.bf16.msra.mxu1 %v11488_v30  ;;  %v14017_v30 = vld [vmem:[%s15025_s24 + $0x1524] sm:$0xf]  ;;  %v12328_v31 = vor.u32 %v14087_v17, %v12325_v18  ;;  %v14002_v34 = vld [vmem:[%s15025_s24 + $0x14ac] sm:$0xf]  ;;  %v12265_v17 = vld [vmem:[%s15025_s24 + $0x16ec] sm:$0xf0] }
 0x2cf   : > { %6697 = vmatpush.bf16.msra.mxu2 %v11648_v36  ;;  %v12045_v36 = vld [vmem:[%s15025_s24 + $0x1534] sm:$0xf0] }
 0x2d0   : > { %6710 = vmatpush.bf16.msra.mxu3 %v11808_v44  ;;  %v12205_v44 = vld [vmem:[%s15025_s24 + $0x1674] sm:$0xf0]  ;;  %v12048_v46 = vor.u32 %v14017_v30, %v12045_v36  ;;  %v11985_v30 = vld [vmem:[%s15025_s24 + $0x14bc] sm:$0xf0]  ;;  %v14042_v36 = vld [vmem:[%s15025_s24 + $0x15ec] sm:$0xf] }
 0x2d1   : > { %6672 = vmatpush.bf16.msra.mxu0 %v11308_v56  ;;  %v12208_v54 = vor.u32 %v14057_v40, %v12205_v44  ;;  %v12368_v56 = vor.u32 %v14097_v45, %v12365_v47  ;;  %v12305_v44 = vld [vmem:[%s15025_s24 + $0x173c] sm:$0xf0]  ;;  %v14122_v47 = vld [vmem:[%s15025_s24 + $0x186c] sm:$0xf]  ;;  %v11988_v50 = vor.u32 %v14002_v34, %v11985_v30 }
 0x2d2   : > { %6685 = vmatpush.bf16.msra.mxu1 %v11468_v59  ;;  %v12025_v59 = vld [vmem:[%s15025_s24 + $0x150c] sm:$0xf0] }
 0x2d3   : > { %6698 = vmatpush.bf16.msra.mxu2 %v11628_v55  ;;  %v14052_v55 = vld [vmem:[%s15025_s24 + $0x163c] sm:$0xf]  ;;  %v12028_v2 = vor.u32 %v14012_v57, %v12025_v59  ;;  %v14037_v57 = vld [vmem:[%s15025_s24 + $0x15c4] sm:$0xf] }
 0x2d4   : > { %6711 = vmatpush.bf16.msra.mxu3 %v11788_v62  ;;  %v12345_v62 = vld [vmem:[%s15025_s24 + $0x178c] sm:$0xf0]  ;;  %v12188_v3 = vor.u32 %v14052_v55, %v12185_v61  ;;  %v14077_v61 = vld [vmem:[%s15025_s24 + $0x1704] sm:$0xf] }
 0x2d5   : > { %6673 = vmatpush.bf16.msra.mxu0 %v11288_v5  ;;  %v12348_v4 = vor.u32 %v14092_v60, %v12345_v62  ;;  %v14007_v5 = vld [vmem:[%s15025_s24 + $0x14d4] sm:$0xf]  ;;  %v14117_v60 = vld [vmem:[%s15025_s24 + $0x1844] sm:$0xf]  ;;  %v12445_v62 = vld [vmem:[%s15025_s24 + $0x1854] sm:$0xf0] }
 0x2d6   : > { %6686 = vmatpush.bf16.msra.mxu1 %v11448_v8  ;;  %v12508_v8 = vor.u32 %v14132_v0, %v12505_v1  ;;  %v12008_v63 = vor.u32 %v14007_v5, %v12005_v6  ;;  %v14032_v5 = vld [vmem:[%s15025_s24 + $0x159c] sm:$0xf]  ;;  %v12448_v6 = vor.u32 %v14117_v60, %v12445_v62  ;;  %v14102_v60 = vld [vmem:[%s15025_s24 + $0x17cc] sm:$0xf]  ;;  %v12385_v62 = vld [vmem:[%s15025_s24 + $0x17dc] sm:$0xf0] }
 0x2d7   : > { %6699 = vmatpush.bf16.msra.mxu2 %v11608_v11  ;;  %v12165_v11 = vld [vmem:[%s15025_s24 + $0x1624] sm:$0xf0] }
 0x2d8   : > { %6712 = vmatpush.bf16.msra.mxu3 %v11768_v22  ;;  %v12485_v22 = vld [vmem:[%s15025_s24 + $0x18a4] sm:$0xf0]  ;;  %v12168_v29 = vor.u32 %v14047_v7, %v12165_v11  ;;  %v14072_v11 = vld [vmem:[%s15025_s24 + $0x16dc] sm:$0xf] }
 0x2d9   : > { %6674 = vmatpush.bf16.msra.mxu0 %v11268_v43  ;;  %v12488_v40 = vor.u32 %v14127_v15, %v12485_v22  ;;  %v14082_v43 = vld [vmem:[%s15025_s24 + $0x172c] sm:$0xf]  ;;  %v6468_v45 = vpop.f32.mrf.mxu0  ;;  %v14112_v22 = vld [vmem:[%s15025_s24 + $0x181c] sm:$0xf] }
 0x2da   : > { %6687 = vmatpush.bf16.msra.mxu1 %v11428_v48  ;;  %v12465_v48 = vld [vmem:[%s15025_s24 + $0x187c] sm:$0xf0]  ;;  %v6481_v51 = vpop.f32.mrf.mxu1 }
 0x2db   : > { %6700 = vmatpush.bf16.msra.mxu2 %v11588_v49  ;;  %v6469_v49 = vadd.f32 %v6468_v45, %v16405_v58  ;;  %v12468_v59 = vor.u32 %v14122_v47, %v12465_v48  ;;  %v12285_v58 = vld [vmem:[%s15025_s24 + $0x1714] sm:$0xf0]  ;;  %v12085_v47 = vld [vmem:[%s15025_s24 + $0x1584] sm:$0xf0]  ;;  %v14067_v48 = vld [vmem:[%s15025_s24 + $0x16b4] sm:$0xf] }
 0x2dc   : > { %6713 = vmatpush.bf16.msra.mxu3 %v11748_v52  ;;  %6675 = vmatmul.bf16.vlgmr.msra.gmra.mxu0 %v15356_v14  ;;  %v12148_v52 = vor.u32 %v14042_v36, %v12145_v42  ;;  %v13987_v42 = vld [vmem:[%s15025_s24 + $0x1434] sm:$0xf] }
 0x2dd   : > { %6719 = vmatpush.bf16.msrb.mxu0 %v12048_v46  ;;  %6688 = vmatmul.bf16.vlgmr.msra.gmra.mxu1 %v15363_v21  ;;  %v12308_v46 = vor.u32 %v14082_v43, %v12305_v44  ;;  %v6482_v55 = vadd.f32 %v6481_v51, %v6469_v49  ;;  %v11925_v43 = vld [vmem:[%s15025_s24 + $0x1444] sm:$0xf0]  ;;  %v14027_v44 = vld [vmem:[%s15025_s24 + $0x1574] sm:$0xf] }
 0x2de   : > { %6732 = vmatpush.bf16.msrb.mxu1 %v12208_v54  ;;  %6701 = vmatmul.bf16.vlgmr.msra.gmra.mxu2 %v15361_v20  ;;  %v13997_v54 = vld [vmem:[%s15025_s24 + $0x1484] sm:$0xf]  ;;  %v12245_v49 = vld [vmem:[%s15025_s24 + $0x16c4] sm:$0xf0] }
 0x2df   : > { %6745 = vmatpush.bf16.msrb.mxu2 %v12368_v56  ;;  %6714 = vmatmul.bf16.vlgmr.msra.gmra.mxu3 %v15367_v27  ;;  %v11965_v56 = vld [vmem:[%s15025_s24 + $0x1494] sm:$0xf0]  ;;  %v12405_v51 = vld [vmem:[%s15025_s24 + $0x1804] sm:$0xf0] }
 0x2e0   : > { %6758 = vmatpush.bf16.msrb.mxu3 %v12528_v13  ;;  %v12125_v13 = vld [vmem:[%s15025_s24 + $0x15d4] sm:$0xf0]  ;;  %v11968_v0 = vor.u32 %v13997_v54, %v11965_v56  ;;  %v11905_v54 = vld [vmem:[%s15025_s24 + $0x141c] sm:$0xf0]  ;;  %v12088_v56 = vor.u32 %v14027_v44, %v12085_v47 }
 0x2e1   : > { %6720 = vmatpush.bf16.msrb.mxu0 %v12028_v2  ;;  %v12128_v1 = vor.u32 %v14037_v57, %v12125_v13  ;;  %v12288_v2 = vor.u32 %v14077_v61, %v12285_v58  ;;  %v6494_v7 = vpop.f32.mrf.mxu2  ;;  %v12248_v57 = vor.u32 %v14067_v48, %v12245_v49  ;;  %v14062_v13 = vld [vmem:[%s15025_s24 + $0x168c] sm:$0xf]  ;;  %v12225_v58 = vld [vmem:[%s15025_s24 + $0x169c] sm:$0xf0]  ;;  %v13495_v48 = vld [vmem:[%s15025_s24 + $0x4d0] sm:$0xf0] }
 0x2e2   : > { %6733 = vmatpush.bf16.msrb.mxu1 %v12188_v3  ;;  %v13992_v3 = vld [vmem:[%s15025_s24 + $0x145c] sm:$0xf]  ;;  %v6495_v18 = vadd.f32 %v6494_v7, %v6482_v55  ;;  %v6507_v15 = vpop.f32.mrf.mxu3  ;;  %v6483_v34 = vpop.f32.mrf.mxu1  ;;  %v12065_v55 = vld [vmem:[%s15025_s24 + $0x155c] sm:$0xf0]  ;;  %v9811_v7 = vld [vmem:[%s15025_s24 + $0x3a8] sm:$0xf] }
 0x2e3   : > { %6746 = vmatpush.bf16.msrb.mxu2 %v12348_v4  ;;  %v11945_v4 = vld [vmem:[%s15025_s24 + $0x146c] sm:$0xf0]  ;;  %v9471_v34 = vld [vmem:[%s15025_s24 + $0x100] sm:$0xf] }
 0x2e4   : > { %6759 = vmatpush.bf16.msrb.mxu3 %v12508_v8  ;;  %v12105_v8 = vld [vmem:[%s15025_s24 + $0x15ac] sm:$0xf0]  ;;  %v16476_v30 = vadd.f32 %v6507_v15, %v6495_v18  ;;  %v9971_v18 = vld [vmem:[%s15025_s24 + $0x4e8] sm:$0xf]  ;;  %v13500_v15 = vld [vmem:[%s15025_s24 + $0x4f8] sm:$0xf0] }
 0x2e5   : > { %6721 = vmatpush.bf16.msrb.mxu0 %v12008_v63  ;;  %v12425_v63 = vld [vmem:[%s15025_s24 + $0x182c] sm:$0xf0]  ;;  %v12108_v36 = vor.u32 %v14032_v5, %v12105_v8  ;;  %v13460_v8 = vld [vmem:[%s15025_s24 + $0x3b8] sm:$0xf0]  ;;  %v9791_v44 = vld [vmem:[%s15025_s24 + $0x380] sm:$0xf] }
 0x2e6   : > { %6734 = vmatpush.bf16.msrb.mxu1 %v12168_v29  ;;  %v6470_v29 = vpop.f32.mrf.mxu0  ;;  %v12428_v45 = vor.u32 %v14112_v22, %v12425_v63  ;;  %v12388_v22 = vor.u32 %v14102_v60, %v12385_v62  ;;  %v9951_v47 = vld [vmem:[%s15025_s24 + $0x4c0] sm:$0xf]  ;;  %v9431_v60 = vld [vmem:[%s15025_s24 + $0xb0] sm:$0xf] }
 0x2e7   : > { %6747 = vmatpush.bf16.msrb.mxu2 %v12328_v31  ;;  %v11948_v31 = vor.u32 %v13992_v3, %v11945_v4  ;;  %v9651_v3 = vld [vmem:[%s15025_s24 + $0x268] sm:$0xf] }
 0x2e8   : > { %6760 = vmatpush.bf16.msrb.mxu3 %v12488_v40  ;;  %v12268_v40 = vor.u32 %v14072_v11, %v12265_v17  ;;  %v12228_v17 = vor.u32 %v14062_v13, %v12225_v58  ;;  %v9931_v13 = vld [vmem:[%s15025_s24 + $0x498] sm:$0xf] }
 0x2e9   : > { %6722 = vmatpush.bf16.msrb.mxu0 %v11988_v50  ;;  %v14107_v50 = vld [vmem:[%s15025_s24 + $0x17f4] sm:$0xf] }
 0x2ea   : > { %6735 = vmatpush.bf16.msrb.mxu1 %v12148_v52  ;;  %v11928_v52 = vor.u32 %v13987_v42, %v11925_v43  ;;  %v12408_v61 = vor.u32 %v14107_v50, %v12405_v51  ;;  %v6509_v4 = vpop.f32.mrf.mxu3  ;;  %v9972_v42 = vor.u32 %v13500_v15, %v9971_v18  ;;  %v13415_v43 = vld [vmem:[%s15025_s24 + $0x250] sm:$0xf0] }
 0x2eb   : > { %6748 = vmatpush.bf16.msrb.mxu2 %v12308_v46  ;;  %v13982_v46 = vld [vmem:[%s15025_s24 + $0x140c] sm:$0xf] }
 0x2ec   : > { %6761 = vmatpush.bf16.msrb.mxu3 %v12468_v59  ;;  %v14022_v59 = vld [vmem:[%s15025_s24 + $0x154c] sm:$0xf]  ;;  %v11908_v5 = vor.u32 %v13982_v46, %v11905_v54  ;;  %v9611_v54 = vld [vmem:[%s15025_s24 + $0x218] sm:$0xf] }
 0x2ed   : > { %6723 = vmatpush.bf16.msrb.mxu0 %v11968_v0  ;;  %v6496_v0 = vpop.f32.mrf.mxu2  ;;  %v12068_v11 = vor.u32 %v14022_v59, %v12065_v55  ;;  %v13370_v46 = vld [vmem:[%s15025_s24 + $0xe8] sm:$0xf0]  ;;  %v9771_v59 = vld [vmem:[%s15025_s24 + $0x358] sm:$0xf] }
 0x2ee   : > { %6736 = vmatpush.bf16.msrb.mxu1 %v12128_v1  ;;  %v9491_v1 = vld [vmem:[%s15025_s24 + $0x128] sm:$0xf]  ;;  %v13450_v55 = vld [vmem:[%s15025_s24 + $0x368] sm:$0xf0] }
 0x2ef   : > { %6749 = vmatpush.bf16.msrb.mxu2 %v12288_v2  ;;  %v13380_v2 = vld [vmem:[%s15025_s24 + $0x138] sm:$0xf0]  ;;  %v9772_v0 = vor.u32 %v13450_v55, %v9771_v59  ;;  %v13395_v55 = vld [vmem:[%s15025_s24 + $0x1b0] sm:$0xf0] }
 0x2f0   : > { %6762 = vmatpush.bf16.msrb.mxu3 %v12448_v6  ;;  %v13420_v6 = vld [vmem:[%s15025_s24 + $0x278] sm:$0xf0]  ;;  %v9492_v63 = vor.u32 %v13380_v2, %v9491_v1  ;;  %v13365_v1 = vld [vmem:[%s15025_s24 + $0xc0] sm:$0xf0]  ;;  %v9591_v2 = vld [vmem:[%s15025_s24 + $0x1f0] sm:$0xf] }
 0x2f1   : > { %6724 = vmatpush.bf16.msrb.mxu0 %v11948_v31  ;;  %v9652_v29 = vor.u32 %v13420_v6, %v9651_v3  ;;  %v9812_v31 = vor.u32 %v13460_v8, %v9811_v7  ;;  %v14462_v3 = vld [vmem:[%s15031_s11] sm:$0x1f]  ;;  %v9751_v7 = vld [vmem:[%s15025_s24 + $0x330] sm:$0xf]  ;;  %v9432_v18 = vor.u32 %v13365_v1, %v9431_v60 }
 0x2f2   : > { %6737 = vmatpush.bf16.msrb.mxu1 %v12108_v36  ;;  %v13375_v36 = vld [vmem:[%s15025_s24 + $0x110] sm:$0xf0]  ;;  %v1564_v4 = vperm.slane %v14462_v3, 3  ;;  %v13405_v6 = vld [vmem:[%s15025_s24 + $0x200] sm:$0xf0] }
 0x2f3   : > { %6750 = vmatpush.bf16.msrb.mxu2 %v12268_v40  ;;  %v9631_v40 = vld [vmem:[%s15025_s24 + $0x240] sm:$0xf]  ;;  %v9472_v49 = vor.u32 %v13375_v36, %v9471_v34  ;;  %v13445_v8 = vld [vmem:[%s15025_s24 + $0x340] sm:$0xf0]  ;;  %v9571_v34 = vld [vmem:[%s15025_s24 + $0x1c8] sm:$0xf] }
 0x2f4   : > { %6763 = vmatpush.bf16.msrb.mxu3 %v12428_v45  ;;  %v13455_v45 = vld [vmem:[%s15025_s24 + $0x390] sm:$0xf0]  ;;  %v9632_v50 = vor.u32 %v13415_v43, %v9631_v40  ;;  %v13400_v43 = vld [vmem:[%s15025_s24 + $0x1d8] sm:$0xf0] }
 0x2f5   : > { %6725 = vmatpush.bf16.msrb.mxu0 %v11928_v52  ;;  %v9792_v51 = vor.u32 %v13455_v45, %v9791_v44  ;;  %v9451_v52 = vld [vmem:[%s15025_s24 + $0xd8] sm:$0xf]  ;;  %v9731_v44 = vld [vmem:[%s15025_s24 + $0x308] sm:$0xf]  ;;  %v13440_v45 = vld [vmem:[%s15025_s24 + $0x318] sm:$0xf0] }
 0x2f6   : > { %6738 = vmatpush.bf16.msrb.mxu1 %v12088_v56  ;;  %v9952_v56 = vor.u32 %v13495_v48, %v9951_v47  ;;  %v9452_v58 = vor.u32 %v13370_v46, %v9451_v52  ;;  %v9891_v47 = vld [vmem:[%s15025_s24 + $0x448] sm:$0xf]  ;;  %v13480_v48 = vld [vmem:[%s15025_s24 + $0x458] sm:$0xf0]  ;;  %v9732_v52 = vor.u32 %v13440_v45, %v9731_v44  ;;  %v9391_v46 = vld [vmem:[%s15025_s24 + $0x60] sm:$0xf] }
 0x2f7   : > { %6751 = vmatpush.bf16.msrb.mxu2 %v12248_v57  ;;  %v13410_v57 = vld [vmem:[%s15025_s24 + $0x228] sm:$0xf0]  ;;  %v9892_v59 = vor.u32 %v13480_v48, %v9891_v47  ;;  %v13385_v44 = vld [vmem:[%s15025_s24 + $0x160] sm:$0xf0]  ;;  %v9671_v45 = vld [vmem:[%s15025_s24 + $0x290] sm:$0xf] }
 0x2f8   : > { %6764 = vmatpush.bf16.msrb.mxu3 %v12408_v61  ;;  %v13490_v61 = vld [vmem:[%s15025_s24 + $0x4a8] sm:$0xf0]  ;;  %v9612_v62 = vor.u32 %v13410_v57, %v9611_v54  ;;  %v13355_v54 = vld [vmem:[%s15025_s24 + $0x70] sm:$0xf0] }
 0x2f9   : > { %6726 = vmatpush.bf16.msrb.mxu0 %v11908_v5  ;;  %v9932_v5 = vor.u32 %v13490_v61, %v9931_v13  ;;  %v6520_v15 = vpop.f32.mrf.mxu0  ;;  %v9711_v13 = vld [vmem:[%s15025_s24 + $0x2e0] sm:$0xf]  ;;  %v13435_v61 = vld [vmem:[%s15025_s24 + $0x2f0] sm:$0xf0]  ;;  %v9392_v1 = vor.u32 %v13355_v54, %v9391_v46  ;;  %v10131_v46 = vld [vmem:[%s15025_s24 + $0x628] sm:$0xf] }
 0x2fa   : > { %6739 = vmatpush.bf16.msrb.mxu1 %v12068_v11  ;;  %v9911_v11 = vld [vmem:[%s15025_s24 + $0x470] sm:$0xf]  ;;  %v6521_v36 = vadd.f32 %v6520_v15, %v1564_v4  ;;  %v6533_v40 = vpop.f32.mrf.mxu1  ;;  %v9691_v15 = vld [vmem:[%s15025_s24 + $0x2b8] sm:$0xf]  ;;  %v13540_v54 = vld [vmem:[%s15025_s24 + $0x638] sm:$0xf0] }
 0x2fb   : > { %6752 = vmatpush.bf16.msrb.mxu2 %v12228_v17  ;;  %v13485_v17 = vld [vmem:[%s15025_s24 + $0x480] sm:$0xf0] }
 0x2fc   : > { %6765 = vmatpush.bf16.msrb.mxu3 %v12388_v22  ;;  %6727 = vmatmul.bf16.vlgmr.msrb.gmra.mxu0 %v15432_v25  ;;  %v9592_v22 = vor.u32 %v13405_v6, %v9591_v2  ;;  %v9371_v6 = vld [vmem:[%s15025_s24 + $0x38] sm:$0xf] }
 0x2fd   : > { %6771 = vmatpush.bf16.msra.mxu0 %v9492_v63  ;;  %6740 = vmatmul.bf16.vlgmr.msrb.gmra.mxu1 %v15439_v33  ;;  %v9752_v63 = vor.u32 %v13445_v8, %v9751_v7  ;;  %v13350_v7 = vld [vmem:[%s15025_s24 + $0x48] sm:$0xf0]  ;;  %v9531_v8 = vld [vmem:[%s15025_s24 + $0x178] sm:$0xf] }
 0x2fe   : > { %6784 = vmatpush.bf16.msra.mxu1 %v9652_v29  ;;  %6753 = vmatmul.bf16.vlgmr.msrb.gmra.mxu2 %v15437_v32  ;;  %v9411_v29 = vld [vmem:[%s15025_s24 + $0x88] sm:$0xf] }
 0x2ff   : > { %6797 = vmatpush.bf16.msra.mxu2 %v9812_v31  ;;  %6766 = vmatmul.bf16.vlgmr.msrb.gmra.mxu3 %v15443_v37  ;;  %v13360_v31 = vld [vmem:[%s15025_s24 + $0x98] sm:$0xf0] }
 0x300   : > { %6810 = vmatpush.bf16.msra.mxu3 %v9972_v42  ;;  %v9912_v42 = vor.u32 %v13485_v17, %v9911_v11 }
 0x301   : > { %6772 = vmatpush.bf16.msra.mxu0 %v9472_v49  ;;  %v6534_v49 = vadd.f32 %v6533_v40, %v6521_v36  ;;  %v6546_v57 = vpop.f32.mrf.mxu2  ;;  %v6522_v3 = vpop.f32.mrf.mxu0  ;;  %v13345_v36 = vld [vmem:[%s15025_s24 + $0x20] sm:$0xf0] }
 0x302   : > { %6785 = vmatpush.bf16.msra.mxu1 %v9632_v50  ;;  %v9412_v50 = vor.u32 %v13360_v31, %v9411_v29  ;;  %v6559_v60 = vpop.f32.mrf.mxu3  ;;  %v6535_v11 = vpop.f32.mrf.mxu1  ;;  %v13470_v29 = vld [vmem:[%s15025_s24 + $0x408] sm:$0xf0]  ;;  %v9372_v31 = vor.u32 %v13350_v7, %v9371_v6  ;;  %v13535_v6 = vld [vmem:[%s15025_s24 + $0x610] sm:$0xf0]  ;;  %v10271_v7 = vld [vmem:[%s15025_s24 + $0x740] sm:$0xf] }
 0x303   : > { %6798 = vmatpush.bf16.msra.mxu2 %v9792_v51  ;;  %v9572_v51 = vor.u32 %v13400_v43, %v9571_v34  ;;  %v9351_v34 = vld [vmem:[%s15025_s24 + $0x10] sm:$0xf]  ;;  %v13575_v11 = vld [vmem:[%s15025_s24 + $0x750] sm:$0xf0] }
 0x304   : > { %6811 = vmatpush.bf16.msra.mxu3 %v9952_v56  ;;  %v9551_v56 = vld [vmem:[%s15025_s24 + $0x1a0] sm:$0xf]  ;;  %v9511_v43 = vld [vmem:[%s15025_s24 + $0x150] sm:$0xf] }
 0x305   : > { %6773 = vmatpush.bf16.msra.mxu0 %v9452_v58  ;;  %v6547_v58 = vadd.f32 %v6546_v57, %v6534_v49  ;;  %v9552_v4 = vor.u32 %v13395_v55, %v9551_v56  ;;  %v13425_v49 = vld [vmem:[%s15025_s24 + $0x2a0] sm:$0xf0]  ;;  %v10291_v56 = vld [vmem:[%s15025_s24 + $0x768] sm:$0xf]  ;;  %v9352_v57 = vor.u32 %v13345_v36, %v9351_v34  ;;  %v10091_v34 = vld [vmem:[%s15025_s24 + $0x5d8] sm:$0xf] }
 0x306   : > { %6786 = vmatpush.bf16.msra.mxu1 %v9612_v62  ;;  %v9871_v62 = vld [vmem:[%s15025_s24 + $0x420] sm:$0xf]  ;;  %v10451_v55 = vld [vmem:[%s15025_s24 + $0x8a8] sm:$0xf]  ;;  %v13530_v36 = vld [vmem:[%s15025_s24 + $0x5e8] sm:$0xf0] }
 0x307   : > { %6799 = vmatpush.bf16.msra.mxu2 %v9772_v0  ;;  %v13475_v0 = vld [vmem:[%s15025_s24 + $0x430] sm:$0xf0]  ;;  %v16547_v2 = vadd.f32 %v6559_v60, %v6547_v58  ;;  %v9672_v58 = vor.u32 %v13425_v49, %v9671_v45  ;;  %v10611_v60 = vld [vmem:[%s15025_s24 + $0x9e8] sm:$0xf]  ;;  %v13610_v45 = vld [vmem:[%s15025_s24 + $0x868] sm:$0xf0]  ;;  %v10092_v49 = vor.u32 %v13530_v36, %v10091_v34 }
 0x308   : > { %6812 = vmatpush.bf16.msra.mxu3 %v9932_v5  ;;  %v9712_v5 = vor.u32 %v13435_v61, %v9711_v13  ;;  %v9872_v17 = vor.u32 %v13475_v0, %v9871_v62  ;;  %v13620_v13 = vld [vmem:[%s15025_s24 + $0x8b8] sm:$0xf0]  ;;  %v9512_v61 = vor.u32 %v13385_v44, %v9511_v43  ;;  %v13570_v43 = vld [vmem:[%s15025_s24 + $0x728] sm:$0xf0]  ;;  %v10411_v44 = vld [vmem:[%s15025_s24 + $0x858] sm:$0xf] }
 0x309   : > { %6774 = vmatpush.bf16.msra.mxu0 %v9432_v18  ;;  %v13390_v18 = vld [vmem:[%s15025_s24 + $0x188] sm:$0xf0]  ;;  %v6548_v47 = vpop.f32.mrf.mxu2  ;;  %v13660_v62 = vld [vmem:[%s15025_s24 + $0x9f8] sm:$0xf0]  ;;  %v13555_v34 = vld [vmem:[%s15025_s24 + $0x6b0] sm:$0xf0] }
 0x30a   : > { %6787 = vmatpush.bf16.msra.mxu1 %v9592_v22  ;;  %v13430_v22 = vld [vmem:[%s15025_s24 + $0x2c8] sm:$0xf0]  ;;  %v9532_v40 = vor.u32 %v13390_v18, %v9531_v8  ;;  %v10612_v8 = vor.u32 %v13660_v62, %v10611_v60  ;;  %v13615_v18 = vld [vmem:[%s15025_s24 + $0x890] sm:$0xf0]  ;;  %v10571_v47 = vld [vmem:[%s15025_s24 + $0x998] sm:$0xf] }
 0x30b   : > { %6800 = vmatpush.bf16.msra.mxu2 %v9752_v63  ;;  %v9851_v63 = vld [vmem:[%s15025_s24 + $0x3f8] sm:$0xf]  ;;  %v13520_v60 = vld [vmem:[%s15025_s24 + $0x598] sm:$0xf0]  ;;  %v10211_v62 = vld [vmem:[%s15025_s24 + $0x6c8] sm:$0xf] }
 0x30c   : > { %6813 = vmatpush.bf16.msra.mxu3 %v9912_v42  ;;  %v9692_v42 = vor.u32 %v13430_v22, %v9691_v15  ;;  %v9852_v48 = vor.u32 %v13470_v29, %v9851_v63  ;;  %v10591_v15 = vld [vmem:[%s15025_s24 + $0x9c0] sm:$0xf]  ;;  %v13655_v22 = vld [vmem:[%s15025_s24 + $0x9d0] sm:$0xf0]  ;;  %v10272_v29 = vor.u32 %v13575_v11, %v10271_v7  ;;  %v10531_v7 = vld [vmem:[%s15025_s24 + $0x948] sm:$0xf] }
 0x30d   : > { %6775 = vmatpush.bf16.msra.mxu0 %v9412_v50  ;;  %v9831_v50 = vld [vmem:[%s15025_s24 + $0x3d0] sm:$0xf]  ;;  %v10351_v36 = vld [vmem:[%s15025_s24 + $0x7e0] sm:$0xf] }
 0x30e   : > { %6788 = vmatpush.bf16.msra.mxu1 %v9572_v51  ;;  %v13465_v51 = vld [vmem:[%s15025_s24 + $0x3e0] sm:$0xf0] }
 0x30f   : > { %6801 = vmatpush.bf16.msra.mxu2 %v9732_v52  ;;  %v6561_v52 = vpop.f32.mrf.mxu3  ;;  %v9832_v0 = vor.u32 %v13465_v51, %v9831_v50  ;;  %v10412_v51 = vor.u32 %v13610_v45, %v10411_v44  ;;  %v10511_v44 = vld [vmem:[%s15025_s24 + $0x920] sm:$0xf]  ;;  %v13635_v45 = vld [vmem:[%s15025_s24 + $0x930] sm:$0xf0] }
 0x310   : > { %6814 = vmatpush.bf16.msra.mxu3 %v9892_v59  ;;  %v13580_v59 = vld [vmem:[%s15025_s24 + $0x778] sm:$0xf0]  ;;  %v13525_v52 = vld [vmem:[%s15025_s24 + $0x5c0] sm:$0xf0] }
 0x311   : > { %6776 = vmatpush.bf16.msra.mxu0 %v9392_v1  ;;  %v10132_v1 = vor.u32 %v13540_v54, %v10131_v46  ;;  %v10292_v3 = vor.u32 %v13580_v59, %v10291_v56  ;;  %v10231_v46 = vld [vmem:[%s15025_s24 + $0x6f0] sm:$0xf]  ;;  %v13565_v54 = vld [vmem:[%s15025_s24 + $0x700] sm:$0xf0] }
 0x312   : > { %6789 = vmatpush.bf16.msra.mxu1 %v9552_v4  ;;  %v10452_v4 = vor.u32 %v13620_v13, %v10451_v55  ;;  %v13605_v56 = vld [vmem:[%s15025_s24 + $0x840] sm:$0xf0]  ;;  %v10232_v13 = vor.u32 %v13565_v54, %v10231_v46  ;;  %v10171_v46 = vld [vmem:[%s15025_s24 + $0x678] sm:$0xf]  ;;  %v10512_v54 = vor.u32 %v13635_v45, %v10511_v44  ;;  %v10751_v45 = vld [vmem:[%s15025_s24 + $0xb00] sm:$0xf] }
 0x313   : > { %6802 = vmatpush.bf16.msra.mxu2 %v9712_v5  ;;  %v10111_v5 = vld [vmem:[%s15025_s24 + $0x600] sm:$0xf]  ;;  %v13645_v59 = vld [vmem:[%s15025_s24 + $0x980] sm:$0xf0] }
 0x314   : > { %6815 = vmatpush.bf16.msra.mxu3 %v9872_v17  ;;  %v10431_v17 = vld [vmem:[%s15025_s24 + $0x880] sm:$0xf]  ;;  %v10112_v63 = vor.u32 %v13535_v6, %v10111_v5  ;;  %v10371_v5 = vld [vmem:[%s15025_s24 + $0x808] sm:$0xf]  ;;  %v13600_v6 = vld [vmem:[%s15025_s24 + $0x818] sm:$0xf0] }
 0x315   : > { %6777 = vmatpush.bf16.msra.mxu0 %v9372_v31  ;;  %v10432_v31 = vor.u32 %v13615_v18, %v10431_v17  ;;  %v10372_v18 = vor.u32 %v13600_v6, %v10371_v5  ;;  %v13585_v5 = vld [vmem:[%s15025_s24 + $0x7a0] sm:$0xf0]  ;;  %v10471_v6 = vld [vmem:[%s15025_s24 + $0x8d0] sm:$0xf] }
 0x316   : > { %6790 = vmatpush.bf16.msra.mxu1 %v9532_v40  ;;  %v10251_v40 = vld [vmem:[%s15025_s24 + $0x718] sm:$0xf] }
 0x317   : > { %6803 = vmatpush.bf16.msra.mxu2 %v9692_v42  ;;  %v10592_v42 = vor.u32 %v13655_v22, %v10591_v15  ;;  %v10252_v50 = vor.u32 %v13570_v43, %v10251_v40  ;;  %v10031_v15 = vld [vmem:[%s15025_s24 + $0x560] sm:$0xf]  ;;  %v13515_v22 = vld [vmem:[%s15025_s24 + $0x570] sm:$0xf0] }
 0x318   : > { %6816 = vmatpush.bf16.msra.mxu3 %v9852_v48  ;;  %v13650_v48 = vld [vmem:[%s15025_s24 + $0x9a8] sm:$0xf0]  ;;  %v13595_v40 = vld [vmem:[%s15025_s24 + $0x7f0] sm:$0xf0] }
 0x319   : > { %6778 = vmatpush.bf16.msra.mxu0 %v9352_v57  ;;  %v10551_v57 = vld [vmem:[%s15025_s24 + $0x970] sm:$0xf]  ;;  %v6572_v55 = vpop.f32.mrf.mxu0 }
 0x31a   : > { %6791 = vmatpush.bf16.msra.mxu1 %v9512_v61 }
 0x31b   : > { %6804 = vmatpush.bf16.msra.mxu2 %v9672_v58  ;;  %v10051_v58 = vld [vmem:[%s15025_s24 + $0x588] sm:$0xf] }
 0x31c   : > { %6817 = vmatpush.bf16.msra.mxu3 %v9832_v0  ;;  %6779 = vmatmul.bf16.vlgmr.msra.gmra.mxu0 %v15146_v10  ;;  %v10572_v10 = vor.u32 %v13650_v48, %v10571_v47  ;;  %v6573_v0 = vadd.f32 %v6572_v55, %v16547_v2  ;;  %v10052_v17 = vor.u32 %v13520_v60, %v10051_v58 }
 0x31d   : > { %6823 = vmatpush.bf16.msrb.mxu0 %v10132_v1  ;;  %6792 = vmatmul.bf16.vlgmr.msra.gmra.mxu1 %v15161_v26  ;;  %v6585_v1 = vpop.f32.mrf.mxu1  ;;  %v10032_v47 = vor.u32 %v13515_v22, %v10031_v15  ;;  %v13740_v15 = vld [vmem:[%s15025_s24 + $0xc78] sm:$0xf0]  ;;  %v11091_v22 = vld [vmem:[%s15025_s24 + $0xda8] sm:$0xf] }
 0x31e   : > { %6836 = vmatpush.bf16.msrb.mxu1 %v10292_v3  ;;  %6805 = vmatmul.bf16.vlgmr.msra.gmra.mxu2 %v15144_v9  ;;  %v10071_v9 = vld [vmem:[%s15025_s24 + $0x5b0] sm:$0xf]  ;;  %v10552_v3 = vor.u32 %v13645_v59, %v10551_v57  ;;  %v6586_v11 = vadd.f32 %v6585_v1, %v6573_v0  ;;  %v13590_v57 = vld [vmem:[%s15025_s24 + $0x7c8] sm:$0xf0]  ;;  %v10491_v59 = vld [vmem:[%s15025_s24 + $0x8f8] sm:$0xf] }
 0x31f   : > { %6849 = vmatpush.bf16.msrb.mxu2 %v10452_v4  ;;  %6818 = vmatmul.bf16.vlgmr.msra.gmra.mxu3 %v15151_v16  ;;  %v10391_v16 = vld [vmem:[%s15025_s24 + $0x830] sm:$0xf]  ;;  %v10072_v26 = vor.u32 %v13525_v52, %v10071_v9  ;;  %v13560_v4 = vld [vmem:[%s15025_s24 + $0x6d8] sm:$0xf0]  ;;  %v10011_v9 = vld [vmem:[%s15025_s24 + $0x538] sm:$0xf] }
 0x320   : > { %6862 = vmatpush.bf16.msrb.mxu3 %v10612_v8  ;;  %v10392_v61 = vor.u32 %v13605_v56, %v10391_v16  ;;  %v13640_v8 = vld [vmem:[%s15025_s24 + $0x958] sm:$0xf0]  ;;  %v10212_v2 = vor.u32 %v13560_v4, %v10211_v62  ;;  %v13510_v52 = vld [vmem:[%s15025_s24 + $0x548] sm:$0xf0]  ;;  %v10331_v56 = vld [vmem:[%s15025_s24 + $0x7b8] sm:$0xf] }
 0x321   : > { %6824 = vmatpush.bf16.msrb.mxu0 %v10112_v63  ;;  %v10191_v63 = vld [vmem:[%s15025_s24 + $0x6a0] sm:$0xf]  ;;  %v13550_v16 = vld [vmem:[%s15025_s24 + $0x688] sm:$0xf0]  ;;  %v10012_v55 = vor.u32 %v13510_v52, %v10011_v9  ;;  %v10332_v60 = vor.u32 %v13590_v57, %v10331_v56  ;;  %v10151_v62 = vld [vmem:[%s15025_s24 + $0x650] sm:$0xf] }
 0x322   : > { %6837 = vmatpush.bf16.msrb.mxu1 %v10272_v29  ;;  %v6598_v29 = vpop.f32.mrf.mxu2  ;;  %v6611_v43 = vpop.f32.mrf.mxu3  ;;  %v10172_v58 = vor.u32 %v13550_v16, %v10171_v46  ;;  %v13545_v0 = vld [vmem:[%s15025_s24 + $0x660] sm:$0xf0]  ;;  %v10311_v1 = vld [vmem:[%s15025_s24 + $0x790] sm:$0xf]  ;;  %v11071_v9 = vld [vmem:[%s15025_s24 + $0xd80] sm:$0xf] }
 0x323   : > { %6850 = vmatpush.bf16.msrb.mxu2 %v10432_v31  ;;  %v10532_v31 = vor.u32 %v13640_v8, %v10531_v7  ;;  %v13625_v7 = vld [vmem:[%s15025_s24 + $0x8e0] sm:$0xf0]  ;;  %v13775_v52 = vld [vmem:[%s15025_s24 + $0xd90] sm:$0xf0]  ;;  %v11231_v46 = vld [vmem:[%s15025_s24 + $0xec0] sm:$0xf] }
 0x324   : > { %6863 = vmatpush.bf16.msrb.mxu3 %v10592_v42  ;;  %v6599_v42 = vadd.f32 %v6598_v29, %v6586_v11  ;;  %v10771_v11 = vld [vmem:[%s15025_s24 + $0xb28] sm:$0xf]  ;;  %v10152_v29 = vor.u32 %v13545_v0, %v10151_v62  ;;  %v11072_v56 = vor.u32 %v13775_v52, %v11071_v9  ;;  %v10731_v57 = vld [vmem:[%s15025_s24 + $0xad8] sm:$0xf]  ;;  %v13810_v62 = vld [vmem:[%s15025_s24 + $0xea8] sm:$0xf0] }
 0x325   : > { %6825 = vmatpush.bf16.msrb.mxu0 %v10092_v49  ;;  %v6574_v49 = vpop.f32.mrf.mxu0  ;;  %v10831_v9 = vld [vmem:[%s15025_s24 + $0xba0] sm:$0xf] }
 0x326   : > { %6838 = vmatpush.bf16.msrb.mxu1 %v10252_v50  ;;  %v16618_v48 = vadd.f32 %v6611_v43, %v6599_v42  ;;  %v10192_v50 = vor.u32 %v13555_v34, %v10191_v63  ;;  %v13780_v63 = vld [vmem:[%s15025_s24 + $0xdb8] sm:$0xf0]  ;;  %v11251_v34 = vld [vmem:[%s15025_s24 + $0xee8] sm:$0xf]  ;;  %v10911_v49 = vld [vmem:[%s15025_s24 + $0xc40] sm:$0xf] }
 0x327   : > { %6851 = vmatpush.bf16.msrb.mxu2 %v10412_v51  ;;  %v10352_v51 = vor.u32 %v13595_v40, %v10351_v36  ;;  %v13820_v36 = vld [vmem:[%s15025_s24 + $0xef8] sm:$0xf0]  ;;  %v10472_v40 = vor.u32 %v13625_v7, %v10471_v6  ;;  %v11092_v44 = vor.u32 %v13780_v63, %v11091_v22  ;;  %v13765_v7 = vld [vmem:[%s15025_s24 + $0xd40] sm:$0xf0]  ;;  %v10691_v63 = vld [vmem:[%s15025_s24 + $0xa88] sm:$0xf] }
 0x328   : > { %6864 = vmatpush.bf16.msrb.mxu3 %v10572_v10  ;;  %v6587_v10 = vpop.f32.mrf.mxu1 }
 0x329   : > { %6826 = vmatpush.bf16.msrb.mxu0 %v10072_v26  ;;  %v13630_v26 = vld [vmem:[%s15025_s24 + $0x908] sm:$0xf0]  ;;  %v13815_v10 = vld [vmem:[%s15025_s24 + $0xed0] sm:$0xf0] }
 0x32a   : > { %6839 = vmatpush.bf16.msrb.mxu1 %v10232_v13  ;;  %v9991_v13 = vld [vmem:[%s15025_s24 + $0x510] sm:$0xf]  ;;  %v10492_v4 = vor.u32 %v13630_v26, %v10491_v59  ;;  %v6613_v8 = vpop.f32.mrf.mxu3  ;;  %v13690_v59 = vld [vmem:[%s15025_s24 + $0xae8] sm:$0xf0]  ;;  %v10891_v26 = vld [vmem:[%s15025_s24 + $0xc18] sm:$0xf] }
 0x32b   : > { %6852 = vmatpush.bf16.msrb.mxu2 %v10392_v61  ;;  %v13505_v61 = vld [vmem:[%s15025_s24 + $0x520] sm:$0xf0]  ;;  %v10732_v0 = vor.u32 %v13690_v59, %v10731_v57  ;;  %v11151_v59 = vld [vmem:[%s15025_s24 + $0xe20] sm:$0xf] }
 0x32c   : > { %6865 = vmatpush.bf16.msrb.mxu3 %v10552_v3  ;;  %v6600_v3 = vpop.f32.mrf.mxu2 }
 0x32d   : > { %6827 = vmatpush.bf16.msrb.mxu0 %v10052_v17  ;;  %v13700_v17 = vld [vmem:[%s15025_s24 + $0xb38] sm:$0xf0]  ;;  %v10711_v3 = vld [vmem:[%s15025_s24 + $0xab0] sm:$0xf] }
 0x32e   : > { %6840 = vmatpush.bf16.msrb.mxu1 %v10212_v2  ;;  %v10931_v2 = vld [vmem:[%s15025_s24 + $0xc68] sm:$0xf]  ;;  %v10772_v42 = vor.u32 %v13700_v17, %v10771_v11  ;;  %v11191_v11 = vld [vmem:[%s15025_s24 + $0xe70] sm:$0xf]  ;;  %v13805_v17 = vld [vmem:[%s15025_s24 + $0xe80] sm:$0xf0] }
 0x32f   : > { %6853 = vmatpush.bf16.msrb.mxu2 %v10372_v18  ;;  %v9992_v18 = vor.u32 %v13505_v61, %v9991_v13  ;;  %v10932_v43 = vor.u32 %v13740_v15, %v10931_v2  ;;  %v13730_v13 = vld [vmem:[%s15025_s24 + $0xc28] sm:$0xf0]  ;;  %v11051_v61 = vld [vmem:[%s15025_s24 + $0xd58] sm:$0xf] }
 0x330   : > { %6866 = vmatpush.bf16.msrb.mxu3 %v10532_v31  ;;  %v10312_v31 = vor.u32 %v13585_v5, %v10311_v1  ;;  %v10871_v5 = vld [vmem:[%s15025_s24 + $0xbf0] sm:$0xf] }
 0x331   : > { %6828 = vmatpush.bf16.msrb.mxu0 %v10032_v47  ;;  %v13695_v47 = vld [vmem:[%s15025_s24 + $0xb10] sm:$0xf0] }
 0x332   : > { %6841 = vmatpush.bf16.msrb.mxu1 %v10192_v50  ;;  %v11252_v50 = vor.u32 %v13820_v36, %v11251_v34  ;;  %v11192_v34 = vor.u32 %v13805_v17, %v11191_v11  ;;  %v13665_v11 = vld [vmem:[%s15025_s24 + $0xa20] sm:$0xf0] }
 0x333   : > { %6854 = vmatpush.bf16.msrb.mxu2 %v10352_v51  ;;  %v13735_v51 = vld [vmem:[%s15025_s24 + $0xc50] sm:$0xf0] }
 0x334   : > { %6867 = vmatpush.bf16.msrb.mxu3 %v10512_v54  ;;  %v10752_v54 = vor.u32 %v13695_v47, %v10751_v45  ;;  %v10912_v16 = vor.u32 %v13735_v51, %v10911_v49  ;;  %v13675_v51 = vld [vmem:[%s15025_s24 + $0xa70] sm:$0xf0] }
 0x335   : > { %6829 = vmatpush.bf16.msrb.mxu0 %v10012_v55  ;;  %v11232_v55 = vor.u32 %v13815_v10, %v11231_v46  ;;  %v13715_v10 = vld [vmem:[%s15025_s24 + $0xbb0] sm:$0xf0] }
 0x336   : > { %6842 = vmatpush.bf16.msrb.mxu1 %v10172_v58  ;;  %v13770_v58 = vld [vmem:[%s15025_s24 + $0xd68] sm:$0xf0] }
 0x337   : > { %6855 = vmatpush.bf16.msrb.mxu2 %v10332_v60  ;;  %v11211_v60 = vld [vmem:[%s15025_s24 + $0xe98] sm:$0xf]  ;;  %v11052_v1 = vor.u32 %v13770_v58, %v11051_v61 }
 0x338   : > { %6868 = vmatpush.bf16.msrb.mxu3 %v10492_v4  ;;  %v13685_v4 = vld [vmem:[%s15025_s24 + $0xac0] sm:$0xf0]  ;;  %v11212_v6 = vor.u32 %v13810_v62, %v11211_v60  ;;  %v10832_v60 = vor.u32 %v13715_v10, %v10831_v9  ;;  %v13980_v9 = vld [vmem:[%s15025_s24 + $0x13f8] sm:$0xf0] }
 0x339   : > { %6830 = vmatpush.bf16.msrb.mxu0 %v9992_v18  ;;  %v6624_v8 = vpop.f32.mrf.mxu0  ;;  %v10712_v2 = vor.u32 %v13685_v4, %v10711_v3  ;;  %v13710_v4 = vld [vmem:[%s15025_s24 + $0xb88] sm:$0xf0] }
 0x33a   : > { %6843 = vmatpush.bf16.msrb.mxu1 %v10152_v29  ;;  %v6637_v18 = vpop.f32.mrf.mxu1  ;;  %v13680_v29 = vld [vmem:[%s15025_s24 + $0xa98] sm:$0xf0] }
 0x33b   : > { %6856 = vmatpush.bf16.msrb.mxu2 %v10312_v31  ;;  %v10851_v31 = vld [vmem:[%s15025_s24 + $0xbc8] sm:$0xf]  ;;  %v10692_v45 = vor.u32 %v13680_v29, %v10691_v63  ;;  %v13745_v63 = vld [vmem:[%s15025_s24 + $0xca0] sm:$0xf0]  ;;  %v11111_v29 = vld [vmem:[%s15025_s24 + $0xdd0] sm:$0xf] }
 0x33c   : > { %6869 = vmatpush.bf16.msrb.mxu3 %v10472_v40  ;;  %6831 = vmatmul.bf16.vlgmr.msrb.gmra.mxu0 %v15211_v38  ;;  %v13725_v38 = vld [vmem:[%s15025_s24 + $0xc00] sm:$0xf0]  ;;  %v13720_v40 = vld [vmem:[%s15025_s24 + $0xbd8] sm:$0xf0] }
 0x33d   : > { %6875 = vmatpush.bf16.msra.mxu0 %v10772_v42  ;;  %6844 = vmatmul.bf16.vlgmr.msrb.gmra.mxu1 %v15215_v41  ;;  %v6625_v41 = vadd.f32 %v6624_v8, %v16618_v48  ;;  %v10872_v15 = vor.u32 %v13725_v38, %v10871_v5  ;;  %v11011_v42 = vld [vmem:[%s15025_s24 + $0xd08] sm:$0xf]  ;;  %v13760_v48 = vld [vmem:[%s15025_s24 + $0xd18] sm:$0xf0]  ;;  %v10852_v47 = vor.u32 %v13720_v40, %v10851_v31  ;;  %v10971_v5 = vld [vmem:[%s15025_s24 + $0xcb8] sm:$0xf] }
 0x33e   : > { %6888 = vmatpush.bf16.msra.mxu1 %v10932_v43  ;;  %6857 = vmatmul.bf16.vlgmr.msrb.gmra.mxu2 %v15207_v35  ;;  %v10892_v35 = vor.u32 %v13730_v13, %v10891_v26  ;;  %v11171_v43 = vld [vmem:[%s15025_s24 + $0xe48] sm:$0xf]  ;;  %v11012_v49 = vor.u32 %v13760_v48, %v11011_v42  ;;  %v13795_v26 = vld [vmem:[%s15025_s24 + $0xe30] sm:$0xf0]  ;;  %v11131_v38 = vld [vmem:[%s15025_s24 + $0xdf8] sm:$0xf] }
 0x33f   : > { %6901 = vmatpush.bf16.msra.mxu2 %v11092_v44  ;;  %6870 = vmatmul.bf16.vlgmr.msrb.gmra.mxu3 %v15213_v39  ;;  %v11031_v39 = vld [vmem:[%s15025_s24 + $0xd30] sm:$0xf]  ;;  %v6638_v36 = vadd.f32 %v6637_v18, %v6625_v41  ;;  %v13800_v44 = vld [vmem:[%s15025_s24 + $0xe58] sm:$0xf0]  ;;  %v11152_v3 = vor.u32 %v13795_v26, %v11151_v59  ;;  %v13705_v18 = vld [vmem:[%s15025_s24 + $0xb60] sm:$0xf0] }
 0x340   : > { %6914 = vmatpush.bf16.msra.mxu3 %v11252_v50  ;;  %v11032_v22 = vor.u32 %v13765_v7, %v11031_v39  ;;  %v10671_v50 = vld [vmem:[%s15025_s24 + $0xa60] sm:$0xf]  ;;  %v11172_v52 = vor.u32 %v13800_v44, %v11171_v43  ;;  %v13790_v39 = vld [vmem:[%s15025_s24 + $0xe08] sm:$0xf0]  ;;  %v10631_v8 = vld [vmem:[%s15025_s24 + $0xa10] sm:$0xf] }
 0x341   : > { %6876 = vmatpush.bf16.msra.mxu0 %v10752_v54  ;;  %v6650_v46 = vpop.f32.mrf.mxu2  ;;  %v10991_v54 = vld [vmem:[%s15025_s24 + $0xce0] sm:$0xf]  ;;  %v10672_v13 = vor.u32 %v13675_v51, %v10671_v50  ;;  %v13785_v31 = vld [vmem:[%s15025_s24 + $0xde0] sm:$0xf0]  ;;  %v13860_v40 = vld [vmem:[%s15025_s24 + $0x1038] sm:$0xf0]  ;;  %v10632_v43 = vor.u32 %v13665_v11, %v10631_v8 }
 0x342   : > { %6889 = vmatpush.bf16.msra.mxu1 %v10912_v16  ;;  %v13755_v16 = vld [vmem:[%s15025_s24 + $0xcf0] sm:$0xf0]  ;;  %v6663_v57 = vpop.f32.mrf.mxu3  ;;  %v6639_v61 = vpop.f32.mrf.mxu1  ;;  %v11571_v42 = vld [vmem:[%s15025_s24 + $0x1168] sm:$0xf]  ;;  %v13900_v44 = vld [vmem:[%s15025_s24 + $0x1178] sm:$0xf0] }
 0x343   : > { %6902 = vmatpush.bf16.msra.mxu2 %v11072_v56  ;;  %v6651_v56 = vadd.f32 %v6650_v46, %v6638_v36  ;;  %v10992_v62 = vor.u32 %v13755_v16, %v10991_v54  ;;  %v11411_v36 = vld [vmem:[%s15025_s24 + $0x1028] sm:$0xf]  ;;  %v11572_v10 = vor.u32 %v13900_v44, %v11571_v42  ;;  %v11391_v16 = vld [vmem:[%s15025_s24 + $0x1000] sm:$0xf]  ;;  %v13895_v26 = vld [vmem:[%s15025_s24 + $0x1150] sm:$0xf0] }
 0x344   : > { %6915 = vmatpush.bf16.msra.mxu3 %v11232_v55  ;;  %v6626_v55 = vpop.f32.mrf.mxu0  ;;  %v11891_v51 = vld [vmem:[%s15025_s24 + $0x13e8] sm:$0xf]  ;;  %v11412_v46 = vor.u32 %v13860_v40, %v11411_v36  ;;  %v11871_v61 = vld [vmem:[%s15025_s24 + $0x13c0] sm:$0xf]  ;;  %v13970_v8 = vld [vmem:[%s15025_s24 + $0x13a8] sm:$0xf0] }
 0x345   : > { %6877 = vmatpush.bf16.msra.mxu0 %v10732_v0  ;;  %v16689_v58 = vadd.f32 %v6663_v57, %v6651_v56  ;;  %v10651_v0 = vld [vmem:[%s15025_s24 + $0xa38] sm:$0xf]  ;;  %v13855_v56 = vld [vmem:[%s15025_s24 + $0x1010] sm:$0xf0]  ;;  %v11551_v57 = vld [vmem:[%s15025_s24 + $0x1140] sm:$0xf]  ;;  %v11892_v59 = vor.u32 %v13980_v9, %v11891_v51 }
 0x346   : > { %6890 = vmatpush.bf16.msra.mxu1 %v10892_v35  ;;  %v13670_v35 = vld [vmem:[%s15025_s24 + $0xa48] sm:$0xf0]  ;;  %v11711_v55 = vld [vmem:[%s15025_s24 + $0x1280] sm:$0xf]  ;;  %v11491_v44 = vld [vmem:[%s15025_s24 + $0x10c8] sm:$0xf] }
 0x347   : > { %6903 = vmatpush.bf16.msra.mxu2 %v11052_v1  ;;  %v10811_v1 = vld [vmem:[%s15025_s24 + $0xb78] sm:$0xf]  ;;  %v10652_v7 = vor.u32 %v13670_v35, %v10651_v0  ;;  %v11552_v0 = vor.u32 %v13895_v26, %v11551_v57  ;;  %v11811_v51 = vld [vmem:[%s15025_s24 + $0x1348] sm:$0xf]  ;;  %v13960_v9 = vld [vmem:[%s15025_s24 + $0x1358] sm:$0xf0] }
 0x348   : > { %6916 = vmatpush.bf16.msra.mxu3 %v11212_v6  ;;  %v13750_v6 = vld [vmem:[%s15025_s24 + $0xcc8] sm:$0xf0]  ;;  %v10812_v17 = vor.u32 %v13710_v4, %v10811_v1  ;;  %v11371_v1 = vld [vmem:[%s15025_s24 + $0xfd8] sm:$0xf]  ;;  %v11812_v57 = vor.u32 %v13960_v9, %v11811_v51  ;;  %v13875_v26 = vld [vmem:[%s15025_s24 + $0x10b0] sm:$0xf0] }
 0x349   : > { %6878 = vmatpush.bf16.msra.mxu0 %v10712_v2  ;;  %v10972_v41 = vor.u32 %v13750_v6, %v10971_v5  ;;  %v10791_v2 = vld [vmem:[%s15025_s24 + $0xb50] sm:$0xf]  ;;  %v11531_v4 = vld [vmem:[%s15025_s24 + $0x1118] sm:$0xf]  ;;  %v13890_v6 = vld [vmem:[%s15025_s24 + $0x1128] sm:$0xf0] }
 0x34a   : > { %6891 = vmatpush.bf16.msra.mxu1 %v10872_v15  ;;  %v10951_v15 = vld [vmem:[%s15025_s24 + $0xc90] sm:$0xf]  ;;  %v6665_v48 = vpop.f32.mrf.mxu3  ;;  %v11532_v11 = vor.u32 %v13890_v6, %v11531_v4  ;;  %v13830_v6 = vld [vmem:[%s15025_s24 + $0xf48] sm:$0xf0]  ;;  %v12531_v9 = vld [vmem:[%s15025_s24 + $0x18e8] sm:$0xf] }
 0x34b   : > { %6904 = vmatpush.bf16.msra.mxu2 %v11032_v22  ;;  %v11132_v22 = vor.u32 %v13790_v39, %v11131_v38  ;;  %v10952_v50 = vor.u32 %v13745_v63, %v10951_v15  ;;  %v11691_v38 = vld [vmem:[%s15025_s24 + $0x1258] sm:$0xf]  ;;  %v13930_v39 = vld [vmem:[%s15025_s24 + $0x1268] sm:$0xf0]  ;;  %v11671_v15 = vld [vmem:[%s15025_s24 + $0x1230] sm:$0xf] }
 0x34c   : > { %6917 = vmatpush.bf16.msra.mxu3 %v11192_v34  ;;  %v6652_v34 = vpop.f32.mrf.mxu2  ;;  %v11831_v63 = vld [vmem:[%s15025_s24 + $0x1370] sm:$0xf]  ;;  %v11331_v48 = vld [vmem:[%s15025_s24 + $0xf88] sm:$0xf] }
 0x34d   : > { %6879 = vmatpush.bf16.msra.mxu0 %v10692_v45  ;;  %v11731_v45 = vld [vmem:[%s15025_s24 + $0x12a8] sm:$0xf] }
 0x34e   : > { %6892 = vmatpush.bf16.msra.mxu1 %v10852_v47  ;;  %v13940_v47 = vld [vmem:[%s15025_s24 + $0x12b8] sm:$0xf0] }
 0x34f   : > { %6905 = vmatpush.bf16.msra.mxu2 %v11012_v49  ;;  %v10792_v49 = vor.u32 %v13705_v18, %v10791_v2  ;;  %v11732_v54 = vor.u32 %v13940_v47, %v11731_v45  ;;  %v13845_v2 = vld [vmem:[%s15025_s24 + $0xfc0] sm:$0xf0] }
 0x350   : > { %6918 = vmatpush.bf16.msra.mxu3 %v11172_v52  ;;  %v11112_v52 = vor.u32 %v13785_v31, %v11111_v29  ;;  %v13885_v18 = vld [vmem:[%s15025_s24 + $0x1100] sm:$0xf0] }
 0x351   : > { %6880 = vmatpush.bf16.msra.mxu0 %v10672_v13  ;;  %v13935_v13 = vld [vmem:[%s15025_s24 + $0x1290] sm:$0xf0]  ;;  %v13965_v29 = vld [vmem:[%s15025_s24 + $0x1380] sm:$0xf0] }
 0x352   : > { %6893 = vmatpush.bf16.msra.mxu1 %v10832_v60  ;;  %v13975_v60 = vld [vmem:[%s15025_s24 + $0x13d0] sm:$0xf0]  ;;  %v11712_v35 = vor.u32 %v13935_v13, %v11711_v55  ;;  %v11832_v45 = vor.u32 %v13965_v29, %v11831_v63  ;;  %v11631_v55 = vld [vmem:[%s15025_s24 + $0x11e0] sm:$0xf]  ;;  %v13905_v29 = vld [vmem:[%s15025_s24 + $0x11a0] sm:$0xf0] }
 0x353   : > { %6906 = vmatpush.bf16.msra.mxu2 %v10992_v62  ;;  %v11392_v62 = vor.u32 %v13855_v56, %v11391_v16  ;;  %v11872_v5 = vor.u32 %v13975_v60, %v11871_v61  ;;  %v13835_v16 = vld [vmem:[%s15025_s24 + $0xf70] sm:$0xf0]  ;;  %v11471_v56 = vld [vmem:[%s15025_s24 + $0x10a0] sm:$0xf] }
 0x354   : > { %6919 = vmatpush.bf16.msra.mxu3 %v11152_v3  ;;  %v13850_v3 = vld [vmem:[%s15025_s24 + $0xfe8] sm:$0xf0]  ;;  %v13915_v13 = vld [vmem:[%s15025_s24 + $0x11f0] sm:$0xf0]  ;;  %v11791_v60 = vld [vmem:[%s15025_s24 + $0x1320] sm:$0xf] }
 0x355   : > { %6881 = vmatpush.bf16.msra.mxu0 %v10652_v7  ;;  %v11851_v7 = vld [vmem:[%s15025_s24 + $0x1398] sm:$0xf]  ;;  %v11632_v4 = vor.u32 %v13915_v13, %v11631_v55  ;;  %v14055_v13 = vld [vmem:[%s15025_s24 + $0x1650] sm:$0xf0] }
 0x356   : > { %6894 = vmatpush.bf16.msra.mxu1 %v10812_v17  ;;  %v11692_v17 = vor.u32 %v13930_v39, %v11691_v38  ;;  %v11451_v38 = vld [vmem:[%s15025_s24 + $0x1078] sm:$0xf] }
 0x357   : > { %6907 = vmatpush.bf16.msra.mxu2 %v10972_v41  ;;  %v11351_v41 = vld [vmem:[%s15025_s24 + $0xfb0] sm:$0xf] }
 0x358   : > { %6920 = vmatpush.bf16.msra.mxu3 %v11132_v22  ;;  %v13925_v22 = vld [vmem:[%s15025_s24 + $0x1240] sm:$0xf0]  ;;  %v11352_v34 = vor.u32 %v13845_v2, %v11351_v41  ;;  %v11271_v2 = vld [vmem:[%s15025_s24 + $0xf10] sm:$0xf] }
 0x359   : > { %6882 = vmatpush.bf16.msra.mxu0 %v10632_v43  ;;  %v11672_v42 = vor.u32 %v13925_v22, %v11671_v15  ;;  %v13840_v43 = vld [vmem:[%s15025_s24 + $0xf98] sm:$0xf0]  ;;  %v11431_v15 = vld [vmem:[%s15025_s24 + $0x1050] sm:$0xf]  ;;  %v13865_v22 = vld [vmem:[%s15025_s24 + $0x1060] sm:$0xf0] }
 0x35a   : > { %6895 = vmatpush.bf16.msra.mxu1 %v10792_v49  ;;  %v6689_v36 = vpop.f32.mrf.mxu1  ;;  %v13880_v49 = vld [vmem:[%s15025_s24 + $0x10d8] sm:$0xf0] }
 0x35b   : > { %6908 = vmatpush.bf16.msra.mxu2 %v10952_v50  ;;  %v13920_v50 = vld [vmem:[%s15025_s24 + $0x1218] sm:$0xf0] }
 0x35c   : > { %6921 = vmatpush.bf16.msra.mxu3 %v11112_v52  ;;  %6883 = vmatmul.bf16.vlgmr.msra.gmra.mxu0 %v15280_v19  ;;  %v11372_v19 = vor.u32 %v13850_v3, %v11371_v1  ;;  %v11332_v52 = vor.u32 %v13840_v43, %v11331_v48  ;;  %v11472_v3 = vor.u32 %v13875_v26, %v11471_v56  ;;  %v12211_v48 = vld [vmem:[%s15025_s24 + $0x1668] sm:$0xf]  ;;  %v12031_v56 = vld [vmem:[%s15025_s24 + $0x1500] sm:$0xf] }
 0x35d   : > { %6927 = vmatpush.bf16.msrb.mxu0 %v11412_v46  ;;  %6896 = vmatmul.bf16.vlgmr.msra.gmra.mxu1 %v15287_v24  ;;  %v11852_v24 = vor.u32 %v13970_v8, %v11851_v7  ;;  %v11492_v46 = vor.u32 %v13880_v49, %v11491_v44  ;;  %v13870_v7 = vld [vmem:[%s15025_s24 + $0x1088] sm:$0xf0]  ;;  %v11611_v8 = vld [vmem:[%s15025_s24 + $0x11b8] sm:$0xf]  ;;  %v12371_v49 = vld [vmem:[%s15025_s24 + $0x17a8] sm:$0xf] }
 0x35e   : > { %6940 = vmatpush.bf16.msrb.mxu1 %v11572_v10  ;;  %6909 = vmatmul.bf16.vlgmr.msra.gmra.mxu2 %v15285_v23  ;;  %v11511_v23 = vld [vmem:[%s15025_s24 + $0x10f0] sm:$0xf]  ;;  %v12191_v26 = vld [vmem:[%s15025_s24 + $0x1640] sm:$0xf] }
 0x35f   : > { %6953 = vmatpush.bf16.msrb.mxu2 %v11732_v54  ;;  %6922 = vmatmul.bf16.vlgmr.msra.gmra.mxu3 %v15291_v28  ;;  %v6676_v28 = vpop.f32.mrf.mxu0  ;;  %v11512_v40 = vor.u32 %v13885_v18, %v11511_v23  ;;  %v11311_v54 = vld [vmem:[%s15025_s24 + $0xf60] sm:$0xf]  ;;  %v13825_v23 = vld [vmem:[%s15025_s24 + $0xf20] sm:$0xf0] }
 0x360   : > { %6966 = vmatpush.bf16.msrb.mxu3 %v11892_v59  ;;  %v6677_v31 = vadd.f32 %v6676_v28, %v16689_v58  ;;  %v11651_v58 = vld [vmem:[%s15025_s24 + $0x1208] sm:$0xf]  ;;  %v11591_v28 = vld [vmem:[%s15025_s24 + $0x1190] sm:$0xf]  ;;  %v11272_v44 = vor.u32 %v13825_v23, %v11271_v2 }
 0x361   : > { %6928 = vmatpush.bf16.msrb.mxu0 %v11392_v62  ;;  %v11652_v10 = vor.u32 %v13920_v50, %v11651_v58  ;;  %v16757_v59 = vpop.f32.mrf.mxu2  ;;  %v13955_v62 = vld [vmem:[%s15025_s24 + $0x1330] sm:$0xf0]  ;;  %v14100_v58 = vld [vmem:[%s15025_s24 + $0x17b8] sm:$0xf0]  ;;  %v11432_v50 = vor.u32 %v13865_v22, %v11431_v15  ;;  %v11592_v51 = vor.u32 %v13905_v29, %v11591_v28  ;;  %v11991_v23 = vld [vmem:[%s15025_s24 + $0x14b0] sm:$0xf] }
 0x362   : > { %6941 = vmatpush.bf16.msrb.mxu1 %v11552_v0  ;;  %v16747_v47 = vadd.f32 %v6689_v36, %v6677_v31  ;;  %v16762_v61 = vpop.f32.mrf.mxu3  ;;  %v6691_v1 = vpop.f32.mrf.mxu1  ;;  %v11792_v39 = vor.u32 %v13955_v62, %v11791_v60  ;;  %v11751_v31 = vld [vmem:[%s15025_s24 + $0x12d0] sm:$0xf]  ;;  %v12351_v60 = vld [vmem:[%s15025_s24 + $0x1780] sm:$0xf]  ;;  %v14095_v62 = vld [vmem:[%s15025_s24 + $0x1790] sm:$0xf0] }
 0x363   : > { %6954 = vmatpush.bf16.msrb.mxu2 %v11712_v35  ;;  %v11312_v35 = vor.u32 %v13835_v16, %v11311_v54  ;;  %v12372_v16 = vor.u32 %v14100_v58, %v12371_v49  ;;  %v12311_v15 = vld [vmem:[%s15025_s24 + $0x1730] sm:$0xf]  ;;  %v14085_v22 = vld [vmem:[%s15025_s24 + $0x1740] sm:$0xf0]  ;;  %v14080_v49 = vld [vmem:[%s15025_s24 + $0x1718] sm:$0xf0] }
 0x364   : > { %6967 = vmatpush.bf16.msrb.mxu3 %v11872_v5  ;;  %v11291_v5 = vld [vmem:[%s15025_s24 + $0xf38] sm:$0xf]  ;;  %v12471_v28 = vld [vmem:[%s15025_s24 + $0x1870] sm:$0xf]  ;;  %v12451_v58 = vld [vmem:[%s15025_s24 + $0x1848] sm:$0xf] }
 0x365   : > { %6929 = vmatpush.bf16.msrb.mxu0 %v11372_v19  ;;  %v13910_v19 = vld [vmem:[%s15025_s24 + $0x11c8] sm:$0xf0]  ;;  %v11292_v41 = vor.u32 %v13830_v6, %v11291_v5  ;;  %v12011_v5 = vld [vmem:[%s15025_s24 + $0x14d8] sm:$0xf] }
 0x366   : > { %6942 = vmatpush.bf16.msrb.mxu1 %v11532_v11  ;;  %v11771_v11 = vld [vmem:[%s15025_s24 + $0x12f8] sm:$0xf]  ;;  %v11612_v18 = vor.u32 %v13910_v19, %v11611_v8  ;;  %v14010_v6 = vld [vmem:[%s15025_s24 + $0x14e8] sm:$0xf0] }
 0x367   : > { %6955 = vmatpush.bf16.msrb.mxu2 %v11692_v17  ;;  %v6678_v0 = vpop.f32.mrf.mxu0  ;;  %v13950_v17 = vld [vmem:[%s15025_s24 + $0x1308] sm:$0xf0]  ;;  %v12331_v8 = vld [vmem:[%s15025_s24 + $0x1758] sm:$0xf] }
 0x368   : > { %6968 = vmatpush.bf16.msrb.mxu3 %v11852_v24  ;;  %v11452_v24 = vor.u32 %v13870_v7, %v11451_v38  ;;  %v11772_v63 = vor.u32 %v13950_v17, %v11771_v11  ;;  %v12511_v0 = vld [vmem:[%s15025_s24 + $0x18c0] sm:$0xf]  ;;  %v12171_v38 = vld [vmem:[%s15025_s24 + $0x1618] sm:$0xf]  ;;  %v14050_v7 = vld [vmem:[%s15025_s24 + $0x1628] sm:$0xf0] }
 0x369   : > { %6930 = vmatpush.bf16.msrb.mxu0 %v11352_v34  ;;  %v13945_v34 = vld [vmem:[%s15025_s24 + $0x12e0] sm:$0xf0]  ;;  %v6704_v36 = vpop.f32.mrf.mxu2  ;;  %v14090_v19 = vld [vmem:[%s15025_s24 + $0x1768] sm:$0xf0]  ;;  %v12491_v11 = vld [vmem:[%s15025_s24 + $0x1898] sm:$0xf] }
 0x36a   : > { %6943 = vmatpush.bf16.msrb.mxu1 %v11512_v40  ;;  %v12051_v40 = vld [vmem:[%s15025_s24 + $0x1528] sm:$0xf]  ;;  %v6717_v43 = vpop.f32.mrf.mxu3  ;;  %v14130_v17 = vld [vmem:[%s15025_s24 + $0x18a8] sm:$0xf0]  ;;  %v12332_v2 = vor.u32 %v14090_v19, %v12331_v8  ;;  %v12312_v36 = vor.u32 %v14085_v22, %v12311_v15  ;;  %v12251_v8 = vld [vmem:[%s15025_s24 + $0x16b8] sm:$0xf] }
 0x36b   : > { %6956 = vmatpush.bf16.msrb.mxu2 %v11672_v42  ;;  %v14020_v42 = vld [vmem:[%s15025_s24 + $0x1538] sm:$0xf0]  ;;  %v14070_v19 = vld [vmem:[%s15025_s24 + $0x16c8] sm:$0xf0]  ;;  %v14065_v22 = vld [vmem:[%s15025_s24 + $0x16a0] sm:$0xf0] }
 0x36c   : > { %6969 = vmatpush.bf16.msrb.mxu3 %v11832_v45  ;;  %v14060_v45 = vld [vmem:[%s15025_s24 + $0x1678] sm:$0xf0] }
 0x36d   : > { %6931 = vmatpush.bf16.msrb.mxu0 %v11332_v52  ;;  %v14140_v52 = vld [vmem:[%s15025_s24 + $0x18f8] sm:$0xf0]  ;;  %v12212_v54 = vor.u32 %v14060_v45, %v12211_v48  ;;  %v12131_v48 = vld [vmem:[%s15025_s24 + $0x15c8] sm:$0xf] }
 0x36e   : > { %6944 = vmatpush.bf16.msrb.mxu1 %v11492_v46  ;;  %v11752_v46 = vor.u32 %v13945_v34, %v11751_v31  ;;  %v12532_v55 = vor.u32 %v14140_v52, %v12531_v9  ;;  %v12291_v45 = vld [vmem:[%s15025_s24 + $0x1708] sm:$0xf] }
 0x36f   : > { %6957 = vmatpush.bf16.msrb.mxu2 %v11652_v10  ;;  %v12052_v10 = vor.u32 %v14020_v42, %v12051_v40  ;;  %v11971_v40 = vld [vmem:[%s15025_s24 + $0x1488] sm:$0xf]  ;;  %v14000_v42 = vld [vmem:[%s15025_s24 + $0x1498] sm:$0xf0]  ;;  %v12292_v52 = vor.u32 %v14080_v49, %v12291_v45  ;;  %v14258_v45 = vld [vmem:[%s15033_s0 + $0x3a8] sm:$0xf0] }
 0x370   : > { %6970 = vmatpush.bf16.msrb.mxu3 %v11812_v57  ;;  %v14015_v57 = vld [vmem:[%s15025_s24 + $0x1510] sm:$0xf0] }
 0x371   : > { %6932 = vmatpush.bf16.msrb.mxu0 %v11312_v35  ;;  %v14135_v35 = vld [vmem:[%s15025_s24 + $0x18d0] sm:$0xf0]  ;;  %v12032_v1 = vor.u32 %v14015_v57, %v12031_v56 }
 0x372   : > { %6945 = vmatpush.bf16.msrb.mxu1 %v11472_v3  ;;  %v12192_v3 = vor.u32 %v14055_v13, %v12191_v26  ;;  %v14035_v57 = vld [vmem:[%s15025_s24 + $0x15b0] sm:$0xf0]  ;;  %v12271_v26 = vld [vmem:[%s15025_s24 + $0x16e0] sm:$0xf] }
 0x373   : > { %6958 = vmatpush.bf16.msrb.mxu2 %v11632_v4  ;;  %v12352_v4 = vor.u32 %v14095_v62, %v12351_v60  ;;  %v12431_v60 = vld [vmem:[%s15025_s24 + $0x1820] sm:$0xf]  ;;  %v14115_v62 = vld [vmem:[%s15025_s24 + $0x1830] sm:$0xf0] }
 0x374   : > { %6971 = vmatpush.bf16.msrb.mxu3 %v11792_v39  ;;  %v12512_v39 = vor.u32 %v14135_v35, %v12511_v0 }
 0x375   : > { %6933 = vmatpush.bf16.msrb.mxu0 %v11292_v41  ;;  %v12172_v41 = vor.u32 %v14050_v7, %v12171_v38  ;;  %v12091_v38 = vld [vmem:[%s15025_s24 + $0x1578] sm:$0xf]  ;;  %v14030_v7 = vld [vmem:[%s15025_s24 + $0x1588] sm:$0xf0] }
 0x376   : > { %6946 = vmatpush.bf16.msrb.mxu1 %v11452_v24  ;;  %v14005_v24 = vld [vmem:[%s15025_s24 + $0x14c0] sm:$0xf0] }
 0x377   : > { %6959 = vmatpush.bf16.msrb.mxu2 %v11612_v18  ;;  %v14045_v18 = vld [vmem:[%s15025_s24 + $0x1600] sm:$0xf0]  ;;  %v11992_v29 = vor.u32 %v14005_v24, %v11991_v23  ;;  %v12092_v23 = vor.u32 %v14030_v7, %v12091_v38  ;;  %v12252_v24 = vor.u32 %v14070_v19, %v12251_v8  ;;  %v12795_v38 = vld [vmem:[%s15033_s0 + $0x208] sm:$0xf] }
 0x378   : > { %6972 = vmatpush.bf16.msrb.mxu3 %v11772_v63  ;;  %v14125_v63 = vld [vmem:[%s15025_s24 + $0x1880] sm:$0xf0]  ;;  %v12955_v8 = vld [vmem:[%s15033_s0 + $0x348] sm:$0xf] }
 0x379   : > { %6934 = vmatpush.bf16.msrb.mxu0 %v11272_v44  ;;  %v12472_v43 = vor.u32 %v14125_v63, %v12471_v28  ;;  %v14040_v44 = vld [vmem:[%s15025_s24 + $0x15d8] sm:$0xf0]  ;;  %v12391_v28 = vld [vmem:[%s15025_s24 + $0x17d0] sm:$0xf]  ;;  %v14105_v63 = vld [vmem:[%s15025_s24 + $0x17e0] sm:$0xf0] }
 0x37a   : > { %6947 = vmatpush.bf16.msrb.mxu1 %v11432_v50  ;;  %v16820_v31 = vpop.f32.mrf.mxu1  ;;  %v14120_v50 = vld [vmem:[%s15025_s24 + $0x1858] sm:$0xf0]  ;;  %v12132_v9 = vor.u32 %v14040_v44, %v12131_v48  ;;  %v12995_v44 = vld [vmem:[%s15033_s0 + $0x398] sm:$0xf]  ;;  %v14208_v7 = vld [vmem:[%s15033_s0 + $0x218] sm:$0xf0] }
 0x37b   : > { %6960 = vmatpush.bf16.msrb.mxu2 %v11592_v51  ;;  %v11972_v51 = vor.u32 %v14000_v42, %v11971_v40  ;;  %v12835_v40 = vld [vmem:[%s15033_s0 + $0x258] sm:$0xf]  ;;  %v14248_v19 = vld [vmem:[%s15033_s0 + $0x358] sm:$0xf0] }
 0x37c   : > { %6973 = vmatpush.bf16.msrb.mxu3 %v11752_v46  ;;  %6935 = vmatmul.bf16.vlgmr.msrb.gmra.mxu0 %v15356_v14  ;;  %v12012_v14 = vor.u32 %v14010_v6, %v12011_v5  ;;  %v11951_v46 = vld [vmem:[%s15025_s24 + $0x1460] sm:$0xf]  ;;  %v11931_v5 = vld [vmem:[%s15025_s24 + $0x1438] sm:$0xf]  ;;  %v13990_v6 = vld [vmem:[%s15025_s24 + $0x1448] sm:$0xf0] }
 0x37d   : > { %6979 = vmatpush.bf16.msra.mxu0 %v12052_v10  ;;  %6948 = vmatmul.bf16.vlgmr.msrb.gmra.mxu1 %v15363_v21  ;;  %v12492_v21 = vor.u32 %v14130_v17, %v12491_v11  ;;  %v13995_v10 = vld [vmem:[%s15025_s24 + $0x1470] sm:$0xf0]  ;;  %v12411_v11 = vld [vmem:[%s15025_s24 + $0x17f8] sm:$0xf]  ;;  %v14110_v17 = vld [vmem:[%s15025_s24 + $0x1808] sm:$0xf0] }
 0x37e   : > { %6992 = vmatpush.bf16.msra.mxu1 %v12212_v54  ;;  %6961 = vmatmul.bf16.vlgmr.msrb.gmra.mxu2 %v15361_v20  ;;  %v12151_v20 = vld [vmem:[%s15025_s24 + $0x15f0] sm:$0xf]  ;;  %v12111_v54 = vld [vmem:[%s15025_s24 + $0x15a0] sm:$0xf]  ;;  %v11952_v35 = vor.u32 %v13995_v10, %v11951_v46  ;;  %v12412_v15 = vor.u32 %v14110_v17, %v12411_v11  ;;  %v12996_v10 = vor.u32 %v14258_v45, %v12995_v44  ;;  %v14288_v17 = vld [vmem:[%s15033_s0 + $0x498] sm:$0xf0] }
 0x37f   : > { %7005 = vmatpush.bf16.msra.mxu2 %v12372_v16  ;;  %6974 = vmatmul.bf16.vlgmr.msrb.gmra.mxu3 %v15367_v27  ;;  %v16816_v27 = vpop.f32.mrf.mxu0  ;;  %v12152_v34 = vor.u32 %v14045_v18, %v12151_v20  ;;  %v12452_v16 = vor.u32 %v14120_v50, %v12451_v58  ;;  %v12071_v20 = vld [vmem:[%s15025_s24 + $0x1550] sm:$0xf]  ;;  %v13155_v50 = vld [vmem:[%s15033_s0 + $0x4d8] sm:$0xf]  ;;  %v14198_v45 = vld [vmem:[%s15033_s0 + $0x1c8] sm:$0xf0] }
 0x380   : > { %7018 = vmatpush.bf16.msra.mxu3 %v12532_v55  ;;  %v14075_v55 = vld [vmem:[%s15025_s24 + $0x16f0] sm:$0xf0]  ;;  %v12231_v18 = vld [vmem:[%s15025_s24 + $0x1690] sm:$0xf] }
 0x381   : > { %6980 = vmatpush.bf16.msra.mxu0 %v12032_v1  ;;  %v16833_v56 = vpop.f32.mrf.mxu2  ;;  %v12232_v58 = vor.u32 %v14065_v22, %v12231_v18  ;;  %v13115_v11 = vld [vmem:[%s15033_s0 + $0x488] sm:$0xf]  ;;  %v12935_v18 = vld [vmem:[%s15033_s0 + $0x320] sm:$0xf] }
 0x382   : > { %6993 = vmatpush.bf16.msra.mxu1 %v12192_v3  ;;  %v16838_v13 = vpop.f32.mrf.mxu3  ;;  %v6743_v1 = vpop.f32.mrf.mxu1  ;;  %v12112_v3 = vor.u32 %v14035_v57, %v12111_v54  ;;  %v12655_v54 = vld [vmem:[%s15033_s0 + $0xf0] sm:$0xf]  ;;  %v13095_v22 = vld [vmem:[%s15033_s0 + $0x460] sm:$0xf] }
 0x383   : > { %7006 = vmatpush.bf16.msra.mxu2 %v12352_v4  ;;  %v12272_v4 = vor.u32 %v14075_v55, %v12271_v26  ;;  %v12815_v57 = vld [vmem:[%s15033_s0 + $0x230] sm:$0xf]  ;;  %v14213_v55 = vld [vmem:[%s15033_s0 + $0x240] sm:$0xf0] }
 0x384   : > { %7019 = vmatpush.bf16.msra.mxu3 %v12512_v39  ;;  %v12432_v39 = vor.u32 %v14115_v62, %v12431_v60  ;;  %v12975_v60 = vld [vmem:[%s15033_s0 + $0x370] sm:$0xf]  ;;  %v14253_v62 = vld [vmem:[%s15033_s0 + $0x380] sm:$0xf0] }
 0x385   : > { %6981 = vmatpush.bf16.msra.mxu0 %v12012_v14  ;;  %v11932_v14 = vor.u32 %v13990_v6, %v11931_v5  ;;  %v12635_v5 = vld [vmem:[%s15033_s0 + $0xc8] sm:$0xf]  ;;  %v14168_v6 = vld [vmem:[%s15033_s0 + $0xd8] sm:$0xf0] }
 0x386   : > { %6994 = vmatpush.bf16.msra.mxu1 %v12172_v41  ;;  %v11911_v41 = vld [vmem:[%s15025_s24 + $0x1410] sm:$0xf] }
 0x387   : > { %7007 = vmatpush.bf16.msra.mxu2 %v12332_v2  ;;  %v6730_v0 = vpop.f32.mrf.mxu0  ;;  %v13985_v2 = vld [vmem:[%s15025_s24 + $0x1420] sm:$0xf0] }
 0x388   : > { %7020 = vmatpush.bf16.msra.mxu3 %v12492_v21  ;;  %v14025_v21 = vld [vmem:[%s15025_s24 + $0x1560] sm:$0xf0]  ;;  %v11912_v48 = vor.u32 %v13985_v2, %v11911_v41  ;;  %v13135_v0 = vld [vmem:[%s15033_s0 + $0x4b0] sm:$0xf]  ;;  %v12796_v41 = vor.u32 %v14208_v7, %v12795_v38  ;;  %v12956_v2 = vor.u32 %v14248_v19, %v12955_v8  ;;  %v12555_v8 = vld [vmem:[%s15033_s0 + $0x28] sm:$0xf] }
 0x389   : > { %6982 = vmatpush.bf16.msra.mxu0 %v11992_v29  ;;  %v6756_v29 = vpop.f32.mrf.mxu2  ;;  %v12072_v49 = vor.u32 %v14025_v21, %v12071_v20  ;;  %v6703_v20 = vadd.f32 %v16757_v59, %v16747_v47  ;;  %v14203_v21 = vld [vmem:[%s15033_s0 + $0x1f0] sm:$0xf0]  ;;  %v14148_v19 = vld [vmem:[%s15033_s0 + $0x38] sm:$0xf0] }
 0x38a   : > { %6995 = vmatpush.bf16.msra.mxu1 %v12152_v34  ;;  %v12675_v34 = vld [vmem:[%s15033_s0 + $0x118] sm:$0xf]  ;;  %v6769_v42 = vpop.f32.mrf.mxu3 }
 0x38b   : > { %7008 = vmatpush.bf16.msra.mxu2 %v12312_v36  ;;  %v14178_v36 = vld [vmem:[%s15033_s0 + $0x128] sm:$0xf0] }
 0x38c   : > { %7021 = vmatpush.bf16.msra.mxu3 %v12472_v43  ;;  %v14218_v43 = vld [vmem:[%s15033_s0 + $0x268] sm:$0xf0] }
 0x38d   : > { %6983 = vmatpush.bf16.msra.mxu0 %v11972_v51  ;;  %v14298_v51 = vld [vmem:[%s15033_s0 + $0x4e8] sm:$0xf0]  ;;  %v12836_v46 = vor.u32 %v14218_v43, %v12835_v40  ;;  %v12755_v40 = vld [vmem:[%s15033_s0 + $0x1b8] sm:$0xf]  ;;  %v6716_v43 = vadd.f32 %v16762_v61, %v6703_v20  ;;  %v14143_v20 = vld [vmem:[%s15033_s0 + $0x10] sm:$0xf0] }
 0x38e   : > { %6996 = vmatpush.bf16.msra.mxu1 %v12132_v9  ;;  %v12392_v9 = vor.u32 %v14105_v63, %v12391_v28  ;;  %v13156_v26 = vor.u32 %v14298_v51, %v13155_v50  ;;  %v14283_v28 = vld [vmem:[%s15033_s0 + $0x470] sm:$0xf0]  ;;  %v13075_v50 = vld [vmem:[%s15033_s0 + $0x438] sm:$0xf]  ;;  %v14278_v51 = vld [vmem:[%s15033_s0 + $0x448] sm:$0xf0]  ;;  %v12756_v61 = vor.u32 %v14198_v45, %v12755_v40 }
 0x38f   : > { %7009 = vmatpush.bf16.msra.mxu2 %v12292_v52  ;;  %v12676_v52 = vor.u32 %v14178_v36, %v12675_v34  ;;  %v12595_v34 = vld [vmem:[%s15033_s0 + $0x78] sm:$0xf]  ;;  %v14158_v36 = vld [vmem:[%s15033_s0 + $0x88] sm:$0xf0]  ;;  %v13096_v44 = vor.u32 %v14283_v28, %v13095_v22  ;;  %v12677_v40 = vld [vmem:[%s15033_s0 + $0x12c] sm:$0xf0] }
 0x390   : > { %7022 = vmatpush.bf16.msra.mxu3 %v12452_v16  ;;  %v14173_v16 = vld [vmem:[%s15033_s0 + $0x100] sm:$0xf0]  ;;  %v12997_v45 = vld [vmem:[%s15033_s0 + $0x3ac] sm:$0xf0] }
 0x391   : > { %6984 = vmatpush.bf16.msra.mxu0 %v11952_v35  ;;  %v14293_v35 = vld [vmem:[%s15033_s0 + $0x4c0] sm:$0xf0]  ;;  %v12656_v1 = vor.u32 %v14173_v16, %v12655_v54  ;;  %v12575_v54 = vld [vmem:[%s15033_s0 + $0x50] sm:$0xf] }
 0x392   : > { %6997 = vmatpush.bf16.msra.mxu1 %v12112_v3  ;;  %v12816_v3 = vor.u32 %v14213_v55, %v12815_v57  ;;  %v14153_v16 = vld [vmem:[%s15033_s0 + $0x60] sm:$0xf0]  ;;  %v12735_v57 = vld [vmem:[%s15033_s0 + $0x190] sm:$0xf]  ;;  %v13076_v55 = vor.u32 %v14278_v51, %v13075_v50  ;;  %v7033_v51 = vmax.f32 %v16476_v30, 0.0 }
 0x393   : > { %7010 = vmatpush.bf16.msra.mxu2 %v12272_v4  ;;  %v12976_v4 = vor.u32 %v14253_v62, %v12975_v60  ;;  %v14193_v60 = vld [vmem:[%s15033_s0 + $0x1a0] sm:$0xf0]  ;;  %v12895_v62 = vld [vmem:[%s15033_s0 + $0x2d0] sm:$0xf] }
 0x394   : > { %7023 = vmatpush.bf16.msra.mxu3 %v12432_v39  ;;  %v13136_v39 = vor.u32 %v14293_v35, %v13135_v0  ;;  %v14233_v0 = vld [vmem:[%s15033_s0 + $0x2e0] sm:$0xf0] }
 0x395   : > { %6985 = vmatpush.bf16.msra.mxu0 %v11932_v14  ;;  %v12615_v14 = vld [vmem:[%s15033_s0 + $0xa0] sm:$0xf]  ;;  %v12896_v7 = vor.u32 %v14233_v0, %v12895_v62 }
 0x396   : > { %6998 = vmatpush.bf16.msra.mxu1 %v12092_v23  ;;  %v14163_v23 = vld [vmem:[%s15033_s0 + $0xb0] sm:$0xf0] }
 0x397   : > { %7011 = vmatpush.bf16.msra.mxu2 %v12252_v24  ;;  %v14463_v24 = vld [vmem:[%s15031_s11] sm:$0x1f]  ;;  %v12616_v63 = vor.u32 %v14163_v23, %v12615_v14  ;;  %v13035_v23 = vld [vmem:[%s15033_s0 + $0x3e8] sm:$0xf] }
 0x398   : > { %7024 = vmatpush.bf16.msra.mxu3 %v12412_v15  ;;  %v14243_v15 = vld [vmem:[%s15033_s0 + $0x330] sm:$0xf0]  ;;  %v14188_v14 = vld [vmem:[%s15033_s0 + $0x178] sm:$0xf0] }
 0x399   : > { %6986 = vmatpush.bf16.msra.mxu0 %v11912_v48  ;;  %v6780_v29 = vpop.f32.mrf.mxu0  ;;  %v12936_v59 = vor.u32 %v14243_v15, %v12935_v18  ;;  %v14183_v18 = vld [vmem:[%s15033_s0 + $0x150] sm:$0xf0]  ;;  %v12855_v15 = vld [vmem:[%s15033_s0 + $0x280] sm:$0xf] }
 0x39a   : > { %6999 = vmatpush.bf16.msra.mxu1 %v12072_v49  ;;  %v6793_v48 = vpop.f32.mrf.mxu1  ;;  %v12915_v49 = vld [vmem:[%s15033_s0 + $0x2f8] sm:$0xf] }
 0x39b   : > { %7012 = vmatpush.bf16.msra.mxu2 %v12232_v58  ;;  %v14238_v58 = vld [vmem:[%s15033_s0 + $0x308] sm:$0xf0] }
 0x39c   : > { %7025 = vmatpush.bf16.msra.mxu3 %v12392_v9  ;;  %6987 = vmatmul.bf16.vlgmr.msra.gmra.mxu0 %v15432_v25  ;;  %v12636_v25 = vor.u32 %v14168_v6, %v12635_v5  ;;  %v12576_v5 = vor.u32 %v14153_v16, %v12575_v54  ;;  %v14171_v54 = vld [vmem:[%s15033_s0 + $0xf4] sm:$0xf]  ;;  %v12657_v16 = vld [vmem:[%s15033_s0 + $0x104] sm:$0xf0] }
 0x39d   : > { %8326 = vmatpush.bf16.msrb.mxu0 %v12676_v52  ;;  %7000 = vmatmul.bf16.vlgmr.msra.gmra.mxu1 %v15439_v33  ;;  %v12775_v33 = vld [vmem:[%s15033_s0 + $0x1e0] sm:$0xf]  ;;  %v6729_v52 = vadd.f32 %v16816_v27, %v6716_v43  ;;  %v12837_v43 = vld [vmem:[%s15033_s0 + $0x26c] sm:$0xf0]  ;;  %v12660_v62 = vor.u32 %v14171_v54, %v12657_v16 }
 0x39e   : > { %8339 = vmatpush.bf16.msrb.mxu1 %v12836_v46  ;;  %7013 = vmatmul.bf16.vlgmr.msra.gmra.mxu2 %v15437_v32  ;;  %v1565_v32 = vperm.slane %v14463_v24, 4  ;;  %v12776_v47 = vor.u32 %v14203_v21, %v12775_v33  ;;  %v12596_v46 = vor.u32 %v14158_v36, %v12595_v34  ;;  %v14268_v33 = vld [vmem:[%s15033_s0 + $0x3f8] sm:$0xf0]  ;;  %v12556_v24 = vor.u32 %v14148_v19, %v12555_v8  ;;  %v12695_v21 = vld [vmem:[%s15033_s0 + $0x140] sm:$0xf] }
 0x39f   : > { %8352 = vmatpush.bf16.msrb.mxu2 %v12996_v10  ;;  %7026 = vmatmul.bf16.vlgmr.msra.gmra.mxu3 %v15443_v37  ;;  %v13116_v37 = vor.u32 %v14288_v17, %v13115_v11  ;;  %v12916_v10 = vor.u32 %v14238_v58, %v12915_v49  ;;  %v12715_v11 = vld [vmem:[%s15033_s0 + $0x168] sm:$0xf]  ;;  %v14176_v36 = vld [vmem:[%s15033_s0 + $0x11c] sm:$0xf]  ;;  %v7031_v49 = vmax.f32 %v15766_v53, 0.0  ;;  %v12696_v58 = vor.u32 %v14183_v18, %v12695_v21 }
 0x3a0   : > { %8365 = vmatpush.bf16.msrb.mxu3 %v13156_v26  ;;  %v6781_v42 = vadd.f32 %v6780_v29, %v1565_v32  ;;  %v12535_v32 = vld [vmem:[%s15033_s0] sm:$0xf]  ;;  %v14223_v29 = vld [vmem:[%s15033_s0 + $0x290] sm:$0xf0]  ;;  %v12757_v18 = vld [vmem:[%s15033_s0 + $0x1cc] sm:$0xf0] }
 0x3a1   : > { %8327 = vmatpush.bf16.msrb.mxu0 %v12656_v1  ;;  %v6806_v26 = vpop.f32.mrf.mxu2  ;;  %v13055_v1 = vld [vmem:[%s15033_s0 + $0x410] sm:$0xf]  ;;  %v6782_v38 = vpop.f32.mrf.mxu0  ;;  %v12856_v50 = vor.u32 %v14223_v29, %v12855_v15  ;;  %v14211_v53 = vld [vmem:[%s15033_s0 + $0x234] sm:$0xf]  ;;  %v14236_v15 = vld [vmem:[%s15033_s0 + $0x2fc] sm:$0xf] }
 0x3a2   : > { %8340 = vmatpush.bf16.msrb.mxu1 %v12816_v3  ;;  %v6794_v9 = vadd.f32 %v6793_v48, %v6781_v42  ;;  %v6819_v35 = vpop.f32.mrf.mxu3  ;;  %v14273_v3 = vld [vmem:[%s15033_s0 + $0x420] sm:$0xf0]  ;;  %v14216_v42 = vld [vmem:[%s15033_s0 + $0x25c] sm:$0xf]  ;;  %v12536_v48 = vor.u32 %v14143_v20, %v12535_v32  ;;  %v14246_v38 = vld [vmem:[%s15033_s0 + $0x34c] sm:$0xf] }
 0x3a3   : > { %8353 = vmatpush.bf16.msrb.mxu2 %v12976_v4  ;;  %v6742_v4 = vadd.f32 %v16820_v31, %v6729_v52  ;;  %v6795_v31 = vpop.f32.mrf.mxu1  ;;  %v14156_v32 = vld [vmem:[%s15033_s0 + $0x7c] sm:$0xf]  ;;  %v12597_v20 = vld [vmem:[%s15033_s0 + $0x8c] sm:$0xf0]  ;;  %v12877_v54 = vld [vmem:[%s15033_s0 + $0x2bc] sm:$0xf0] }
 0x3a4   : > { %8366 = vmatpush.bf16.msrb.mxu3 %v13136_v39  ;;  %v6807_v27 = vadd.f32 %v6806_v26, %v6794_v9  ;;  %v12736_v39 = vor.u32 %v14193_v60, %v12735_v57  ;;  %v14251_v57 = vld [vmem:[%s15033_s0 + $0x374] sm:$0xf]  ;;  %v12977_v26 = vld [vmem:[%s15033_s0 + $0x384] sm:$0xf0]  ;;  %v16955_v60 = vpack.c.bf16 %v7033_v51, %v7033_v51  ;;  %v12617_v31 = vld [vmem:[%s15033_s0 + $0xb4] sm:$0xf0] }
 0x3a5   : > { %8328 = vmatpush.bf16.msrb.mxu0 %v12636_v25  ;;  %v6755_v17 = vadd.f32 %v16833_v56, %v6742_v4  ;;  %v13056_v25 = vor.u32 %v14273_v3, %v13055_v1  ;;  %v12716_v56 = vor.u32 %v14188_v14, %v12715_v11  ;;  %v14166_v1 = vld [vmem:[%s15033_s0 + $0xcc] sm:$0xf]  ;;  %v12637_v3 = vld [vmem:[%s15033_s0 + $0xdc] sm:$0xf0]  ;;  %v14161_v11 = vld [vmem:[%s15033_s0 + $0xa4] sm:$0xf] }
 0x3a6   : > { %8341 = vmatpush.bf16.msrb.mxu1 %v12796_v41  ;;  %v16916_v6 = vadd.f32 %v6819_v35, %v6807_v27  ;;  %v12875_v41 = vld [vmem:[%s15033_s0 + $0x2a8] sm:$0xf]  ;;  %v12980_v35 = vor.u32 %v14251_v57, %v12977_v26  ;;  %v14206_v4 = vld [vmem:[%s15033_s0 + $0x20c] sm:$0xf]  ;;  %v14241_v14 = vld [vmem:[%s15033_s0 + $0x324] sm:$0xf] }
 0x3a7   : > { %8354 = vmatpush.bf16.msrb.mxu2 %v12956_v2  ;;  %v14228_v2 = vld [vmem:[%s15033_s0 + $0x2b8] sm:$0xf0]  ;;  %v6768_v28 = vadd.f32 %v16838_v13, %v6755_v17  ;;  %v7032_v13 = vmax.f32 %v16121_v12, 0.0  ;;  %v12817_v12 = vld [vmem:[%s15033_s0 + $0x244] sm:$0xf0] }
 0x3a8   : > { %8367 = vmatpush.bf16.msrb.mxu3 %v13116_v37  ;;  %v12876_v37 = vor.u32 %v14228_v2, %v12875_v41  ;;  %v12820_v27 = vor.u32 %v14211_v53, %v12817_v12  ;;  %v14201_v17 = vld [vmem:[%s15033_s0 + $0x1e4] sm:$0xf]  ;;  %v12937_v41 = vld [vmem:[%s15033_s0 + $0x334] sm:$0xf0]  ;;  %v12620_v2 = vor.u32 %v14161_v11, %v12617_v31  ;;  %v14146_v51 = vld [vmem:[%s15033_s0 + $0x2c] sm:$0xf] }
 0x3a9   : > { %8329 = vmatpush.bf16.msrb.mxu0 %v12616_v63  ;;  %v6808_v22 = vpop.f32.mrf.mxu2  ;;  %v13036_v63 = vor.u32 %v14268_v33, %v13035_v23  ;;  %v7034_v9 = vmax.f32 %v6768_v28, 0.0  ;;  %v16953_v30 = vpack.c.bf16 %v7032_v13, %v7032_v13  ;;  %v14141_v53 = vld [vmem:[%s15033_s0 + $0x4] sm:$0xf]  ;;  %v12537_v12 = vld [vmem:[%s15033_s0 + $0x14] sm:$0xf0] }
 0x3aa   : > { %8342 = vmatpush.bf16.msrb.mxu1 %v12776_v47  ;;  %v13015_v47 = vld [vmem:[%s15033_s0 + $0x3c0] sm:$0xf]  ;;  %v6821_v34 = vpop.f32.mrf.mxu3  ;;  %v12917_v22 = vld [vmem:[%s15033_s0 + $0x30c] sm:$0xf0]  ;;  %v14181_v57 = vld [vmem:[%s15033_s0 + $0x144] sm:$0xf]  ;;  %v12540_v31 = vor.u32 %v14141_v53, %v12537_v12 }
 0x3ab   : > { %8355 = vmatpush.bf16.msrb.mxu2 %v12936_v59  ;;  %v14263_v59 = vld [vmem:[%s15033_s0 + $0x3d0] sm:$0xf0]  ;;  %v16957_v0 = vpack.c.bf16 %v7034_v9, %v7034_v9  ;;  %v12577_v34 = vld [vmem:[%s15033_s0 + $0x64] sm:$0xf0]  ;;  %v12557_v9 = vld [vmem:[%s15033_s0 + $0x3c] sm:$0xf0] }
 0x3ac   : > { %8368 = vmatpush.bf16.msrb.mxu3 %v13096_v44  ;;  %v14256_v44 = vld [vmem:[%s15033_s0 + $0x39c] sm:$0xf]  ;;  %v13016_v52 = vor.u32 %v14263_v59, %v13015_v47  ;;  %v12920_v47 = vor.u32 %v14236_v15, %v12917_v22  ;;  %v14151_v59 = vld [vmem:[%s15033_s0 + $0x54] sm:$0xf]  ;;  %v12560_v16 = vor.u32 %v14146_v51, %v12557_v9  ;;  %v13275_v15 = vld [vmem:[%s15033_s0 + $0x5c8] sm:$0xf] }
 0x3ad   : > { %8330 = vmatpush.bf16.msrb.mxu0 %v12596_v46  ;;  %v12680_v46 = vor.u32 %v14176_v36, %v12677_v40  ;;  %v14191_v36 = vld [vmem:[%s15033_s0 + $0x194] sm:$0xf]  ;;  %v12737_v40 = vld [vmem:[%s15033_s0 + $0x1a4] sm:$0xf0]  ;;  %v14328_v22 = vld [vmem:[%s15033_s0 + $0x5d8] sm:$0xf0] }
 0x3ae   : > { %8343 = vmatpush.bf16.msrb.mxu1 %v12756_v61  ;;  %v12840_v61 = vor.u32 %v14216_v42, %v12837_v43  ;;  %v14231_v42 = vld [vmem:[%s15033_s0 + $0x2d4] sm:$0xf]  ;;  %v14164_v9 = vld [vmem:[%s15033_s0 + $0xb8] sm:$0xf0] }
 0x3af   : > { %8356 = vmatpush.bf16.msrb.mxu2 %v12916_v10  ;;  %v13000_v10 = vor.u32 %v14256_v44, %v12997_v45  ;;  %v12580_v45 = vor.u32 %v14151_v59, %v12577_v34  ;;  %v14219_v11 = vld [vmem:[%s15033_s0 + $0x270] sm:$0xf0]  ;;  %v13297_v59 = vld [vmem:[%s15033_s0 + $0x604] sm:$0xf0]  ;;  %v13276_v34 = vor.u32 %v14328_v22, %v13275_v15 }
 0x3b0   : > { %8369 = vmatpush.bf16.msrb.mxu3 %v13076_v55  ;;  %v16951_v55 = vpack.c.bf16 %v7031_v49, %v7031_v49  ;;  %v14311_v15 = vld [vmem:[%s15033_s0 + $0x554] sm:$0xf]  ;;  %v13217_v22 = vld [vmem:[%s15033_s0 + $0x564] sm:$0xf0] }
 0x3b1   : > { %8331 = vmatpush.bf16.msrb.mxu0 %v12576_v5  ;;  %v12797_v5 = vld [vmem:[%s15033_s0 + $0x21c] sm:$0xf0] }
 0x3b2   : > { %8344 = vmatpush.bf16.msrb.mxu1 %v12736_v39  ;;  %v12957_v39 = vld [vmem:[%s15033_s0 + $0x35c] sm:$0xf0]  ;;  %v12800_v8 = vor.u32 %v14206_v4, %v12797_v5  ;;  %v14221_v4 = vld [vmem:[%s15033_s0 + $0x284] sm:$0xf]  ;;  %v12857_v5 = vld [vmem:[%s15033_s0 + $0x294] sm:$0xf0] }
 0x3b3   : > { %8357 = vmatpush.bf16.msrb.mxu2 %v12896_v7  ;;  %v12640_v7 = vor.u32 %v14166_v1, %v12637_v3  ;;  %v12960_v19 = vor.u32 %v14246_v38, %v12957_v39  ;;  %v13315_v1 = vld [vmem:[%s15033_s0 + $0x618] sm:$0xf]  ;;  %v14338_v3 = vld [vmem:[%s15033_s0 + $0x628] sm:$0xf0]  ;;  %v12683_v38 = vld [vmem:[%s15033_s0 + $0x120] sm:$0xf] }
 0x3b4   : > { %8370 = vmatpush.bf16.msrb.mxu3 %v13056_v25  ;;  %v12777_v25 = vld [vmem:[%s15033_s0 + $0x1f4] sm:$0xf0] }
 0x3b5   : > { %8332 = vmatpush.bf16.msrb.mxu0 %v12556_v24  ;;  %v12780_v33 = vor.u32 %v14201_v17, %v12777_v25  ;;  %v12940_v24 = vor.u32 %v14241_v14, %v12937_v41  ;;  %v12860_v25 = vor.u32 %v14221_v4, %v12857_v5  ;;  %v13295_v14 = vld [vmem:[%s15033_s0 + $0x5f0] sm:$0xf]  ;;  %v14333_v41 = vld [vmem:[%s15033_s0 + $0x600] sm:$0xf0]  ;;  %v14199_v4 = vld [vmem:[%s15033_s0 + $0x1d0] sm:$0xf0] }
 0x3b6   : > { %8345 = vmatpush.bf16.msrb.mxu1 %v12716_v56  ;;  %v14196_v56 = vld [vmem:[%s15033_s0 + $0x1bc] sm:$0xf] }
 0x3b7   : > { %8358 = vmatpush.bf16.msrb.mxu2 %v12876_v37  ;;  %v12760_v29 = vor.u32 %v14196_v56, %v12757_v18  ;;  %v14174_v56 = vld [vmem:[%s15033_s0 + $0x108] sm:$0xf0] }
 0x3b8   : > { %8371 = vmatpush.bf16.msrb.mxu3 %v13036_v63  ;;  %v12600_v63 = vor.u32 %v14156_v32, %v12597_v20  ;;  %v13317_v32 = vld [vmem:[%s15033_s0 + $0x62c] sm:$0xf0]  ;;  %v13296_v20 = vor.u32 %v14333_v41, %v13295_v14  ;;  %v12743_v14 = vld [vmem:[%s15033_s0 + $0x198] sm:$0xf]  ;;  %v14194_v41 = vld [vmem:[%s15033_s0 + $0x1a8] sm:$0xf0] }
 0x3b9   : > { %8333 = vmatpush.bf16.msrb.mxu0 %v12536_v48  ;;  %v6832_v23 = vpop.f32.mrf.mxu0  ;;  %v12897_v48 = vld [vmem:[%s15033_s0 + $0x2e4] sm:$0xf0] }
 0x3ba   : > { %8346 = vmatpush.bf16.msrb.mxu1 %v12696_v58  ;;  %v6833_v37 = vadd.f32 %v6832_v23, %v16916_v6  ;;  %v6845_v21 = vpop.f32.mrf.mxu1  ;;  %v12740_v58 = vor.u32 %v14191_v36, %v12737_v40  ;;  %v14169_v36 = vld [vmem:[%s15033_s0 + $0xe0] sm:$0xf0] }
 0x3bb   : > { %8359 = vmatpush.bf16.msrb.mxu2 %v12856_v50  ;;  %v12900_v50 = vor.u32 %v14231_v42, %v12897_v48  ;;  %v14209_v40 = vld [vmem:[%s15033_s0 + $0x220] sm:$0xf0]  ;;  %v13255_v48 = vld [vmem:[%s15033_s0 + $0x5a0] sm:$0xf] }
 0x3bc   : > { %8372 = vmatpush.bf16.msrb.mxu3 %v13016_v52  ;;  %8334 = vmatmul.bf16.vlgmr.msrb.gmra.mxu0 %v16951_v55  ;;  %v6846_v28 = vadd.f32 %v6845_v21, %v6833_v37  ;;  %v14186_v52 = vld [vmem:[%s15033_s0 + $0x16c] sm:$0xf]  ;;  %v12823_v37 = vld [vmem:[%s15033_s0 + $0x238] sm:$0xf] }
 0x3bd   : > { %8347 = vmatmul.bf16.vlgmr.msrb.gmra.mxu1 %v16953_v30  ;;  %v14214_v21 = vld [vmem:[%s15033_s0 + $0x248] sm:$0xf0] }
 0x3be   : > { %8391 = vmatpush.bf16.msra.mxu1 %v12680_v46  ;;  %8360 = vmatmul.bf16.vlgmr.msrb.gmra.mxu2 %v16955_v60 }
 0x3bf   : > { %8404 = vmatpush.bf16.msra.mxu2 %v12840_v61  ;;  %8373 = vmatmul.bf16.vlgmr.msrb.gmra.mxu3 %v16957_v0  ;;  %v12717_v61 = vld [vmem:[%s15033_s0 + $0x17c] sm:$0xf0] }
 0x3c0   : > { %8417 = vmatpush.bf16.msra.mxu3 %v13000_v10  ;;  %v14226_v10 = vld [vmem:[%s15033_s0 + $0x2ac] sm:$0xf]  ;;  %v12720_v26 = vor.u32 %v14186_v52, %v12717_v61  ;;  %v12783_v52 = vld [vmem:[%s15033_s0 + $0x1e8] sm:$0xf] }
 0x3c1   : > { %v6858_v6 = vpop.f32.mrf.mxu2  ;;  %v6834_v13 = vpop.f32.mrf.mxu0 }
 0x3c2   : > { %8392 = vmatpush.bf16.msra.mxu1 %v12660_v62  ;;  %v6859_v43 = vadd.f32 %v6858_v6, %v6846_v28  ;;  %v6871_v44 = vpop.f32.mrf.mxu3  ;;  %v6847_v46 = vpop.f32.mrf.mxu1  ;;  %v12880_v62 = vor.u32 %v14226_v10, %v12877_v54  ;;  %v12803_v6 = vld [vmem:[%s15033_s0 + $0x210] sm:$0xf]  ;;  %v12623_v13 = vld [vmem:[%s15033_s0 + $0xa8] sm:$0xf]  ;;  %v13235_v54 = vld [vmem:[%s15033_s0 + $0x578] sm:$0xf] }
 0x3c3   : > { %8405 = vmatpush.bf16.msra.mxu2 %v12820_v27  ;;  %v12697_v27 = vld [vmem:[%s15033_s0 + $0x154] sm:$0xf0]  ;;  %v14204_v46 = vld [vmem:[%s15033_s0 + $0x1f8] sm:$0xf0]  ;;  %v12624_v53 = vor.u32 %v14164_v9, %v12623_v13  ;;  %v13323_v9 = vld [vmem:[%s15033_s0 + $0x620] sm:$0xf] }
 0x3c4   : > { %8418 = vmatpush.bf16.msra.mxu3 %v12980_v35  ;;  %v16988_v49 = vadd.f32 %v6871_v44, %v6859_v43  ;;  %v12700_v17 = vor.u32 %v14181_v57, %v12697_v27  ;;  %v14323_v43 = vld [vmem:[%s15033_s0 + $0x5b0] sm:$0xf0]  ;;  %v12784_v12 = vor.u32 %v14204_v46, %v12783_v52  ;;  %v13257_v27 = vld [vmem:[%s15033_s0 + $0x5b4] sm:$0xf0]  ;;  %v14296_v13 = vld [vmem:[%s15033_s0 + $0x4dc] sm:$0xf] }
 0x3c5   : > { %v13256_v51 = vor.u32 %v14323_v43, %v13255_v48  ;;  %v14339_v46 = vld [vmem:[%s15033_s0 + $0x630] sm:$0xf0] }
 0x3c6   : > { %8393 = vmatpush.bf16.msra.mxu1 %v12640_v7  ;;  %v13316_v7 = vor.u32 %v14338_v3, %v13315_v1  ;;  %v14159_v1 = vld [vmem:[%s15033_s0 + $0x90] sm:$0xf0]  ;;  %v12763_v3 = vld [vmem:[%s15033_s0 + $0x1c0] sm:$0xf] }
 0x3c7   : > { %8406 = vmatpush.bf16.msra.mxu2 %v12800_v8  ;;  %v14179_v8 = vld [vmem:[%s15033_s0 + $0x130] sm:$0xf0] }
 0x3c8   : > { %8419 = vmatpush.bf16.msra.mxu3 %v12960_v19  ;;  %v12843_v19 = vld [vmem:[%s15033_s0 + $0x260] sm:$0xf]  ;;  %8378 = vmatpush.bf16.msra.mxu0 %v13316_v7 }
 0x3c9   : > { %v6860_v35 = vpop.f32.mrf.mxu2  ;;  %v12844_v23 = vor.u32 %v14219_v11, %v12843_v19  ;;  %v12583_v19 = vld [vmem:[%s15033_s0 + $0x58] sm:$0xf]  ;;  %v14316_v11 = vld [vmem:[%s15033_s0 + $0x57c] sm:$0xf] }
 0x3ca   : > { %8394 = vmatpush.bf16.msra.mxu1 %v12620_v2  ;;  %v6873_v39 = vpop.f32.mrf.mxu3  ;;  %v12684_v2 = vor.u32 %v14179_v8, %v12683_v38  ;;  %v13215_v38 = vld [vmem:[%s15033_s0 + $0x550] sm:$0xf]  ;;  %v12764_v8 = vor.u32 %v14199_v4, %v12763_v3  ;;  %v13303_v4 = vld [vmem:[%s15033_s0 + $0x5f8] sm:$0xf] }
 0x3cb   : > { %8407 = vmatpush.bf16.msra.mxu2 %v12780_v33  ;;  %v12663_v33 = vld [vmem:[%s15033_s0 + $0xf8] sm:$0xf]  ;;  %v14313_v39 = vld [vmem:[%s15033_s0 + $0x560] sm:$0xf0] }
 0x3cc   : > { %8420 = vmatpush.bf16.msra.mxu3 %v12940_v24  ;;  %v14336_v24 = vld [vmem:[%s15033_s0 + $0x61c] sm:$0xf]  ;;  %8379 = vmatpush.bf16.msra.mxu0 %v13296_v20  ;;  %v12664_v28 = vor.u32 %v14174_v56, %v12663_v33 }
 0x3cd   : > { %v13320_v18 = vor.u32 %v14336_v24, %v13317_v32  ;;  %v13195_v32 = vld [vmem:[%s15033_s0 + $0x528] sm:$0xf]  ;;  %v14308_v20 = vld [vmem:[%s15033_s0 + $0x538] sm:$0xf0] }
 0x3ce   : > { %8395 = vmatpush.bf16.msra.mxu1 %v12600_v63  ;;  %v12824_v63 = vor.u32 %v14214_v21, %v12823_v37  ;;  %v12744_v37 = vor.u32 %v14194_v41, %v12743_v14  ;;  %v12563_v21 = vld [vmem:[%s15033_s0 + $0x30] sm:$0xf]  ;;  %v13117_v14 = vld [vmem:[%s15033_s0 + $0x49c] sm:$0xf0] }
 0x3cf   : > { %8408 = vmatpush.bf16.msra.mxu2 %v12760_v29  ;;  %v12643_v29 = vld [vmem:[%s15033_s0 + $0xd0] sm:$0xf] }
 0x3d0   : > { %8421 = vmatpush.bf16.msra.mxu3 %v12920_v47  ;;  %v14331_v47 = vld [vmem:[%s15033_s0 + $0x5f4] sm:$0xf]  ;;  %8380 = vmatpush.bf16.msra.mxu0 %v13276_v34  ;;  %v12644_v44 = vor.u32 %v14169_v36, %v12643_v29  ;;  %v12723_v29 = vld [vmem:[%s15033_s0 + $0x170] sm:$0xf]  ;;  %v14144_v34 = vld [vmem:[%s15033_s0 + $0x18] sm:$0xf0]  ;;  %v13220_v36 = vor.u32 %v14311_v15, %v13217_v22 }
 0x3d1   : > { %v13300_v42 = vor.u32 %v14331_v47, %v13297_v59  ;;  %v14189_v47 = vld [vmem:[%s15033_s0 + $0x180] sm:$0xf0]  ;;  %v12543_v59 = vld [vmem:[%s15033_s0 + $0x8] sm:$0xf]  ;;  %v14294_v15 = vld [vmem:[%s15033_s0 + $0x4c8] sm:$0xf0] }
 0x3d2   : > { %8396 = vmatpush.bf16.msra.mxu1 %v12580_v45  ;;  %v12804_v45 = vor.u32 %v14209_v40, %v12803_v6  ;;  %v14306_v6 = vld [vmem:[%s15033_s0 + $0x52c] sm:$0xf]  ;;  %v13175_v40 = vld [vmem:[%s15033_s0 + $0x500] sm:$0xf]  ;;  %v12724_v43 = vor.u32 %v14189_v47, %v12723_v29  ;;  %v14281_v22 = vld [vmem:[%s15033_s0 + $0x464] sm:$0xf] }
 0x3d3   : > { %8409 = vmatpush.bf16.msra.mxu2 %v12740_v58  ;;  %v14326_v58 = vld [vmem:[%s15033_s0 + $0x5cc] sm:$0xf]  ;;  %v13263_v47 = vld [vmem:[%s15033_s0 + $0x5a8] sm:$0xf] }
 0x3d4   : > { %8422 = vmatpush.bf16.msra.mxu3 %v12900_v50  ;;  %v13277_v50 = vld [vmem:[%s15033_s0 + $0x5dc] sm:$0xf0]  ;;  %8381 = vmatpush.bf16.msra.mxu0 %v13256_v51  ;;  %v14184_v51 = vld [vmem:[%s15033_s0 + $0x158] sm:$0xf0] }
 0x3d5   : > { %v13280_v10 = vor.u32 %v14326_v58, %v13277_v50  ;;  %v13157_v58 = vld [vmem:[%s15033_s0 + $0x4ec] sm:$0xf0]  ;;  %v12703_v50 = vld [vmem:[%s15033_s0 + $0x148] sm:$0xf] }
 0x3d6   : > { %8397 = vmatpush.bf16.msra.mxu1 %v12560_v16  ;;  %v14318_v16 = vld [vmem:[%s15033_s0 + $0x588] sm:$0xf0]  ;;  %v13160_v52 = vor.u32 %v14296_v13, %v13157_v58 }
 0x3d7   : > { %8410 = vmatpush.bf16.msra.mxu2 %v12720_v26  ;;  %v12603_v26 = vld [vmem:[%s15033_s0 + $0x80] sm:$0xf]  ;;  %v13236_v35 = vor.u32 %v14318_v16, %v13235_v54  ;;  %v12685_v54 = vld [vmem:[%s15033_s0 + $0x134] sm:$0xf0] }
 0x3d8   : > { %8423 = vmatpush.bf16.msra.mxu3 %v12880_v62  ;;  %v14321_v62 = vld [vmem:[%s15033_s0 + $0x5a4] sm:$0xf]  ;;  %v12604_v7 = vor.u32 %v14159_v1, %v12603_v26  ;;  %v12544_v26 = vor.u32 %v14144_v34, %v12543_v59  ;;  %v13324_v1 = vor.u32 %v14339_v46, %v13323_v9  ;;  %v14324_v59 = vld [vmem:[%s15033_s0 + $0x5b8] sm:$0xf0]  ;;  %v14162_v34 = vld [vmem:[%s15033_s0 + $0xac] sm:$0xf] }
 0x3d9   : > { %v17035_v61 = vpop.f32.mrf.mxu0  ;;  %v13260_v5 = vor.u32 %v14321_v62, %v13257_v27  ;;  %8382 = vmatpush.bf16.msra.mxu0 %v13236_v35  ;;  %v12704_v62 = vor.u32 %v14184_v51, %v12703_v50  ;;  %v14291_v27 = vld [vmem:[%s15033_s0 + $0x4b4] sm:$0xf]  ;;  %v13137_v35 = vld [vmem:[%s15033_s0 + $0x4c4] sm:$0xf0]  ;;  %v13264_v13 = vor.u32 %v14324_v59, %v13263_v47  ;;  %v13243_v50 = vld [vmem:[%s15033_s0 + $0x580] sm:$0xf] }
 0x3da   : > { %8398 = vmatpush.bf16.msra.mxu1 %v12540_v31  ;;  %v17039_v57 = vpop.f32.mrf.mxu1  ;;  %v13237_v31 = vld [vmem:[%s15033_s0 + $0x58c] sm:$0xf0]  ;;  %v14319_v9 = vld [vmem:[%s15033_s0 + $0x590] sm:$0xf0]  ;;  %v12605_v46 = vld [vmem:[%s15033_s0 + $0x94] sm:$0xf0] }
 0x3db   : > { %8411 = vmatpush.bf16.msra.mxu2 %v12700_v17  ;;  %v13216_v17 = vor.u32 %v14313_v39, %v13215_v38  ;;  %v13240_v24 = vor.u32 %v14316_v11, %v13237_v31  ;;  %v13177_v38 = vld [vmem:[%s15033_s0 + $0x514] sm:$0xf0]  ;;  %v14334_v39 = vld [vmem:[%s15033_s0 + $0x608] sm:$0xf0]  ;;  %v13163_v11 = vld [vmem:[%s15033_s0 + $0x4e0] sm:$0xf] }
 0x3dc   : > { %8424 = vmatpush.bf16.msra.mxu3 %v12860_v25  ;;  %v14154_v25 = vld [vmem:[%s15033_s0 + $0x68] sm:$0xf0]  ;;  %v14299_v31 = vld [vmem:[%s15033_s0 + $0x4f0] sm:$0xf0]  ;;  %v13304_v41 = vor.u32 %v14334_v39, %v13303_v4  ;;  %v12585_v4 = vld [vmem:[%s15033_s0 + $0x6c] sm:$0xf0] }
 0x3dd   : > { %8399 = vmatmul.bf16.vlgmr.msra.gmra.mxu1 %v16951_v55  ;;  %8383 = vmatpush.bf16.msra.mxu0 %v13216_v17  ;;  %v12584_v56 = vor.u32 %v14154_v25, %v12583_v19  ;;  %v13140_v19 = vor.u32 %v14291_v27, %v13137_v35  ;;  %v14286_v25 = vld [vmem:[%s15033_s0 + $0x48c] sm:$0xf]  ;;  %v13223_v35 = vld [vmem:[%s15033_s0 + $0x558] sm:$0xf]  ;;  %v13083_v39 = vld [vmem:[%s15033_s0 + $0x440] sm:$0xf] }
 0x3de   : > { %8412 = vmatmul.bf16.vlgmr.msra.gmra.mxu2 %v16953_v30  ;;  %8443 = vmatpush.bf16.msrb.mxu1 %v13320_v18  ;;  %v14304_v47 = vld [vmem:[%s15033_s0 + $0x518] sm:$0xf0]  ;;  %v14142_v59 = vld [vmem:[%s15033_s0 + $0xc] sm:$0xf] }
 0x3df   : > { %8456 = vmatpush.bf16.msrb.mxu2 %v12684_v2  ;;  %8425 = vmatmul.bf16.vlgmr.msra.gmra.mxu3 %v16955_v60 }
 0x3e0   : > { %8469 = vmatpush.bf16.msrb.mxu3 %v12844_v23 }
 0x3e1   : > { %v17055_v2 = vpop.f32.mrf.mxu2  ;;  %v6886_v33 = vpop.f32.mrf.mxu0 }
 0x3e2   : > { %8444 = vmatpush.bf16.msrb.mxu1 %v13300_v42  ;;  %v17057_v23 = vpop.f32.mrf.mxu3  ;;  %v6899_v18 = vpop.f32.mrf.mxu1  ;;  %v14303_v42 = vld [vmem:[%s15033_s0 + $0x510] sm:$0xf0] }
 0x3e3   : > { %8457 = vmatpush.bf16.msrb.mxu2 %v12664_v28  ;;  %v13196_v28 = vor.u32 %v14308_v20, %v13195_v32  ;;  %v14329_v32 = vld [vmem:[%s15033_s0 + $0x5e0] sm:$0xf0]  ;;  %v14167_v20 = vld [vmem:[%s15033_s0 + $0xd4] sm:$0xf]  ;;  %v13143_v18 = vld [vmem:[%s15033_s0 + $0x4b8] sm:$0xf] }
 0x3e4   : > { %8470 = vmatpush.bf16.msrb.mxu3 %v12824_v63  ;;  %v14149_v63 = vld [vmem:[%s15033_s0 + $0x40] sm:$0xf0] }
 0x3e5   : > { %8384 = vmatpush.bf16.msra.mxu0 %v13196_v28  ;;  %v12564_v48 = vor.u32 %v14149_v63, %v12563_v21  ;;  %v13120_v21 = vor.u32 %v14286_v25, %v13117_v14  ;;  %v13097_v28 = vld [vmem:[%s15033_s0 + $0x474] sm:$0xf0] }
 0x3e6   : > { %8445 = vmatpush.bf16.msrb.mxu1 %v13280_v10  ;;  %v14177_v10 = vld [vmem:[%s15033_s0 + $0x124] sm:$0xf] }
 0x3e7   : > { %8458 = vmatpush.bf16.msrb.mxu2 %v12644_v44  ;;  %v13197_v44 = vld [vmem:[%s15033_s0 + $0x53c] sm:$0xf0]  ;;  %v12688_v3 = vor.u32 %v14177_v10, %v12685_v54 }
 0x3e8   : > { %8471 = vmatpush.bf16.msrb.mxu3 %v12804_v45  ;;  %v13176_v45 = vor.u32 %v14303_v42, %v13175_v40  ;;  %v13100_v40 = vor.u32 %v14281_v22, %v13097_v28  ;;  %v13123_v42 = vld [vmem:[%s15033_s0 + $0x490] sm:$0xf] }
 0x3e9   : > { %v6912_v16 = vpop.f32.mrf.mxu2 }
 0x3ea   : > { %8446 = vmatpush.bf16.msrb.mxu1 %v13260_v5  ;;  %8385 = vmatpush.bf16.msra.mxu0 %v13176_v45  ;;  %v14301_v5 = vld [vmem:[%s15033_s0 + $0x504] sm:$0xf]  ;;  %v13103_v16 = vld [vmem:[%s15033_s0 + $0x468] sm:$0xf] }
 0x3eb   : > { %8459 = vmatpush.bf16.msrb.mxu2 %v12624_v53  ;;  %v6925_v53 = vpop.f32.mrf.mxu3  ;;  %v13180_v17 = vor.u32 %v14301_v5, %v13177_v38 }
 0x3ec   : > { %8472 = vmatpush.bf16.msrb.mxu3 %v12784_v12  ;;  %v13200_v12 = vor.u32 %v14306_v6, %v13197_v44  ;;  %v13144_v6 = vor.u32 %v14294_v15, %v13143_v18  ;;  %v13077_v44 = vld [vmem:[%s15033_s0 + $0x44c] sm:$0xf0]  ;;  %v14284_v53 = vld [vmem:[%s15033_s0 + $0x478] sm:$0xf0]  ;;  %v14261_v18 = vld [vmem:[%s15033_s0 + $0x3c4] sm:$0xf] }
 0x3ed   : > { %v13104_v5 = vor.u32 %v14284_v53, %v13103_v16  ;;  %v13017_v15 = vld [vmem:[%s15033_s0 + $0x3d4] sm:$0xf0]  ;;  %v13145_v16 = vld [vmem:[%s15033_s0 + $0x4cc] sm:$0xf0]  ;;  %v14332_v53 = vld [vmem:[%s15033_s0 + $0x5fc] sm:$0xf] }
 0x3ee   : > { %8447 = vmatpush.bf16.msrb.mxu1 %v13240_v24  ;;  %8430 = vmatpush.bf16.msrb.mxu0 %v13160_v52  ;;  %v13283_v24 = vld [vmem:[%s15033_s0 + $0x5d0] sm:$0xf]  ;;  %v14157_v52 = vld [vmem:[%s15033_s0 + $0x84] sm:$0xf] }
 0x3ef   : > { %8460 = vmatpush.bf16.msrb.mxu2 %v12604_v7  ;;  %v14172_v7 = vld [vmem:[%s15033_s0 + $0xfc] sm:$0xf]  ;;  %v13284_v63 = vor.u32 %v14329_v32, %v13283_v24  ;;  %v12608_v27 = vor.u32 %v14157_v52, %v12605_v46  ;;  %v14309_v24 = vld [vmem:[%s15033_s0 + $0x540] sm:$0xf0]  ;;  %v14147_v32 = vld [vmem:[%s15033_s0 + $0x34] sm:$0xf] }
 0x3f0   : > { %8473 = vmatpush.bf16.msrb.mxu3 %v12764_v8  ;;  %v12665_v8 = vld [vmem:[%s15033_s0 + $0x10c] sm:$0xf0] }
 0x3f1   : > { %v12668_v33 = vor.u32 %v14172_v7, %v12665_v8  ;;  %v14279_v7 = vld [vmem:[%s15033_s0 + $0x450] sm:$0xf0] }
 0x3f2   : > { %8448 = vmatpush.bf16.msrb.mxu1 %v13220_v36  ;;  %8431 = vmatpush.bf16.msrb.mxu0 %v13140_v19  ;;  %v12625_v36 = vld [vmem:[%s15033_s0 + $0xbc] sm:$0xf0]  ;;  %v14266_v19 = vld [vmem:[%s15033_s0 + $0x3ec] sm:$0xf] }
 0x3f3   : > { %8461 = vmatpush.bf16.msrb.mxu2 %v12584_v56  ;;  %v12645_v56 = vld [vmem:[%s15033_s0 + $0xe4] sm:$0xf0]  ;;  %v12628_v58 = vor.u32 %v14162_v34, %v12625_v36  ;;  %v12545_v34 = vld [vmem:[%s15033_s0 + $0x1c] sm:$0xf0]  ;;  %v14297_v36 = vld [vmem:[%s15033_s0 + $0x4e4] sm:$0xf] }
 0x3f4   : > { %8474 = vmatpush.bf16.msrb.mxu3 %v12744_v37  ;;  %v13164_v37 = vor.u32 %v14299_v31, %v13163_v11  ;;  %v12648_v29 = vor.u32 %v14167_v20, %v12645_v56  ;;  %v13037_v11 = vld [vmem:[%s15033_s0 + $0x3fc] sm:$0xf0]  ;;  %v6885_v31 = vadd.f32 %v17035_v61, %v16988_v49  ;;  %v12565_v20 = vld [vmem:[%s15033_s0 + $0x44] sm:$0xf0]  ;;  %v13084_v49 = vor.u32 %v14279_v7, %v13083_v39 }
 0x3f5   : > { %v13040_v61 = vor.u32 %v14266_v19, %v13037_v11  ;;  %v14282_v11 = vld [vmem:[%s15033_s0 + $0x46c] sm:$0xf] }
 0x3f6   : > { %8449 = vmatpush.bf16.msrb.mxu1 %v13200_v12  ;;  %8432 = vmatpush.bf16.msrb.mxu0 %v13120_v21  ;;  %v14271_v12 = vld [vmem:[%s15033_s0 + $0x414] sm:$0xf]  ;;  %v14274_v21 = vld [vmem:[%s15033_s0 + $0x428] sm:$0xf0]  ;;  %v6898_v22 = vadd.f32 %v17039_v57, %v6885_v31 }
 0x3f7   : > { %8462 = vmatpush.bf16.msrb.mxu2 %v12564_v48  ;;  %v14289_v48 = vld [vmem:[%s15033_s0 + $0x4a0] sm:$0xf0] }
 0x3f8   : > { %8475 = vmatpush.bf16.msrb.mxu3 %v12724_v43  ;;  %v14276_v43 = vld [vmem:[%s15033_s0 + $0x43c] sm:$0xf]  ;;  %v13124_v10 = vor.u32 %v14289_v48, %v13123_v42  ;;  %v6911_v57 = vadd.f32 %v17055_v2, %v6898_v22  ;;  %v13165_v42 = vld [vmem:[%s15033_s0 + $0x4f4] sm:$0xf0]  ;;  %v14337_v48 = vld [vmem:[%s15033_s0 + $0x624] sm:$0xf] }
 0x3f9   : > { %v17111_v45 = vpop.f32.mrf.mxu0  ;;  %v13080_v54 = vor.u32 %v14276_v43, %v13077_v44  ;;  %v13325_v43 = vld [vmem:[%s15033_s0 + $0x634] sm:$0xf0]  ;;  %v13168_v46 = vor.u32 %v14297_v36, %v13165_v42  ;;  %v13065_v22 = vld [vmem:[%s15033_s0 + $0x42c] sm:$0xf0]  ;;  %v14307_v42 = vld [vmem:[%s15033_s0 + $0x534] sm:$0xf] }
 0x3fa   : > { %8450 = vmatpush.bf16.msrb.mxu1 %v13180_v17  ;;  %v17114_v51 = vpop.f32.mrf.mxu1  ;;  %8433 = vmatpush.bf16.msrb.mxu0 %v13100_v40  ;;  %v13020_v40 = vor.u32 %v14261_v18, %v13017_v15  ;;  %v6924_v2 = vadd.f32 %v17057_v23, %v6911_v57  ;;  %v14287_v23 = vld [vmem:[%s15033_s0 + $0x494] sm:$0xf]  ;;  %v14272_v15 = vld [vmem:[%s15033_s0 + $0x41c] sm:$0xf]  ;;  %v13045_v57 = vld [vmem:[%s15033_s0 + $0x404] sm:$0xf0] }
 0x3fb   : > { %8463 = vmatpush.bf16.msrb.mxu2 %v12544_v26  ;;  %v13057_v26 = vld [vmem:[%s15033_s0 + $0x424] sm:$0xf0] }
 0x3fc   : > { %8476 = vmatpush.bf16.msrb.mxu3 %v12704_v62  ;;  %v13244_v62 = vor.u32 %v14319_v9, %v13243_v50  ;;  %v13060_v38 = vor.u32 %v14271_v12, %v13057_v26  ;;  %v12548_v9 = vor.u32 %v14142_v59, %v12545_v34  ;;  %v13305_v12 = vld [vmem:[%s15033_s0 + $0x60c] sm:$0xf0]  ;;  %v14267_v34 = vld [vmem:[%s15033_s0 + $0x3f4] sm:$0xf] }
 0x3fe   : > { %8464 = vmatmul.bf16.vlgmr.msrb.gmra.mxu2 %v16951_v55  ;;  %8495 = vmatpush.bf16.msra.mxu1 %v13164_v37  ;;  %v13063_v37 = vld [vmem:[%s15033_s0 + $0x418] sm:$0xf] }
 0x3ff   : > { %8508 = vmatpush.bf16.msra.mxu2 %v13324_v1  ;;  %8477 = vmatmul.bf16.vlgmr.msrb.gmra.mxu3 %v16953_v30  ;;  %v14314_v1 = vld [vmem:[%s15033_s0 + $0x568] sm:$0xf0] }
 0x400   : > { %8521 = vmatpush.bf16.msra.mxu3 %v12688_v3  ;;  %v14152_v3 = vld [vmem:[%s15033_s0 + $0x5c] sm:$0xf]  ;;  %8434 = vmatpush.bf16.msrb.mxu0 %v13080_v54  ;;  %v13224_v25 = vor.u32 %v14314_v1, %v13223_v35  ;;  %v6937_v35 = vadd.f32 %v17111_v45, %v6924_v2  ;;  %v14302_v2 = vld [vmem:[%s15033_s0 + $0x50c] sm:$0xf] }
 0x401   : > { %v17129_v8 = vpop.f32.mrf.mxu2  ;;  %v12588_v14 = vor.u32 %v14152_v3, %v12585_v4  ;;  %v14292_v54 = vld [vmem:[%s15033_s0 + $0x4bc] sm:$0xf]  ;;  %v13308_v3 = vor.u32 %v14332_v53, %v13305_v12  ;;  %v13125_v4 = vld [vmem:[%s15033_s0 + $0x4a4] sm:$0xf0]  ;;  %v13185_v53 = vld [vmem:[%s15033_s0 + $0x51c] sm:$0xf0] }
 0x402   : > { %8496 = vmatpush.bf16.msra.mxu1 %v13144_v6  ;;  %v17135_v17 = vpop.f32.mrf.mxu3  ;;  %v6951_v56 = vpop.f32.mrf.mxu1  ;;  %v13064_v6 = vor.u32 %v14274_v21, %v13063_v37  ;;  %v13148_v1 = vor.u32 %v14292_v54, %v13145_v16  ;;  %v6950_v45 = vadd.f32 %v17114_v51, %v6937_v35  ;;  %v13128_v7 = vor.u32 %v14287_v23, %v13125_v4  ;;  %v13025_v54 = vld [vmem:[%s15033_s0 + $0x3dc] sm:$0xf0]  ;;  %v13011_v12 = vld [vmem:[%s15033_s0 + $0x3a8] sm:$0xf]  ;;  %v14300_v35 = vld [vmem:[%s15033_s0 + $0x4f8] sm:$0xf0] }
 0x403   : > { %8509 = vmatpush.bf16.msra.mxu2 %v13304_v41  ;;  %v13203_v41 = vld [vmem:[%s15033_s0 + $0x530] sm:$0xf]  ;;  %v13085_v56 = vld [vmem:[%s15033_s0 + $0x454] sm:$0xf0]  ;;  %v14254_v4 = vld [vmem:[%s15033_s0 + $0x388] sm:$0xf0] }
 0x404   : > { %8522 = vmatpush.bf16.msra.mxu3 %v12668_v33  ;;  %v6938_v33 = vpop.f32.mrf.mxu0  ;;  %8435 = vmatpush.bf16.msrb.mxu0 %v13060_v38  ;;  %v13204_v28 = vor.u32 %v14309_v24, %v13203_v41  ;;  %v13285_v38 = vld [vmem:[%s15033_s0 + $0x5e4] sm:$0xf0]  ;;  %v6963_v31 = vadd.f32 %v17129_v8, %v6950_v45  ;;  %v13265_v41 = vld [vmem:[%s15033_s0 + $0x5bc] sm:$0xf0]  ;;  %v14277_v24 = vld [vmem:[%s15033_s0 + $0x444] sm:$0xf] }
 0x405   : > { %v13088_v21 = vor.u32 %v14277_v24, %v13085_v56  ;;  %v12983_v23 = vld [vmem:[%s15033_s0 + $0x378] sm:$0xf]  ;;  %v14252_v45 = vld [vmem:[%s15033_s0 + $0x37c] sm:$0xf]  ;;  %v14247_v56 = vld [vmem:[%s15033_s0 + $0x354] sm:$0xf] }
 0x406   : > { %8497 = vmatpush.bf16.msra.mxu1 %v13124_v10  ;;  %v13328_v10 = vor.u32 %v14337_v48, %v13325_v43  ;;  %v13205_v48 = vld [vmem:[%s15033_s0 + $0x544] sm:$0xf0] }
 0x407   : > { %8510 = vmatpush.bf16.msra.mxu2 %v13284_v63  ;;  %v12568_v63 = vor.u32 %v14147_v32, %v12565_v20  ;;  %v6976_v32 = vadd.f32 %v17135_v17, %v6963_v31 }
 0x408   : > { %8523 = vmatpush.bf16.msra.mxu3 %v12648_v29  ;;  %v13183_v29 = vld [vmem:[%s15033_s0 + $0x508] sm:$0xf]  ;;  %8436 = vmatpush.bf16.msrb.mxu0 %v13040_v61  ;;  %v13245_v61 = vld [vmem:[%s15033_s0 + $0x594] sm:$0xf0] }
 0x409   : > { %v6964_v44 = vpop.f32.mrf.mxu2  ;;  %v13184_v50 = vor.u32 %v14304_v47, %v13183_v29  ;;  %v13068_v47 = vor.u32 %v14272_v15, %v13065_v22  ;;  %v13131_v15 = vld [vmem:[%s15033_s0 + $0x498] sm:$0xf]  ;;  %v14290_v22 = vld [vmem:[%s15033_s0 + $0x4a8] sm:$0xf0] }
 0x40a   : > { %8498 = vmatpush.bf16.msra.mxu1 %v13104_v5  ;;  %v6977_v52 = vpop.f32.mrf.mxu3  ;;  %v14327_v5 = vld [vmem:[%s15033_s0 + $0x5d4] sm:$0xf]  ;;  %v13003_v44 = vld [vmem:[%s15033_s0 + $0x3a0] sm:$0xf] }
 0x40b   : > { %8511 = vmatpush.bf16.msra.mxu2 %v13264_v13  ;;  %v13043_v13 = vld [vmem:[%s15033_s0 + $0x3f0] sm:$0xf]  ;;  %v13288_v19 = vor.u32 %v14327_v5, %v13285_v38  ;;  %v13048_v52 = vor.u32 %v14267_v34, %v13045_v57  ;;  %v13132_v34 = vor.u32 %v14290_v22, %v13131_v15  ;;  %v12863_v15 = vld [vmem:[%s15033_s0 + $0x288] sm:$0xf]  ;;  %v14224_v22 = vld [vmem:[%s15033_s0 + $0x298] sm:$0xf0] }
 0x40c   : > { %8524 = vmatpush.bf16.msra.mxu3 %v12628_v58  ;;  %v14269_v58 = vld [vmem:[%s15033_s0 + $0x400] sm:$0xf0]  ;;  %8437 = vmatpush.bf16.msrb.mxu0 %v13020_v40  ;;  %v13111_v57 = vld [vmem:[%s15033_s0 + $0x470] sm:$0xf] }
 0x40d   : > { %v13044_v26 = vor.u32 %v14269_v58, %v13043_v13  ;;  %v14259_v58 = vld [vmem:[%s15033_s0 + $0x3b0] sm:$0xf0] }
 0x40e   : > { %8499 = vmatpush.bf16.msra.mxu1 %v13084_v49  ;;  %v14317_v49 = vld [vmem:[%s15033_s0 + $0x584] sm:$0xf] }
 0x40f   : > { %8512 = vmatpush.bf16.msra.mxu2 %v13244_v62  ;;  %v13023_v62 = vld [vmem:[%s15033_s0 + $0x3c8] sm:$0xf]  ;;  %v13248_v18 = vor.u32 %v14317_v49, %v13245_v61 }
 0x410   : > { %8525 = vmatpush.bf16.msra.mxu3 %v12608_v27  ;;  %v14264_v27 = vld [vmem:[%s15033_s0 + $0x3d8] sm:$0xf0]  ;;  %v12965_v49 = vld [vmem:[%s15033_s0 + $0x364] sm:$0xf0] }
 0x411   : > { %v13024_v39 = vor.u32 %v14264_v27, %v13023_v62  ;;  %v14260_v62 = vld [vmem:[%s15033_s0 + $0x3b8] sm:$0xf0]  ;;  %v13171_v27 = vld [vmem:[%s15033_s0 + $0x4e8] sm:$0xf] }
 0x412   : > { %8500 = vmatpush.bf16.msra.mxu1 %v13064_v6  ;;  %v13172_v31 = vor.u32 %v14300_v35, %v13171_v27  ;;  %v14234_v27 = vld [vmem:[%s15033_s0 + $0x2e8] sm:$0xf0]  ;;  %v14232_v35 = vld [vmem:[%s15033_s0 + $0x2dc] sm:$0xf] }
 0x413   : > { %8513 = vmatpush.bf16.msra.mxu2 %v13224_v25  ;;  %v13105_v25 = vld [vmem:[%s15033_s0 + $0x47c] sm:$0xf0] }
 0x414   : > { %8526 = vmatpush.bf16.msra.mxu3 %v12588_v14  ;;  %v14322_v14 = vld [vmem:[%s15033_s0 + $0x5ac] sm:$0xf]  ;;  %v13108_v33 = vor.u32 %v14282_v11, %v13105_v25  ;;  %v13012_v11 = vor.u32 %v14260_v62, %v13011_v12  ;;  %v12991_v25 = vld [vmem:[%s15033_s0 + $0x380] sm:$0xf] }
 0x415   : > { %v13268_v51 = vor.u32 %v14322_v14, %v13265_v41  ;;  %v12984_v14 = vor.u32 %v14254_v4, %v12983_v23  ;;  %v14255_v41 = vld [vmem:[%s15033_s0 + $0x390] sm:$0xf0] }
 0x416   : > { %8501 = vmatpush.bf16.msra.mxu1 %v13044_v26  ;;  %v13004_v26 = vor.u32 %v14259_v58, %v13003_v44  ;;  %v12992_v61 = vor.u32 %v14255_v41, %v12991_v25  ;;  %v14239_v44 = vld [vmem:[%s15033_s0 + $0x310] sm:$0xf0]  ;;  %v12925_v58 = vld [vmem:[%s15033_s0 + $0x314] sm:$0xf0] }
 0x417   : > { %8514 = vmatpush.bf16.msra.mxu2 %v13204_v28  ;;  %v14312_v28 = vld [vmem:[%s15033_s0 + $0x55c] sm:$0xf]  ;;  %v14227_v25 = vld [vmem:[%s15033_s0 + $0x2b4] sm:$0xf] }
 0x418   : > { %8527 = vmatpush.bf16.msra.mxu3 %v12568_v63  ;;  %v13225_v63 = vld [vmem:[%s15033_s0 + $0x56c] sm:$0xf0] }
 0x419   : > { %v6988_v20 = vpop.f32.mrf.mxu0  ;;  %v13228_v59 = vor.u32 %v14312_v28, %v13225_v63  ;;  %v12968_v28 = vor.u32 %v14247_v56, %v12965_v49  ;;  %v12943_v63 = vld [vmem:[%s15033_s0 + $0x328] sm:$0xf]  ;;  %v13051_v56 = vld [vmem:[%s15033_s0 + $0x3f8] sm:$0xf]  ;;  %v14270_v49 = vld [vmem:[%s15033_s0 + $0x408] sm:$0xf0] }
 0x41a   : > { %8502 = vmatpush.bf16.msra.mxu1 %v13024_v39  ;;  %v7001_v8 = vpop.f32.mrf.mxu1  ;;  %v6989_v37 = vadd.f32 %v6988_v20, %v6976_v32  ;;  %v13188_v39 = vor.u32 %v14302_v2, %v13185_v53  ;;  %v12963_v32 = vld [vmem:[%s15033_s0 + $0x350] sm:$0xf]  ;;  %v14249_v20 = vld [vmem:[%s15033_s0 + $0x360] sm:$0xf0] }
 0x41b   : > { %8515 = vmatpush.bf16.msra.mxu2 %v13184_v50  ;;  %v14257_v50 = vld [vmem:[%s15033_s0 + $0x3a4] sm:$0xf] }
 0x41c   : > { %8528 = vmatpush.bf16.msra.mxu3 %v12548_v9  ;;  %v7002_v17 = vadd.f32 %v7001_v8, %v6989_v37  ;;  %v13005_v9 = vld [vmem:[%s15033_s0 + $0x3b4] sm:$0xf0] }
 0x41d   : > { %v12971_v37 = vld [vmem:[%s15033_s0 + $0x358] sm:$0xf] }
 0x41f   : > { %8560 = vmatpush.bf16.msrb.mxu2 %v13168_v46  ;;  %8529 = vmatmul.bf16.vlgmr.msra.gmra.mxu3 %v16951_v55  ;;  %v13208_v46 = vor.u32 %v14307_v42, %v13205_v48  ;;  %v14285_v42 = vld [vmem:[%s15033_s0 + $0x480] sm:$0xf0] }
 0x420   : > { %8573 = vmatpush.bf16.msrb.mxu3 %v13328_v10  ;;  %v14262_v10 = vld [vmem:[%s15033_s0 + $0x3cc] sm:$0xf] }
 0x421   : > { %v7014_v29 = vpop.f32.mrf.mxu2  ;;  %v6990_v40 = vpop.f32.mrf.mxu0  ;;  %v13028_v38 = vor.u32 %v14262_v10, %v13025_v54  ;;  %v13091_v10 = vld [vmem:[%s15033_s0 + $0x448] sm:$0xf]  ;;  %v14280_v54 = vld [vmem:[%s15033_s0 + $0x458] sm:$0xf0] }
 0x422   : > { %v7015_v36 = vadd.f32 %v7014_v29, %v7002_v17  ;;  %v7027_v6 = vpop.f32.mrf.mxu3  ;;  %v7003_v43 = vpop.f32.mrf.mxu1  ;;  %v14244_v17 = vld [vmem:[%s15033_s0 + $0x338] sm:$0xf0]  ;;  %v14242_v29 = vld [vmem:[%s15033_s0 + $0x32c] sm:$0xf]  ;;  %v14245_v40 = vld [vmem:[%s15033_s0 + $0x340] sm:$0xf0]  ;;  %v13092_v4 = vor.u32 %v14280_v54, %v13091_v10 }
 0x423   : > { %8561 = vmatpush.bf16.msrb.mxu2 %v13148_v1  ;;  %v12923_v43 = vld [vmem:[%s15033_s0 + $0x300] sm:$0xf]  ;;  %v14215_v54 = vld [vmem:[%s15033_s0 + $0x250] sm:$0xf0] }
 0x424   : > { %8574 = vmatpush.bf16.msrb.mxu3 %v13308_v3  ;;  %v7028_v13 = vadd.f32 %v7027_v6, %v7015_v36  ;;  %v13008_v3 = vor.u32 %v14257_v50, %v13005_v9  ;;  %v12951_v36 = vld [vmem:[%s15033_s0 + $0x330] sm:$0xf]  ;;  %v12944_v6 = vor.u32 %v14244_v17, %v12943_v63  ;;  %v13112_v9 = vor.u32 %v14285_v42, %v13111_v57  ;;  %v12865_v63 = vld [vmem:[%s15033_s0 + $0x29c] sm:$0xf0]  ;;  %v14217_v17 = vld [vmem:[%s15033_s0 + $0x264] sm:$0xf] }
 0x425   : > { %v12952_v50 = vor.u32 %v14245_v40, %v12951_v36  ;;  %v12924_v53 = vor.u32 %v14239_v44, %v12923_v43  ;;  %v12851_v36 = vld [vmem:[%s15033_s0 + $0x268] sm:$0xf]  ;;  %v12871_v40 = vld [vmem:[%s15033_s0 + $0x290] sm:$0xf]  ;;  %v14225_v57 = vld [vmem:[%s15033_s0 + $0x2a0] sm:$0xf0]  ;;  %v12864_v43 = vor.u32 %v14224_v22, %v12863_v15 }
 0x426   : > { %v7035_v16 = vmax.f32 %v7028_v13, 0.0  ;;  %v14237_v13 = vld [vmem:[%s15033_s0 + $0x304] sm:$0xf]  ;;  %v13031_v42 = vld [vmem:[%s15033_s0 + $0x3d0] sm:$0xf] }
 0x427   : > { %8562 = vmatpush.bf16.msrb.mxu2 %v13128_v7  ;;  %v12985_v7 = vld [vmem:[%s15033_s0 + $0x38c] sm:$0xf0]  ;;  %v12928_v12 = vor.u32 %v14237_v13, %v12925_v58  ;;  %v12831_v10 = vld [vmem:[%s15033_s0 + $0x240] sm:$0xf] }
 0x428   : > { %8575 = vmatpush.bf16.msrb.mxu3 %v13288_v19  ;;  %v17201_v1 = vpack.c.bf16 %v7035_v16, %v7035_v16  ;;  %v12988_v24 = vor.u32 %v14252_v45, %v12985_v7  ;;  %v14275_v45 = vld [vmem:[%s15033_s0 + $0x430] sm:$0xf0] }
 0x429   : > { %v7016_v5 = vpop.f32.mrf.mxu2 }
 0x42a   : > { %v7029_v19 = vpop.f32.mrf.mxu3  ;;  %8386 = vmatmul.bf16.vlgmr.msra.gmra.mxu0 %v17201_v1  ;;  %8451 = vmatmul.bf16.vlgmr.msrb.gmra.mxu1 %v17201_v1  ;;  %v12911_v5 = vld [vmem:[%s15033_s0 + $0x2e0] sm:$0xf] }
 0x42b   : > { %8563 = vmatpush.bf16.msrb.mxu2 %v13108_v33  ;;  %8482 = vmatpush.bf16.msra.mxu0 %v13004_v26  ;;  %v13151_v33 = vld [vmem:[%s15033_s0 + $0x4c0] sm:$0xf]  ;;  %v12903_v26 = vld [vmem:[%s15033_s0 + $0x2d8] sm:$0xf] }
 0x42c   : > { %8576 = vmatpush.bf16.msrb.mxu3 %v13268_v51  ;;  %8516 = vmatmul.bf16.vlgmr.msra.gmra.mxu2 %v17201_v1  ;;  %v14295_v51 = vld [vmem:[%s15033_s0 + $0x4d0] sm:$0xf0]  ;;  %v12904_v7 = vor.u32 %v14234_v27, %v12903_v26  ;;  %v12811_v27 = vld [vmem:[%s15033_s0 + $0x218] sm:$0xf] }
 0x42d   : > { %8547 = vmatpush.bf16.msrb.mxu1 %v13008_v3  ;;  %v13152_v8 = vor.u32 %v14295_v51, %v13151_v33  ;;  %v12905_v3 = vld [vmem:[%s15033_s0 + $0x2ec] sm:$0xf0]  ;;  %v12891_v51 = vld [vmem:[%s15033_s0 + $0x2b8] sm:$0xf]  ;;  %v14207_v26 = vld [vmem:[%s15033_s0 + $0x214] sm:$0xf] }
 0x42e   : > { %v12908_v19 = vor.u32 %v14232_v35, %v12905_v3  ;;  %v14210_v35 = vld [vmem:[%s15033_s0 + $0x228] sm:$0xf0] }
 0x42f   : > { %8564 = vmatpush.bf16.msrb.mxu2 %v13088_v21  ;;  %8483 = vmatpush.bf16.msra.mxu0 %v12984_v14  ;;  %v12964_v21 = vor.u32 %v14249_v20, %v12963_v32  ;;  %v12885_v14 = vld [vmem:[%s15033_s0 + $0x2c4] sm:$0xf0]  ;;  %v14230_v20 = vld [vmem:[%s15033_s0 + $0x2c8] sm:$0xf0] }
 0x430   : > { %8577 = vmatpush.bf16.msrb.mxu3 %v13248_v18  ;;  %v14250_v18 = vld [vmem:[%s15033_s0 + $0x368] sm:$0xf0] }
 0x431   : > { %8548 = vmatpush.bf16.msrb.mxu1 %v12988_v24 }
 0x433   : > { %8565 = vmatpush.bf16.msrb.mxu2 %v13068_v47  ;;  %v12945_v47 = vld [vmem:[%s15033_s0 + $0x33c] sm:$0xf0]  ;;  %8484 = vmatpush.bf16.msra.mxu0 %v12964_v21 }
 0x434   : > { %8578 = vmatpush.bf16.msrb.mxu3 %v13228_v59  ;;  %v12972_v59 = vor.u32 %v14250_v18, %v12971_v37  ;;  %v12948_v48 = vor.u32 %v14242_v29, %v12945_v47  ;;  %v12888_v18 = vor.u32 %v14227_v25, %v12885_v14  ;;  %v12845_v29 = vld [vmem:[%s15033_s0 + $0x274] sm:$0xf0]  ;;  %v14200_v25 = vld [vmem:[%s15033_s0 + $0x1d8] sm:$0xf0] }
 0x435   : > { %8549 = vmatpush.bf16.msrb.mxu1 %v12968_v28  ;;  %v14222_v28 = vld [vmem:[%s15033_s0 + $0x28c] sm:$0xf]  ;;  %v12848_v13 = vor.u32 %v14217_v17, %v12845_v29  ;;  %v12705_v17 = vld [vmem:[%s15033_s0 + $0x15c] sm:$0xf0]  ;;  %v12711_v29 = vld [vmem:[%s15033_s0 + $0x150] sm:$0xf] }
 0x436   : > { %v12868_v44 = vor.u32 %v14222_v28, %v12865_v63  ;;  %v14182_v63 = vld [vmem:[%s15033_s0 + $0x14c] sm:$0xf] }
 0x437   : > { %8566 = vmatpush.bf16.msrb.mxu2 %v13048_v52  ;;  %v12931_v52 = vld [vmem:[%s15033_s0 + $0x308] sm:$0xf]  ;;  %8485 = vmatpush.bf16.msra.mxu0 %v12944_v6  ;;  %v14220_v6 = vld [vmem:[%s15033_s0 + $0x278] sm:$0xf0] }
 0x438   : > { %8579 = vmatpush.bf16.msrb.mxu3 %v13208_v46  ;;  %v14240_v46 = vld [vmem:[%s15033_s0 + $0x318] sm:$0xf0]  ;;  %v12852_v58 = vor.u32 %v14220_v6, %v12851_v36  ;;  %v12691_v36 = vld [vmem:[%s15033_s0 + $0x128] sm:$0xf] }
 0x439   : > { %8550 = vmatpush.bf16.msrb.mxu1 %v12948_v48  ;;  %v8335_v2 = vpop.f32.mrf.mxu0  ;;  %v12932_v23 = vor.u32 %v14240_v46, %v12931_v52  ;;  %v14265_v48 = vld [vmem:[%s15033_s0 + $0x3e0] sm:$0xf0]  ;;  %v12825_v46 = vld [vmem:[%s15033_s0 + $0x24c] sm:$0xf0]  ;;  %v14180_v6 = vld [vmem:[%s15033_s0 + $0x138] sm:$0xf0] }
 0x43a   : > { %v8348_v16 = vpop.f32.mrf.mxu1  ;;  %8438 = vmatmul.bf16.vlgmr.msrb.gmra.mxu0 %v16957_v0  ;;  %8503 = vmatmul.bf16.vlgmr.msra.gmra.mxu1 %v16957_v0  ;;  %v13032_v52 = vor.u32 %v14265_v48, %v13031_v42  ;;  %v12692_v42 = vor.u32 %v14180_v6, %v12691_v36  ;;  %v12671_v48 = vld [vmem:[%s15033_s0 + $0x100] sm:$0xf] }
 0x43b   : > { %8567 = vmatpush.bf16.msrb.mxu2 %v13028_v38  ;;  %v8349_v62 = vadd.f32 %v8348_v16, %v8335_v2  ;;  %v14235_v38 = vld [vmem:[%s15033_s0 + $0x2f0] sm:$0xf0]  ;;  %8486 = vmatpush.bf16.msra.mxu0 %v12924_v53 }
 0x43c   : > { %8580 = vmatpush.bf16.msrb.mxu3 %v13188_v39  ;;  %v13071_v39 = vld [vmem:[%s15033_s0 + $0x420] sm:$0xf]  ;;  %v12912_v41 = vor.u32 %v14235_v38, %v12911_v5  ;;  %v12791_v38 = vld [vmem:[%s15033_s0 + $0x1f0] sm:$0xf] }
 0x43d   : > { %8551 = vmatpush.bf16.msrb.mxu1 %v12928_v12  ;;  %v13072_v33 = vor.u32 %v14275_v45, %v13071_v39  ;;  %v12832_v12 = vor.u32 %v14215_v54, %v12831_v10  ;;  %v12785_v5 = vld [vmem:[%s15033_s0 + $0x1fc] sm:$0xf0]  ;;  %v14205_v39 = vld [vmem:[%s15033_s0 + $0x200] sm:$0xf0] }
 0x43e   : > { %8568 = vmatmul.bf16.vlgmr.msrb.gmra.mxu2 %v16957_v0  ;;  %v14165_v10 = vld [vmem:[%s15033_s0 + $0xc0] sm:$0xf0] }
 0x43f   : > { %8612 = vmatpush.bf16.msra.mxu2 %v13012_v11  ;;  %8581 = vmatmul.bf16.vlgmr.msrb.gmra.mxu3 %v17201_v1  ;;  %v12883_v11 = vld [vmem:[%s15033_s0 + $0x2b0] sm:$0xf] }
 0x440   : > { %8625 = vmatpush.bf16.msra.mxu3 %v13172_v31  ;;  %v14229_v31 = vld [vmem:[%s15033_s0 + $0x2c0] sm:$0xf0]  ;;  %8487 = vmatpush.bf16.msra.mxu0 %v12904_v7  ;;  %v12792_v7 = vor.u32 %v14205_v39, %v12791_v38  ;;  %v13331_v39 = vld [vmem:[%s15033_s0 + $0x628] sm:$0xf] }
 0x441   : > { %v8361_v24 = vpop.f32.mrf.mxu2  ;;  %8552 = vmatpush.bf16.msrb.mxu1 %v12908_v19  ;;  %v12884_v21 = vor.u32 %v14229_v31, %v12883_v11  ;;  %v14197_v19 = vld [vmem:[%s15033_s0 + $0x1c4] sm:$0xf]  ;;  %v12765_v11 = vld [vmem:[%s15033_s0 + $0x1d4] sm:$0xf0]  ;;  %v12771_v31 = vld [vmem:[%s15033_s0 + $0x1c8] sm:$0xf] }
 0x442   : > { %v8374_v32 = vpop.f32.mrf.mxu3  ;;  %v8350_v37 = vpop.f32.mrf.mxu1  ;;  %v12772_v14 = vor.u32 %v14200_v25, %v12771_v31  ;;  %v14145_v38 = vld [vmem:[%s15033_s0 + $0x20] sm:$0xf0]  ;;  %v14335_v31 = vld [vmem:[%s15033_s0 + $0x610] sm:$0xf0] }
 0x443   : > { %8613 = vmatpush.bf16.msra.mxu2 %v12992_v61  ;;  %v8362_v61 = vadd.f32 %v8361_v24, %v8349_v62  ;;  %v12805_v62 = vld [vmem:[%s15033_s0 + $0x224] sm:$0xf0]  ;;  %v14195_v24 = vld [vmem:[%s15033_s0 + $0x1b0] sm:$0xf0] }
 0x444   : > { %8626 = vmatpush.bf16.msra.mxu3 %v13152_v8  ;;  %v8337_v8 = vpop.f32.mrf.mxu0  ;;  %8488 = vmatpush.bf16.msra.mxu0 %v12884_v21  ;;  %v12808_v3 = vor.u32 %v14207_v26, %v12805_v62  ;;  %v14155_v26 = vld [vmem:[%s15033_s0 + $0x70] sm:$0xf0]  ;;  %v12571_v62 = vld [vmem:[%s15033_s0 + $0x38] sm:$0xf] }
 0x445   : > { %v17264_v47 = vadd.f32 %v8374_v32, %v8362_v61  ;;  %8553 = vmatpush.bf16.msrb.mxu1 %v12888_v18  ;;  %v12731_v61 = vld [vmem:[%s15033_s0 + $0x178] sm:$0xf]  ;;  %v14190_v8 = vld [vmem:[%s15033_s0 + $0x188] sm:$0xf0] }
 0x446   : > { %v12732_v28 = vor.u32 %v14190_v8, %v12731_v61  ;;  %v13231_v61 = vld [vmem:[%s15033_s0 + $0x560] sm:$0xf]  ;;  %v14315_v8 = vld [vmem:[%s15033_s0 + $0x570] sm:$0xf0] }
 0x447   : > { %8614 = vmatpush.bf16.msra.mxu2 %v12972_v59  ;;  %v12892_v59 = vor.u32 %v14230_v20, %v12891_v51  ;;  %v12751_v51 = vld [vmem:[%s15033_s0 + $0x1a0] sm:$0xf] }
 0x448   : > { %8627 = vmatpush.bf16.msra.mxu3 %v13132_v34  ;;  %v13052_v34 = vor.u32 %v14270_v49, %v13051_v56  ;;  %8489 = vmatpush.bf16.msra.mxu0 %v12864_v43  ;;  %v12752_v20 = vor.u32 %v14195_v24, %v12751_v51  ;;  %v14187_v56 = vld [vmem:[%s15033_s0 + $0x174] sm:$0xf]  ;;  %v12725_v49 = vld [vmem:[%s15033_s0 + $0x184] sm:$0xf0]  ;;  %v13271_v51 = vld [vmem:[%s15033_s0 + $0x5b0] sm:$0xf] }
 0x449   : > { %v8363_v2 = vpop.f32.mrf.mxu2  ;;  %8554 = vmatpush.bf16.msrb.mxu1 %v12868_v44  ;;  %v12728_v22 = vor.u32 %v14187_v56, %v12725_v49  ;;  %v14175_v43 = vld [vmem:[%s15033_s0 + $0x110] sm:$0xf0]  ;;  %v14325_v24 = vld [vmem:[%s15033_s0 + $0x5c0] sm:$0xf0]  ;;  %v14320_v56 = vld [vmem:[%s15033_s0 + $0x598] sm:$0xf0] }
 0x44a   : > { %v8376_v16 = vpop.f32.mrf.mxu3  ;;  %v12611_v2 = vld [vmem:[%s15033_s0 + $0x88] sm:$0xf] }
 0x44b   : > { %8615 = vmatpush.bf16.msra.mxu2 %v12952_v50  ;;  %v14212_v50 = vld [vmem:[%s15033_s0 + $0x23c] sm:$0xf]  ;;  %8490 = vmatmul.bf16.vlgmr.msra.gmra.mxu0 %v16955_v60 }
 0x44c   : > { %8628 = vmatpush.bf16.msra.mxu3 %v13112_v9  ;;  %v12872_v9 = vor.u32 %v14225_v57, %v12871_v40  ;;  %8534 = vmatpush.bf16.msrb.mxu0 %v12848_v13  ;;  %v12828_v53 = vor.u32 %v14212_v50, %v12825_v46  ;;  %v12708_v40 = vor.u32 %v14182_v63, %v12705_v17  ;;  %v12651_v50 = vld [vmem:[%s15033_s0 + $0xd8] sm:$0xf]  ;;  %v12631_v46 = vld [vmem:[%s15033_s0 + $0xb0] sm:$0xf]  ;;  %v14160_v16 = vld [vmem:[%s15033_s0 + $0x98] sm:$0xf0] }
 0x44d   : > { %8599 = vmatpush.bf16.msra.mxu1 %v12852_v58  ;;  %v12672_v58 = vor.u32 %v14175_v43, %v12671_v48  ;;  %v12632_v54 = vor.u32 %v14165_v10, %v12631_v46 }
 0x44e   : > { %8555 = vmatmul.bf16.vlgmr.msrb.gmra.mxu1 %v16955_v60 }
 0x44f   : > { %8616 = vmatpush.bf16.msra.mxu2 %v12932_v23  ;;  %v12812_v23 = vor.u32 %v14210_v35, %v12811_v27  ;;  %v14150_v27 = vld [vmem:[%s15033_s0 + $0x48] sm:$0xf0] }
 0x450   : > { %8629 = vmatpush.bf16.msra.mxu3 %v13092_v4  ;;  %8535 = vmatpush.bf16.msrb.mxu0 %v12828_v53  ;;  %v14202_v4 = vld [vmem:[%s15033_s0 + $0x1ec] sm:$0xf]  ;;  %v12612_v53 = vor.u32 %v14160_v16, %v12611_v2 }
 0x451   : > { %8600 = vmatpush.bf16.msra.mxu1 %v12832_v12  ;;  %v12788_v45 = vor.u32 %v14202_v4, %v12785_v5  ;;  %v12591_v12 = vld [vmem:[%s15033_s0 + $0x60] sm:$0xf]  ;;  %v12572_v4 = vor.u32 %v14150_v27, %v12571_v62  ;;  %v12551_v5 = vld [vmem:[%s15033_s0 + $0x10] sm:$0xf] }
 0x453   : > { %8617 = vmatpush.bf16.msra.mxu2 %v12912_v41  ;;  %v14192_v41 = vld [vmem:[%s15033_s0 + $0x19c] sm:$0xf] }
 0x454   : > { %8630 = vmatpush.bf16.msra.mxu3 %v13072_v33  ;;  %8536 = vmatpush.bf16.msrb.mxu0 %v12808_v3  ;;  %v12745_v33 = vld [vmem:[%s15033_s0 + $0x1ac] sm:$0xf0] }
 0x455   : > { %8601 = vmatpush.bf16.msra.mxu1 %v12812_v23  ;;  %v12748_v32 = vor.u32 %v14192_v41, %v12745_v33  ;;  %v14330_v41 = vld [vmem:[%s15033_s0 + $0x5e8] sm:$0xf0] }
 0x457   : > { %8618 = vmatpush.bf16.msra.mxu2 %v12892_v59  ;;  %v14185_v59 = vld [vmem:[%s15033_s0 + $0x160] sm:$0xf0] }
 0x458   : > { %8631 = vmatpush.bf16.msra.mxu3 %v13052_v34  ;;  %8537 = vmatpush.bf16.msrb.mxu0 %v12788_v45  ;;  %v12712_v57 = vor.u32 %v14185_v59, %v12711_v29  ;;  %v14340_v45 = vld [vmem:[%s15033_s0 + $0x638] sm:$0xf0] }
 0x459   : > { %8602 = vmatpush.bf16.msra.mxu1 %v12792_v7  ;;  %v12552_v7 = vor.u32 %v14145_v38, %v12551_v5  ;;  %v7036_v29 = vld [vmem:[#allocation2 + $0x8] sm:$0xff] }
 0x45b   : > { %8619 = vmatpush.bf16.msra.mxu2 %v12872_v9  ;;  %v14170_v9 = vld [vmem:[%s15033_s0 + $0xe8] sm:$0xf0] }
 0x45c   : > { %8632 = vmatpush.bf16.msra.mxu3 %v13032_v52  ;;  %v12652_v52 = vor.u32 %v14170_v9, %v12651_v50  ;;  %v7037_v9 = vld [vmem:[#allocation2] sm:$0xff] }
 0x45d   : > { %8603 = vmatpush.bf16.msra.mxu1 %v12772_v14  ;;  %v13291_v14 = vld [vmem:[%s15033_s0 + $0x5d8] sm:$0xf] }
 0x45e   : > { %8620 = vmatmul.bf16.vlgmr.msra.gmra.mxu2 %v16955_v60  ;;  %v8400_v60 = vpop.f32.mrf.mxu1  ;;  %v13292_v33 = vor.u32 %v14330_v41, %v13291_v14 }
 0x45f   : > { %8633 = vmatmul.bf16.vlgmr.msra.gmra.mxu3 %v16957_v0  ;;  %v12768_v0 = vor.u32 %v14197_v19, %v12765_v11  ;;  %v13332_v19 = vor.u32 %v14340_v45, %v13331_v39  ;;  %v13311_v11 = vld [vmem:[%s15033_s0 + $0x600] sm:$0xf] }
 0x461   : > { %8538 = vmatpush.bf16.msrb.mxu0 %v12768_v0  ;;  %v8413_v37 = vpop.f32.mrf.mxu2  ;;  %8604 = vmatpush.bf16.msra.mxu1 %v12752_v20  ;;  %v13312_v0 = vor.u32 %v14335_v31, %v13311_v11  ;;  %v13251_v20 = vld [vmem:[%s15033_s0 + $0x588] sm:$0xf]  ;;  %v7039_v31 = vld [vmem:[#allocation2 + $0x10] sm:$0xff] }
 0x462   : > { %v8426_v21 = vpop.f32.mrf.mxu3  ;;  %v8414_v18 = vadd.f32 %v8413_v37, %v8400_v60  ;;  %v13252_v49 = vor.u32 %v14320_v56, %v13251_v20  ;;  %v13232_v37 = vor.u32 %v14315_v8, %v13231_v61 }
 0x464   : > { %v17304_v34 = vadd.f32 %v8426_v21, %v8414_v18  ;;  %v13211_v21 = vld [vmem:[%s15033_s0 + $0x538] sm:$0xf]  ;;  %v14310_v18 = vld [vmem:[%s15033_s0 + $0x548] sm:$0xf0] }
 0x465   : > { %8539 = vmatpush.bf16.msrb.mxu0 %v12748_v32  ;;  %8605 = vmatpush.bf16.msra.mxu1 %v12732_v28  ;;  %v13272_v32 = vor.u32 %v14325_v24, %v13271_v51  ;;  %v14305_v28 = vld [vmem:[%s15033_s0 + $0x520] sm:$0xf0] }
 0x466   : > { %v8402_v15 = vpop.f32.mrf.mxu1 }
 0x467   : > { %v13212_v15 = vor.u32 %v14310_v18, %v13211_v21 }
 0x469   : > { %8540 = vmatpush.bf16.msrb.mxu0 %v12728_v22  ;;  %v8415_v44 = vpop.f32.mrf.mxu2  ;;  %8606 = vmatpush.bf16.msra.mxu1 %v12712_v57  ;;  %v13191_v22 = vld [vmem:[%s15033_s0 + $0x510] sm:$0xf] }
 0x46a   : > { %v8428_v13 = vpop.f32.mrf.mxu3  ;;  %v13192_v63 = vor.u32 %v14305_v28, %v13191_v22 }
 0x46c   : > { %8607 = vmatmul.bf16.vlgmr.msra.gmra.mxu1 %v16953_v30 }
 0x46d   : > { %8541 = vmatpush.bf16.msrb.mxu0 %v12708_v40 }
 0x470   : > { %8542 = vmatmul.bf16.vlgmr.msrb.gmra.mxu0 %v16953_v30  ;;  %v12592_v30 = vor.u32 %v14155_v26, %v12591_v12 }
 0x471   : > { %8586 = vmatpush.bf16.msra.mxu0 %v12692_v42 }
 0x475   : > { %8587 = vmatpush.bf16.msra.mxu0 %v12672_v58 }
 0x479   : > { %8588 = vmatpush.bf16.msra.mxu0 %v12652_v52 }
 0x47d   : > { %8589 = vmatpush.bf16.msra.mxu0 %v12632_v54 }
 0x481   : > { %8590 = vmatpush.bf16.msra.mxu0 %v12612_v53  ;;  %v8465_v35 = vpop.f32.mrf.mxu2 }
 0x482   : > { %v8478_v3 = vpop.f32.mrf.mxu3 }
 0x483   : > { %v17322_v23 = vadd.f32 %v8478_v3, %v8465_v35 }
 0x485   : > { %8591 = vmatpush.bf16.msra.mxu0 %v12592_v30  ;;  %v7038_v30 = vld [vmem:[#allocation2 + $0x20] sm:$0xff] }
 0x489   : > { %8592 = vmatpush.bf16.msra.mxu0 %v12572_v4  ;;  %v8467_v25 = vpop.f32.mrf.mxu2 }
 0x48a   : > { %v8480_v60 = vpop.f32.mrf.mxu3 }
 0x48d   : > { %8593 = vmatpush.bf16.msra.mxu0 %v12552_v7 }
 0x490   : > { %8594 = vmatmul.bf16.vlgmr.msra.gmra.mxu0 %v16951_v55 }
 0x491   : > { %8638 = vmatpush.bf16.msrb.mxu0 %v13332_v19 }
 0x495   : > { %8639 = vmatpush.bf16.msrb.mxu0 %v13312_v0 }
 0x499   : > { %8640 = vmatpush.bf16.msrb.mxu0 %v13292_v33 }
 0x49d   : > { %8641 = vmatpush.bf16.msrb.mxu0 %v13272_v32  ;;  %v7040_v32 = vld [vmem:[#allocation2 + $0x18] sm:$0xff] }
 0x4a1   : > { %8642 = vmatpush.bf16.msrb.mxu0 %v13252_v49 }
 0x4a2   : > { %v8530_v55 = vpop.f32.mrf.mxu3 }
 0x4a5   : > { %8643 = vmatpush.bf16.msrb.mxu0 %v13232_v37 }
 0x4a7   : > { %v8387_v59 = vpop.f32.mrf.mxu0  ;;  %v8452_v36 = vpop.f32.mrf.mxu1 }
 0x4a8   : > { %v8388_v6 = vadd.f32 %v8387_v59, %v17264_v47 }
 0x4a9   : > { %8644 = vmatpush.bf16.msrb.mxu0 %v13212_v15 }
 0x4aa   : > { %v8532_v17 = vpop.f32.mrf.mxu3  ;;  %v8651_v40 = vadd.f32 %v8388_v6, %v7036_v29 }
 0x4ac   : > { %8656 = vst [vmem:[#allocation2 + $0x8] sm:$0xff] %v8651_v40 }
 0x4ad   : > { %8645 = vmatpush.bf16.msrb.mxu0 %v13192_v63 }
 0x4af   : > { %v8517_v57 = vpop.f32.mrf.mxu2  ;;  %v8389_v42 = vpop.f32.mrf.mxu0 }
 0x4b0   : > { %8646 = vmatmul.bf16.vlgmr.msrb.gmra.mxu0 %v17201_v1  ;;  %v8454_v48 = vpop.f32.mrf.mxu1 }
 0x4b7   : > { %v8519_v44 = vpop.f32.mrf.mxu2  ;;  %v8439_v13 = vpop.f32.mrf.mxu0 }
 0x4b8   : > { %v8504_v58 = vpop.f32.mrf.mxu1  ;;  %v8440_v50 = vadd.f32 %v8439_v13, %v17304_v34 }
 0x4ba   : > { %v8453_v52 = vadd.f32 %v8452_v36, %v8440_v50 }
 0x4bc   : > { %v8652_v1 = vadd.f32 %v8453_v52, %v7037_v9 }
 0x4be   : > { %8657 = vst [vmem:[#allocation2] sm:$0xff] %v8652_v1 }
 0x4bf   : > { %v8441_v54 = vpop.f32.mrf.mxu0 }
 0x4c0   : > { %v8506_v2 = vpop.f32.mrf.mxu1 }
 0x4c1   : > { %v8569_v10 = vpop.f32.mrf.mxu2 }
 0x4c2   : > { %v8582_v43 = vpop.f32.mrf.mxu3 }
 0x4c8   : > { %v8491_v16 = vpop.f32.mrf.mxu0 }
 0x4c9   : > { %v8571_v47 = vpop.f32.mrf.mxu2  ;;  %v8492_v53 = vadd.f32 %v8491_v16, %v17322_v23 }
 0x4ca   : > { %v8584_v46 = vpop.f32.mrf.mxu3 }
 0x4cb   : > { %v8556_v12 = vpop.f32.mrf.mxu1  ;;  %v8505_v26 = vadd.f32 %v8504_v58, %v8492_v53 }
 0x4cd   : > { %v8518_v62 = vadd.f32 %v8517_v57, %v8505_v26 }
 0x4cf   : > { %v8653_v27 = vadd.f32 %v8518_v62, %v7038_v30 }
 0x4d0   : > { %v8493_v35 = vpop.f32.mrf.mxu0 }
 0x4d1   : > { %8658 = vst [vmem:[#allocation2 + $0x20] sm:$0xff] %v8653_v27 }
 0x4d3   : > { %v8558_v34 = vpop.f32.mrf.mxu1 }
 0x4e1   : > { %v8621_v3 = vpop.f32.mrf.mxu2 }
 0x4e2   : > { %v8634_v4 = vpop.f32.mrf.mxu3 }
 0x4e9   : > { %v8623_v5 = vpop.f32.mrf.mxu2  ;;  %v8608_v45 = vpop.f32.mrf.mxu1 }
 0x4ea   : > { %v8636_v38 = vpop.f32.mrf.mxu3 }
 0x4ed   : > { %v8543_v39 = vpop.f32.mrf.mxu0 }
 0x4ee   : > { %v8544_v7 = vadd.f32 %v8543_v39, %v8530_v55 }
 0x4f0   : > { %v8557_v19 = vadd.f32 %v8556_v12, %v8544_v7 }
 0x4f1   : > { %v8610_v60 = vpop.f32.mrf.mxu1 }
 0x4f2   : > { %v8570_v11 = vadd.f32 %v8569_v10, %v8557_v19 }
 0x4f4   : > { %v8583_v25 = vadd.f32 %v8582_v43, %v8570_v11 }
 0x4f5   : > { %v8545_v23 = vpop.f32.mrf.mxu0 }
 0x4f6   : > { %v8654_v0 = vadd.f32 %v8583_v25, %v7039_v31 }
 0x4f8   : > { %8659 = vst [vmem:[#allocation2 + $0x10] sm:$0xff] %v8654_v0 }
 0x50d   : > { %v8595_v14 = vpop.f32.mrf.mxu0 }
 0x50e   : > { %v8609_v41 = vadd.f32 %v8608_v45, %v8595_v14 }
 0x510   : > { %v8622_v33 = vadd.f32 %v8621_v3, %v8609_v41 }
 0x512   : > { %v8635_v51 = vadd.f32 %v8634_v4, %v8622_v33 }
 0x515   : > { %v8597_v24 = vpop.f32.mrf.mxu0 }
 0x52d   : > { %v8647_v20 = vpop.f32.mrf.mxu0 }
 0x52e   : > { %v8648_v56 = vadd.f32 %v8647_v20, %v8635_v51 }
 0x530   : > { %v8655_v49 = vadd.f32 %v8648_v56, %v7040_v32 }
 0x531   : > { %8664 = sbr.rel (%p13333_p1) target bundleno = 1833 (0x729), region = 104 }
 0x532   : > { %8660 = vst [vmem:[#allocation2 + $0x18] sm:$0xff] %v8655_v49 }
 0x535   : > { %v8649_v61 = vpop.f32.mrf.mxu0 }
 0x536   : > { %v8722_v8 = vld [vmem:[%s17967_s5 + $0xf0] sm:$0xff]  ;;  %v8720_v37 = vld [vmem:[%s17967_s5 + $0xe0] sm:$0xff]  ;;  %v8723_v33 = vld [vmem:[%s17967_s5 + $0xf8] sm:$0xff]  ;;  %vm9084_vm0 = vcmask 261120   ;;  %vm9138_vm1 = vcmask 326656   ;;  %vm9162_vm2 = vcmask 48128  }
 0x537   : > { %v8754_v21 = vld [vmem:[%s17967_s5 + $0x1f0] sm:$0xff]  ;;  %8858 = vmatpush.msra.mxu0 %v8722_v8  ;;  %v8752_v18 = vld [vmem:[%s17967_s5 + $0x1e0] sm:$0xff]  ;;  %v8721_v20 = vld [vmem:[%s17967_s5 + $0xe8] sm:$0xff] }
 0x538   : > { %8878 = vmatpush.msra.mxu1 %v8754_v21  ;;  %v8718_v55 = vld [vmem:[%s17967_s5 + $0xd0] sm:$0xff]  ;;  %v8716_v22 = vld [vmem:[%s17967_s5 + $0xc0] sm:$0xff]  ;;  %v8719_v8 = vld [vmem:[%s17967_s5 + $0xd8] sm:$0xff] }
 0x539   : > { %v8750_v15 = vld [vmem:[%s17967_s5 + $0x1d0] sm:$0xff]  ;;  %8859 = vmatpush.msra.mxu0 %v8720_v37  ;;  %v8748_v28 = vld [vmem:[%s17967_s5 + $0x1c0] sm:$0xff] }
 0x53a   : > { %8879 = vmatpush.msra.mxu1 %v8752_v18  ;;  %v8714_v63 = vld [vmem:[%s17967_s5 + $0xb0] sm:$0xff]  ;;  %v8712_v29 = vld [vmem:[%s17967_s5 + $0xa0] sm:$0xff] }
 0x53b   : > { %8860 = vmatpush.msra.mxu0 %v8718_v55  ;;  %v8746_v17 = vld [vmem:[%s17967_s5 + $0x1b0] sm:$0xff]  ;;  %v8744_v36 = vld [vmem:[%s17967_s5 + $0x1a0] sm:$0xff] }
 0x53c   : > { %8880 = vmatpush.msra.mxu1 %v8750_v15  ;;  %v8786_v59 = vld [vmem:[%s17967_s5 + $0x2f0] sm:$0xff]  ;;  %v8784_v6 = vld [vmem:[%s17967_s5 + $0x2e0] sm:$0xff]  ;;  %v8717_v15 = vld [vmem:[%s17967_s5 + $0xc8] sm:$0xff] }
 0x53d   : > { %8861 = vmatpush.msra.mxu0 %v8716_v22  ;;  %8898 = vmatpush.msra.mxu2 %v8786_v59  ;;  %v8818_v40 = vld [vmem:[%s17967_s5 + $0x3f0] sm:$0xff]  ;;  %v8816_v42 = vld [vmem:[%s17967_s5 + $0x3e0] sm:$0xff]  ;;  %v8755_v59 = vld [vmem:[%s17967_s5 + $0x1f8] sm:$0xff] }
 0x53e   : > { %8881 = vmatpush.msra.mxu1 %v8748_v28  ;;  %v8782_v57 = vld [vmem:[%s17967_s5 + $0x2d0] sm:$0xff]  ;;  %8918 = vmatpush.msra.mxu3 %v8818_v40  ;;  %v8780_v44 = vld [vmem:[%s17967_s5 + $0x2c0] sm:$0xff] }
 0x53f   : > { %8862 = vmatpush.msra.mxu0 %v8714_v63  ;;  %v8710_v48 = vld [vmem:[%s17967_s5 + $0x90] sm:$0xff]  ;;  %8899 = vmatpush.msra.mxu2 %v8784_v6  ;;  %v8708_v58 = vld [vmem:[%s17967_s5 + $0x80] sm:$0xff] }
 0x540   : > { %8882 = vmatpush.msra.mxu1 %v8746_v17  ;;  %v8742_v43 = vld [vmem:[%s17967_s5 + $0x190] sm:$0xff]  ;;  %v8740_v50 = vld [vmem:[%s17967_s5 + $0x180] sm:$0xff]  ;;  %8919 = vmatpush.msra.mxu3 %v8816_v42  ;;  %v8715_v17 = vld [vmem:[%s17967_s5 + $0xb8] sm:$0xff] }
 0x541   : > { %8863 = vmatpush.msra.mxu0 %v8712_v29  ;;  %v8814_v13 = vld [vmem:[%s17967_s5 + $0x3d0] sm:$0xff]  ;;  %8900 = vmatpush.msra.mxu2 %v8782_v57  ;;  %v8812_v52 = vld [vmem:[%s17967_s5 + $0x3c0] sm:$0xff]  ;;  %v8713_v57 = vld [vmem:[%s17967_s5 + $0xa8] sm:$0xff] }
 0x542   : > { %8883 = vmatpush.msra.mxu1 %v8744_v36  ;;  %v8778_v9 = vld [vmem:[%s17967_s5 + $0x2b0] sm:$0xff]  ;;  %8920 = vmatpush.msra.mxu3 %v8814_v13  ;;  %v8776_v10 = vld [vmem:[%s17967_s5 + $0x2a0] sm:$0xff] }
 0x543   : > { %8864 = vmatpush.msra.mxu0 %v8710_v48  ;;  %v8706_v46 = vld [vmem:[%s17967_s5 + $0x70] sm:$0xff]  ;;  %8901 = vmatpush.msra.mxu2 %v8780_v44  ;;  %v8704_v2 = vld [vmem:[%s17967_s5 + $0x60] sm:$0xff]  ;;  %v8753_v48 = vld [vmem:[%s17967_s5 + $0x1e8] sm:$0xff] }
 0x544   : > { %8884 = vmatpush.msra.mxu1 %v8742_v43  ;;  %v8738_v1 = vld [vmem:[%s17967_s5 + $0x170] sm:$0xff]  ;;  %v8736_v47 = vld [vmem:[%s17967_s5 + $0x160] sm:$0xff]  ;;  %8921 = vmatpush.msra.mxu3 %v8812_v52  ;;  %v8787_v43 = vld [vmem:[%s17967_s5 + $0x2f8] sm:$0xff] }
 0x545   : > { %8865 = vmatpush.msra.mxu0 %v8708_v58  ;;  %v8810_v54 = vld [vmem:[%s17967_s5 + $0x3b0] sm:$0xff]  ;;  %8902 = vmatpush.msra.mxu2 %v8778_v9  ;;  %v8808_v53 = vld [vmem:[%s17967_s5 + $0x3a0] sm:$0xff]  ;;  %v8665_v44 = vld [vmem:[#allocation2 + $0x8] sm:$0xff] }
 0x546   : > { %8885 = vmatpush.msra.mxu1 %v8740_v50  ;;  %v8774_v16 = vld [vmem:[%s17967_s5 + $0x290] sm:$0xff]  ;;  %8922 = vmatpush.msra.mxu3 %v8810_v54  ;;  %v8772_v30 = vld [vmem:[%s17967_s5 + $0x280] sm:$0xff]  ;;  %v8711_v58 = vld [vmem:[%s17967_s5 + $0x98] sm:$0xff] }
 0x547   : > { %8866 = vmatpush.msra.mxu0 %v8706_v46  ;;  %v8702_v12 = vld [vmem:[%s17967_s5 + $0x50] sm:$0xff]  ;;  %8903 = vmatpush.msra.mxu2 %v8776_v10  ;;  %v8700_v27 = vld [vmem:[%s17967_s5 + $0x40] sm:$0xff]  ;;  %v8751_v52 = vld [vmem:[%s17967_s5 + $0x1d8] sm:$0xff] }
 0x548   : > { %8886 = vmatpush.msra.mxu1 %v8738_v1  ;;  %v8734_v26 = vld [vmem:[%s17967_s5 + $0x150] sm:$0xff]  ;;  %v8732_v35 = vld [vmem:[%s17967_s5 + $0x140] sm:$0xff]  ;;  %8923 = vmatpush.msra.mxu3 %v8808_v53  ;;  %v8785_v46 = vld [vmem:[%s17967_s5 + $0x2e8] sm:$0xff] }
 0x549   : > { %8867 = vmatpush.msra.mxu0 %v8704_v2  ;;  %v8806_v62 = vld [vmem:[%s17967_s5 + $0x390] sm:$0xff]  ;;  %8904 = vmatpush.msra.mxu2 %v8774_v16  ;;  %v8804_v3 = vld [vmem:[%s17967_s5 + $0x380] sm:$0xff]  ;;  %v8709_v54 = vld [vmem:[%s17967_s5 + $0x88] sm:$0xff] }
 0x54a   : > { %8887 = vmatpush.msra.mxu1 %v8736_v47  ;;  %v8770_v34 = vld [vmem:[%s17967_s5 + $0x270] sm:$0xff]  ;;  %8924 = vmatpush.msra.mxu3 %v8806_v62  ;;  %v8768_v38 = vld [vmem:[%s17967_s5 + $0x260] sm:$0xff]  ;;  %v8749_v16 = vld [vmem:[%s17967_s5 + $0x1c8] sm:$0xff] }
 0x54b   : > { %8868 = vmatpush.msra.mxu0 %v8702_v12  ;;  %v8698_v4 = vld [vmem:[%s17967_s5 + $0x30] sm:$0xff]  ;;  %8905 = vmatpush.msra.mxu2 %v8772_v30  ;;  %v8696_v45 = vld [vmem:[%s17967_s5 + $0x20] sm:$0xff]  ;;  %v8783_v53 = vld [vmem:[%s17967_s5 + $0x2d8] sm:$0xff] }
 0x54c   : > { %8888 = vmatpush.msra.mxu1 %v8734_v26  ;;  %v8730_v5 = vld [vmem:[%s17967_s5 + $0x130] sm:$0xff]  ;;  %v8728_v7 = vld [vmem:[%s17967_s5 + $0x120] sm:$0xff]  ;;  %8925 = vmatpush.msra.mxu3 %v8804_v3  ;;  %v8707_v30 = vld [vmem:[%s17967_s5 + $0x78] sm:$0xff] }
 0x54d   : > { %8869 = vmatpush.msra.mxu0 %v8700_v27  ;;  %v8802_v39 = vld [vmem:[%s17967_s5 + $0x370] sm:$0xff]  ;;  %8906 = vmatpush.msra.mxu2 %v8770_v34  ;;  %v8800_v11 = vld [vmem:[%s17967_s5 + $0x360] sm:$0xff]  ;;  %v8705_v3 = vld [vmem:[%s17967_s5 + $0x68] sm:$0xff] }
 0x54e   : > { %8889 = vmatpush.msra.mxu1 %v8732_v35  ;;  %v8766_v19 = vld [vmem:[%s17967_s5 + $0x250] sm:$0xff]  ;;  %8926 = vmatpush.msra.mxu3 %v8802_v39  ;;  %v8764_v23 = vld [vmem:[%s17967_s5 + $0x240] sm:$0xff]  ;;  %v8781_v35 = vld [vmem:[%s17967_s5 + $0x2c8] sm:$0xff] }
 0x54f   : > { %8870 = vmatpush.msra.mxu0 %v8698_v4  ;;  %v8694_v31 = vld [vmem:[%s17967_s5 + $0x10] sm:$0xff]  ;;  %8907 = vmatpush.msra.mxu2 %v8768_v38  ;;  %v8692_v0 = vld [vmem:[%s17967_s5] sm:$0xff]  ;;  %v8747_v38 = vld [vmem:[%s17967_s5 + $0x1b8] sm:$0xff] }
 0x550   : > { %8890 = vmatpush.msra.mxu1 %v8730_v5  ;;  %v8726_v25 = vld [vmem:[%s17967_s5 + $0x110] sm:$0xff]  ;;  %v8724_v14 = vld [vmem:[%s17967_s5 + $0x100] sm:$0xff]  ;;  %8927 = vmatpush.msra.mxu3 %v8800_v11 }
 0x551   : > { %8871 = vmatpush.msra.mxu0 %v8696_v45  ;;  %v8798_v60 = vld [vmem:[%s17967_s5 + $0x350] sm:$0xff]  ;;  %8908 = vmatpush.msra.mxu2 %v8766_v19  ;;  %v8796_v24 = vld [vmem:[%s17967_s5 + $0x340] sm:$0xff]  ;;  %v8703_v45 = vld [vmem:[%s17967_s5 + $0x58] sm:$0xff] }
 0x552   : > { %8891 = vmatpush.msra.mxu1 %v8728_v7  ;;  %v8850_v41 = vld [vmem:[%s17967_s5 + $0x4f0] sm:$0xff]  ;;  %8928 = vmatpush.msra.mxu3 %v8798_v60  ;;  %v8848_v32 = vld [vmem:[%s17967_s5 + $0x4e0] sm:$0xff]  ;;  %v8745_v19 = vld [vmem:[%s17967_s5 + $0x1a8] sm:$0xff] }
 0x553   : > { %8872 = vmatpush.msra.mxu0 %v8694_v31  ;;  %8909 = vmatpush.msra.mxu2 %v8764_v23  ;;  %v8762_v51 = vld [vmem:[%s17967_s5 + $0x230] sm:$0xff]  ;;  %v8760_v56 = vld [vmem:[%s17967_s5 + $0x220] sm:$0xff]  ;;  %v8701_v31 = vld [vmem:[%s17967_s5 + $0x48] sm:$0xff] }
 0x554   : > { %8892 = vmatpush.msra.mxu1 %v8726_v25  ;;  %v8794_v49 = vld [vmem:[%s17967_s5 + $0x330] sm:$0xff]  ;;  %8929 = vmatpush.msra.mxu3 %v8796_v24  ;;  %v8792_v21 = vld [vmem:[%s17967_s5 + $0x320] sm:$0xff]  ;;  %v8779_v23 = vld [vmem:[%s17967_s5 + $0x2b8] sm:$0xff] }
 0x555   : > { %8873 = vmatpush.msra.mxu0 %v8692_v0  ;;  %v8846_v61 = vld [vmem:[%s17967_s5 + $0x4d0] sm:$0xff]  ;;  %8910 = vmatpush.msra.mxu2 %v8762_v51  ;;  %v8844_v55 = vld [vmem:[%s17967_s5 + $0x4c0] sm:$0xff]  ;;  %v8777_v51 = vld [vmem:[%s17967_s5 + $0x2a8] sm:$0xff] }
 0x556   : > { %8893 = vmatpush.msra.mxu1 %v8724_v14  ;;  %v8758_v37 = vld [vmem:[%s17967_s5 + $0x210] sm:$0xff]  ;;  %8930 = vmatpush.msra.mxu3 %v8794_v49  ;;  %v8756_v22 = vld [vmem:[%s17967_s5 + $0x200] sm:$0xff]  ;;  %v8699_v14 = vld [vmem:[%s17967_s5 + $0x38] sm:$0xff] }
 0x557   : > { %8938 = vmatpush.msrb.mxu0 %v8850_v41  ;;  %v17549_v18 = vld [vmem:[#allocation11] sm:$0x1f]  ;;  %8911 = vmatpush.msra.mxu2 %v8760_v56  ;;  %v8788_v36 = vld [vmem:[%s17967_s5 + $0x300] sm:$0xff]  ;;  %v8669_v41 = vld [vmem:[#allocation2 + $0x18] sm:$0xff] }
 0x558   : > { %8958 = vmatpush.msrb.mxu1 %v8723_v33  ;;  %v8790_v28 = vld [vmem:[%s17967_s5 + $0x310] sm:$0xff]  ;;  %8931 = vmatpush.msra.mxu3 %v8792_v21  ;;  %v8674_v29 = vperm.slane %v17549_v18, 2  ;;  %v8667_v6 = vld [vmem:[#allocation2 + $0x20] sm:$0xff]  ;;  %v8672_v42 = vperm.slane %v17549_v18, 0  ;;  %v8675_v9 = vperm.slane %v17549_v18, 3  ;;  %v8673_v47 = vperm.slane %v17549_v18, 1 }
 0x559   : > { %8939 = vmatpush.msrb.mxu0 %v8848_v32  ;;  %v8842_v63 = vld [vmem:[%s17967_s5 + $0x4b0] sm:$0xff]  ;;  %8912 = vmatpush.msra.mxu2 %v8758_v37  ;;  %v8840_v40 = vld [vmem:[%s17967_s5 + $0x4a0] sm:$0xff]  ;;  %v8676_v60 = vperm.slane %v17549_v18, 4  ;;  %v8743_v33 = vld [vmem:[%s17967_s5 + $0x198] sm:$0xff] }
 0x55a   : > { %8959 = vmatpush.msrb.mxu1 %v8721_v20  ;;  %8932 = vmatpush.msra.mxu3 %v8790_v28  ;;  %v8838_v13 = vld [vmem:[%s17967_s5 + $0x490] sm:$0xff]  ;;  %v17595_v50 = vadd.f32 %v8674_v29, %v8667_v6  ;;  %v8836_v10 = vld [vmem:[%s17967_s5 + $0x480] sm:$0xff]  ;;  %v17610_v2 = vadd.f32 %v8672_v42, %v8665_v44  ;;  %v8697_v32 = vld [vmem:[%s17967_s5 + $0x28] sm:$0xff] }
 0x55b   : > { %8940 = vmatpush.msrb.mxu0 %v8846_v61  ;;  %8913 = vmatpush.msra.mxu2 %v8756_v22  ;;  %v8668_v1 = vld [vmem:[#allocation2 + $0x10] sm:$0xff]  ;;  %v8666_v12 = vld [vmem:[#allocation2] sm:$0xff]  ;;  %v8741_v20 = vld [vmem:[%s17967_s5 + $0x188] sm:$0xff]  ;;  %v17696_v49 = vadd.f32 %v8676_v60, %v8669_v41 }
 0x55c   : > { %8960 = vmatpush.msrb.mxu1 %v8719_v8  ;;  %8933 = vmatpush.msra.mxu3 %v8788_v36  ;;  %v8834_v26 = vld [vmem:[%s17967_s5 + $0x470] sm:$0xff]  ;;  %v8689_v62 = vmax.f32 %v17595_v50, 0.0  ;;  %v17626_v27 = vadd.f32 %v8675_v9, %v8668_v1  ;;  %v8832_v34 = vld [vmem:[%s17967_s5 + $0x460] sm:$0xff]  ;;  %v8687_v4 = vmax.f32 %v17610_v2, 0.0  ;;  %v17638_v5 = vadd.f32 %v8673_v47, %v8666_v12  ;;  %v8775_v56 = vld [vmem:[%s17967_s5 + $0x298] sm:$0xff] }
 0x55d   : > { %8941 = vmatpush.msrb.mxu0 %v8844_v55  ;;  %8978 = vmatpush.msrb.mxu2 %v8755_v59  ;;  %v8830_v39 = vld [vmem:[%s17967_s5 + $0x450] sm:$0xff]  ;;  %v8828_v11 = vld [vmem:[%s17967_s5 + $0x440] sm:$0xff]  ;;  %v8695_v8 = vld [vmem:[%s17967_s5 + $0x18] sm:$0xff]  ;;  %v8691_v28 = vmax.f32 %v17696_v49, 0.0 }
 0x55e   : > { %8961 = vmatpush.msrb.mxu1 %v8717_v15  ;;  %8998 = vmatpush.msrb.mxu3 %v8787_v43  ;;  %v8690_v7 = vmax.f32 %v17626_v27, 0.0  ;;  %v8688_v25 = vmax.f32 %v17638_v5, 0.0  ;;  %v8826_v0 = vld [vmem:[%s17967_s5 + $0x430] sm:$0xff]  ;;  %v8824_v24 = vld [vmem:[%s17967_s5 + $0x420] sm:$0xff]  ;;  %v8739_v37 = vld [vmem:[%s17967_s5 + $0x178] sm:$0xff] }
 0x55f   : > { %8942 = vmatpush.msrb.mxu0 %v8842_v63  ;;  %8979 = vmatpush.msrb.mxu2 %v8753_v48  ;;  %v8822_v61 = vld [vmem:[%s17967_s5 + $0x410] sm:$0xff]  ;;  %v8773_v21 = vld [vmem:[%s17967_s5 + $0x288] sm:$0xff]  ;;  %v8820_v18 = vld [vmem:[%s17967_s5 + $0x400] sm:$0xff] }
 0x560   : > { %8962 = vmatpush.msrb.mxu1 %v8715_v17  ;;  %8999 = vmatpush.msrb.mxu3 %v8785_v46  ;;  %v8693_v55 = vld [vmem:[%s17967_s5 + $0x8] sm:$0xff]  ;;  %v8819_v15 = vld [vmem:[%s17967_s5 + $0x3f8] sm:$0xff]  ;;  %v9074_v5 = vld [vmem:[%s17969_s7 + $0x70] sm:$0xff] }
 0x561   : > { %8943 = vmatpush.msrb.mxu0 %v8840_v40  ;;  %8980 = vmatpush.msrb.mxu2 %v8751_v52  ;;  %v8851_v22 = vld [vmem:[%s17967_s5 + $0x4f8] sm:$0xff]  ;;  %v8737_v63 = vld [vmem:[%s17967_s5 + $0x168] sm:$0xff] }
 0x562   : > { %8963 = vmatpush.msrb.mxu1 %v8713_v57  ;;  %9000 = vmatpush.msrb.mxu3 %v8783_v53  ;;  %v8817_v17 = vld [vmem:[%s17967_s5 + $0x3e8] sm:$0xff]  ;;  %v8771_v59 = vld [vmem:[%s17967_s5 + $0x278] sm:$0xff] }
 0x563   : > { %8944 = vmatpush.msrb.mxu0 %v8838_v13  ;;  %8981 = vmatpush.msrb.mxu2 %v8749_v16  ;;  %v8849_v29 = vld [vmem:[%s17967_s5 + $0x4e8] sm:$0xff]  ;;  %v8735_v36 = vld [vmem:[%s17967_s5 + $0x158] sm:$0xff] }
 0x564   : > { %8964 = vmatpush.msrb.mxu1 %v8711_v58  ;;  %8914 = vmatmul.f32.vlgmr.msra.gmra.mxu2 %v8689_v62  ;;  %v8815_v6 = vld [vmem:[%s17967_s5 + $0x3d8] sm:$0xff]  ;;  %v8769_v57 = vld [vmem:[%s17967_s5 + $0x268] sm:$0xff] }
 0x565   : > { %8945 = vmatpush.msrb.mxu0 %v8836_v10  ;;  %9001 = vmatpush.msrb.mxu3 %v8781_v35  ;;  %v8847_v40 = vld [vmem:[%s17967_s5 + $0x4d8] sm:$0xff]  ;;  %v8733_v42 = vld [vmem:[%s17967_s5 + $0x148] sm:$0xff] }
 0x566   : > { %8965 = vmatpush.msrb.mxu1 %v8709_v54  ;;  %8982 = vmatpush.msrb.mxu2 %v8747_v38  ;;  %v8813_v48 = vld [vmem:[%s17967_s5 + $0x3c8] sm:$0xff]  ;;  %v8767_v44 = vld [vmem:[%s17967_s5 + $0x258] sm:$0xff] }
 0x567   : > { %8946 = vmatpush.msrb.mxu0 %v8834_v26  ;;  %8934 = vmatmul.f32.vlgmr.msra.gmra.mxu3 %v8690_v7  ;;  %v8845_v43 = vld [vmem:[%s17967_s5 + $0x4c8] sm:$0xff]  ;;  %v8731_v13 = vld [vmem:[%s17967_s5 + $0x138] sm:$0xff] }
 0x568   : > { %8966 = vmatpush.msrb.mxu1 %v8707_v30  ;;  %8874 = vmatmul.f32.vlgmr.msra.gmra.mxu0 %v8687_v4  ;;  %v8811_v58 = vld [vmem:[%s17967_s5 + $0x3b8] sm:$0xff]  ;;  %v8765_v52 = vld [vmem:[%s17967_s5 + $0x248] sm:$0xff] }
 0x569   : > { %8947 = vmatpush.msrb.mxu0 %v8832_v34  ;;  %8983 = vmatpush.msrb.mxu2 %v8745_v19  ;;  %v8843_v9 = vld [vmem:[%s17967_s5 + $0x4b8] sm:$0xff]  ;;  %v8729_v46 = vld [vmem:[%s17967_s5 + $0x128] sm:$0xff] }
 0x56a   : > { %8967 = vmatpush.msrb.mxu1 %v8705_v3  ;;  %9002 = vmatpush.msrb.mxu3 %v8779_v23  ;;  %v8809_v1 = vld [vmem:[%s17967_s5 + $0x3a8] sm:$0xff]  ;;  %v8763_v54 = vld [vmem:[%s17967_s5 + $0x238] sm:$0xff] }
 0x56b   : > { %8948 = vmatpush.msrb.mxu0 %v8830_v39  ;;  %8894 = vmatmul.f32.vlgmr.msra.gmra.mxu1 %v8688_v25  ;;  %v8841_v10 = vld [vmem:[%s17967_s5 + $0x4a8] sm:$0xff]  ;;  %v8727_v47 = vld [vmem:[%s17967_s5 + $0x118] sm:$0xff] }
 0x56c   : > { %8968 = vmatpush.msrb.mxu1 %v8703_v45  ;;  %8984 = vmatpush.msrb.mxu2 %v8743_v33  ;;  %v8807_v16 = vld [vmem:[%s17967_s5 + $0x398] sm:$0xff]  ;;  %v8761_v12 = vld [vmem:[%s17967_s5 + $0x228] sm:$0xff] }
 0x56d   : > { %8949 = vmatpush.msrb.mxu0 %v8828_v11  ;;  %9003 = vmatpush.msrb.mxu3 %v8777_v51  ;;  %v8839_v53 = vld [vmem:[%s17967_s5 + $0x498] sm:$0xff]  ;;  %v8725_v26 = vld [vmem:[%s17967_s5 + $0x108] sm:$0xff] }
 0x56e   : > { %8969 = vmatpush.msrb.mxu1 %v8701_v31  ;;  %8985 = vmatpush.msrb.mxu2 %v8741_v20  ;;  %v8805_v30 = vld [vmem:[%s17967_s5 + $0x388] sm:$0xff]  ;;  %v8759_v34 = vld [vmem:[%s17967_s5 + $0x218] sm:$0xff] }
 0x56f   : > { %8950 = vmatpush.msrb.mxu0 %v8826_v0  ;;  %9004 = vmatpush.msrb.mxu3 %v8775_v56  ;;  %v8837_v35 = vld [vmem:[%s17967_s5 + $0x488] sm:$0xff]  ;;  %v8803_v3 = vld [vmem:[%s17967_s5 + $0x378] sm:$0xff] }
 0x570   : > { %8970 = vmatpush.msrb.mxu1 %v8699_v14  ;;  %8986 = vmatpush.msrb.mxu2 %v8739_v37  ;;  %v8835_v38 = vld [vmem:[%s17967_s5 + $0x478] sm:$0xff]  ;;  %v8757_v39 = vld [vmem:[%s17967_s5 + $0x208] sm:$0xff]  ;;  %v9066_v37 = vld [vmem:[%s17969_s7 + $0x30] sm:$0xff] }
 0x571   : > { %8951 = vmatpush.msrb.mxu0 %v8824_v24  ;;  %9005 = vmatpush.msrb.mxu3 %v8773_v21  ;;  %v8801_v45 = vld [vmem:[%s17967_s5 + $0x368] sm:$0xff]  ;;  %v9075_v11 = vld [vmem:[%s17969_s7 + $0x78] sm:$0xff]  ;;  %v9070_v24 = vld [vmem:[%s17969_s7 + $0x50] sm:$0xff] }
 0x572   : > { %8971 = vmatpush.msrb.mxu1 %v8697_v32  ;;  %8987 = vmatpush.msrb.mxu2 %v8737_v63  ;;  %v8833_v19 = vld [vmem:[%s17967_s5 + $0x468] sm:$0xff]  ;;  %v8799_v31 = vld [vmem:[%s17967_s5 + $0x358] sm:$0xff]  ;;  %v9062_v21 = vld [vmem:[%s17969_s7 + $0x10] sm:$0xff] }
 0x573   : > { %8952 = vmatpush.msrb.mxu0 %v8822_v61  ;;  %9006 = vmatpush.msrb.mxu3 %v8771_v59  ;;  %v8831_v23 = vld [vmem:[%s17967_s5 + $0x458] sm:$0xff]  ;;  %v8829_v60 = vld [vmem:[%s17967_s5 + $0x448] sm:$0xff]  ;;  %v9068_v61 = vld [vmem:[%s17969_s7 + $0x40] sm:$0xff] }
 0x574   : > { %8972 = vmatpush.msrb.mxu1 %v8695_v8  ;;  %8988 = vmatpush.msrb.mxu2 %v8735_v36  ;;  %v9073_v2 = vld [vmem:[%s17969_s7 + $0x68] sm:$0xff]  ;;  %v8827_v50 = vld [vmem:[%s17967_s5 + $0x438] sm:$0xff] }
 0x575   : > { %8953 = vmatpush.msrb.mxu0 %v8820_v18  ;;  %9007 = vmatpush.msrb.mxu3 %v8769_v57  ;;  %v8793_v0 = vld [vmem:[%s17967_s5 + $0x328] sm:$0xff]  ;;  %v9071_v41 = vld [vmem:[%s17969_s7 + $0x58] sm:$0xff] }
 0x576   : > { %8973 = vmatpush.msrb.mxu1 %v8693_v55  ;;  %8954 = vmatmul.f32.vlgmr.msrb.gmra.mxu0 %v8691_v28  ;;  %v8825_v14 = vld [vmem:[%s17967_s5 + $0x428] sm:$0xff]  ;;  %v8791_v33 = vld [vmem:[%s17967_s5 + $0x318] sm:$0xff]  ;;  %v9060_v55 = vld [vmem:[%s17969_s7] sm:$0xff] }
 0x577   : > { %9018 = vmatpush.msra.mxu0 %v8819_v15  ;;  %8989 = vmatpush.msrb.mxu2 %v8733_v42  ;;  %v8823_v51 = vld [vmem:[%s17967_s5 + $0x418] sm:$0xff]  ;;  %v8789_v32 = vld [vmem:[%s17967_s5 + $0x308] sm:$0xff]  ;;  %v9078_v42 = vld [vmem:[%s17969_s7 + $0x90] sm:$0xff] }
 0x578   : > { %9038 = vmatpush.msra.mxu1 %v8851_v22  ;;  %9008 = vmatpush.msrb.mxu3 %v8767_v44  ;;  %v8821_v20 = vld [vmem:[%s17967_s5 + $0x408] sm:$0xff]  ;;  %v9067_v8 = vld [vmem:[%s17969_s7 + $0x38] sm:$0xff] }
 0x579   : > { %9019 = vmatpush.msra.mxu0 %v8817_v17  ;;  %8990 = vmatpush.msrb.mxu2 %v8731_v13  ;;  %v9069_v56 = vld [vmem:[%s17969_s7 + $0x48] sm:$0xff]  ;;  %v9063_v49 = vld [vmem:[%s17969_s7 + $0x18] sm:$0xff] }
 0x57a   : > { %9039 = vmatpush.msra.mxu1 %v8849_v29  ;;  %9009 = vmatpush.msrb.mxu3 %v8765_v52  ;;  %v9065_v27 = vld [vmem:[%s17969_s7 + $0x28] sm:$0xff]  ;;  %v8852_v15 = vld [vmem:[#allocation12] sm:$0x3] }
 0x57b   : > { %9020 = vmatpush.msra.mxu0 %v8815_v6  ;;  %8991 = vmatpush.msrb.mxu2 %v8729_v46  ;;  %v9061_v18 = vld [vmem:[%s17969_s7 + $0x8] sm:$0xff]  ;;  %v8854_v22 = vperm.slane %v8852_v15, 0  ;;  %v9079_v36 = vld [vmem:[%s17969_s7 + $0x98] sm:$0xff] }
 0x57c   : > { %9040 = vmatpush.msra.mxu1 %v8847_v40  ;;  %9010 = vmatpush.msrb.mxu3 %v8763_v54  ;;  %v9077_v44 = vld [vmem:[%s17969_s7 + $0x88] sm:$0xff] }
 0x57d   : > { %9021 = vmatpush.msra.mxu0 %v8813_v48  ;;  %8992 = vmatpush.msrb.mxu2 %v8727_v47 }
 0x57e   : > { %9041 = vmatpush.msra.mxu1 %v8845_v43  ;;  %9011 = vmatpush.msrb.mxu3 %v8761_v12 }
 0x57f   : > { %9022 = vmatpush.msra.mxu0 %v8811_v58  ;;  %8993 = vmatpush.msrb.mxu2 %v8725_v26  ;;  %v9076_v58 = vld [vmem:[%s17969_s7 + $0x80] sm:$0xff] }
 0x580   : > { %9042 = vmatpush.msra.mxu1 %v8843_v9  ;;  %9012 = vmatpush.msrb.mxu3 %v8759_v34  ;;  %v8855_v9 = vperm.slane %v8852_v15, 1  ;;  %v9132_v34 = vld [vmem:[%s17998_s9 + $0x18] sm:$0xff] }
 0x581   : > { %9023 = vmatpush.msra.mxu0 %v8809_v1  ;;  %8994 = vmatmul.f32.vlgmr.msrb.gmra.mxu2 %v8688_v25  ;;  %v8797_v25 = vld [vmem:[%s17967_s5 + $0x348] sm:$0xff] }
 0x582   : > { %9043 = vmatpush.msra.mxu1 %v8841_v10  ;;  %9013 = vmatpush.msrb.mxu3 %v8757_v39  ;;  %v9129_v39 = vld [vmem:[%s17998_s9] sm:$0xff] }
 0x583   : > { %9024 = vmatpush.msra.mxu0 %v8807_v16  ;;  %8974 = vmatmul.f32.vlgmr.msrb.gmra.mxu1 %v8687_v4  ;;  %v8795_v4 = vld [vmem:[%s17967_s5 + $0x338] sm:$0xff] }
 0x584   : > { %9044 = vmatpush.msra.mxu1 %v8839_v53  ;;  %9014 = vmatmul.f32.vlgmr.msrb.gmra.mxu3 %v8689_v62  ;;  %v9072_v62 = vld [vmem:[%s17969_s7 + $0x60] sm:$0xff] }
 0x585   : > { %9025 = vmatpush.msra.mxu0 %v8805_v30  ;;  %9088 = vmatpush.msra.mxu2 %v9075_v11 }
 0x586   : > { %9045 = vmatpush.msra.mxu1 %v8837_v35  ;;  %9120 = vmatpush.msra.mxu3 %v9079_v36  ;;  %v9133_v35 = vld [vmem:[%s17997_s19 + $0x20] sm:$0xff] }
 0x587   : > { %9026 = vmatpush.msra.mxu0 %v8803_v3  ;;  %9089 = vmatpush.msra.mxu2 %v9074_v5  ;;  %v9131_v3 = vld [vmem:[%s17998_s9 + $0x10] sm:$0xff] }
 0x588   : > { %9046 = vmatpush.msra.mxu1 %v8835_v38  ;;  %9121 = vmatpush.msra.mxu3 %v9078_v42  ;;  %v9130_v38 = vld [vmem:[%s17998_s9 + $0x8] sm:$0xff] }
 0x589   : > { %9027 = vmatpush.msra.mxu0 %v8801_v45  ;;  %9090 = vmatpush.msra.mxu2 %v9073_v2  ;;  %v14464_v45 = vld [vmem:[#allocation14] ss:$0 sm:$0xff] }
 0x58a   : > { %9047 = vmatpush.msra.mxu1 %v8833_v19  ;;  %9122 = vmatpush.msra.mxu3 %v9077_v44 }
 0x58b   : > { %9028 = vmatpush.msra.mxu0 %v8799_v31  ;;  %9091 = vmatpush.msra.mxu2 %v9072_v62 }
 0x58c   : > { %9048 = vmatpush.msra.mxu1 %v8831_v23  ;;  %9123 = vmatpush.msra.mxu3 %v9076_v58 }
 0x58d   : > { %9029 = vmatpush.msra.mxu0 %v8797_v25  ;;  %9092 = vmatpush.msra.mxu2 %v9071_v41  ;;  %v14465_v25 = vld [vmem:[#allocation15] ss:$0 sm:$0xff] }
 0x58e   : > { %9049 = vmatpush.msra.mxu1 %v8829_v60  ;;  %9153 = vmatpush.msrb.mxu3 %v9133_v35 }
 0x58f   : > { %9030 = vmatpush.msra.mxu0 %v8795_v4  ;;  %9093 = vmatpush.msra.mxu2 %v9070_v24 }
 0x590   : > { %9050 = vmatpush.msra.mxu1 %v8827_v50  ;;  %9154 = vmatpush.msrb.mxu3 %v9132_v34 }
 0x591   : > { %9031 = vmatpush.msra.mxu0 %v8793_v0  ;;  %9094 = vmatpush.msra.mxu2 %v9069_v56 }
 0x592   : > { %9051 = vmatpush.msra.mxu1 %v8825_v14  ;;  %9155 = vmatpush.msrb.mxu3 %v9131_v3 }
 0x593   : > { %9032 = vmatpush.msra.mxu0 %v8791_v33  ;;  %9095 = vmatpush.msra.mxu2 %v9068_v61 }
 0x594   : > { %9052 = vmatpush.msra.mxu1 %v8823_v51  ;;  %9156 = vmatpush.msrb.mxu3 %v9130_v38 }
 0x595   : > { %9033 = vmatpush.msra.mxu0 %v8789_v32  ;;  %9096 = vmatpush.msra.mxu2 %v9067_v8 }
 0x596   : > { %9053 = vmatpush.msra.mxu1 %v8821_v20  ;;  %9034 = vmatmul.f32.vlgmr.msra.gmra.mxu0 %v8690_v7  ;;  %v9064_v7 = vld [vmem:[%s17969_s7 + $0x20] sm:$0xff] }
 0x597   : > { %9054 = vmatmul.f32.vlgmr.msra.gmra.mxu1 %v8691_v28  ;;  %9097 = vmatpush.msra.mxu2 %v9066_v37 }
 0x598   : > { %9157 = vmatpush.msrb.mxu3 %v9129_v39 }
 0x599   : > { %9098 = vmatpush.msra.mxu2 %v9065_v27 }
 0x59b   : > { %9099 = vmatpush.msra.mxu2 %v9064_v7 }
 0x59d   : > { %9100 = vmatpush.msra.mxu2 %v9063_v49 }
 0x59f   : > { %9101 = vmatpush.msra.mxu2 %v9062_v21 }
 0x5a1   : > { %9102 = vmatpush.msra.mxu2 %v9061_v18 }
 0x5a3   : > { %9103 = vmatpush.msra.mxu2 %v9060_v55 }
 0x5e5   : > { %v8875_v28 = vpop.f32.mrf.mxu0 }
 0x5e6   : > { %v8876_v63 = vadd.f32 %v8875_v28, %v8854_v22 }
 0x5e7   : > { %v8915_v29 = vpop.f32.mrf.mxu2 }
 0x5e8   : > { %v8895_v17 = vpop.f32.mrf.mxu1 }
 0x5e9   : > { %v8896_v59 = vadd.f32 %v8895_v17, %v8876_v63 }
 0x5ea   : > { %v8935_v40 = vpop.f32.mrf.mxu3 }
 0x5eb   : > { %v8916_v6 = vadd.f32 %v8915_v29, %v8896_v59 }
 0x5ed   : > { %v8936_v57 = vadd.f32 %v8935_v40, %v8916_v6 }
 0x5f3   : > { %v8955_v48 = vpop.f32.mrf.mxu0 }
 0x5f4   : > { %v8956_v43 = vadd.f32 %v8955_v48, %v8936_v57 }
 0x5f6   : > { %v9058_v13 = vmax.f32 %v8956_v43, 0.0 }
 0x5f8   : > { %9104 = vmatmul.f32.vlgmr.msra.gmra.mxu2 %v9058_v13 }
 0x600   : > { %v8975_v52 = vpop.f32.mrf.mxu1 }
 0x601   : > { %v8976_v46 = vadd.f32 %v8975_v52, %v8855_v9 }
 0x604   : > { %v8995_v1 = vpop.f32.mrf.mxu2 }
 0x605   : > { %v8996_v10 = vadd.f32 %v8995_v1, %v8976_v46 }
 0x607   : > { %v9015_v54 = vpop.f32.mrf.mxu3 }
 0x608   : > { %v9016_v47 = vadd.f32 %v9015_v54, %v8996_v10 }
 0x613   : > { %v9035_v16 = vpop.f32.mrf.mxu0 }
 0x614   : > { %v9055_v53 = vpop.f32.mrf.mxu1  ;;  %v9036_v12 = vadd.f32 %v9035_v16, %v9016_v47 }
 0x616   : > { %v9056_v26 = vadd.f32 %v9055_v53, %v9036_v12 }
 0x618   : > { %v9059_v30 = vmax.f32 %v9056_v26, 0.0 }
 0x61a   : > { %13334 = vmatmul.msk.f32.vlgmr.msra.gmra.mxu3 %vm9084_vm0, %v9059_v30 }
 0x67b   : > { %v9105_v19 = vpop.f32.mrf.mxu2 }
 0x67c   : > { %v9106_v11 = vadd.f32 %v14464_v45, %v9105_v19 }
 0x69d   : > { %v9125_v31 = vpop.f32.mrf.mxu3 }
 0x69e   : > { %v9126_v23 = vadd.f32 %v9125_v31, %v9106_v11 }
 0x6a0   : > { %v9128_v5 = vmax.f32 %v9126_v23, 0.0 }
 0x6a2   : > { %13335 = vmatmul.msk.f32.vlgmr.msrb.gmra.mxu3 %vm9138_vm1, %v9128_v5 }
 0x725   : > { %v9159_v60 = vpop.f32.mrf.mxu3 }
 0x726   : > { %v9160_v2 = vadd.f32 %v14465_v25, %v9159_v60 }
 0x728   : > { %9163 = vst.msk [vmem:[#allocation17] sm:$0xff] %vm9162_vm2, %v9160_v2 }
 0x729 PF: > { %p14416_p4 = scmp.eq.s32.totalorder %s14883_s21, 1  ;;  %s14803_s14 = smov [#allocation17]  }
 0x72a   : > { %s9170_s0 = sshll.u32 %s14803_s14, 4  ;;  %s17999_s4 = sld [smem:[#allocation32_spill]]  ;;  %s9171_s0 = int_to_ptr.vmem [resolvable:$true] %s9170_s0 }
 0x730   : > { %s9172_s29 = sshll.u32 %s17999_s4, 4  ;;  %s9173_s29 = int_to_ptr.hbm [resolvable:$true] %s9172_s29 }
 0x731   : > { %14375 = dma.vmem_to_hbm [thread:$0]  (%p14416_p4), %s9171_s0, 128, %s9173_s29, [#allocation5]  }
 0x732   : > { %14775 = dma.done.wait (%p14416_p4), [#allocation5], 128  }
 0x733   : > { %14777 = vsyncadd (%p14416_p4), [#allocation5], 4294967168 }
 0x734 PF: > { %s18000_s20 = sld [smem:[#allocation26_spill]]  ;;  %s18003_s17 = smov %s14784_s18 }
 0x735   : > { %s18001_s6 = sld [smem:[#allocation25_spill]] }
 0x736   : > { %s18002_s19 = sld [smem:[#allocation27_spill]] }
 0x73a   : > { %p28_p5 = scmp.ge.s32.totalorder %s18000_s20, 4  }
 0x73b   : > { %s18004_s18 = smov %s18001_s6 }
 0x73c   :  { %30 = sbr.rel (!%p28_p5) target bundleno = 15 (0xf), region = 154 }
 0x741   :  { %9186 = vsyncpa [#allocation4], 1 }
 0x742   :  { %9188 = vsyncpa [#allocation4 + $0x1], 1 }
 0x743   :  { %9189 = vsyncpa [#allocation7], 1 }
 0x744   :  { %9191 = vsyncpa [#allocation7 + $0x1], 1 }
 0x745   :  { %9192 = vsyncpa [#allocation10], 1 }
 0x746   :  { %9194 = vsyncpa [#allocation10 + $0x1], 1 }
 0x747   :  { %9195 = vsyncpa [#allocation13], 1 }
 0x748   :  { %9196 = vsyncpa [#allocation16], 1 }
 0x749   :  { %9197 = vsyncpa [#allocation5], 1 }
 0x74a   :  { %9199 = vsyncpa [#allocation5 + $0x1], 1 }

</bundles_post_ra>
